<compile_context>
chip_gen: v5e
topology: v5e:2x2
jax: 0.10.0
libtpu: 0.0.40
codegen_flags: <defaults>
</compile_context>

<pallas_src>
import functools

import jax
import jax.numpy as jnp
from jax.experimental import pallas as pl
from jax.experimental.pallas import tpu as pltpu


def _round_up(x, m):
    return ((x + m - 1) // m) * m


def _fused_cnn_kernel(x_ref, halo_ref, w_ref, b_ref, o_ref, abuf, *,
                      num_layers, KH, KW, Wp, ph, pw, FLATP, MARGIN, c_pad):
    """Whole conv stack for ONE sample, activations resident in VMEM.

    x_ref:    (c_pad, FLATP)   channel-padded, spatially-padded, flat input
    halo_ref: (1, FLATP)       1.0 at real pixels, 0.0 at halo / lane padding
    w_ref:    (L, KH, c_pad, KW*c_pad)   lane-dense per-kh weight slabs
    b_ref:    (L, c_pad, 1)
    o_ref:    (1, FLATP)       final-layer output (padded-flat layout)
    abuf:     (c_pad, 2*MARGIN + FLATP)  margin-extended activation scratch
    """
    halo = halo_ref[...]                                   # (1, FLATP)

    # Zero ONLY the margin lane-tiles (never written elsewhere).  Done every
    # step so correctness does not depend on which core runs program_id == 0.
    abuf[:, 0:MARGIN] = jnp.zeros((c_pad, MARGIN), jnp.float32)
    abuf[:, MARGIN + FLATP:] = jnp.zeros((c_pad, MARGIN), jnp.float32)
    # Lane-aligned store of this sample's input (extra channels are zero).
    abuf[:, MARGIN:MARGIN + FLATP] = x_ref[...]

    for l in range(num_layers):
        bias = b_ref[l]                                    # (c_pad, 1)
        # Bias-initialized accumulator + a second partial to break the
        # serial f32 add chain across the KH dots.
        acc0 = jnp.broadcast_to(bias, (c_pad, FLATP)).astype(jnp.float32)
        acc1 = jnp.zeros((c_pad, FLATP), jnp.float32)

        for kh in range(KH):
            # One wide base window per kh; the KW taps are static lane
            # shifts of it, stacked along the contraction axis (deep K).
            start = MARGIN + (kh - ph) * Wp - pw
            base = abuf[:, start:start + FLATP + KW - 1]   # (c_pad, FLATP+KW-1)
            rhs = jnp.concatenate(
                [base[:, kw:kw + FLATP] for kw in range(KW)],
                axis=0)                                    # (KW*c_pad, FLATP)
            d = jnp.dot(w_ref[l, kh], rhs,
                        preferred_element_type=jnp.float32)
            if kh % 2 == 0:
                acc0 = acc0 + d
            else:
                acc1 = acc1 + d

        acc = acc0 + acc1
        if l < num_layers - 1:
            # ReLU, then restore the zero 'same'-padding halo (and the zero
            # lane-padding tail) so the next layer sees a padded image again.
            acc = jnp.maximum(acc, 0.0) * halo
            abuf[:, MARGIN:MARGIN + FLATP] = acc           # lane-aligned store
        else:
            o_ref[...] = acc[0:1, :]                       # lane-aligned store


@jax.jit
def decrop_cnn_pred(x_nchw, params):
    """Fused conv stack.  x_nchw: (N, C, H, W); returns pred of shape (N, H, W)."""
    N, C, H, W = x_nchw.shape
    KH, KW = params[0][0].shape[0], params[0][0].shape[1]
    ph, pw = KH // 2, KW // 2
    Hp, Wp = H + 2 * ph, W + 2 * pw
    FLAT = Hp * Wp
    FLATP = _round_up(FLAT, 128)            # lane-aligned flat spatial extent
    MARGIN = _round_up(ph * Wp + pw, 128)   # lane-aligned halo margin
    L = len(params)

    # One common channel count (multiple of 8) for every layer's cin/cout, so
    # all matmuls share shape (c_pad, KW*c_pad) x (KW*c_pad, FLATP).
    c_pad = max(max(w.shape[2], w.shape[3]) for w, _ in params)
    c_pad = _round_up(max(c_pad, C), 8)

    # Pack weights lane-dense and per-kh: (L, KH, c_pad, KW*c_pad).
    w_list, b_list = [], []
    for (w, b) in params:
        _, _, cin, cout = w.shape
        wt = jnp.transpose(w, (0, 3, 1, 2))                # (KH, cout, KW, cin)
        wt = jnp.pad(wt, ((0, 0), (0, c_pad - cout), (0, 0), (0, c_pad - cin)))
        wt = wt.reshape(KH, c_pad, KW * c_pad)
        bt = jnp.pad(b, ((0, c_pad - cout),)).reshape(c_pad, 1)
        w_list.append(wt.astype(jnp.float32))
        b_list.append(bt.astype(jnp.float32))
    w_all = jnp.stack(w_list)                              # (L, KH, c_pad, KW*c_pad)
    b_all = jnp.stack(b_list)                              # (L, c_pad, 1)

    # Channel-pad + spatially zero-pad the input ONCE, flatten, lane-pad.
    x_p = jnp.pad(x_nchw.astype(jnp.float32),
                  ((0, 0), (0, c_pad - C), (ph, ph), (pw, pw)))
    x_flat = x_p.reshape(N, c_pad, FLAT)
    x_flat = jnp.pad(x_flat, ((0, 0), (0, 0), (0, FLATP - FLAT)))

    # 1.0 at real pixels, 0.0 on the halo border and the lane-padding tail.
    halo = jnp.pad(jnp.ones((H, W), jnp.float32), ((ph, ph), (pw, pw)))
    halo = jnp.pad(halo.reshape(1, FLAT), ((0, 0), (0, FLATP - FLAT)))

    kernel = functools.partial(
        _fused_cnn_kernel, num_layers=L, KH=KH, KW=KW, Wp=Wp, ph=ph, pw=pw,
        FLATP=FLATP, MARGIN=MARGIN, c_pad=c_pad)

    out = pl.pallas_call(
        kernel,
        out_shape=jax.ShapeDtypeStruct((N, 1, FLATP), jnp.float32),
        grid=(N,),
        in_specs=[
            pl.BlockSpec((None, c_pad, FLATP), lambda n: (n, 0, 0)),
            pl.BlockSpec((1, FLATP), lambda n: (0, 0)),
            pl.BlockSpec((L, KH, c_pad, KW * c_pad), lambda n: (0, 0, 0, 0)),
            pl.BlockSpec((L, c_pad, 1), lambda n: (0, 0, 0)),
        ],
        out_specs=pl.BlockSpec((None, 1, FLATP), lambda n: (n, 0, 0)),
        scratch_shapes=[pltpu.VMEM((c_pad, FLATP + 2 * MARGIN), jnp.float32)],
        compiler_params=pltpu.CompilerParams(
            dimension_semantics=("parallel",)),
    )(x_flat, halo, w_all, b_all)

    # Drop the lane padding and the 'same'-padding halo of the final output.
    pred = out[:, 0, :FLAT].reshape(N, Hp, Wp)[:, ph:ph + H, pw:pw + W]
    return pred


def init_params(key, n_in_channels, n_hidden_layers, n_kernels, kernel_size):
    """Deterministic PyTorch-Conv2d-style init (uniform +- 1/sqrt(fan_in))."""
    params = []
    cin = n_in_channels
    for i in range(n_hidden_layers + 1):
        cout = n_kernels if i < n_hidden_layers else 1
        key, kw_key, kb_key = jax.random.split(key, 3)
        fan_in = cin * kernel_size * kernel_size
        bound = 1.0 / float(fan_in) ** 0.5
        w = jax.random.uniform(
            kw_key, (kernel_size, kernel_size, cin, cout), jnp.float32,
            -bound, bound)
        b = jax.random.uniform(kb_key, (cout,), jnp.float32, -bound, bound)
        params.append((w, b))
        cin = cout
    return params


def decrop_cnn_forward(x_nchw, params):
    """Mirrors DeCropCNN.forward.  x_nchw: (N, C, H, W) like PyTorch."""
    crop_array = x_nchw[:, -1, :, :]
    target_masks = crop_array != 0          # torch .to(bool): nonzero -> True

    pred = decrop_cnn_pred(x_nchw, params)   # (N, H, W) from ONE fused kernel

    # Ragged per-sample masked gather: data-dependent output lengths, so it is
    # done in host-side JAX (one device->host sync per sample).
    # TODO(synk): ragged boolean-mask gather has no fixed-shape Pallas kernel.
    predictions = [pred[i][target_masks[i]] for i in range(pred.shape[0])]
    return predictions, pred, target_masks


def _conv_ref(x_nhwc, w, b, apply_relu):
    out = jax.lax.conv_general_dilated(
        x_nhwc, w, window_strides=(1, 1), padding="SAME",
        dimension_numbers=("NHWC", "HWIO", "NHWC"),
        precision=jax.lax.Precision.HIGHEST)
    out = out + b
    if apply_relu:
        out = jnp.maximum(out, 0.0)
    return out


if __name__ == "__main__":
    key = jax.random.PRNGKey(0)
    k_x, k_m, k_p = jax.random.split(key, 3)

    # Small shapes: batch=2, in-channels=4, spatial=16x16,
    # n_hidden_layers=3, n_kernels=8, kernel_size=7 (padding=3).
    N, C, H, W = 2, 4, 16, 16
    n_hidden_layers, n_kernels, kernel_size = 3, 8, 7

    x = jax.random.normal(k_x, (N, C, H, W), jnp.float32)
    # Make the last channel an actual 0/1 crop mask (like the PyTorch usage).
    crop_mask = (jax.random.uniform(k_m, (N, H, W)) > 0.5).astype(jnp.float32)
    x = x.at[:, -1, :, :].set(crop_mask)

    params = init_params(k_p, C, n_hidden_layers, n_kernels, kernel_size)

    predictions, pred, target_masks = decrop_cnn_forward(x, params)

    # Pure-JAX reference for the conv stack (sanity check of the Pallas path).
    h_ref = jnp.transpose(x, (0, 2, 3, 1))
    for i, (w, b) in enumerate(params):
        h_ref = _conv_ref(h_ref, w, b, i < len(params) - 1)
    pred_ref = h_ref[..., 0]
    assert jnp.allclose(pred, pred_ref, atol=5e-3, rtol=5e-3), "mismatch vs ref"

    for p in predictions:
        jax.block_until_ready(p)
    jax.block_until_ready(pred)
    print("KERNEL_OK")
</pallas_src>

<mosaic_0001>
module attributes {stable_mosaic.version = 11 : i64} {
  func.func @_fused_cnn_kernel(%arg0: i32, %arg1: memref<1x8x512xf32, #tpu.memory_space<vmem>>, %arg2: memref<1x512xf32, #tpu.memory_space<vmem>>, %arg3: memref<4x7x8x56xf32, #tpu.memory_space<vmem>>, %arg4: memref<4x8x1xf32, #tpu.memory_space<vmem>>, %arg5: memref<1x1x512xf32, #tpu.memory_space<vmem>>, %arg6: memref<8x768xf32, #tpu.memory_space<vmem>>) attributes {dimension_semantics = [#tpu.dimension_semantics<parallel>], iteration_bounds = array<i64: 2>, scalar_prefetch = 0 : i64, scratch_operands = 1 : i64, tpu.core_type = #tpu.core_type<tc>, window_params = [{transform_indices = @transform_0, window_bounds = array<i64: 1, 8, 512>}, {pipeline_mode = #tpu.pipeline_mode<synchronous>, transform_indices = @transform_1, window_bounds = array<i64: 1, 512>}, {pipeline_mode = #tpu.pipeline_mode<synchronous>, transform_indices = @transform_2, window_bounds = array<i64: 4, 7, 8, 56>}, {pipeline_mode = #tpu.pipeline_mode<synchronous>, transform_indices = @transform_3, window_bounds = array<i64: 4, 8, 1>}, {transform_indices = @transform_4, window_bounds = array<i64: 1, 1, 512>}]} {
    %c0 = arith.constant 0 : index
    %c0_0 = arith.constant 0 : index
    %0 = vector.load %arg2[%c0, %c0_0] : memref<1x512xf32, #tpu.memory_space<vmem>>, vector<1x512xf32>
    %cst = arith.constant 0.000000e+00 : f32
    %1 = vector.broadcast %cst : f32 to vector<8x128xf32>
    %c0_1 = arith.constant 0 : index
    %c0_2 = arith.constant 0 : index
    %2 = vector.load %arg6[%c0_1, %c0_2] : memref<8x768xf32, #tpu.memory_space<vmem>>, vector<8x128xf32>
    tpu.vector_store %arg6[%c0_1, %c0_2], %1 {strides = array<i32>} : memref<8x768xf32, #tpu.memory_space<vmem>>, vector<8x128xf32>,
    %cst_3 = arith.constant 0.000000e+00 : f32
    %3 = vector.broadcast %cst_3 : f32 to vector<8x128xf32>
    %c0_4 = arith.constant 0 : index
    %c640 = arith.constant 640 : index
    %4 = vector.load %arg6[%c0_4, %c640] : memref<8x768xf32, #tpu.memory_space<vmem>>, vector<8x128xf32>
    tpu.vector_store %arg6[%c0_4, %c640], %3 {strides = array<i32>} : memref<8x768xf32, #tpu.memory_space<vmem>>, vector<8x128xf32>,
    %c0_5 = arith.constant 0 : index
    %c0_6 = arith.constant 0 : index
    %c0_7 = arith.constant 0 : index
    %5 = vector.load %arg1[%c0_5, %c0_6, %c0_7] : memref<1x8x512xf32, #tpu.memory_space<vmem>>, vector<1x8x512xf32>
    %6 = vector.shape_cast %5 : vector<1x8x512xf32> to vector<8x512xf32>
    %c0_8 = arith.constant 0 : index
    %c128 = arith.constant 128 : index
    %7 = vector.load %arg6[%c0_8, %c128] : memref<8x768xf32, #tpu.memory_space<vmem>>, vector<8x512xf32>
    tpu.vector_store %arg6[%c0_8, %c128], %6 {strides = array<i32>} : memref<8x768xf32, #tpu.memory_space<vmem>>, vector<8x512xf32>,
    %c0_9 = arith.constant 0 : index
    %c0_10 = arith.constant 0 : index
    %c0_11 = arith.constant 0 : index
    %8 = vector.load %arg4[%c0_9, %c0_10, %c0_11] : memref<4x8x1xf32, #tpu.memory_space<vmem>>, vector<1x8x1xf32>
    %9 = vector.shape_cast %8 : vector<1x8x1xf32> to vector<8x1xf32>
    %10 = vector.shape_cast %9 : vector<8x1xf32> to vector<8x1xf32>
    %11 = vector.broadcast %10 : vector<8x1xf32> to vector<8x512xf32>
    %cst_12 = arith.constant 0.000000e+00 : f32
    %12 = vector.broadcast %cst_12 : f32 to vector<8x512xf32>
    %c0_13 = arith.constant 0 : index
    %c59 = arith.constant 59 : index
    %13 = vector.load %arg6[%c0_13, %c59] : memref<8x768xf32, #tpu.memory_space<vmem>>, vector<8x518xf32>
    %14 = vector.extract_strided_slice %13 {offsets = [0, 0], sizes = [8, 512], strides = [1, 1]} : vector<8x518xf32> to vector<8x512xf32>
    %15 = vector.extract_strided_slice %13 {offsets = [0, 1], sizes = [8, 512], strides = [1, 1]} : vector<8x518xf32> to vector<8x512xf32>
    %16 = vector.extract_strided_slice %13 {offsets = [0, 2], sizes = [8, 512], strides = [1, 1]} : vector<8x518xf32> to vector<8x512xf32>
    %17 = vector.extract_strided_slice %13 {offsets = [0, 3], sizes = [8, 512], strides = [1, 1]} : vector<8x518xf32> to vector<8x512xf32>
    %18 = vector.extract_strided_slice %13 {offsets = [0, 4], sizes = [8, 512], strides = [1, 1]} : vector<8x518xf32> to vector<8x512xf32>
    %19 = vector.extract_strided_slice %13 {offsets = [0, 5], sizes = [8, 512], strides = [1, 1]} : vector<8x518xf32> to vector<8x512xf32>
    %20 = vector.extract_strided_slice %13 {offsets = [0, 6], sizes = [8, 512], strides = [1, 1]} : vector<8x518xf32> to vector<8x512xf32>
    %21 = tpu.concatenate %14, %15, %16, %17, %18, %19, %20 in 0 : vector<8x512xf32>, vector<8x512xf32>, vector<8x512xf32>, vector<8x512xf32>, vector<8x512xf32>, vector<8x512xf32>, vector<8x512xf32> -> vector<56x512xf32>
    %c0_14 = arith.constant 0 : index
    %c0_15 = arith.constant 0 : index
    %c0_16 = arith.constant 0 : index
    %c0_17 = arith.constant 0 : index
    %22 = vector.load %arg3[%c0_14, %c0_15, %c0_16, %c0_17] : memref<4x7x8x56xf32, #tpu.memory_space<vmem>>, vector<1x1x8x56xf32>
    %23 = vector.shape_cast %22 : vector<1x1x8x56xf32> to vector<8x56xf32>
    %cst_18 = arith.constant dense<0.000000e+00> : vector<8x512xf32>
    %24 = tpu.matmul %23, %21, %cst_18 {dimension_numbers = #tpu.dot_dimension_numbers<[1], [0], [0], [1], [0, 0, 1, 1], [], []>} : vector<8x56xf32>, vector<56x512xf32>, vector<8x512xf32> -> vector<8x512xf32>
    %25 = arith.addf %11, %24 : vector<8x512xf32>
    %c0_19 = arith.constant 0 : index
    %c81 = arith.constant 81 : index
    %26 = vector.load %arg6[%c0_19, %c81] : memref<8x768xf32, #tpu.memory_space<vmem>>, vector<8x518xf32>
    %27 = vector.extract_strided_slice %26 {offsets = [0, 0], sizes = [8, 512], strides = [1, 1]} : vector<8x518xf32> to vector<8x512xf32>
    %28 = vector.extract_strided_slice %26 {offsets = [0, 1], sizes = [8, 512], strides = [1, 1]} : vector<8x518xf32> to vector<8x512xf32>
    %29 = vector.extract_strided_slice %26 {offsets = [0, 2], sizes = [8, 512], strides = [1, 1]} : vector<8x518xf32> to vector<8x512xf32>
    %30 = vector.extract_strided_slice %26 {offsets = [0, 3], sizes = [8, 512], strides = [1, 1]} : vector<8x518xf32> to vector<8x512xf32>
    %31 = vector.extract_strided_slice %26 {offsets = [0, 4], sizes = [8, 512], strides = [1, 1]} : vector<8x518xf32> to vector<8x512xf32>
    %32 = vector.extract_strided_slice %26 {offsets = [0, 5], sizes = [8, 512], strides = [1, 1]} : vector<8x518xf32> to vector<8x512xf32>
    %33 = vector.extract_strided_slice %26 {offsets = [0, 6], sizes = [8, 512], strides = [1, 1]} : vector<8x518xf32> to vector<8x512xf32>
    %34 = tpu.concatenate %27, %28, %29, %30, %31, %32, %33 in 0 : vector<8x512xf32>, vector<8x512xf32>, vector<8x512xf32>, vector<8x512xf32>, vector<8x512xf32>, vector<8x512xf32>, vector<8x512xf32> -> vector<56x512xf32>
    %c0_20 = arith.constant 0 : index
    %c1 = arith.constant 1 : index
    %c0_21 = arith.constant 0 : index
    %c0_22 = arith.constant 0 : index
    %35 = vector.load %arg3[%c0_20, %c1, %c0_21, %c0_22] : memref<4x7x8x56xf32, #tpu.memory_space<vmem>>, vector<1x1x8x56xf32>
    %36 = vector.shape_cast %35 : vector<1x1x8x56xf32> to vector<8x56xf32>
    %cst_23 = arith.constant dense<0.000000e+00> : vector<8x512xf32>
    %37 = tpu.matmul %36, %34, %cst_23 {dimension_numbers = #tpu.dot_dimension_numbers<[1], [0], [0], [1], [0, 0, 1, 1], [], []>} : vector<8x56xf32>, vector<56x512xf32>, vector<8x512xf32> -> vector<8x512xf32>
    %38 = arith.addf %12, %37 : vector<8x512xf32>
    %c0_24 = arith.constant 0 : index
    %c103 = arith.constant 103 : index
    %39 = vector.load %arg6[%c0_24, %c103] : memref<8x768xf32, #tpu.memory_space<vmem>>, vector<8x518xf32>
    %40 = vector.extract_strided_slice %39 {offsets = [0, 0], sizes = [8, 512], strides = [1, 1]} : vector<8x518xf32> to vector<8x512xf32>
    %41 = vector.extract_strided_slice %39 {offsets = [0, 1], sizes = [8, 512], strides = [1, 1]} : vector<8x518xf32> to vector<8x512xf32>
    %42 = vector.extract_strided_slice %39 {offsets = [0, 2], sizes = [8, 512], strides = [1, 1]} : vector<8x518xf32> to vector<8x512xf32>
    %43 = vector.extract_strided_slice %39 {offsets = [0, 3], sizes = [8, 512], strides = [1, 1]} : vector<8x518xf32> to vector<8x512xf32>
    %44 = vector.extract_strided_slice %39 {offsets = [0, 4], sizes = [8, 512], strides = [1, 1]} : vector<8x518xf32> to vector<8x512xf32>
    %45 = vector.extract_strided_slice %39 {offsets = [0, 5], sizes = [8, 512], strides = [1, 1]} : vector<8x518xf32> to vector<8x512xf32>
    %46 = vector.extract_strided_slice %39 {offsets = [0, 6], sizes = [8, 512], strides = [1, 1]} : vector<8x518xf32> to vector<8x512xf32>
    %47 = tpu.concatenate %40, %41, %42, %43, %44, %45, %46 in 0 : vector<8x512xf32>, vector<8x512xf32>, vector<8x512xf32>, vector<8x512xf32>, vector<8x512xf32>, vector<8x512xf32>, vector<8x512xf32> -> vector<56x512xf32>
    %c0_25 = arith.constant 0 : index
    %c2 = arith.constant 2 : index
    %c0_26 = arith.constant 0 : index
    %c0_27 = arith.constant 0 : index
    %48 = vector.load %arg3[%c0_25, %c2, %c0_26, %c0_27] : memref<4x7x8x56xf32, #tpu.memory_space<vmem>>, vector<1x1x8x56xf32>
    %49 = vector.shape_cast %48 : vector<1x1x8x56xf32> to vector<8x56xf32>
    %cst_28 = arith.constant dense<0.000000e+00> : vector<8x512xf32>
    %50 = tpu.matmul %49, %47, %cst_28 {dimension_numbers = #tpu.dot_dimension_numbers<[1], [0], [0], [1], [0, 0, 1, 1], [], []>} : vector<8x56xf32>, vector<56x512xf32>, vector<8x512xf32> -> vector<8x512xf32>
    %51 = arith.addf %25, %50 : vector<8x512xf32>
    %c0_29 = arith.constant 0 : index
    %c125 = arith.constant 125 : index
    %52 = vector.load %arg6[%c0_29, %c125] : memref<8x768xf32, #tpu.memory_space<vmem>>, vector<8x518xf32>
    %53 = vector.extract_strided_slice %52 {offsets = [0, 0], sizes = [8, 512], strides = [1, 1]} : vector<8x518xf32> to vector<8x512xf32>
    %54 = vector.extract_strided_slice %52 {offsets = [0, 1], sizes = [8, 512], strides = [1, 1]} : vector<8x518xf32> to vector<8x512xf32>
    %55 = vector.extract_strided_slice %52 {offsets = [0, 2], sizes = [8, 512], strides = [1, 1]} : vector<8x518xf32> to vector<8x512xf32>
    %56 = vector.extract_strided_slice %52 {offsets = [0, 3], sizes = [8, 512], strides = [1, 1]} : vector<8x518xf32> to vector<8x512xf32>
    %57 = vector.extract_strided_slice %52 {offsets = [0, 4], sizes = [8, 512], strides = [1, 1]} : vector<8x518xf32> to vector<8x512xf32>
    %58 = vector.extract_strided_slice %52 {offsets = [0, 5], sizes = [8, 512], strides = [1, 1]} : vector<8x518xf32> to vector<8x512xf32>
    %59 = vector.extract_strided_slice %52 {offsets = [0, 6], sizes = [8, 512], strides = [1, 1]} : vector<8x518xf32> to vector<8x512xf32>
    %60 = tpu.concatenate %53, %54, %55, %56, %57, %58, %59 in 0 : vector<8x512xf32>, vector<8x512xf32>, vector<8x512xf32>, vector<8x512xf32>, vector<8x512xf32>, vector<8x512xf32>, vector<8x512xf32> -> vector<56x512xf32>
    %c0_30 = arith.constant 0 : index
    %c3 = arith.constant 3 : index
    %c0_31 = arith.constant 0 : index
    %c0_32 = arith.constant 0 : index
    %61 = vector.load %arg3[%c0_30, %c3, %c0_31, %c0_32] : memref<4x7x8x56xf32, #tpu.memory_space<vmem>>, vector<1x1x8x56xf32>
    %62 = vector.shape_cast %61 : vector<1x1x8x56xf32> to vector<8x56xf32>
    %cst_33 = arith.constant dense<0.000000e+00> : vector<8x512xf32>
    %63 = tpu.matmul %62, %60, %cst_33 {dimension_numbers = #tpu.dot_dimension_numbers<[1], [0], [0], [1], [0, 0, 1, 1], [], []>} : vector<8x56xf32>, vector<56x512xf32>, vector<8x512xf32> -> vector<8x512xf32>
    %64 = arith.addf %38, %63 : vector<8x512xf32>
    %c0_34 = arith.constant 0 : index
    %c147 = arith.constant 147 : index
    %65 = vector.load %arg6[%c0_34, %c147] : memref<8x768xf32, #tpu.memory_space<vmem>>, vector<8x518xf32>
    %66 = vector.extract_strided_slice %65 {offsets = [0, 0], sizes = [8, 512], strides = [1, 1]} : vector<8x518xf32> to vector<8x512xf32>
    %67 = vector.extract_strided_slice %65 {offsets = [0, 1], sizes = [8, 512], strides = [1, 1]} : vector<8x518xf32> to vector<8x512xf32>
    %68 = vector.extract_strided_slice %65 {offsets = [0, 2], sizes = [8, 512], strides = [1, 1]} : vector<8x518xf32> to vector<8x512xf32>
    %69 = vector.extract_strided_slice %65 {offsets = [0, 3], sizes = [8, 512], strides = [1, 1]} : vector<8x518xf32> to vector<8x512xf32>
    %70 = vector.extract_strided_slice %65 {offsets = [0, 4], sizes = [8, 512], strides = [1, 1]} : vector<8x518xf32> to vector<8x512xf32>
    %71 = vector.extract_strided_slice %65 {offsets = [0, 5], sizes = [8, 512], strides = [1, 1]} : vector<8x518xf32> to vector<8x512xf32>
    %72 = vector.extract_strided_slice %65 {offsets = [0, 6], sizes = [8, 512], strides = [1, 1]} : vector<8x518xf32> to vector<8x512xf32>
    %73 = tpu.concatenate %66, %67, %68, %69, %70, %71, %72 in 0 : vector<8x512xf32>, vector<8x512xf32>, vector<8x512xf32>, vector<8x512xf32>, vector<8x512xf32>, vector<8x512xf32>, vector<8x512xf32> -> vector<56x512xf32>
    %c0_35 = arith.constant 0 : index
    %c4 = arith.constant 4 : index
    %c0_36 = arith.constant 0 : index
    %c0_37 = arith.constant 0 : index
    %74 = vector.load %arg3[%c0_35, %c4, %c0_36, %c0_37] : memref<4x7x8x56xf32, #tpu.memory_space<vmem>>, vector<1x1x8x56xf32>
    %75 = vector.shape_cast %74 : vector<1x1x8x56xf32> to vector<8x56xf32>
    %cst_38 = arith.constant dense<0.000000e+00> : vector<8x512xf32>
    %76 = tpu.matmul %75, %73, %cst_38 {dimension_numbers = #tpu.dot_dimension_numbers<[1], [0], [0], [1], [0, 0, 1, 1], [], []>} : vector<8x56xf32>, vector<56x512xf32>, vector<8x512xf32> -> vector<8x512xf32>
    %77 = arith.addf %51, %76 : vector<8x512xf32>
    %c0_39 = arith.constant 0 : index
    %c169 = arith.constant 169 : index
    %78 = vector.load %arg6[%c0_39, %c169] : memref<8x768xf32, #tpu.memory_space<vmem>>, vector<8x518xf32>
    %79 = vector.extract_strided_slice %78 {offsets = [0, 0], sizes = [8, 512], strides = [1, 1]} : vector<8x518xf32> to vector<8x512xf32>
    %80 = vector.extract_strided_slice %78 {offsets = [0, 1], sizes = [8, 512], strides = [1, 1]} : vector<8x518xf32> to vector<8x512xf32>
    %81 = vector.extract_strided_slice %78 {offsets = [0, 2], sizes = [8, 512], strides = [1, 1]} : vector<8x518xf32> to vector<8x512xf32>
    %82 = vector.extract_strided_slice %78 {offsets = [0, 3], sizes = [8, 512], strides = [1, 1]} : vector<8x518xf32> to vector<8x512xf32>
    %83 = vector.extract_strided_slice %78 {offsets = [0, 4], sizes = [8, 512], strides = [1, 1]} : vector<8x518xf32> to vector<8x512xf32>
    %84 = vector.extract_strided_slice %78 {offsets = [0, 5], sizes = [8, 512], strides = [1, 1]} : vector<8x518xf32> to vector<8x512xf32>
    %85 = vector.extract_strided_slice %78 {offsets = [0, 6], sizes = [8, 512], strides = [1, 1]} : vector<8x518xf32> to vector<8x512xf32>
    %86 = tpu.concatenate %79, %80, %81, %82, %83, %84, %85 in 0 : vector<8x512xf32>, vector<8x512xf32>, vector<8x512xf32>, vector<8x512xf32>, vector<8x512xf32>, vector<8x512xf32>, vector<8x512xf32> -> vector<56x512xf32>
    %c0_40 = arith.constant 0 : index
    %c5 = arith.constant 5 : index
    %c0_41 = arith.constant 0 : index
    %c0_42 = arith.constant 0 : index
    %87 = vector.load %arg3[%c0_40, %c5, %c0_41, %c0_42] : memref<4x7x8x56xf32, #tpu.memory_space<vmem>>, vector<1x1x8x56xf32>
    %88 = vector.shape_cast %87 : vector<1x1x8x56xf32> to vector<8x56xf32>
    %cst_43 = arith.constant dense<0.000000e+00> : vector<8x512xf32>
    %89 = tpu.matmul %88, %86, %cst_43 {dimension_numbers = #tpu.dot_dimension_numbers<[1], [0], [0], [1], [0, 0, 1, 1], [], []>} : vector<8x56xf32>, vector<56x512xf32>, vector<8x512xf32> -> vector<8x512xf32>
    %90 = arith.addf %64, %89 : vector<8x512xf32>
    %c0_44 = arith.constant 0 : index
    %c191 = arith.constant 191 : index
    %91 = vector.load %arg6[%c0_44, %c191] : memref<8x768xf32, #tpu.memory_space<vmem>>, vector<8x518xf32>
    %92 = vector.extract_strided_slice %91 {offsets = [0, 0], sizes = [8, 512], strides = [1, 1]} : vector<8x518xf32> to vector<8x512xf32>
    %93 = vector.extract_strided_slice %91 {offsets = [0, 1], sizes = [8, 512], strides = [1, 1]} : vector<8x518xf32> to vector<8x512xf32>
    %94 = vector.extract_strided_slice %91 {offsets = [0, 2], sizes = [8, 512], strides = [1, 1]} : vector<8x518xf32> to vector<8x512xf32>
    %95 = vector.extract_strided_slice %91 {offsets = [0, 3], sizes = [8, 512], strides = [1, 1]} : vector<8x518xf32> to vector<8x512xf32>
    %96 = vector.extract_strided_slice %91 {offsets = [0, 4], sizes = [8, 512], strides = [1, 1]} : vector<8x518xf32> to vector<8x512xf32>
    %97 = vector.extract_strided_slice %91 {offsets = [0, 5], sizes = [8, 512], strides = [1, 1]} : vector<8x518xf32> to vector<8x512xf32>
    %98 = vector.extract_strided_slice %91 {offsets = [0, 6], sizes = [8, 512], strides = [1, 1]} : vector<8x518xf32> to vector<8x512xf32>
    %99 = tpu.concatenate %92, %93, %94, %95, %96, %97, %98 in 0 : vector<8x512xf32>, vector<8x512xf32>, vector<8x512xf32>, vector<8x512xf32>, vector<8x512xf32>, vector<8x512xf32>, vector<8x512xf32> -> vector<56x512xf32>
    %c0_45 = arith.constant 0 : index
    %c6 = arith.constant 6 : index
    %c0_46 = arith.constant 0 : index
    %c0_47 = arith.constant 0 : index
    %100 = vector.load %arg3[%c0_45, %c6, %c0_46, %c0_47] : memref<4x7x8x56xf32, #tpu.memory_space<vmem>>, vector<1x1x8x56xf32>
    %101 = vector.shape_cast %100 : vector<1x1x8x56xf32> to vector<8x56xf32>
    %cst_48 = arith.constant dense<0.000000e+00> : vector<8x512xf32>
    %102 = tpu.matmul %101, %99, %cst_48 {dimension_numbers = #tpu.dot_dimension_numbers<[1], [0], [0], [1], [0, 0, 1, 1], [], []>} : vector<8x56xf32>, vector<56x512xf32>, vector<8x512xf32> -> vector<8x512xf32>
    %103 = arith.addf %77, %102 : vector<8x512xf32>
    %104 = arith.addf %103, %90 : vector<8x512xf32>
    %cst_49 = arith.constant 0.000000e+00 : f32
    %105 = vector.broadcast %cst_49 : f32 to vector<8x512xf32>
    %106 = arith.maximumf %104, %105 : vector<8x512xf32>
    %107 = vector.broadcast %0 : vector<1x512xf32> to vector<8x512xf32>
    %108 = arith.mulf %106, %107 : vector<8x512xf32>
    %c0_50 = arith.constant 0 : index
    %c128_51 = arith.constant 128 : index
    %109 = vector.load %arg6[%c0_50, %c128_51] : memref<8x768xf32, #tpu.memory_space<vmem>>, vector<8x512xf32>
    tpu.vector_store %arg6[%c0_50, %c128_51], %108 {strides = array<i32>} : memref<8x768xf32, #tpu.memory_space<vmem>>, vector<8x512xf32>,
    %c1_52 = arith.constant 1 : index
    %c0_53 = arith.constant 0 : index
    %c0_54 = arith.constant 0 : index
    %110 = vector.load %arg4[%c1_52, %c0_53, %c0_54] : memref<4x8x1xf32, #tpu.memory_space<vmem>>, vector<1x8x1xf32>
    %111 = vector.shape_cast %110 : vector<1x8x1xf32> to vector<8x1xf32>
    %112 = vector.shape_cast %111 : vector<8x1xf32> to vector<8x1xf32>
    %113 = vector.broadcast %112 : vector<8x1xf32> to vector<8x512xf32>
    %cst_55 = arith.constant 0.000000e+00 : f32
    %114 = vector.broadcast %cst_55 : f32 to vector<8x512xf32>
    %c0_56 = arith.constant 0 : index
    %c59_57 = arith.constant 59 : index
    %115 = vector.load %arg6[%c0_56, %c59_57] : memref<8x768xf32, #tpu.memory_space<vmem>>, vector<8x518xf32>
    %116 = vector.extract_strided_slice %115 {offsets = [0, 0], sizes = [8, 512], strides = [1, 1]} : vector<8x518xf32> to vector<8x512xf32>
    %117 = vector.extract_strided_slice %115 {offsets = [0, 1], sizes = [8, 512], strides = [1, 1]} : vector<8x518xf32> to vector<8x512xf32>
    %118 = vector.extract_strided_slice %115 {offsets = [0, 2], sizes = [8, 512], strides = [1, 1]} : vector<8x518xf32> to vector<8x512xf32>
    %119 = vector.extract_strided_slice %115 {offsets = [0, 3], sizes = [8, 512], strides = [1, 1]} : vector<8x518xf32> to vector<8x512xf32>
    %120 = vector.extract_strided_slice %115 {offsets = [0, 4], sizes = [8, 512], strides = [1, 1]} : vector<8x518xf32> to vector<8x512xf32>
    %121 = vector.extract_strided_slice %115 {offsets = [0, 5], sizes = [8, 512], strides = [1, 1]} : vector<8x518xf32> to vector<8x512xf32>
    %122 = vector.extract_strided_slice %115 {offsets = [0, 6], sizes = [8, 512], strides = [1, 1]} : vector<8x518xf32> to vector<8x512xf32>
    %123 = tpu.concatenate %116, %117, %118, %119, %120, %121, %122 in 0 : vector<8x512xf32>, vector<8x512xf32>, vector<8x512xf32>, vector<8x512xf32>, vector<8x512xf32>, vector<8x512xf32>, vector<8x512xf32> -> vector<56x512xf32>
    %c1_58 = arith.constant 1 : index
    %c0_59 = arith.constant 0 : index
    %c0_60 = arith.constant 0 : index
    %c0_61 = arith.constant 0 : index
    %124 = vector.load %arg3[%c1_58, %c0_59, %c0_60, %c0_61] : memref<4x7x8x56xf32, #tpu.memory_space<vmem>>, vector<1x1x8x56xf32>
    %125 = vector.shape_cast %124 : vector<1x1x8x56xf32> to vector<8x56xf32>
    %cst_62 = arith.constant dense<0.000000e+00> : vector<8x512xf32>
    %126 = tpu.matmul %125, %123, %cst_62 {dimension_numbers = #tpu.dot_dimension_numbers<[1], [0], [0], [1], [0, 0, 1, 1], [], []>} : vector<8x56xf32>, vector<56x512xf32>, vector<8x512xf32> -> vector<8x512xf32>
    %127 = arith.addf %113, %126 : vector<8x512xf32>
    %c0_63 = arith.constant 0 : index
    %c81_64 = arith.constant 81 : index
    %128 = vector.load %arg6[%c0_63, %c81_64] : memref<8x768xf32, #tpu.memory_space<vmem>>, vector<8x518xf32>
    %129 = vector.extract_strided_slice %128 {offsets = [0, 0], sizes = [8, 512], strides = [1, 1]} : vector<8x518xf32> to vector<8x512xf32>
    %130 = vector.extract_strided_slice %128 {offsets = [0, 1], sizes = [8, 512], strides = [1, 1]} : vector<8x518xf32> to vector<8x512xf32>
    %131 = vector.extract_strided_slice %128 {offsets = [0, 2], sizes = [8, 512], strides = [1, 1]} : vector<8x518xf32> to vector<8x512xf32>
    %132 = vector.extract_strided_slice %128 {offsets = [0, 3], sizes = [8, 512], strides = [1, 1]} : vector<8x518xf32> to vector<8x512xf32>
    %133 = vector.extract_strided_slice %128 {offsets = [0, 4], sizes = [8, 512], strides = [1, 1]} : vector<8x518xf32> to vector<8x512xf32>
    %134 = vector.extract_strided_slice %128 {offsets = [0, 5], sizes = [8, 512], strides = [1, 1]} : vector<8x518xf32> to vector<8x512xf32>
    %135 = vector.extract_strided_slice %128 {offsets = [0, 6], sizes = [8, 512], strides = [1, 1]} : vector<8x518xf32> to vector<8x512xf32>
    %136 = tpu.concatenate %129, %130, %131, %132, %133, %134, %135 in 0 : vector<8x512xf32>, vector<8x512xf32>, vector<8x512xf32>, vector<8x512xf32>, vector<8x512xf32>, vector<8x512xf32>, vector<8x512xf32> -> vector<56x512xf32>
    %c1_65 = arith.constant 1 : index
    %c1_66 = arith.constant 1 : index
    %c0_67 = arith.constant 0 : index
    %c0_68 = arith.constant 0 : index
    %137 = vector.load %arg3[%c1_65, %c1_66, %c0_67, %c0_68] : memref<4x7x8x56xf32, #tpu.memory_space<vmem>>, vector<1x1x8x56xf32>
    %138 = vector.shape_cast %137 : vector<1x1x8x56xf32> to vector<8x56xf32>
    %cst_69 = arith.constant dense<0.000000e+00> : vector<8x512xf32>
    %139 = tpu.matmul %138, %136, %cst_69 {dimension_numbers = #tpu.dot_dimension_numbers<[1], [0], [0], [1], [0, 0, 1, 1], [], []>} : vector<8x56xf32>, vector<56x512xf32>, vector<8x512xf32> -> vector<8x512xf32>
    %140 = arith.addf %114, %139 : vector<8x512xf32>
    %c0_70 = arith.constant 0 : index
    %c103_71 = arith.constant 103 : index
    %141 = vector.load %arg6[%c0_70, %c103_71] : memref<8x768xf32, #tpu.memory_space<vmem>>, vector<8x518xf32>
    %142 = vector.extract_strided_slice %141 {offsets = [0, 0], sizes = [8, 512], strides = [1, 1]} : vector<8x518xf32> to vector<8x512xf32>
    %143 = vector.extract_strided_slice %141 {offsets = [0, 1], sizes = [8, 512], strides = [1, 1]} : vector<8x518xf32> to vector<8x512xf32>
    %144 = vector.extract_strided_slice %141 {offsets = [0, 2], sizes = [8, 512], strides = [1, 1]} : vector<8x518xf32> to vector<8x512xf32>
    %145 = vector.extract_strided_slice %141 {offsets = [0, 3], sizes = [8, 512], strides = [1, 1]} : vector<8x518xf32> to vector<8x512xf32>
    %146 = vector.extract_strided_slice %141 {offsets = [0, 4], sizes = [8, 512], strides = [1, 1]} : vector<8x518xf32> to vector<8x512xf32>
    %147 = vector.extract_strided_slice %141 {offsets = [0, 5], sizes = [8, 512], strides = [1, 1]} : vector<8x518xf32> to vector<8x512xf32>
    %148 = vector.extract_strided_slice %141 {offsets = [0, 6], sizes = [8, 512], strides = [1, 1]} : vector<8x518xf32> to vector<8x512xf32>
    %149 = tpu.concatenate %142, %143, %144, %145, %146, %147, %148 in 0 : vector<8x512xf32>, vector<8x512xf32>, vector<8x512xf32>, vector<8x512xf32>, vector<8x512xf32>, vector<8x512xf32>, vector<8x512xf32> -> vector<56x512xf32>
    %c1_72 = arith.constant 1 : index
    %c2_73 = arith.constant 2 : index
    %c0_74 = arith.constant 0 : index
    %c0_75 = arith.constant 0 : index
    %150 = vector.load %arg3[%c1_72, %c2_73, %c0_74, %c0_75] : memref<4x7x8x56xf32, #tpu.memory_space<vmem>>, vector<1x1x8x56xf32>
    %151 = vector.shape_cast %150 : vector<1x1x8x56xf32> to vector<8x56xf32>
    %cst_76 = arith.constant dense<0.000000e+00> : vector<8x512xf32>
    %152 = tpu.matmul %151, %149, %cst_76 {dimension_numbers = #tpu.dot_dimension_numbers<[1], [0], [0], [1], [0, 0, 1, 1], [], []>} : vector<8x56xf32>, vector<56x512xf32>, vector<8x512xf32> -> vector<8x512xf32>
    %153 = arith.addf %127, %152 : vector<8x512xf32>
    %c0_77 = arith.constant 0 : index
    %c125_78 = arith.constant 125 : index
    %154 = vector.load %arg6[%c0_77, %c125_78] : memref<8x768xf32, #tpu.memory_space<vmem>>, vector<8x518xf32>
    %155 = vector.extract_strided_slice %154 {offsets = [0, 0], sizes = [8, 512], strides = [1, 1]} : vector<8x518xf32> to vector<8x512xf32>
    %156 = vector.extract_strided_slice %154 {offsets = [0, 1], sizes = [8, 512], strides = [1, 1]} : vector<8x518xf32> to vector<8x512xf32>
    %157 = vector.extract_strided_slice %154 {offsets = [0, 2], sizes = [8, 512], strides = [1, 1]} : vector<8x518xf32> to vector<8x512xf32>
    %158 = vector.extract_strided_slice %154 {offsets = [0, 3], sizes = [8, 512], strides = [1, 1]} : vector<8x518xf32> to vector<8x512xf32>
    %159 = vector.extract_strided_slice %154 {offsets = [0, 4], sizes = [8, 512], strides = [1, 1]} : vector<8x518xf32> to vector<8x512xf32>
    %160 = vector.extract_strided_slice %154 {offsets = [0, 5], sizes = [8, 512], strides = [1, 1]} : vector<8x518xf32> to vector<8x512xf32>
    %161 = vector.extract_strided_slice %154 {offsets = [0, 6], sizes = [8, 512], strides = [1, 1]} : vector<8x518xf32> to vector<8x512xf32>
    %162 = tpu.concatenate %155, %156, %157, %158, %159, %160, %161 in 0 : vector<8x512xf32>, vector<8x512xf32>, vector<8x512xf32>, vector<8x512xf32>, vector<8x512xf32>, vector<8x512xf32>, vector<8x512xf32> -> vector<56x512xf32>
    %c1_79 = arith.constant 1 : index
    %c3_80 = arith.constant 3 : index
    %c0_81 = arith.constant 0 : index
    %c0_82 = arith.constant 0 : index
    %163 = vector.load %arg3[%c1_79, %c3_80, %c0_81, %c0_82] : memref<4x7x8x56xf32, #tpu.memory_space<vmem>>, vector<1x1x8x56xf32>
    %164 = vector.shape_cast %163 : vector<1x1x8x56xf32> to vector<8x56xf32>
    %cst_83 = arith.constant dense<0.000000e+00> : vector<8x512xf32>
    %165 = tpu.matmul %164, %162, %cst_83 {dimension_numbers = #tpu.dot_dimension_numbers<[1], [0], [0], [1], [0, 0, 1, 1], [], []>} : vector<8x56xf32>, vector<56x512xf32>, vector<8x512xf32> -> vector<8x512xf32>
    %166 = arith.addf %140, %165 : vector<8x512xf32>
    %c0_84 = arith.constant 0 : index
    %c147_85 = arith.constant 147 : index
    %167 = vector.load %arg6[%c0_84, %c147_85] : memref<8x768xf32, #tpu.memory_space<vmem>>, vector<8x518xf32>
    %168 = vector.extract_strided_slice %167 {offsets = [0, 0], sizes = [8, 512], strides = [1, 1]} : vector<8x518xf32> to vector<8x512xf32>
    %169 = vector.extract_strided_slice %167 {offsets = [0, 1], sizes = [8, 512], strides = [1, 1]} : vector<8x518xf32> to vector<8x512xf32>
    %170 = vector.extract_strided_slice %167 {offsets = [0, 2], sizes = [8, 512], strides = [1, 1]} : vector<8x518xf32> to vector<8x512xf32>
    %171 = vector.extract_strided_slice %167 {offsets = [0, 3], sizes = [8, 512], strides = [1, 1]} : vector<8x518xf32> to vector<8x512xf32>
    %172 = vector.extract_strided_slice %167 {offsets = [0, 4], sizes = [8, 512], strides = [1, 1]} : vector<8x518xf32> to vector<8x512xf32>
    %173 = vector.extract_strided_slice %167 {offsets = [0, 5], sizes = [8, 512], strides = [1, 1]} : vector<8x518xf32> to vector<8x512xf32>
    %174 = vector.extract_strided_slice %167 {offsets = [0, 6], sizes = [8, 512], strides = [1, 1]} : vector<8x518xf32> to vector<8x512xf32>
    %175 = tpu.concatenate %168, %169, %170, %171, %172, %173, %174 in 0 : vector<8x512xf32>, vector<8x512xf32>, vector<8x512xf32>, vector<8x512xf32>, vector<8x512xf32>, vector<8x512xf32>, vector<8x512xf32> -> vector<56x512xf32>
    %c1_86 = arith.constant 1 : index
    %c4_87 = arith.constant 4 : index
    %c0_88 = arith.constant 0 : index
    %c0_89 = arith.constant 0 : index
    %176 = vector.load %arg3[%c1_86, %c4_87, %c0_88, %c0_89] : memref<4x7x8x56xf32, #tpu.memory_space<vmem>>, vector<1x1x8x56xf32>
    %177 = vector.shape_cast %176 : vector<1x1x8x56xf32> to vector<8x56xf32>
    %cst_90 = arith.constant dense<0.000000e+00> : vector<8x512xf32>
    %178 = tpu.matmul %177, %175, %cst_90 {dimension_numbers = #tpu.dot_dimension_numbers<[1], [0], [0], [1], [0, 0, 1, 1], [], []>} : vector<8x56xf32>, vector<56x512xf32>, vector<8x512xf32> -> vector<8x512xf32>
    %179 = arith.addf %153, %178 : vector<8x512xf32>
    %c0_91 = arith.constant 0 : index
    %c169_92 = arith.constant 169 : index
    %180 = vector.load %arg6[%c0_91, %c169_92] : memref<8x768xf32, #tpu.memory_space<vmem>>, vector<8x518xf32>
    %181 = vector.extract_strided_slice %180 {offsets = [0, 0], sizes = [8, 512], strides = [1, 1]} : vector<8x518xf32> to vector<8x512xf32>
    %182 = vector.extract_strided_slice %180 {offsets = [0, 1], sizes = [8, 512], strides = [1, 1]} : vector<8x518xf32> to vector<8x512xf32>
    %183 = vector.extract_strided_slice %180 {offsets = [0, 2], sizes = [8, 512], strides = [1, 1]} : vector<8x518xf32> to vector<8x512xf32>
    %184 = vector.extract_strided_slice %180 {offsets = [0, 3], sizes = [8, 512], strides = [1, 1]} : vector<8x518xf32> to vector<8x512xf32>
    %185 = vector.extract_strided_slice %180 {offsets = [0, 4], sizes = [8, 512], strides = [1, 1]} : vector<8x518xf32> to vector<8x512xf32>
    %186 = vector.extract_strided_slice %180 {offsets = [0, 5], sizes = [8, 512], strides = [1, 1]} : vector<8x518xf32> to vector<8x512xf32>
    %187 = vector.extract_strided_slice %180 {offsets = [0, 6], sizes = [8, 512], strides = [1, 1]} : vector<8x518xf32> to vector<8x512xf32>
    %188 = tpu.concatenate %181, %182, %183, %184, %185, %186, %187 in 0 : vector<8x512xf32>, vector<8x512xf32>, vector<8x512xf32>, vector<8x512xf32>, vector<8x512xf32>, vector<8x512xf32>, vector<8x512xf32> -> vector<56x512xf32>
    %c1_93 = arith.constant 1 : index
    %c5_94 = arith.constant 5 : index
    %c0_95 = arith.constant 0 : index
    %c0_96 = arith.constant 0 : index
    %189 = vector.load %arg3[%c1_93, %c5_94, %c0_95, %c0_96] : memref<4x7x8x56xf32, #tpu.memory_space<vmem>>, vector<1x1x8x56xf32>
    %190 = vector.shape_cast %189 : vector<1x1x8x56xf32> to vector<8x56xf32>
    %cst_97 = arith.constant dense<0.000000e+00> : vector<8x512xf32>
    %191 = tpu.matmul %190, %188, %cst_97 {dimension_numbers = #tpu.dot_dimension_numbers<[1], [0], [0], [1], [0, 0, 1, 1], [], []>} : vector<8x56xf32>, vector<56x512xf32>, vector<8x512xf32> -> vector<8x512xf32>
    %192 = arith.addf %166, %191 : vector<8x512xf32>
    %c0_98 = arith.constant 0 : index
    %c191_99 = arith.constant 191 : index
    %193 = vector.load %arg6[%c0_98, %c191_99] : memref<8x768xf32, #tpu.memory_space<vmem>>, vector<8x518xf32>
    %194 = vector.extract_strided_slice %193 {offsets = [0, 0], sizes = [8, 512], strides = [1, 1]} : vector<8x518xf32> to vector<8x512xf32>
    %195 = vector.extract_strided_slice %193 {offsets = [0, 1], sizes = [8, 512], strides = [1, 1]} : vector<8x518xf32> to vector<8x512xf32>
    %196 = vector.extract_strided_slice %193 {offsets = [0, 2], sizes = [8, 512], strides = [1, 1]} : vector<8x518xf32> to vector<8x512xf32>
    %197 = vector.extract_strided_slice %193 {offsets = [0, 3], sizes = [8, 512], strides = [1, 1]} : vector<8x518xf32> to vector<8x512xf32>
    %198 = vector.extract_strided_slice %193 {offsets = [0, 4], sizes = [8, 512], strides = [1, 1]} : vector<8x518xf32> to vector<8x512xf32>
    %199 = vector.extract_strided_slice %193 {offsets = [0, 5], sizes = [8, 512], strides = [1, 1]} : vector<8x518xf32> to vector<8x512xf32>
    %200 = vector.extract_strided_slice %193 {offsets = [0, 6], sizes = [8, 512], strides = [1, 1]} : vector<8x518xf32> to vector<8x512xf32>
    %201 = tpu.concatenate %194, %195, %196, %197, %198, %199, %200 in 0 : vector<8x512xf32>, vector<8x512xf32>, vector<8x512xf32>, vector<8x512xf32>, vector<8x512xf32>, vector<8x512xf32>, vector<8x512xf32> -> vector<56x512xf32>
    %c1_100 = arith.constant 1 : index
    %c6_101 = arith.constant 6 : index
    %c0_102 = arith.constant 0 : index
    %c0_103 = arith.constant 0 : index
    %202 = vector.load %arg3[%c1_100, %c6_101, %c0_102, %c0_103] : memref<4x7x8x56xf32, #tpu.memory_space<vmem>>, vector<1x1x8x56xf32>
    %203 = vector.shape_cast %202 : vector<1x1x8x56xf32> to vector<8x56xf32>
    %cst_104 = arith.constant dense<0.000000e+00> : vector<8x512xf32>
    %204 = tpu.matmul %203, %201, %cst_104 {dimension_numbers = #tpu.dot_dimension_numbers<[1], [0], [0], [1], [0, 0, 1, 1], [], []>} : vector<8x56xf32>, vector<56x512xf32>, vector<8x512xf32> -> vector<8x512xf32>
    %205 = arith.addf %179, %204 : vector<8x512xf32>
    %206 = arith.addf %205, %192 : vector<8x512xf32>
    %cst_105 = arith.constant 0.000000e+00 : f32
    %207 = vector.broadcast %cst_105 : f32 to vector<8x512xf32>
    %208 = arith.maximumf %206, %207 : vector<8x512xf32>
    %209 = vector.broadcast %0 : vector<1x512xf32> to vector<8x512xf32>
    %210 = arith.mulf %208, %209 : vector<8x512xf32>
    %c0_106 = arith.constant 0 : index
    %c128_107 = arith.constant 128 : index
    %211 = vector.load %arg6[%c0_106, %c128_107] : memref<8x768xf32, #tpu.memory_space<vmem>>, vector<8x512xf32>
    tpu.vector_store %arg6[%c0_106, %c128_107], %210 {strides = array<i32>} : memref<8x768xf32, #tpu.memory_space<vmem>>, vector<8x512xf32>,
    %c2_108 = arith.constant 2 : index
    %c0_109 = arith.constant 0 : index
    %c0_110 = arith.constant 0 : index
    %212 = vector.load %arg4[%c2_108, %c0_109, %c0_110] : memref<4x8x1xf32, #tpu.memory_space<vmem>>, vector<1x8x1xf32>
    %213 = vector.shape_cast %212 : vector<1x8x1xf32> to vector<8x1xf32>
    %214 = vector.shape_cast %213 : vector<8x1xf32> to vector<8x1xf32>
    %215 = vector.broadcast %214 : vector<8x1xf32> to vector<8x512xf32>
    %cst_111 = arith.constant 0.000000e+00 : f32
    %216 = vector.broadcast %cst_111 : f32 to vector<8x512xf32>
    %c0_112 = arith.constant 0 : index
    %c59_113 = arith.constant 59 : index
    %217 = vector.load %arg6[%c0_112, %c59_113] : memref<8x768xf32, #tpu.memory_space<vmem>>, vector<8x518xf32>
    %218 = vector.extract_strided_slice %217 {offsets = [0, 0], sizes = [8, 512], strides = [1, 1]} : vector<8x518xf32> to vector<8x512xf32>
    %219 = vector.extract_strided_slice %217 {offsets = [0, 1], sizes = [8, 512], strides = [1, 1]} : vector<8x518xf32> to vector<8x512xf32>
    %220 = vector.extract_strided_slice %217 {offsets = [0, 2], sizes = [8, 512], strides = [1, 1]} : vector<8x518xf32> to vector<8x512xf32>
    %221 = vector.extract_strided_slice %217 {offsets = [0, 3], sizes = [8, 512], strides = [1, 1]} : vector<8x518xf32> to vector<8x512xf32>
    %222 = vector.extract_strided_slice %217 {offsets = [0, 4], sizes = [8, 512], strides = [1, 1]} : vector<8x518xf32> to vector<8x512xf32>
    %223 = vector.extract_strided_slice %217 {offsets = [0, 5], sizes = [8, 512], strides = [1, 1]} : vector<8x518xf32> to vector<8x512xf32>
    %224 = vector.extract_strided_slice %217 {offsets = [0, 6], sizes = [8, 512], strides = [1, 1]} : vector<8x518xf32> to vector<8x512xf32>
    %225 = tpu.concatenate %218, %219, %220, %221, %222, %223, %224 in 0 : vector<8x512xf32>, vector<8x512xf32>, vector<8x512xf32>, vector<8x512xf32>, vector<8x512xf32>, vector<8x512xf32>, vector<8x512xf32> -> vector<56x512xf32>
    %c2_114 = arith.constant 2 : index
    %c0_115 = arith.constant 0 : index
    %c0_116 = arith.constant 0 : index
    %c0_117 = arith.constant 0 : index
    %226 = vector.load %arg3[%c2_114, %c0_115, %c0_116, %c0_117] : memref<4x7x8x56xf32, #tpu.memory_space<vmem>>, vector<1x1x8x56xf32>
    %227 = vector.shape_cast %226 : vector<1x1x8x56xf32> to vector<8x56xf32>
    %cst_118 = arith.constant dense<0.000000e+00> : vector<8x512xf32>
    %228 = tpu.matmul %227, %225, %cst_118 {dimension_numbers = #tpu.dot_dimension_numbers<[1], [0], [0], [1], [0, 0, 1, 1], [], []>} : vector<8x56xf32>, vector<56x512xf32>, vector<8x512xf32> -> vector<8x512xf32>
    %229 = arith.addf %215, %228 : vector<8x512xf32>
    %c0_119 = arith.constant 0 : index
    %c81_120 = arith.constant 81 : index
    %230 = vector.load %arg6[%c0_119, %c81_120] : memref<8x768xf32, #tpu.memory_space<vmem>>, vector<8x518xf32>
    %231 = vector.extract_strided_slice %230 {offsets = [0, 0], sizes = [8, 512], strides = [1, 1]} : vector<8x518xf32> to vector<8x512xf32>
    %232 = vector.extract_strided_slice %230 {offsets = [0, 1], sizes = [8, 512], strides = [1, 1]} : vector<8x518xf32> to vector<8x512xf32>
    %233 = vector.extract_strided_slice %230 {offsets = [0, 2], sizes = [8, 512], strides = [1, 1]} : vector<8x518xf32> to vector<8x512xf32>
    %234 = vector.extract_strided_slice %230 {offsets = [0, 3], sizes = [8, 512], strides = [1, 1]} : vector<8x518xf32> to vector<8x512xf32>
    %235 = vector.extract_strided_slice %230 {offsets = [0, 4], sizes = [8, 512], strides = [1, 1]} : vector<8x518xf32> to vector<8x512xf32>
    %236 = vector.extract_strided_slice %230 {offsets = [0, 5], sizes = [8, 512], strides = [1, 1]} : vector<8x518xf32> to vector<8x512xf32>
    %237 = vector.extract_strided_slice %230 {offsets = [0, 6], sizes = [8, 512], strides = [1, 1]} : vector<8x518xf32> to vector<8x512xf32>
    %238 = tpu.concatenate %231, %232, %233, %234, %235, %236, %237 in 0 : vector<8x512xf32>, vector<8x512xf32>, vector<8x512xf32>, vector<8x512xf32>, vector<8x512xf32>, vector<8x512xf32>, vector<8x512xf32> -> vector<56x512xf32>
    %c2_121 = arith.constant 2 : index
    %c1_122 = arith.constant 1 : index
    %c0_123 = arith.constant 0 : index
    %c0_124 = arith.constant 0 : index
    %239 = vector.load %arg3[%c2_121, %c1_122, %c0_123, %c0_124] : memref<4x7x8x56xf32, #tpu.memory_space<vmem>>, vector<1x1x8x56xf32>
    %240 = vector.shape_cast %239 : vector<1x1x8x56xf32> to vector<8x56xf32>
    %cst_125 = arith.constant dense<0.000000e+00> : vector<8x512xf32>
    %241 = tpu.matmul %240, %238, %cst_125 {dimension_numbers = #tpu.dot_dimension_numbers<[1], [0], [0], [1], [0, 0, 1, 1], [], []>} : vector<8x56xf32>, vector<56x512xf32>, vector<8x512xf32> -> vector<8x512xf32>
    %242 = arith.addf %216, %241 : vector<8x512xf32>
    %c0_126 = arith.constant 0 : index
    %c103_127 = arith.constant 103 : index
    %243 = vector.load %arg6[%c0_126, %c103_127] : memref<8x768xf32, #tpu.memory_space<vmem>>, vector<8x518xf32>
    %244 = vector.extract_strided_slice %243 {offsets = [0, 0], sizes = [8, 512], strides = [1, 1]} : vector<8x518xf32> to vector<8x512xf32>
    %245 = vector.extract_strided_slice %243 {offsets = [0, 1], sizes = [8, 512], strides = [1, 1]} : vector<8x518xf32> to vector<8x512xf32>
    %246 = vector.extract_strided_slice %243 {offsets = [0, 2], sizes = [8, 512], strides = [1, 1]} : vector<8x518xf32> to vector<8x512xf32>
    %247 = vector.extract_strided_slice %243 {offsets = [0, 3], sizes = [8, 512], strides = [1, 1]} : vector<8x518xf32> to vector<8x512xf32>
    %248 = vector.extract_strided_slice %243 {offsets = [0, 4], sizes = [8, 512], strides = [1, 1]} : vector<8x518xf32> to vector<8x512xf32>
    %249 = vector.extract_strided_slice %243 {offsets = [0, 5], sizes = [8, 512], strides = [1, 1]} : vector<8x518xf32> to vector<8x512xf32>
    %250 = vector.extract_strided_slice %243 {offsets = [0, 6], sizes = [8, 512], strides = [1, 1]} : vector<8x518xf32> to vector<8x512xf32>
    %251 = tpu.concatenate %244, %245, %246, %247, %248, %249, %250 in 0 : vector<8x512xf32>, vector<8x512xf32>, vector<8x512xf32>, vector<8x512xf32>, vector<8x512xf32>, vector<8x512xf32>, vector<8x512xf32> -> vector<56x512xf32>
    %c2_128 = arith.constant 2 : index
    %c2_129 = arith.constant 2 : index
    %c0_130 = arith.constant 0 : index
    %c0_131 = arith.constant 0 : index
    %252 = vector.load %arg3[%c2_128, %c2_129, %c0_130, %c0_131] : memref<4x7x8x56xf32, #tpu.memory_space<vmem>>, vector<1x1x8x56xf32>
    %253 = vector.shape_cast %252 : vector<1x1x8x56xf32> to vector<8x56xf32>
    %cst_132 = arith.constant dense<0.000000e+00> : vector<8x512xf32>
    %254 = tpu.matmul %253, %251, %cst_132 {dimension_numbers = #tpu.dot_dimension_numbers<[1], [0], [0], [1], [0, 0, 1, 1], [], []>} : vector<8x56xf32>, vector<56x512xf32>, vector<8x512xf32> -> vector<8x512xf32>
    %255 = arith.addf %229, %254 : vector<8x512xf32>
    %c0_133 = arith.constant 0 : index
    %c125_134 = arith.constant 125 : index
    %256 = vector.load %arg6[%c0_133, %c125_134] : memref<8x768xf32, #tpu.memory_space<vmem>>, vector<8x518xf32>
    %257 = vector.extract_strided_slice %256 {offsets = [0, 0], sizes = [8, 512], strides = [1, 1]} : vector<8x518xf32> to vector<8x512xf32>
    %258 = vector.extract_strided_slice %256 {offsets = [0, 1], sizes = [8, 512], strides = [1, 1]} : vector<8x518xf32> to vector<8x512xf32>
    %259 = vector.extract_strided_slice %256 {offsets = [0, 2], sizes = [8, 512], strides = [1, 1]} : vector<8x518xf32> to vector<8x512xf32>
    %260 = vector.extract_strided_slice %256 {offsets = [0, 3], sizes = [8, 512], strides = [1, 1]} : vector<8x518xf32> to vector<8x512xf32>
    %261 = vector.extract_strided_slice %256 {offsets = [0, 4], sizes = [8, 512], strides = [1, 1]} : vector<8x518xf32> to vector<8x512xf32>
    %262 = vector.extract_strided_slice %256 {offsets = [0, 5], sizes = [8, 512], strides = [1, 1]} : vector<8x518xf32> to vector<8x512xf32>
    %263 = vector.extract_strided_slice %256 {offsets = [0, 6], sizes = [8, 512], strides = [1, 1]} : vector<8x518xf32> to vector<8x512xf32>
    %264 = tpu.concatenate %257, %258, %259, %260, %261, %262, %263 in 0 : vector<8x512xf32>, vector<8x512xf32>, vector<8x512xf32>, vector<8x512xf32>, vector<8x512xf32>, vector<8x512xf32>, vector<8x512xf32> -> vector<56x512xf32>
    %c2_135 = arith.constant 2 : index
    %c3_136 = arith.constant 3 : index
    %c0_137 = arith.constant 0 : index
    %c0_138 = arith.constant 0 : index
    %265 = vector.load %arg3[%c2_135, %c3_136, %c0_137, %c0_138] : memref<4x7x8x56xf32, #tpu.memory_space<vmem>>, vector<1x1x8x56xf32>
    %266 = vector.shape_cast %265 : vector<1x1x8x56xf32> to vector<8x56xf32>
    %cst_139 = arith.constant dense<0.000000e+00> : vector<8x512xf32>
    %267 = tpu.matmul %266, %264, %cst_139 {dimension_numbers = #tpu.dot_dimension_numbers<[1], [0], [0], [1], [0, 0, 1, 1], [], []>} : vector<8x56xf32>, vector<56x512xf32>, vector<8x512xf32> -> vector<8x512xf32>
    %268 = arith.addf %242, %267 : vector<8x512xf32>
    %c0_140 = arith.constant 0 : index
    %c147_141 = arith.constant 147 : index
    %269 = vector.load %arg6[%c0_140, %c147_141] : memref<8x768xf32, #tpu.memory_space<vmem>>, vector<8x518xf32>
    %270 = vector.extract_strided_slice %269 {offsets = [0, 0], sizes = [8, 512], strides = [1, 1]} : vector<8x518xf32> to vector<8x512xf32>
    %271 = vector.extract_strided_slice %269 {offsets = [0, 1], sizes = [8, 512], strides = [1, 1]} : vector<8x518xf32> to vector<8x512xf32>
    %272 = vector.extract_strided_slice %269 {offsets = [0, 2], sizes = [8, 512], strides = [1, 1]} : vector<8x518xf32> to vector<8x512xf32>
    %273 = vector.extract_strided_slice %269 {offsets = [0, 3], sizes = [8, 512], strides = [1, 1]} : vector<8x518xf32> to vector<8x512xf32>
    %274 = vector.extract_strided_slice %269 {offsets = [0, 4], sizes = [8, 512], strides = [1, 1]} : vector<8x518xf32> to vector<8x512xf32>
    %275 = vector.extract_strided_slice %269 {offsets = [0, 5], sizes = [8, 512], strides = [1, 1]} : vector<8x518xf32> to vector<8x512xf32>
    %276 = vector.extract_strided_slice %269 {offsets = [0, 6], sizes = [8, 512], strides = [1, 1]} : vector<8x518xf32> to vector<8x512xf32>
    %277 = tpu.concatenate %270, %271, %272, %273, %274, %275, %276 in 0 : vector<8x512xf32>, vector<8x512xf32>, vector<8x512xf32>, vector<8x512xf32>, vector<8x512xf32>, vector<8x512xf32>, vector<8x512xf32> -> vector<56x512xf32>
    %c2_142 = arith.constant 2 : index
    %c4_143 = arith.constant 4 : index
    %c0_144 = arith.constant 0 : index
    %c0_145 = arith.constant 0 : index
    %278 = vector.load %arg3[%c2_142, %c4_143, %c0_144, %c0_145] : memref<4x7x8x56xf32, #tpu.memory_space<vmem>>, vector<1x1x8x56xf32>
    %279 = vector.shape_cast %278 : vector<1x1x8x56xf32> to vector<8x56xf32>
    %cst_146 = arith.constant dense<0.000000e+00> : vector<8x512xf32>
    %280 = tpu.matmul %279, %277, %cst_146 {dimension_numbers = #tpu.dot_dimension_numbers<[1], [0], [0], [1], [0, 0, 1, 1], [], []>} : vector<8x56xf32>, vector<56x512xf32>, vector<8x512xf32> -> vector<8x512xf32>
    %281 = arith.addf %255, %280 : vector<8x512xf32>
    %c0_147 = arith.constant 0 : index
    %c169_148 = arith.constant 169 : index
    %282 = vector.load %arg6[%c0_147, %c169_148] : memref<8x768xf32, #tpu.memory_space<vmem>>, vector<8x518xf32>
    %283 = vector.extract_strided_slice %282 {offsets = [0, 0], sizes = [8, 512], strides = [1, 1]} : vector<8x518xf32> to vector<8x512xf32>
    %284 = vector.extract_strided_slice %282 {offsets = [0, 1], sizes = [8, 512], strides = [1, 1]} : vector<8x518xf32> to vector<8x512xf32>
    %285 = vector.extract_strided_slice %282 {offsets = [0, 2], sizes = [8, 512], strides = [1, 1]} : vector<8x518xf32> to vector<8x512xf32>
    %286 = vector.extract_strided_slice %282 {offsets = [0, 3], sizes = [8, 512], strides = [1, 1]} : vector<8x518xf32> to vector<8x512xf32>
    %287 = vector.extract_strided_slice %282 {offsets = [0, 4], sizes = [8, 512], strides = [1, 1]} : vector<8x518xf32> to vector<8x512xf32>
    %288 = vector.extract_strided_slice %282 {offsets = [0, 5], sizes = [8, 512], strides = [1, 1]} : vector<8x518xf32> to vector<8x512xf32>
    %289 = vector.extract_strided_slice %282 {offsets = [0, 6], sizes = [8, 512], strides = [1, 1]} : vector<8x518xf32> to vector<8x512xf32>
    %290 = tpu.concatenate %283, %284, %285, %286, %287, %288, %289 in 0 : vector<8x512xf32>, vector<8x512xf32>, vector<8x512xf32>, vector<8x512xf32>, vector<8x512xf32>, vector<8x512xf32>, vector<8x512xf32> -> vector<56x512xf32>
    %c2_149 = arith.constant 2 : index
    %c5_150 = arith.constant 5 : index
    %c0_151 = arith.constant 0 : index
    %c0_152 = arith.constant 0 : index
    %291 = vector.load %arg3[%c2_149, %c5_150, %c0_151, %c0_152] : memref<4x7x8x56xf32, #tpu.memory_space<vmem>>, vector<1x1x8x56xf32>
    %292 = vector.shape_cast %291 : vector<1x1x8x56xf32> to vector<8x56xf32>
    %cst_153 = arith.constant dense<0.000000e+00> : vector<8x512xf32>
    %293 = tpu.matmul %292, %290, %cst_153 {dimension_numbers = #tpu.dot_dimension_numbers<[1], [0], [0], [1], [0, 0, 1, 1], [], []>} : vector<8x56xf32>, vector<56x512xf32>, vector<8x512xf32> -> vector<8x512xf32>
    %294 = arith.addf %268, %293 : vector<8x512xf32>
    %c0_154 = arith.constant 0 : index
    %c191_155 = arith.constant 191 : index
    %295 = vector.load %arg6[%c0_154, %c191_155] : memref<8x768xf32, #tpu.memory_space<vmem>>, vector<8x518xf32>
    %296 = vector.extract_strided_slice %295 {offsets = [0, 0], sizes = [8, 512], strides = [1, 1]} : vector<8x518xf32> to vector<8x512xf32>
    %297 = vector.extract_strided_slice %295 {offsets = [0, 1], sizes = [8, 512], strides = [1, 1]} : vector<8x518xf32> to vector<8x512xf32>
    %298 = vector.extract_strided_slice %295 {offsets = [0, 2], sizes = [8, 512], strides = [1, 1]} : vector<8x518xf32> to vector<8x512xf32>
    %299 = vector.extract_strided_slice %295 {offsets = [0, 3], sizes = [8, 512], strides = [1, 1]} : vector<8x518xf32> to vector<8x512xf32>
    %300 = vector.extract_strided_slice %295 {offsets = [0, 4], sizes = [8, 512], strides = [1, 1]} : vector<8x518xf32> to vector<8x512xf32>
    %301 = vector.extract_strided_slice %295 {offsets = [0, 5], sizes = [8, 512], strides = [1, 1]} : vector<8x518xf32> to vector<8x512xf32>
    %302 = vector.extract_strided_slice %295 {offsets = [0, 6], sizes = [8, 512], strides = [1, 1]} : vector<8x518xf32> to vector<8x512xf32>
    %303 = tpu.concatenate %296, %297, %298, %299, %300, %301, %302 in 0 : vector<8x512xf32>, vector<8x512xf32>, vector<8x512xf32>, vector<8x512xf32>, vector<8x512xf32>, vector<8x512xf32>, vector<8x512xf32> -> vector<56x512xf32>
    %c2_156 = arith.constant 2 : index
    %c6_157 = arith.constant 6 : index
    %c0_158 = arith.constant 0 : index
    %c0_159 = arith.constant 0 : index
    %304 = vector.load %arg3[%c2_156, %c6_157, %c0_158, %c0_159] : memref<4x7x8x56xf32, #tpu.memory_space<vmem>>, vector<1x1x8x56xf32>
    %305 = vector.shape_cast %304 : vector<1x1x8x56xf32> to vector<8x56xf32>
    %cst_160 = arith.constant dense<0.000000e+00> : vector<8x512xf32>
    %306 = tpu.matmul %305, %303, %cst_160 {dimension_numbers = #tpu.dot_dimension_numbers<[1], [0], [0], [1], [0, 0, 1, 1], [], []>} : vector<8x56xf32>, vector<56x512xf32>, vector<8x512xf32> -> vector<8x512xf32>
    %307 = arith.addf %281, %306 : vector<8x512xf32>
    %308 = arith.addf %307, %294 : vector<8x512xf32>
    %cst_161 = arith.constant 0.000000e+00 : f32
    %309 = vector.broadcast %cst_161 : f32 to vector<8x512xf32>
    %310 = arith.maximumf %308, %309 : vector<8x512xf32>
    %311 = vector.broadcast %0 : vector<1x512xf32> to vector<8x512xf32>
    %312 = arith.mulf %310, %311 : vector<8x512xf32>
    %c0_162 = arith.constant 0 : index
    %c128_163 = arith.constant 128 : index
    %313 = vector.load %arg6[%c0_162, %c128_163] : memref<8x768xf32, #tpu.memory_space<vmem>>, vector<8x512xf32>
    tpu.vector_store %arg6[%c0_162, %c128_163], %312 {strides = array<i32>} : memref<8x768xf32, #tpu.memory_space<vmem>>, vector<8x512xf32>,
    %c3_164 = arith.constant 3 : index
    %c0_165 = arith.constant 0 : index
    %c0_166 = arith.constant 0 : index
    %314 = vector.load %arg4[%c3_164, %c0_165, %c0_166] : memref<4x8x1xf32, #tpu.memory_space<vmem>>, vector<1x8x1xf32>
    %315 = vector.shape_cast %314 : vector<1x8x1xf32> to vector<8x1xf32>
    %316 = vector.shape_cast %315 : vector<8x1xf32> to vector<8x1xf32>
    %317 = vector.broadcast %316 : vector<8x1xf32> to vector<8x512xf32>
    %cst_167 = arith.constant 0.000000e+00 : f32
    %318 = vector.broadcast %cst_167 : f32 to vector<8x512xf32>
    %c0_168 = arith.constant 0 : index
    %c59_169 = arith.constant 59 : index
    %319 = vector.load %arg6[%c0_168, %c59_169] : memref<8x768xf32, #tpu.memory_space<vmem>>, vector<8x518xf32>
    %320 = vector.extract_strided_slice %319 {offsets = [0, 0], sizes = [8, 512], strides = [1, 1]} : vector<8x518xf32> to vector<8x512xf32>
    %321 = vector.extract_strided_slice %319 {offsets = [0, 1], sizes = [8, 512], strides = [1, 1]} : vector<8x518xf32> to vector<8x512xf32>
    %322 = vector.extract_strided_slice %319 {offsets = [0, 2], sizes = [8, 512], strides = [1, 1]} : vector<8x518xf32> to vector<8x512xf32>
    %323 = vector.extract_strided_slice %319 {offsets = [0, 3], sizes = [8, 512], strides = [1, 1]} : vector<8x518xf32> to vector<8x512xf32>
    %324 = vector.extract_strided_slice %319 {offsets = [0, 4], sizes = [8, 512], strides = [1, 1]} : vector<8x518xf32> to vector<8x512xf32>
    %325 = vector.extract_strided_slice %319 {offsets = [0, 5], sizes = [8, 512], strides = [1, 1]} : vector<8x518xf32> to vector<8x512xf32>
    %326 = vector.extract_strided_slice %319 {offsets = [0, 6], sizes = [8, 512], strides = [1, 1]} : vector<8x518xf32> to vector<8x512xf32>
    %327 = tpu.concatenate %320, %321, %322, %323, %324, %325, %326 in 0 : vector<8x512xf32>, vector<8x512xf32>, vector<8x512xf32>, vector<8x512xf32>, vector<8x512xf32>, vector<8x512xf32>, vector<8x512xf32> -> vector<56x512xf32>
    %c3_170 = arith.constant 3 : index
    %c0_171 = arith.constant 0 : index
    %c0_172 = arith.constant 0 : index
    %c0_173 = arith.constant 0 : index
    %328 = vector.load %arg3[%c3_170, %c0_171, %c0_172, %c0_173] : memref<4x7x8x56xf32, #tpu.memory_space<vmem>>, vector<1x1x8x56xf32>
    %329 = vector.shape_cast %328 : vector<1x1x8x56xf32> to vector<8x56xf32>
    %cst_174 = arith.constant dense<0.000000e+00> : vector<8x512xf32>
    %330 = tpu.matmul %329, %327, %cst_174 {dimension_numbers = #tpu.dot_dimension_numbers<[1], [0], [0], [1], [0, 0, 1, 1], [], []>} : vector<8x56xf32>, vector<56x512xf32>, vector<8x512xf32> -> vector<8x512xf32>
    %331 = arith.addf %317, %330 : vector<8x512xf32>
    %c0_175 = arith.constant 0 : index
    %c81_176 = arith.constant 81 : index
    %332 = vector.load %arg6[%c0_175, %c81_176] : memref<8x768xf32, #tpu.memory_space<vmem>>, vector<8x518xf32>
    %333 = vector.extract_strided_slice %332 {offsets = [0, 0], sizes = [8, 512], strides = [1, 1]} : vector<8x518xf32> to vector<8x512xf32>
    %334 = vector.extract_strided_slice %332 {offsets = [0, 1], sizes = [8, 512], strides = [1, 1]} : vector<8x518xf32> to vector<8x512xf32>
    %335 = vector.extract_strided_slice %332 {offsets = [0, 2], sizes = [8, 512], strides = [1, 1]} : vector<8x518xf32> to vector<8x512xf32>
    %336 = vector.extract_strided_slice %332 {offsets = [0, 3], sizes = [8, 512], strides = [1, 1]} : vector<8x518xf32> to vector<8x512xf32>
    %337 = vector.extract_strided_slice %332 {offsets = [0, 4], sizes = [8, 512], strides = [1, 1]} : vector<8x518xf32> to vector<8x512xf32>
    %338 = vector.extract_strided_slice %332 {offsets = [0, 5], sizes = [8, 512], strides = [1, 1]} : vector<8x518xf32> to vector<8x512xf32>
    %339 = vector.extract_strided_slice %332 {offsets = [0, 6], sizes = [8, 512], strides = [1, 1]} : vector<8x518xf32> to vector<8x512xf32>
    %340 = tpu.concatenate %333, %334, %335, %336, %337, %338, %339 in 0 : vector<8x512xf32>, vector<8x512xf32>, vector<8x512xf32>, vector<8x512xf32>, vector<8x512xf32>, vector<8x512xf32>, vector<8x512xf32> -> vector<56x512xf32>
    %c3_177 = arith.constant 3 : index
    %c1_178 = arith.constant 1 : index
    %c0_179 = arith.constant 0 : index
    %c0_180 = arith.constant 0 : index
    %341 = vector.load %arg3[%c3_177, %c1_178, %c0_179, %c0_180] : memref<4x7x8x56xf32, #tpu.memory_space<vmem>>, vector<1x1x8x56xf32>
    %342 = vector.shape_cast %341 : vector<1x1x8x56xf32> to vector<8x56xf32>
    %cst_181 = arith.constant dense<0.000000e+00> : vector<8x512xf32>
    %343 = tpu.matmul %342, %340, %cst_181 {dimension_numbers = #tpu.dot_dimension_numbers<[1], [0], [0], [1], [0, 0, 1, 1], [], []>} : vector<8x56xf32>, vector<56x512xf32>, vector<8x512xf32> -> vector<8x512xf32>
    %344 = arith.addf %318, %343 : vector<8x512xf32>
    %c0_182 = arith.constant 0 : index
    %c103_183 = arith.constant 103 : index
    %345 = vector.load %arg6[%c0_182, %c103_183] : memref<8x768xf32, #tpu.memory_space<vmem>>, vector<8x518xf32>
    %346 = vector.extract_strided_slice %345 {offsets = [0, 0], sizes = [8, 512], strides = [1, 1]} : vector<8x518xf32> to vector<8x512xf32>
    %347 = vector.extract_strided_slice %345 {offsets = [0, 1], sizes = [8, 512], strides = [1, 1]} : vector<8x518xf32> to vector<8x512xf32>
    %348 = vector.extract_strided_slice %345 {offsets = [0, 2], sizes = [8, 512], strides = [1, 1]} : vector<8x518xf32> to vector<8x512xf32>
    %349 = vector.extract_strided_slice %345 {offsets = [0, 3], sizes = [8, 512], strides = [1, 1]} : vector<8x518xf32> to vector<8x512xf32>
    %350 = vector.extract_strided_slice %345 {offsets = [0, 4], sizes = [8, 512], strides = [1, 1]} : vector<8x518xf32> to vector<8x512xf32>
    %351 = vector.extract_strided_slice %345 {offsets = [0, 5], sizes = [8, 512], strides = [1, 1]} : vector<8x518xf32> to vector<8x512xf32>
    %352 = vector.extract_strided_slice %345 {offsets = [0, 6], sizes = [8, 512], strides = [1, 1]} : vector<8x518xf32> to vector<8x512xf32>
    %353 = tpu.concatenate %346, %347, %348, %349, %350, %351, %352 in 0 : vector<8x512xf32>, vector<8x512xf32>, vector<8x512xf32>, vector<8x512xf32>, vector<8x512xf32>, vector<8x512xf32>, vector<8x512xf32> -> vector<56x512xf32>
    %c3_184 = arith.constant 3 : index
    %c2_185 = arith.constant 2 : index
    %c0_186 = arith.constant 0 : index
    %c0_187 = arith.constant 0 : index
    %354 = vector.load %arg3[%c3_184, %c2_185, %c0_186, %c0_187] : memref<4x7x8x56xf32, #tpu.memory_space<vmem>>, vector<1x1x8x56xf32>
    %355 = vector.shape_cast %354 : vector<1x1x8x56xf32> to vector<8x56xf32>
    %cst_188 = arith.constant dense<0.000000e+00> : vector<8x512xf32>
    %356 = tpu.matmul %355, %353, %cst_188 {dimension_numbers = #tpu.dot_dimension_numbers<[1], [0], [0], [1], [0, 0, 1, 1], [], []>} : vector<8x56xf32>, vector<56x512xf32>, vector<8x512xf32> -> vector<8x512xf32>
    %357 = arith.addf %331, %356 : vector<8x512xf32>
    %c0_189 = arith.constant 0 : index
    %c125_190 = arith.constant 125 : index
    %358 = vector.load %arg6[%c0_189, %c125_190] : memref<8x768xf32, #tpu.memory_space<vmem>>, vector<8x518xf32>
    %359 = vector.extract_strided_slice %358 {offsets = [0, 0], sizes = [8, 512], strides = [1, 1]} : vector<8x518xf32> to vector<8x512xf32>
    %360 = vector.extract_strided_slice %358 {offsets = [0, 1], sizes = [8, 512], strides = [1, 1]} : vector<8x518xf32> to vector<8x512xf32>
    %361 = vector.extract_strided_slice %358 {offsets = [0, 2], sizes = [8, 512], strides = [1, 1]} : vector<8x518xf32> to vector<8x512xf32>
    %362 = vector.extract_strided_slice %358 {offsets = [0, 3], sizes = [8, 512], strides = [1, 1]} : vector<8x518xf32> to vector<8x512xf32>
    %363 = vector.extract_strided_slice %358 {offsets = [0, 4], sizes = [8, 512], strides = [1, 1]} : vector<8x518xf32> to vector<8x512xf32>
    %364 = vector.extract_strided_slice %358 {offsets = [0, 5], sizes = [8, 512], strides = [1, 1]} : vector<8x518xf32> to vector<8x512xf32>
    %365 = vector.extract_strided_slice %358 {offsets = [0, 6], sizes = [8, 512], strides = [1, 1]} : vector<8x518xf32> to vector<8x512xf32>
    %366 = tpu.concatenate %359, %360, %361, %362, %363, %364, %365 in 0 : vector<8x512xf32>, vector<8x512xf32>, vector<8x512xf32>, vector<8x512xf32>, vector<8x512xf32>, vector<8x512xf32>, vector<8x512xf32> -> vector<56x512xf32>
    %c3_191 = arith.constant 3 : index
    %c3_192 = arith.constant 3 : index
    %c0_193 = arith.constant 0 : index
    %c0_194 = arith.constant 0 : index
    %367 = vector.load %arg3[%c3_191, %c3_192, %c0_193, %c0_194] : memref<4x7x8x56xf32, #tpu.memory_space<vmem>>, vector<1x1x8x56xf32>
    %368 = vector.shape_cast %367 : vector<1x1x8x56xf32> to vector<8x56xf32>
    %cst_195 = arith.constant dense<0.000000e+00> : vector<8x512xf32>
    %369 = tpu.matmul %368, %366, %cst_195 {dimension_numbers = #tpu.dot_dimension_numbers<[1], [0], [0], [1], [0, 0, 1, 1], [], []>} : vector<8x56xf32>, vector<56x512xf32>, vector<8x512xf32> -> vector<8x512xf32>
    %370 = arith.addf %344, %369 : vector<8x512xf32>
    %c0_196 = arith.constant 0 : index
    %c147_197 = arith.constant 147 : index
    %371 = vector.load %arg6[%c0_196, %c147_197] : memref<8x768xf32, #tpu.memory_space<vmem>>, vector<8x518xf32>
    %372 = vector.extract_strided_slice %371 {offsets = [0, 0], sizes = [8, 512], strides = [1, 1]} : vector<8x518xf32> to vector<8x512xf32>
    %373 = vector.extract_strided_slice %371 {offsets = [0, 1], sizes = [8, 512], strides = [1, 1]} : vector<8x518xf32> to vector<8x512xf32>
    %374 = vector.extract_strided_slice %371 {offsets = [0, 2], sizes = [8, 512], strides = [1, 1]} : vector<8x518xf32> to vector<8x512xf32>
    %375 = vector.extract_strided_slice %371 {offsets = [0, 3], sizes = [8, 512], strides = [1, 1]} : vector<8x518xf32> to vector<8x512xf32>
    %376 = vector.extract_strided_slice %371 {offsets = [0, 4], sizes = [8, 512], strides = [1, 1]} : vector<8x518xf32> to vector<8x512xf32>
    %377 = vector.extract_strided_slice %371 {offsets = [0, 5], sizes = [8, 512], strides = [1, 1]} : vector<8x518xf32> to vector<8x512xf32>
    %378 = vector.extract_strided_slice %371 {offsets = [0, 6], sizes = [8, 512], strides = [1, 1]} : vector<8x518xf32> to vector<8x512xf32>
    %379 = tpu.concatenate %372, %373, %374, %375, %376, %377, %378 in 0 : vector<8x512xf32>, vector<8x512xf32>, vector<8x512xf32>, vector<8x512xf32>, vector<8x512xf32>, vector<8x512xf32>, vector<8x512xf32> -> vector<56x512xf32>
    %c3_198 = arith.constant 3 : index
    %c4_199 = arith.constant 4 : index
    %c0_200 = arith.constant 0 : index
    %c0_201 = arith.constant 0 : index
    %380 = vector.load %arg3[%c3_198, %c4_199, %c0_200, %c0_201] : memref<4x7x8x56xf32, #tpu.memory_space<vmem>>, vector<1x1x8x56xf32>
    %381 = vector.shape_cast %380 : vector<1x1x8x56xf32> to vector<8x56xf32>
    %cst_202 = arith.constant dense<0.000000e+00> : vector<8x512xf32>
    %382 = tpu.matmul %381, %379, %cst_202 {dimension_numbers = #tpu.dot_dimension_numbers<[1], [0], [0], [1], [0, 0, 1, 1], [], []>} : vector<8x56xf32>, vector<56x512xf32>, vector<8x512xf32> -> vector<8x512xf32>
    %383 = arith.addf %357, %382 : vector<8x512xf32>
    %c0_203 = arith.constant 0 : index
    %c169_204 = arith.constant 169 : index
    %384 = vector.load %arg6[%c0_203, %c169_204] : memref<8x768xf32, #tpu.memory_space<vmem>>, vector<8x518xf32>
    %385 = vector.extract_strided_slice %384 {offsets = [0, 0], sizes = [8, 512], strides = [1, 1]} : vector<8x518xf32> to vector<8x512xf32>
    %386 = vector.extract_strided_slice %384 {offsets = [0, 1], sizes = [8, 512], strides = [1, 1]} : vector<8x518xf32> to vector<8x512xf32>
    %387 = vector.extract_strided_slice %384 {offsets = [0, 2], sizes = [8, 512], strides = [1, 1]} : vector<8x518xf32> to vector<8x512xf32>
    %388 = vector.extract_strided_slice %384 {offsets = [0, 3], sizes = [8, 512], strides = [1, 1]} : vector<8x518xf32> to vector<8x512xf32>
    %389 = vector.extract_strided_slice %384 {offsets = [0, 4], sizes = [8, 512], strides = [1, 1]} : vector<8x518xf32> to vector<8x512xf32>
    %390 = vector.extract_strided_slice %384 {offsets = [0, 5], sizes = [8, 512], strides = [1, 1]} : vector<8x518xf32> to vector<8x512xf32>
    %391 = vector.extract_strided_slice %384 {offsets = [0, 6], sizes = [8, 512], strides = [1, 1]} : vector<8x518xf32> to vector<8x512xf32>
    %392 = tpu.concatenate %385, %386, %387, %388, %389, %390, %391 in 0 : vector<8x512xf32>, vector<8x512xf32>, vector<8x512xf32>, vector<8x512xf32>, vector<8x512xf32>, vector<8x512xf32>, vector<8x512xf32> -> vector<56x512xf32>
    %c3_205 = arith.constant 3 : index
    %c5_206 = arith.constant 5 : index
    %c0_207 = arith.constant 0 : index
    %c0_208 = arith.constant 0 : index
    %393 = vector.load %arg3[%c3_205, %c5_206, %c0_207, %c0_208] : memref<4x7x8x56xf32, #tpu.memory_space<vmem>>, vector<1x1x8x56xf32>
    %394 = vector.shape_cast %393 : vector<1x1x8x56xf32> to vector<8x56xf32>
    %cst_209 = arith.constant dense<0.000000e+00> : vector<8x512xf32>
    %395 = tpu.matmul %394, %392, %cst_209 {dimension_numbers = #tpu.dot_dimension_numbers<[1], [0], [0], [1], [0, 0, 1, 1], [], []>} : vector<8x56xf32>, vector<56x512xf32>, vector<8x512xf32> -> vector<8x512xf32>
    %396 = arith.addf %370, %395 : vector<8x512xf32>
    %c0_210 = arith.constant 0 : index
    %c191_211 = arith.constant 191 : index
    %397 = vector.load %arg6[%c0_210, %c191_211] : memref<8x768xf32, #tpu.memory_space<vmem>>, vector<8x518xf32>
    %398 = vector.extract_strided_slice %397 {offsets = [0, 0], sizes = [8, 512], strides = [1, 1]} : vector<8x518xf32> to vector<8x512xf32>
    %399 = vector.extract_strided_slice %397 {offsets = [0, 1], sizes = [8, 512], strides = [1, 1]} : vector<8x518xf32> to vector<8x512xf32>
    %400 = vector.extract_strided_slice %397 {offsets = [0, 2], sizes = [8, 512], strides = [1, 1]} : vector<8x518xf32> to vector<8x512xf32>
    %401 = vector.extract_strided_slice %397 {offsets = [0, 3], sizes = [8, 512], strides = [1, 1]} : vector<8x518xf32> to vector<8x512xf32>
    %402 = vector.extract_strided_slice %397 {offsets = [0, 4], sizes = [8, 512], strides = [1, 1]} : vector<8x518xf32> to vector<8x512xf32>
    %403 = vector.extract_strided_slice %397 {offsets = [0, 5], sizes = [8, 512], strides = [1, 1]} : vector<8x518xf32> to vector<8x512xf32>
    %404 = vector.extract_strided_slice %397 {offsets = [0, 6], sizes = [8, 512], strides = [1, 1]} : vector<8x518xf32> to vector<8x512xf32>
    %405 = tpu.concatenate %398, %399, %400, %401, %402, %403, %404 in 0 : vector<8x512xf32>, vector<8x512xf32>, vector<8x512xf32>, vector<8x512xf32>, vector<8x512xf32>, vector<8x512xf32>, vector<8x512xf32> -> vector<56x512xf32>
    %c3_212 = arith.constant 3 : index
    %c6_213 = arith.constant 6 : index
    %c0_214 = arith.constant 0 : index
    %c0_215 = arith.constant 0 : index
    %406 = vector.load %arg3[%c3_212, %c6_213, %c0_214, %c0_215] : memref<4x7x8x56xf32, #tpu.memory_space<vmem>>, vector<1x1x8x56xf32>
    %407 = vector.shape_cast %406 : vector<1x1x8x56xf32> to vector<8x56xf32>
    %cst_216 = arith.constant dense<0.000000e+00> : vector<8x512xf32>
    %408 = tpu.matmul %407, %405, %cst_216 {dimension_numbers = #tpu.dot_dimension_numbers<[1], [0], [0], [1], [0, 0, 1, 1], [], []>} : vector<8x56xf32>, vector<56x512xf32>, vector<8x512xf32> -> vector<8x512xf32>
    %409 = arith.addf %383, %408 : vector<8x512xf32>
    %410 = arith.addf %409, %396 : vector<8x512xf32>
    %411 = vector.extract_strided_slice %410 {offsets = [0, 0], sizes = [1, 512], strides = [1, 1]} : vector<8x512xf32> to vector<1x512xf32>
    %c0_217 = arith.constant 0 : index
    %c0_218 = arith.constant 0 : index
    %c0_219 = arith.constant 0 : index
    %412 = vector.load %arg5[%c0_217, %c0_218, %c0_219] : memref<1x1x512xf32, #tpu.memory_space<vmem>>, vector<1x1x512xf32>
    %413 = vector.shape_cast %412 : vector<1x1x512xf32> to vector<1x512xf32>
    %414 = vector.shape_cast %411 : vector<1x512xf32> to vector<1x1x512xf32>
    tpu.vector_store %arg5[%c0_217, %c0_218, %c0_219], %414 {strides = array<i32>} : memref<1x1x512xf32, #tpu.memory_space<vmem>>, vector<1x1x512xf32>,
    return
  }
  func.func @transform_0(%arg0: i32) -> (i32, i32, i32) {
    %c0_i32 = arith.constant 0 : i32
    %c0_i32_0 = arith.constant 0 : i32
    %c0_i32_1 = arith.constant 0 : i32
    return %arg0, %c0_i32, %c0_i32_0 : i32, i32, i32
  }
  func.func @transform_1(%arg0: i32) -> (i32, i32) {
    %c0_i32 = arith.constant 0 : i32
    %c0_i32_0 = arith.constant 0 : i32
    %c0_i32_1 = arith.constant 0 : i32
    return %c0_i32, %c0_i32_0 : i32, i32
  }
  func.func @transform_2(%arg0: i32) -> (i32, i32, i32, i32) {
    %c0_i32 = arith.constant 0 : i32
    %c0_i32_0 = arith.constant 0 : i32
    %c0_i32_1 = arith.constant 0 : i32
    %c0_i32_2 = arith.constant 0 : i32
    %c0_i32_3 = arith.constant 0 : i32
    return %c0_i32, %c0_i32_0, %c0_i32_1, %c0_i32_2 : i32, i32, i32, i32
  }
  func.func @transform_3(%arg0: i32) -> (i32, i32, i32) {
    %c0_i32 = arith.constant 0 : i32
    %c0_i32_0 = arith.constant 0 : i32
    %c0_i32_1 = arith.constant 0 : i32
    %c0_i32_2 = arith.constant 0 : i32
    return %c0_i32, %c0_i32_0, %c0_i32_1 : i32, i32, i32
  }
  func.func @transform_4(%arg0: i32) -> (i32, i32, i32) {
    %c0_i32 = arith.constant 0 : i32
    %c0_i32_0 = arith.constant 0 : i32
    %c0_i32_1 = arith.constant 0 : i32
    return %arg0, %c0_i32, %c0_i32_0 : i32, i32, i32
  }
}

</mosaic_0001>

<bundles_post_ra>
// kernel: squeeze.1
= control target key start
LH: loop header
LB: loop body
LE: loop exit
PB: predicated region body
PF: predicated region fallthrough
CT: control target
= control target key end

     0   :  { %s248_s14 = smov 124   ;;  %s249_s15 = smov 102   ;;  %vm19_vm0 = vcmask 179200   ;;  %vm158_vm1 = vcmask 900096   ;;  %vm174_vm2 = vcmask 932864   ;;  %vm190_vm3 = vcmask 965632   ;;  %s385_s0 = inlined_call_operand.vmem [shape: f32[2,484], index: 0, kind: input, shape index: {}]   ;;  %s386_s1 = inlined_call_operand.vmem [shape: f32[2,22,22], index: 1, kind: output, shape index: {}]  }
   0x1   :  { %v202_v0 = vld [vmem:[%s385_s0 + $0x2] sm:$0x3]  ;;  %v200_v1 = vld [vmem:[%s385_s0 + $0x6] sm:$0x3]  ;;  %v201_v2 = vld [vmem:[%s385_s0 + $0x4] sm:$0x3] }
   0x2   :  { %15 = vst [vmem:[#allocation0 + $0x8] sm:$0x3] %v202_v0  ;;  %v16_v3 = vld [vmem:[%s385_s0] sm:$0x3]  ;;  %s37_s0 = smov 3  ;;  %s250_s16 = smov 116  }
   0x3   :  { %7 = vst [vmem:[#allocation0 + $0x18] sm:$0x3] %v200_v1  ;;  %s29_s17 = smov 3  ;;  %s58_s18 = smov 3  ;;  %vm162_vm4 = vcmask 146432   ;;  %vm165_vm5 = vcmask 179344  }
   0x4   :  { %11 = vst [vmem:[#allocation0 + $0x10] sm:$0x3] %v201_v2  ;;  %s251_s21 = smov 120   ;;  %s252_s22 = smov 98   ;;  %vm178_vm6 = vcmask 113664   ;;  %vm181_vm7 = vcmask 179312  }
   0x5   :  { %17 = vst [vmem:[#allocation0] sm:$0x3] %v16_v3  ;;  %s253_s23 = smov 106   ;;  %s66_s24 = smov 3  ;;  %vm194_vm8 = vcmask 80896   ;;  %vm197_vm9 = vcmask 179280  }
   0x6   :  { %s169_s25 = smov 3  ;;  %s172_s26 = smov 3 }
   0x7   :  { %s254_s27 = smov 94   ;;  %s185_s28 = smov 3 }
   0x8   :  { %s188_s29 = smov 3  ;;  %s255_s30 = smov 18  }
   0x9   :  { %v22_v4 = vld [vmem:[#allocation0 + $0x8] sm:$0x3]   ;;  %s256_s2 = smov 84   ;;  %s80_s3 = smov 3 }
   0xa   :  { %v51_v5 = vld [vmem:[#allocation0 + $0x8] sm:$0x3]   ;;  %23 = vrot.lane.b32.xlu0 %v22_v4, %s248_s14  ;;  %v38_v6 = vld [vmem:[#allocation0 + $0x19] ss:$-1 sm:%s37_s0]   ;;  %s257_s4 = smov 14   ;;  %s258_s5 = smov 80  }
   0xb   :  { %52 = vrot.lane.b32.xlu2 %v51_v5, %s249_s15  ;;  %39 = vrot.lane.b32.xlu1 %v38_v6, %s250_s16  ;;  %v30_v8 = vld [vmem:[#allocation0 + $0x11] ss:$-1 sm:%s29_s17]   ;;  %v157_v12 = vld [vmem:[#allocation0 + $0x8] sm:$0x3]   ;;  %v67_v13 = vld [vmem:[#allocation0 + $0x19] ss:$-1 sm:%s66_s24]  }
   0xc   :  { %v18_v7 = vld [vmem:[#allocation0] sm:$0x3]   ;;  %v59_v9 = vld [vmem:[#allocation0 + $0x11] ss:$-1 sm:%s58_s18]   ;;  %v170_v16 = vld [vmem:[#allocation0 + $0x9] ss:$-1 sm:%s169_s25]  }
   0xd   :  { %20 = vst.msk [vmem:[%s386_s1] ss:$24 sm:$0x3] %vm19_vm0, %v18_v7   ;;  %v44_v10 = vld [vmem:[#allocation0] sm:$0x3]   ;;  %s259_s6 = smov 10  }
   0xe   :  { %v155_v11 = vld [vmem:[#allocation0] sm:$0x3]   ;;  %v173_v17 = vld [vmem:[#allocation0 + $0x11] ss:$-1 sm:%s172_s26]   ;;  %v189_v19 = vld [vmem:[#allocation0 + $0x19] ss:$-1 sm:%s188_s29]  }
   0xf   :  { %v159_v14 = vsel %vm158_vm1, %v157_v12, %v155_v11  ;;  %v73_v15 = vld [vmem:[#allocation0] sm:$0x3]   ;;  %v186_v18 = vld [vmem:[#allocation0 + $0x11] ss:$-1 sm:%s185_s28]   ;;  %v175_v20 = vsel %vm174_vm2, %v173_v17, %v170_v16  ;;  %v81_v21 = vld [vmem:[#allocation0 + $0x9] ss:$-1 sm:%s80_s3]  }
  0x10   :  { %v191_v22 = vsel %vm190_vm3, %v189_v19, %v186_v18  ;;  %s88_s7 = smov 3  ;;  %s96_s8 = smov 3  ;;  %v103_v24 = vld [vmem:[#allocation0] sm:$0x3]  }
  0x11   :  { %v89_v23 = vld [vmem:[#allocation0 + $0x11] ss:$-1 sm:%s88_s7]   ;;  %v97_v25 = vld [vmem:[#allocation0 + $0x19] ss:$-1 sm:%s96_s8]   ;;  %s260_s9 = smov 76   ;;  %s261_s10 = smov 62  }
  0x12   :  { %31 = vrot.lane.b32.xlu0 %v30_v8, %s251_s21  ;;  %s262_s11 = smov 72   ;;  %s110_s12 = smov 3  ;;  %v133_v29 = vld [vmem:[#allocation0] sm:$0x3]  }
  0x13   :  { %60 = vrot.lane.b32.xlu2 %v59_v9, %s252_s22  ;;  %45 = vrot.lane.b32.xlu1 %v44_v10, %s253_s23  ;;  %s126_s13 = smov 3  ;;  %s118_s0 = smov 3  ;;  %v111_v26 = vld [vmem:[#allocation0 + $0x9] ss:$-1 sm:%s110_s12]  }
  0x14   :  { %v127_v27 = vld [vmem:[#allocation0 + $0x19] ss:$-1 sm:%s126_s13]   ;;  %v119_v28 = vld [vmem:[#allocation0 + $0x11] ss:$-1 sm:%s118_s0]   ;;  %s263_s14 = smov 58   ;;  %s264_s15 = smov 50  }
  0x15   :  { %s265_s16 = smov 54   ;;  %s148_s17 = smov 3 }
  0x16   :  { %s140_s18 = smov 3  ;;  %v149_v30 = vld [vmem:[#allocation0 + $0x11] ss:$-1 sm:%s148_s17]   ;;  %s266_s19 = smov 40  }
  0x17   :  { %v141_v31 = vld [vmem:[#allocation0 + $0x9] ss:$-1 sm:%s140_s18]   ;;  %s267_s20 = smov 32   ;;  %s268_s21 = smov 36  }
  0x1a   :  { %68 = vrot.lane.b32.xlu0 %v67_v13, %s254_s27 }
  0x1b   :  { %160 = vrot.lane.b32.xlu2 %v159_v14, %s255_s30  ;;  %74 = vrot.lane.b32.xlu1 %v73_v15, %s256_s2 }
  0x22   :  { %176 = vrot.lane.b32.xlu0 %v175_v20, %s257_s4 }
  0x23   :  { %82 = vrot.lane.b32.xlu2 %v81_v21, %s258_s5  ;;  %192 = vrot.lane.b32.xlu1 %v191_v22, %s259_s6 }
  0x2a   :  { %90 = vrot.lane.b32.xlu0 %v89_v23, %s260_s9 }
  0x2b   :  { %104 = vrot.lane.b32.xlu2 %v103_v24, %s261_s10  ;;  %98 = vrot.lane.b32.xlu1 %v97_v25, %s262_s11 }
  0x32   :  { %112 = vrot.lane.b32.xlu0 %v111_v26, %s263_s14 }
  0x33   :  { %128 = vrot.lane.b32.xlu2 %v127_v27, %s264_s15  ;;  %120 = vrot.lane.b32.xlu1 %v119_v28, %s265_s16 }
  0x3a   :  { %134 = vrot.lane.b32.xlu0 %v133_v29, %s266_s19 }
  0x3b   :  { %150 = vrot.lane.b32.xlu2 %v149_v30, %s267_s20  ;;  %142 = vrot.lane.b32.xlu1 %v141_v31, %s268_s21 }
  0x65   :  { %v53_v32 = vpop.permute.xlu2 %52  }
  0x66   :  { %207 = vst.msk [vmem:[%s386_s1 + $0x7] ss:$24 sm:$0x3] %vm19_vm0, %v53_v32  }
  0x6d   :  { %v61_v33 = vpop.permute.xlu2 %60  }
  0x6e   :  { %208 = vst.msk [vmem:[%s386_s1 + $0x25] ss:$-24 sm:$0x3] %vm19_vm0, %v61_v33  }
  0x75   :  { %v161_v34 = vpop.permute.xlu2 %160  }
  0x76   :  { %221 = vst.msk [vmem:[%s386_s1 + $0x5] ss:$24 sm:$0x3] %vm162_vm4, %v161_v34  }
  0x77   :  { %222 = vst.msk [vmem:[%s386_s1 + $0x5] ss:$24 sm:$0x3] %vm165_vm5, %v161_v34  }
  0x7c   :  { %v24_v35 = vpop.permute.xlu0 %23  }
  0x7d   :  { %v83_v36 = vpop.permute.xlu2 %82   ;;  %203 = vst.msk [vmem:[%s386_s1 + $0x6] ss:$24 sm:$0x3] %vm19_vm0, %v24_v35   ;;  %v40_v37 = vpop.permute.xlu1 %39  }
  0x7e   :  { %205 = vst.msk [vmem:[%s386_s1 + $0x2a] ss:$-24 sm:$0x3] %vm19_vm0, %v40_v37  }
  0x7f   :  { %211 = vst.msk [vmem:[%s386_s1 + $0x20] ss:$-24 sm:$0x3] %vm19_vm0, %v83_v36  }
  0x84   :  { %v32_v38 = vpop.permute.xlu0 %31  }
  0x85   :  { %v105_v39 = vpop.permute.xlu2 %104   ;;  %204 = vst.msk [vmem:[%s386_s1 + $0x24] ss:$-24 sm:$0x3] %vm19_vm0, %v32_v38   ;;  %v46_v40 = vpop.permute.xlu1 %45  }
  0x86   :  { %206 = vst.msk [vmem:[%s386_s1 + $0x1] ss:$24 sm:$0x3] %vm19_vm0, %v46_v40  }
  0x87   :  { %214 = vst.msk [vmem:[%s386_s1 + $0x3] ss:$24 sm:$0x3] %vm19_vm0, %v105_v39  }
  0x8c   :  { %v69_v41 = vpop.permute.xlu0 %68  }
  0x8d   :  { %v129_v42 = vpop.permute.xlu2 %128   ;;  %209 = vst.msk [vmem:[%s386_s1 + $0x2b] ss:$-24 sm:$0x3] %vm19_vm0, %v69_v41   ;;  %v75_v43 = vpop.permute.xlu1 %74  }
  0x8e   :  { %210 = vst.msk [vmem:[%s386_s1 + $0x2] ss:$24 sm:$0x3] %vm19_vm0, %v75_v43  }
  0x8f   :  { %217 = vst.msk [vmem:[%s386_s1 + $0x2d] ss:$-24 sm:$0x3] %vm19_vm0, %v129_v42  }
  0x94   :  { %v177_v44 = vpop.permute.xlu0 %176  }
  0x95   :  { %v151_v45 = vpop.permute.xlu2 %150   ;;  %223 = vst.msk [vmem:[%s386_s1 + $0x23] ss:$-24 sm:$0x3] %vm178_vm6, %v177_v44   ;;  %v193_v46 = vpop.permute.xlu1 %192  }
  0x96   :  { %224 = vst.msk [vmem:[%s386_s1 + $0x23] ss:$-24 sm:$0x3] %vm181_vm7, %v177_v44  }
  0x97   :  { %225 = vst.msk [vmem:[%s386_s1 + $0x29] ss:$-24 sm:$0x3] %vm194_vm8, %v193_v46  }
  0x98   :  { %226 = vst.msk [vmem:[%s386_s1 + $0x29] ss:$-24 sm:$0x3] %vm197_vm9, %v193_v46  }
  0x99   :  { %220 = vst.msk [vmem:[%s386_s1 + $0x28] ss:$-24 sm:$0x3] %vm19_vm0, %v151_v45  }
  0x9c   :  { %v91_v47 = vpop.permute.xlu0 %90  }
  0x9d   :  { %212 = vst.msk [vmem:[%s386_s1 + $0x26] ss:$-24 sm:$0x3] %vm19_vm0, %v91_v47   ;;  %v99_v48 = vpop.permute.xlu1 %98  }
  0x9e   :  { %213 = vst.msk [vmem:[%s386_s1 + $0x2c] ss:$-24 sm:$0x3] %vm19_vm0, %v99_v48  }
  0xa4   :  { %v113_v49 = vpop.permute.xlu0 %112  }
  0xa5   :  { %215 = vst.msk [vmem:[%s386_s1 + $0x21] ss:$-24 sm:$0x3] %vm19_vm0, %v113_v49   ;;  %v121_v50 = vpop.permute.xlu1 %120  }
  0xa6   :  { %216 = vst.msk [vmem:[%s386_s1 + $0x27] ss:$-24 sm:$0x3] %vm19_vm0, %v121_v50  }
  0xac   :  { %v135_v51 = vpop.permute.xlu0 %134  }
  0xad   :  { %218 = vst.msk [vmem:[%s386_s1 + $0x4] ss:$24 sm:$0x3] %vm19_vm0, %v135_v51   ;;  %v143_v52 = vpop.permute.xlu1 %142  }
  0xae   :  { %219 = vst.msk [vmem:[%s386_s1 + $0x22] ss:$-24 sm:$0x3] %vm19_vm0, %v143_v52  }

// kernel: decrop_cnn_pred.1
= control target key start
LH: loop header
LB: loop body
LE: loop exit
PB: predicated region body
PF: predicated region fallthrough
CT: control target
= control target key end

     0   :  { %s10427_s15 = smov 0   ;;  %s16003_s0 = inlined_call_operand.vmem [shape: f32[2,8,512], index: 0, kind: input, shape index: {}]   ;;  %s16004_s1 = inlined_call_operand.vmem [shape: f32[1,512], index: 1, kind: input, shape index: {}]   ;;  %s16005_s2 = inlined_call_operand.vmem [shape: f32[4,7,8,56], index: 2, kind: input, shape index: {}]   ;;  %s16006_s3 = inlined_call_operand.vmem [shape: f32[4,8,1], index: 3, kind: input, shape index: {}]   ;;  %s16007_s4 = inlined_call_operand.vmem [shape: f32[2,1,512], index: 4, kind: output, shape index: {}]  }
   0x1 LB: > { %s7152_s16 = sadd.s32 4294967295, %s10385_s15   ;;  %p7156_p0 = scmp.ge.s32.totalorder %s10385_s15, 1  ;;  %s10385_s15 = sphi %s10427_s15, %s14_s15  }
   0x2   : > { %p162_p1 = scmp.lt.s32.totalorder %s10385_s15, 3 }
   0x4   : > { %p163_p2 = pnand %p7156_p0, %p162_p1 }
   0x6   : > { %166 = sbr.rel (%p163_p2) target bundleno = 3757 (0xead), region = 36 }
   0xb   : > { %v207_v0 = vld [vmem:[%s16006_s3] sm:$0xff]  ;;  %p187_p3 = scmp.lt.s32.totalorder %s7152_s16, 1  ;;  %v10387_v1 = vmov 0   ;;  %v16008_v6 = vmov 0.0   ;;  %s10389_s23 = smov 127   ;;  %vm233_vm0 = vcmask 1039360  }
   0xc   : > { %7328 = vset.pattern.permute.xlu0 %v10387_v1  ;;  %8854 = vset.pattern.permute.xlu2 %v10387_v1  ;;  %s10390_s24 = smov 126   ;;  %s10391_s25 = smov 125   ;;  %vm248_vm1 = vcmask 1031168   ;;  %vm263_vm2 = vcmask 1022976   ;;  %vm278_vm3 = vcmask 1014784   ;;  %vm293_vm4 = vcmask 1006592  }
   0xd   : > { %210 = vperm.xlu0 %7328, %v207_v0   ;;  %s16378_s16 = smov (!%p187_p3, %s7152_s16), 1  ;;  %s10392_s26 = smov 124   ;;  %vm308_vm5 = vcmask 998400   ;;  %vm384_vm6 = vcmask 564224   ;;  %vm441_vm7 = vcmask 457728   ;;  %vm603_vm8 = vcmask 203776  }
   0xe   : > { %s7304_s19 = sshll.u32 %s16378_s16, 5  ;;  %s10393_s27 = smov 123   ;;  %vm912_vm9 = vcmask 23552   ;;  %vm1122_vm10 = vcmask 384000   ;;  %vm1343_vm11 = vcmask 891904   ;;  %vm1559_vm12 = vcmask 711680  }
   0xf   : > { %s10444_s22 = scalar_lea.vmem %s16003_s0, %s7304_s19  ;;  %s10394_s28 = smov 122   ;;  %vm1775_vm13 = vcmask 531456   ;;  %vm7089_vm14 = vcmask 1042434   ;;  %vm7087_vm15 = vcmask 1040384  }
  0x10   : > { %v10447_v2 = vld [vmem:[%s10444_s22 + $0x8] sm:$0xff]  ;;  %v10450_v3 = vld [vmem:[%s10444_s22 + $0x10] sm:$0xff]  ;;  %v10453_v4 = vld [vmem:[%s10444_s22] sm:$0xff]  ;;  %s10395_s29 = smov 69   ;;  %s10396_s30 = smov 25  }
  0x11   : > { %v10457_v5 = vpack.i.bf16 %v10450_v3, %v10447_v2  ;;  %v10461_v7 = vpack.i.bf16 %v10453_v4, %v16008_v6  ;;  %v10468_v8 = vld [vmem:[%s10444_s22 + $0x18] sm:$0xff]  ;;  %s10397_s5 = smov 3   ;;  %s10398_s10 = smov 47  }
  0x12   : > { %v10473_v9 = vpack.i.bf16 0.0, %v10468_v8  ;;  %v7369_v10 = vpack.i.bf16 %v10453_v4, %v10468_v8  ;;  %s10399_s11 = smov 109   ;;  %s10400_s12 = smov 87  }
  0x13   : > { %7335 = vrot.lane.b32.xlu1 %v10457_v5, %s10389_s23  ;;  %7345 = vrot.lane.b32.xlu2 %v10461_v7, %s10390_s24  ;;  %s10401_s13 = smov 65   ;;  %s7159_s19 = sshll.u32 %s16378_s16, 2 }
  0x15   : > { %7330 = vrot.lane.b32.xlu0 %v10461_v7, %s10389_s23 }
  0x1b   : > { %7340 = vrot.lane.b32.xlu1 %v10473_v9, %s10389_s23  ;;  %7350 = vrot.lane.b32.xlu2 %v10457_v5, %s10390_s24 }
  0x1d   : > { %7355 = vrot.lane.b32.xlu0 %v10473_v9, %s10390_s24 }
  0x23   : > { %7360 = vrot.lane.b32.xlu1 %v10461_v7, %s10391_s25  ;;  %7365 = vrot.lane.b32.xlu2 %v10457_v5, %s10391_s25 }
  0x25   : > { %7370 = vrot.lane.b32.xlu0 %v7369_v10, %s10391_s25 }
  0x2b   : > { %7375 = vrot.lane.b32.xlu1 %v10461_v7, %s10392_s26  ;;  %7380 = vrot.lane.b32.xlu2 %v10457_v5, %s10392_s26 }
  0x2d   : > { %7385 = vrot.lane.b32.xlu0 %v7369_v10, %s10392_s26 }
  0x33   : > { %7390 = vrot.lane.b32.xlu1 %v10461_v7, %s10393_s27  ;;  %7395 = vrot.lane.b32.xlu2 %v10457_v5, %s10393_s27 }
  0x35   : > { %7400 = vrot.lane.b32.xlu0 %v7369_v10, %s10393_s27 }
  0x3b   : > { %7405 = vrot.lane.b32.xlu1 %v10461_v7, %s10394_s28  ;;  %7410 = vrot.lane.b32.xlu2 %v10457_v5, %s10394_s28 }
  0x3d   : > { %7415 = vrot.lane.b32.xlu0 %v7369_v10, %s10394_s28 }
  0x43   : > { %7420 = vrot.lane.b32.xlu1 %v10461_v7, %s10395_s29  ;;  %7425 = vrot.lane.b32.xlu2 %v10457_v5, %s10395_s29 }
  0x4b   : > { %7430 = vrot.lane.b32.xlu1 %v10461_v7, %s10396_s30  ;;  %7435 = vrot.lane.b32.xlu2 %v10457_v5, %s10396_s30 }
  0x6d   : > { %v7346_v11 = vpop.permute.xlu2 %7345 }
  0x6e   : > { %v7348_v25 = vunpack.i.h.bf16 %v7346_v11  ;;  %v7347_v26 = vunpack.i.l.bf16 %v7346_v11 }
  0x70   : > { %v249_v33 = vsel %vm248_vm1, %v7347_v26, %v7348_v25 }
  0x75   : > { %v7351_v13 = vpop.permute.xlu2 %7350 }
  0x76   : > { %v7353_v23 = vunpack.i.h.bf16 %v7351_v13  ;;  %v7352_v24 = vunpack.i.l.bf16 %v7351_v13 }
  0x78   : > { %v251_v31 = vsel %vm248_vm1, %v7352_v24, %v7353_v23  ;;  %v250_v34 = vsel %vm248_vm1, %v7348_v25, %v7352_v24 }
  0x79   : > { %v10541_v38 = vpack.i.bf16 %v250_v34, %v249_v33 }
  0x7d   : > { %v7366_v22 = vpop.permute.xlu2 %7365 }
  0x7e   : > { %v7368_v41 = vunpack.i.h.bf16 %v7366_v22  ;;  %v7367_v52 = vunpack.i.l.bf16 %v7366_v22 }
  0x7f   : > { %v10511_v12 = vpop.permute.xlu0 %210 }
  0x80   : > { %16133 = vst [vmem:[#allocation3_spill] sm:$0xff] %v10511_v12  ;;  %v266_v63 = vsel %vm263_vm2, %v7367_v52, %v7368_v41 }
  0x85   : > { %v7336_v14 = vpop.permute.xlu1 %7335  ;;  %v7381_v39 = vpop.permute.xlu2 %7380 }
  0x86   : > { %v7338_v15 = vunpack.i.h.bf16 %v7336_v14  ;;  %v7337_v16 = vunpack.i.l.bf16 %v7336_v14  ;;  %v7383_v50 = vunpack.i.h.bf16 %v7381_v39  ;;  %v7382_v51 = vunpack.i.l.bf16 %v7381_v39 }
  0x87   : > { %v10513_v17 = vpop.permute.xlu0 %7330 }
  0x88   : > { %v7333_v18 = vunpack.i.h.bf16 %v10513_v17  ;;  %v236_v19 = vsel %vm233_vm0, %v7337_v16, %v7338_v15  ;;  %v281_v59 = vsel %vm278_vm3, %v7382_v51, %v7383_v50 }
  0x8a   : > { %v235_v20 = vsel %vm233_vm0, %v7333_v18, %v7337_v16 }
  0x8b   : > { %v10520_v21 = vpack.i.bf16 %v236_v19, %v235_v20 }
  0x8d   : > { %7450 = vrot.lane.b32.xlu1 %v10520_v21, %s10395_s29  ;;  %v10524_v27 = vpop.permute.xlu1 %7340  ;;  %v7396_v57 = vpop.permute.xlu2 %7395 }
  0x8e   : > { %v7342_v28 = vunpack.i.l.bf16 %v10524_v27  ;;  %v7398_v10 = vunpack.i.h.bf16 %v7396_v57  ;;  %v7397_v11 = vunpack.i.l.bf16 %v7396_v57  ;;  %v7604_v57 = vpack.i.bf16 %v10468_v8, %v10450_v3 }
  0x8f   : > { %v10527_v29 = vpop.permute.xlu0 %7355 }
  0x90   : > { %v7357_v30 = vunpack.i.l.bf16 %v10527_v29  ;;  %v237_v32 = vsel %vm233_vm0, %v7338_v15, %v7342_v28  ;;  %v296_v22 = vsel %vm293_vm4, %v7397_v11, %v7398_v10 }
  0x91   : > { %v10534_v35 = vpack.i.bf16 %v7342_v28, %v237_v32 }
  0x92   : > { %v252_v36 = vsel %vm248_vm1, %v7353_v23, %v7357_v30 }
  0x93   : > { %v10537_v37 = vpack.i.bf16 %v252_v36, %v251_v31  ;;  %7455 = vrot.lane.b32.xlu2 %v10534_v35, %s10395_s29 }
  0x95   : > { %7465 = vrot.lane.b32.xlu1 %v10537_v37, %s10395_s29  ;;  %v7361_v40 = vpop.permute.xlu1 %7360  ;;  %v7411_v26 = vpop.permute.xlu2 %7410 }
  0x96   : > { %v7363_v42 = vunpack.i.h.bf16 %v7361_v40  ;;  %v7362_v43 = vunpack.i.l.bf16 %v7361_v40  ;;  %v7413_v32 = vunpack.i.h.bf16 %v7411_v26  ;;  %v7412_v33 = vunpack.i.l.bf16 %v7411_v26 }
  0x97   : > { %v10545_v44 = vpop.permute.xlu0 %7370 }
  0x98   : > { %v7372_v45 = vunpack.i.l.bf16 %v10545_v44  ;;  %v264_v46 = vsel %vm263_vm2, %v7362_v43, %v7363_v42  ;;  %v265_v62 = vsel %vm263_vm2, %v7363_v42, %v7367_v52  ;;  %v311_v43 = vsel %vm308_vm5, %v7412_v33, %v7413_v32 }
  0x99   : > { %v10549_v47 = vpack.i.bf16 %v264_v46, %v7357_v30  ;;  %v10573_v14 = vpack.i.bf16 %v266_v63, %v265_v62  ;;  %v7332_v52 = vunpack.i.l.bf16 %v10513_v17 }
  0x9a   : > { %v267_v48 = vsel %vm263_vm2, %v7368_v41, %v7372_v45 }
  0x9b   : > { %v10552_v49 = vpack.i.bf16 %v7372_v45, %v267_v48  ;;  %7470 = vrot.lane.b32.xlu2 %v10549_v47, %s10395_s29 }
  0x9d   : > { %7480 = vrot.lane.b32.xlu1 %v10552_v49, %s10395_s29  ;;  %v7376_v53 = vpop.permute.xlu1 %7375  ;;  %v10642_v17 = vpop.permute.xlu2 %7425 }
  0x9e   : > { %v7378_v54 = vunpack.i.h.bf16 %v7376_v53  ;;  %v7377_v55 = vunpack.i.l.bf16 %v7376_v53 }
  0x9f   : > { %v10558_v56 = vpop.permute.xlu0 %7385 }
  0xa0   : > { %v7387_v58 = vunpack.i.l.bf16 %v10558_v56  ;;  %v279_v60 = vsel %vm278_vm3, %v7377_v55, %v7378_v54  ;;  %v280_v61 = vsel %vm278_vm3, %v7378_v54, %v7382_v51  ;;  %v10615_v54 = vsel %vm233_vm0, %v7332_v52, %v7333_v18 }
  0xa1   : > { %v10566_v0 = vpack.i.bf16 %v280_v61, %v279_v60  ;;  %v7444_v55 = vpack.i.bf16 %v10615_v54, %v10468_v8  ;;  %v7599_v18 = vpack.i.bf16 %v10447_v2, %v10453_v4 }
  0xa2   : > { %v282_v1 = vsel %vm278_vm3, %v7383_v50, %v7387_v58 }
  0xa3   : > { %v10569_v13 = vpack.i.bf16 %v282_v1, %v281_v59  ;;  %7485 = vrot.lane.b32.xlu2 %v10566_v0, %s10395_s29 }
  0xa5   : > { %v7391_v15 = vpop.permute.xlu1 %7390 }
  0xa6   : > { %v7393_v16 = vunpack.i.h.bf16 %v7391_v15  ;;  %v7392_v19 = vunpack.i.l.bf16 %v7391_v15 }
  0xa7   : > { %v10575_v20 = vpop.permute.xlu0 %7400 }
  0xa8   : > { %v7402_v23 = vunpack.i.l.bf16 %v10575_v20  ;;  %v294_v24 = vsel %vm293_vm4, %v7392_v19, %v7393_v16  ;;  %v295_v25 = vsel %vm293_vm4, %v7393_v16, %v7397_v11 }
  0xa9   : > { %v10581_v28 = vpack.i.bf16 %v294_v24, %v7387_v58  ;;  %v10583_v30 = vpack.i.bf16 %v296_v22, %v295_v25  ;;  %v10656_v58 = vpop.permute.xlu2 %7435 }
  0xaa   : > { %v297_v31 = vsel %vm293_vm4, %v7398_v10, %v7402_v23 }
  0xab   : > { %7495 = vrot.lane.b32.xlu1 %v10581_v28, %s10395_s29  ;;  %7500 = vrot.lane.b32.xlu2 %v10583_v30, %s10395_s29  ;;  %v10590_v34 = vpack.i.bf16 %v7402_v23, %v297_v31 }
  0xad   : > { %16134 = vst [vmem:[#allocation4_spill] sm:$0xff] %v10590_v34  ;;  %v7406_v36 = vpop.permute.xlu1 %7405 }
  0xae   : > { %v7408_v39 = vunpack.i.h.bf16 %v7406_v36  ;;  %v7407_v40 = vunpack.i.l.bf16 %v7406_v36 }
  0xaf   : > { %v10592_v41 = vpop.permute.xlu0 %7415 }
  0xb0   : > { %v7417_v42 = vunpack.i.l.bf16 %v10592_v41  ;;  %v309_v45 = vsel %vm308_vm5, %v7407_v40, %v7408_v39  ;;  %v310_v46 = vsel %vm308_vm5, %v7408_v39, %v7412_v33 }
  0xb1   : > { %v10600_v50 = vpack.i.bf16 %v310_v46, %v309_v45 }
  0xb2   : > { %v10598_v48 = vpack.i.bf16 0.0, %v7417_v42  ;;  %v312_v51 = vsel %vm308_vm5, %v7413_v32, %v7417_v42 }
  0xb3   : > { %16136 = vst [vmem:[#allocation6_spill] sm:$0xff] %v10600_v50  ;;  %v10604_v53 = vpack.i.bf16 %v312_v51, %v311_v43  ;;  %7510 = vrot.lane.b32.xlu1 %v10600_v50, %s10395_s29 }
  0xb4   : > { %16135 = vst [vmem:[#allocation5_spill] sm:$0xff] %v10598_v48  ;;  %7440 = vrot.lane.b32.xlu0 %v10598_v48, %s10395_s29 }
  0xb5   : > { %7515 = vrot.lane.b32.xlu2 %v10604_v53, %s10395_s29  ;;  %v10666_v4 = vpop.permute.xlu1 %7420 }
  0xbb   : > { %7525 = vrot.lane.b32.xlu1 %v10520_v21, %s10396_s30 }
  0xbc   : > { %7445 = vrot.lane.b32.xlu0 %v7444_v55, %s10395_s29 }
  0xbd   : > { %7530 = vrot.lane.b32.xlu2 %v10534_v35, %s10396_s30  ;;  %v10676_v59 = vpop.permute.xlu1 %7430 }
  0xc3   : > { %7540 = vrot.lane.b32.xlu1 %v10537_v37, %s10396_s30 }
  0xc4   : > { %7460 = vrot.lane.b32.xlu0 %v10541_v38, %s10395_s29 }
  0xc5   : > { %7545 = vrot.lane.b32.xlu2 %v10549_v47, %s10396_s30 }
  0xcb   : > { %7555 = vrot.lane.b32.xlu1 %v10552_v49, %s10396_s30 }
  0xcc   : > { %7475 = vrot.lane.b32.xlu0 %v10573_v14, %s10395_s29 }
  0xcd   : > { %7560 = vrot.lane.b32.xlu2 %v10566_v0, %s10396_s30 }
  0xd3   : > { %7570 = vrot.lane.b32.xlu1 %v10581_v28, %s10396_s30 }
  0xd4   : > { %7490 = vrot.lane.b32.xlu0 %v10569_v13, %s10395_s29 }
  0xd5   : > { %7575 = vrot.lane.b32.xlu2 %v10583_v30, %s10396_s30 }
  0xdb   : > { %7585 = vrot.lane.b32.xlu1 %v10600_v50, %s10396_s30 }
  0xdc   : > { %7505 = vrot.lane.b32.xlu0 %v10590_v34, %s10395_s29 }
  0xdd   : > { %7590 = vrot.lane.b32.xlu2 %v10604_v53, %s10396_s30 }
  0xe3   : > { %7600 = vrot.lane.b32.xlu1 %v7599_v18, %s10389_s23 }
  0xe4   : > { %7520 = vrot.lane.b32.xlu0 %v7444_v55, %s10396_s30 }
  0xe5   : > { %7605 = vrot.lane.b32.xlu2 %v7604_v57, %s10389_s23 }
  0xeb   : > { %7615 = vrot.lane.b32.xlu1 %v7604_v57, %s10390_s24 }
  0xec   : > { %7535 = vrot.lane.b32.xlu0 %v10541_v38, %s10396_s30 }
  0xed   : > { %7620 = vrot.lane.b32.xlu2 %v10457_v5, %s10391_s25  ;;  %v10664_v2 = vpop.permute.xlu2 %7455 }
  0xf3   : > { %7630 = vrot.lane.b32.xlu1 %v10457_v5, %s10392_s26 }
  0xf4   : > { %7550 = vrot.lane.b32.xlu0 %v10573_v14, %s10396_s30 }
  0xf5   : > { %7635 = vrot.lane.b32.xlu2 %v10473_v9, %s10392_s26  ;;  %v10674_v3 = vpop.permute.xlu2 %7470 }
  0xfb   : > { %7645 = vrot.lane.b32.xlu1 %v10473_v9, %s10393_s27 }
  0xfc   : > { %7565 = vrot.lane.b32.xlu0 %v10569_v13, %s10396_s30 }
  0xfd   : > { %7650 = vrot.lane.b32.xlu2 %v10457_v5, %s10394_s28  ;;  %v10682_v60 = vpop.permute.xlu2 %7485 }
  0xfe   : > { %v7488_v42 = vunpack.i.h.bf16 %v10682_v60  ;;  %v7487_v43 = vunpack.i.l.bf16 %v10682_v60 }
  0xff   : > { %v10684_v61 = vpop.permute.xlu1 %7450 }
 0x103   : > { %7660 = vrot.lane.b32.xlu1 %v10461_v7, %s10397_s5 }
 0x104   : > { %7580 = vrot.lane.b32.xlu0 %v10590_v34, %s10396_s30 }
 0x105   : > { %v10688_v62 = vpop.permute.xlu2 %7500  ;;  %7665 = vrot.lane.b32.xlu2 %v10457_v5, %s10397_s5 }
 0x106   : > { %v16011_v24 = vunpack.i.h.bf16 %v10688_v62  ;;  %v7502_v25 = vunpack.i.l.bf16 %v10688_v62 }
 0x107   : > { %v10690_v63 = vpop.permute.xlu1 %7465 }
 0x108   : > { %v406_v52 = vsel %vm384_vm6, %v7502_v25, %v16011_v24 }
 0x10c   : > { %7595 = vrot.lane.b32.xlu0 %v10598_v48, %s10396_s30 }
 0x10f   : > { %v7516_v1 = vpop.permute.xlu2 %7515  ;;  %v10698_v16 = vpop.permute.xlu1 %7480 }
 0x110   : > { %v7518_v10 = vunpack.i.h.bf16 %v7516_v1  ;;  %v7517_v11 = vunpack.i.l.bf16 %v7516_v1 }
 0x112   : > { %v411_v15 = vsel %vm384_vm6, %v7517_v11, %v7518_v10 }
 0x113   : > { %494 = vmatpush.msra.mxu2 %v411_v15 }
 0x114   : > { %7610 = vrot.lane.b32.xlu0 %v7599_v18, %s10390_s24  ;;  %v401_v18 = vsel %vm384_vm6, %v7487_v43, %v7488_v42 }
 0x117   : > { %v10700_v19 = vpop.permute.xlu2 %7530 }
 0x11c   : > { %7625 = vrot.lane.b32.xlu0 %v10473_v9, %s10391_s25 }
 0x11d   : > { %v10704_v22 = vpop.permute.xlu1 %7495 }
 0x11e   : > { %v7498_v32 = vunpack.i.h.bf16 %v10704_v22  ;;  %v7497_v50 = vunpack.i.l.bf16 %v10704_v22 }
 0x11f   : > { %v10706_v23 = vpop.permute.xlu2 %7545 }
 0x120   : > { %v405_v55 = vsel %vm384_vm6, %v7498_v32, %v7502_v25 }
 0x124   : > { %7640 = vrot.lane.b32.xlu0 %v10457_v5, %s10393_s27 }
 0x125   : > { %v7511_v31 = vpop.permute.xlu1 %7510 }
 0x126   : > { %v10712_v26 = vpop.permute.xlu0 %7440  ;;  %v7513_v36 = vunpack.i.h.bf16 %v7511_v31  ;;  %v7512_v39 = vunpack.i.l.bf16 %v7511_v31  ;;  %v7473_v31 = vunpack.i.h.bf16 %v10674_v3 }
 0x127   : > { %16137 = vst [vmem:[#allocation7_spill] sm:$0xff] %v10712_v26  ;;  %v7442_v33 = vunpack.i.l.bf16 %v10712_v26  ;;  %v10716_v40 = vpop.permute.xlu2 %7560  ;;  %v7482_v26 = vunpack.i.l.bf16 %v10698_v16 }
 0x128   : > { %v409_v45 = vsel %vm384_vm6, %v7512_v39, %v7513_v36  ;;  %v410_v46 = vsel %vm384_vm6, %v7513_v36, %v7517_v11 }
 0x129   : > { %v412_v51 = vsel %vm384_vm6, %v7518_v10, %v7442_v33  ;;  %454 = vmatpush.msra.mxu0 %v409_v45  ;;  %474 = vmatpush.msra.mxu1 %v410_v46  ;;  %v7423_v46 = vunpack.i.h.bf16 %v10666_v4 }
 0x12a   : > { %514 = vmatpush.msra.mxu3 %v412_v51 }
 0x12b   : > { %455 = vmatpush.msra.mxu0 %v405_v55  ;;  %475 = vmatpush.msra.mxu1 %v406_v52  ;;  %v7422_v52 = vunpack.i.l.bf16 %v10666_v4  ;;  %v7452_v55 = vunpack.i.l.bf16 %v10684_v61  ;;  %v10777_v4 = vld [vmem:[%s16005_s2] sm:$0xff] }
 0x12c   : > { %7655 = vrot.lane.b32.xlu0 %v10473_v9, %s10394_s28 }
 0x12d   : > { %v10730_v57 = vpop.permute.xlu1 %7525  ;;  %456 = vmatpush.msra.mxu0 %v401_v18  ;;  %v385_v24 = vsel %vm384_vm6, %v7422_v52, %v7423_v46 }
 0x12e   : > { %v10732_v60 = vpop.permute.xlu0 %7445 }
 0x12f   : > { %v10734_v1 = vpop.permute.xlu2 %7575  ;;  %v7448_v7 = vunpack.i.h.bf16 %v10732_v60 }
 0x135   : > { %v10738_v10 = vpop.permute.xlu1 %7540 }
 0x136   : > { %v7461_v11 = vpop.permute.xlu0 %7460 }
 0x137   : > { %v10742_v9 = vpop.permute.xlu2 %7590  ;;  %v7463_v32 = vunpack.i.h.bf16 %v7461_v11  ;;  %v7462_v33 = vunpack.i.l.bf16 %v7461_v11 }
 0x139   : > { %v393_v18 = vsel %vm384_vm6, %v7462_v33, %v7463_v32 }
 0x13d   : > { %v10744_v15 = vpop.permute.xlu1 %7555 }
 0x13e   : > { %v10746_v25 = vpop.permute.xlu0 %7475 }
 0x13f   : > { %v7477_v36 = vunpack.i.l.bf16 %v10746_v25  ;;  %v10750_v39 = vpop.permute.xlu2 %7605  ;;  %v7478_v33 = vunpack.i.h.bf16 %v10746_v25 }
 0x140   : > { %v10753_v5 = vunpack.i.h.bf16 %v10750_v39  ;;  %v16010_v43 = vunpack.i.l.bf16 %v10750_v39 }
 0x141   : > { %v397_v45 = vsel %vm384_vm6, %v7473_v31, %v7477_v36  ;;  %v389_v31 = vsel %vm384_vm6, %v7448_v7, %v7452_v55 }
 0x142   : > { %16138 = vst [vmem:[#allocation8_spill] sm:$0xff] %v10753_v5  ;;  %457 = vmatpush.msra.mxu0 %v397_v45  ;;  %v10763_v51 = vsel %vm233_vm0, %v16010_v43, %v10753_v5 }
 0x143   : > { %v7679_v11 = vpack.i.bf16 %v10753_v5, %v10763_v51 }
 0x144   : > { %458 = vmatpush.msra.mxu0 %v393_v18  ;;  %v16017_v18 = vunpack.i.h.bf16 %v10684_v61 }
 0x145   : > { %7680 = vrot.lane.b32.xlu2 %v7679_v11, %s10397_s5  ;;  %v10772_v45 = vpop.permute.xlu1 %7570  ;;  %v7467_v11 = vunpack.i.l.bf16 %v10690_v63 }
 0x146   : > { %v7491_v6 = vpop.permute.xlu0 %7490  ;;  %459 = vmatpush.msra.mxu0 %v389_v31  ;;  %v398_v31 = vsel %vm384_vm6, %v7477_v36, %v7478_v33  ;;  %v7483_v36 = vunpack.i.h.bf16 %v10698_v16  ;;  %v7578_v16 = vunpack.i.h.bf16 %v10734_v1 }
 0x147   : > { %v7492_v43 = vunpack.i.l.bf16 %v7491_v6  ;;  %v394_v25 = vsel %vm384_vm6, %v7463_v32, %v7467_v11  ;;  %v7493_v12 = vunpack.i.h.bf16 %v7491_v6  ;;  %v16139_v6 = vunpack.i.l.bf16 %v10642_v17 }
 0x148   : > { %460 = vmatpush.msra.mxu0 %v385_v24 }
 0x149   : > { %7160 = vmatmul.msk.f32.vlgmr.msra.gmra.mxu0 %vm441_vm7, %v10777_v4  ;;  %v402_v7 = vsel %vm384_vm6, %v7488_v42, %v7492_v43  ;;  %v390_v42 = vsel %vm384_vm6, %v7452_v55, %v16017_v18  ;;  %v386_v32 = vsel %vm384_vm6, %v7423_v46, %v16139_v6  ;;  %v16140_v55 = vunpack.i.h.bf16 %v10688_v62 }
 0x14a   : > { %476 = vmatpush.msra.mxu1 %v402_v7  ;;  %v7468_v62 = vunpack.i.h.bf16 %v10690_v63  ;;  %v7563_v6 = vunpack.i.h.bf16 %v10716_v40  ;;  %v404_v22 = vsel %vm384_vm6, %v7493_v12, %v7497_v50 }
 0x14c   : > { %477 = vmatpush.msra.mxu1 %v398_v31  ;;  %v7592_v31 = vunpack.i.l.bf16 %v10742_v9 }
 0x14d   : > { %v7586_v52 = vpop.permute.xlu1 %7585 }
 0x14e   : > { %v7506_v24 = vpop.permute.xlu0 %7505  ;;  %478 = vmatpush.msra.mxu1 %v394_v25  ;;  %v7588_v5 = vunpack.i.h.bf16 %v7586_v52  ;;  %v7587_v7 = vunpack.i.l.bf16 %v7586_v52  ;;  %v7573_v25 = vunpack.i.h.bf16 %v10772_v45 }
 0x14f   : > { %v7508_v48 = vunpack.i.h.bf16 %v7506_v24  ;;  %v7507_v34 = vunpack.i.l.bf16 %v7506_v24 }
 0x150   : > { %479 = vmatpush.msra.mxu1 %v390_v42  ;;  %v628_v24 = vsel %vm603_vm8, %v7587_v7, %v7588_v5  ;;  %v7577_v42 = vunpack.i.l.bf16 %v10734_v1  ;;  %v629_v46 = vsel %vm603_vm8, %v7588_v5, %v7592_v31  ;;  %v7457_v5 = vunpack.i.l.bf16 %v10664_v2 }
 0x151   : > { %v407_v18 = vsel %vm384_vm6, %v16140_v55, %v7507_v34  ;;  %v408_v52 = vsel %vm384_vm6, %v7507_v34, %v7508_v48  ;;  %v7562_v34 = vunpack.i.l.bf16 %v10716_v40  ;;  %672 = vmatpush.msrb.mxu0 %v628_v24  ;;  %v403_v48 = vsel %vm384_vm6, %v7492_v43, %v7493_v12 }
 0x152   : > { %480 = vmatpush.msra.mxu1 %v386_v32  ;;  %495 = vmatpush.msra.mxu2 %v407_v18  ;;  %v7343_v18 = vunpack.i.h.bf16 %v10524_v27  ;;  %v624_v63 = vsel %vm603_vm8, %v7573_v25, %v7577_v42  ;;  %v399_v7 = vsel %vm384_vm6, %v7478_v33, %v7482_v26  ;;  %v7458_v32 = vunpack.i.h.bf16 %v10664_v2 }
 0x153   : > { %515 = vmatpush.msra.mxu3 %v408_v52  ;;  %7161 = vmatmul.msk.f32.vlgmr.msra.gmra.mxu1 %vm441_vm7, %v10777_v4  ;;  %v7472_v43 = vunpack.i.l.bf16 %v10674_v3  ;;  %v625_v55 = vsel %vm603_vm8, %v7577_v42, %v7578_v16  ;;  %v400_v27 = vsel %vm384_vm6, %v7482_v26, %v7483_v36  ;;  %v620_v2 = vsel %vm603_vm8, %v7562_v34, %v7563_v6 }
 0x154   : > { %496 = vmatpush.msra.mxu2 %v403_v48  ;;  %692 = vmatpush.msrb.mxu1 %v629_v46  ;;  %v395_v3 = vsel %vm384_vm6, %v7467_v11, %v7468_v62  ;;  %v7428_v33 = vunpack.i.h.bf16 %v10642_v17  ;;  %v7447_v24 = vunpack.i.l.bf16 %v10732_v60  ;;  %v16141_v26 = vunpack.i.h.bf16 %v10684_v61 }
 0x155   : > { %516 = vmatpush.msra.mxu3 %v404_v22  ;;  %673 = vmatpush.msrb.mxu0 %v624_v63  ;;  %v7601_v12 = vpop.permute.xlu1 %7600  ;;  %v396_v42 = vsel %vm384_vm6, %v7468_v62, %v7472_v43  ;;  %v16142_v34 = vunpack.i.l.bf16 %v10750_v39  ;;  %v7593_v60 = vunpack.i.h.bf16 %v10742_v9  ;;  %v392_v22 = vsel %vm384_vm6, %v7457_v5, %v7458_v32 }
 0x156   : > { %v10826_v50 = vpop.permute.xlu0 %7520  ;;  %497 = vmatpush.msra.mxu2 %v399_v7  ;;  %693 = vmatpush.msrb.mxu1 %v625_v55  ;;  %v7603_v52 = vunpack.i.h.bf16 %v7601_v12  ;;  %v7602_v25 = vunpack.i.l.bf16 %v7601_v12  ;;  %v391_v36 = vsel %vm384_vm6, %v16141_v26, %v7457_v5  ;;  %v16143_v39 = vunpack.i.l.bf16 %v10642_v17 }
 0x157   : > { %517 = vmatpush.msra.mxu3 %v400_v27  ;;  %674 = vmatpush.msrb.mxu0 %v620_v2  ;;  %v7373_v7 = vunpack.i.h.bf16 %v10545_v44  ;;  %v7548_v55 = vunpack.i.h.bf16 %v10706_v23 }
 0x158   : > { %498 = vmatpush.msra.mxu2 %v395_v3  ;;  %v10840_v46 = vsel %vm233_vm0, %v7602_v25, %v7603_v52  ;;  %v770_v11 = vsel %vm233_vm0, %v7603_v52, %v16142_v34  ;;  %v768_v48 = vsel %vm233_vm0, %v7343_v18, %v7602_v25  ;;  %v387_v63 = vsel %vm384_vm6, %v16143_v39, %v7428_v33  ;;  %v10886_v34 = vpop.permute.xlu2 %7620  ;;  %v10900_v39 = vld [vmem:[%s16005_s2 + $0x10] sm:$0xff] }
 0x159   : > { %518 = vmatpush.msra.mxu3 %v396_v42  ;;  %v7674_v62 = vpack.i.bf16 %v770_v11, %v10840_v46  ;;  %v7669_v61 = vpack.i.bf16 %v768_v48, %v10468_v8  ;;  %v388_v18 = vsel %vm384_vm6, %v7428_v33, %v7447_v24  ;;  %v630_v8 = vsel %vm603_vm8, %v7592_v31, %v7593_v60 }
 0x15a   : > { %499 = vmatpush.msra.mxu2 %v391_v36  ;;  %v7388_v31 = vunpack.i.h.bf16 %v10558_v56  ;;  %v7433_v24 = vunpack.i.h.bf16 %v10676_v59  ;;  %v7523_v42 = vunpack.i.h.bf16 %v10826_v50  ;;  %v7432_v36 = vunpack.i.l.bf16 %v10676_v59 }
 0x15b   : > { %519 = vmatpush.msra.mxu3 %v392_v22  ;;  %7675 = vrot.lane.b32.xlu1 %v7674_v62, %s10397_s5  ;;  %v7527_v56 = vunpack.i.l.bf16 %v10730_v57 }
 0x15c   : > { %7670 = vrot.lane.b32.xlu0 %v7669_v61, %s10397_s5  ;;  %500 = vmatpush.msra.mxu2 %v387_v63 }
 0x15d   : > { %520 = vmatpush.msra.mxu3 %v388_v18  ;;  %7162 = vmatmul.msk.f32.vlgmr.msra.gmra.mxu2 %vm441_vm7, %v10777_v4  ;;  %v10865_v5 = vpop.permute.xlu1 %7615  ;;  %v608_v61 = vsel %vm603_vm8, %v7523_v42, %v7527_v56 }
 0x15e   : > { %7163 = vmatmul.msk.f32.vlgmr.msra.gmra.mxu3 %vm441_vm7, %v10777_v4  ;;  %v7536_v17 = vpop.permute.xlu0 %7535  ;;  %712 = vmatpush.msrb.mxu2 %v630_v8  ;;  %v10869_v32 = vunpack.i.h.bf16 %v10865_v5  ;;  %v10876_v4 = vpack.i.bf16 %v10763_v51, %v770_v11  ;;  %v604_v8 = vsel %vm603_vm8, %v7432_v36, %v7433_v24  ;;  %v7543_v36 = vunpack.i.h.bf16 %v10738_v10 }
 0x15f   : > { %v7538_v12 = vunpack.i.h.bf16 %v7536_v17  ;;  %v7537_v25 = vunpack.i.l.bf16 %v7536_v17 }
 0x160   : > { %v7694_v43 = vpack.i.bf16 %v7373_v7, %v10869_v32 }
 0x161   : > { %v612_v22 = vsel %vm603_vm8, %v7537_v25, %v7538_v12 }
 0x162   : > { %7695 = vrot.lane.b32.xlu2 %v7694_v43, %s10397_s5  ;;  %v7528_v43 = vunpack.i.h.bf16 %v10730_v57 }
 0x164   : > { %v609_v40 = vsel %vm603_vm8, %v7527_v56, %v7528_v43 }
 0x165   : > { %v7631_v27 = vpop.permute.xlu1 %7630 }
 0x166   : > { %v7551_v52 = vpop.permute.xlu0 %7550  ;;  %v7633_v2 = vunpack.i.h.bf16 %v7631_v27  ;;  %v7632_v3 = vunpack.i.l.bf16 %v7631_v27  ;;  %v10911_v27 = vpop.permute.xlu2 %7635 }
 0x167   : > { %v7552_v33 = vunpack.i.l.bf16 %v7551_v52  ;;  %v7553_v63 = vunpack.i.h.bf16 %v7551_v52  ;;  %v7437_v52 = vunpack.i.l.bf16 %v10656_v58  ;;  %v7637_v57 = vunpack.i.l.bf16 %v10911_v27 }
 0x168   : > { %v808_v51 = vsel %vm278_vm3, %v7388_v31, %v7632_v3  ;;  %v10889_v48 = vsel %vm278_vm3, %v7632_v3, %v7633_v2 }
 0x169   : > { %v616_v26 = vsel %vm603_vm8, %v7548_v55, %v7552_v33  ;;  %v7709_v11 = vpack.i.bf16 %v808_v51, %v7388_v31  ;;  %v10893_v62 = vpack.i.bf16 %v10889_v48, %v808_v51  ;;  %v7542_v31 = vunpack.i.l.bf16 %v10738_v10 }
 0x16a   : > { %675 = vmatpush.msrb.mxu0 %v616_v26  ;;  %v617_v55 = vsel %vm603_vm8, %v7552_v33, %v7553_v63  ;;  %v605_v33 = vsel %vm603_vm8, %v7433_v24, %v7437_v52  ;;  %v10933_v1 = vsel %vm278_vm3, %v7633_v2, %v7637_v57  ;;  %v7438_v24 = vunpack.i.h.bf16 %v10656_v58 }
 0x16b   : > { %7710 = vrot.lane.b32.xlu2 %v7709_v11, %s10397_s5  ;;  %v613_v25 = vsel %vm603_vm8, %v7538_v12, %v7542_v31  ;;  %v7557_v12 = vunpack.i.l.bf16 %v10744_v15  ;;  %v614_v2 = vsel %vm603_vm8, %v7542_v31, %v7543_v36 }
 0x16c   : > { %676 = vmatpush.msrb.mxu0 %v612_v22  ;;  %v606_v58 = vsel %vm603_vm8, %v7437_v52, %v7438_v24 }
 0x16d   : > { %v10997_v44 = vpop.permute.xlu1 %7645 }
 0x16e   : > { %v7566_v59 = vpop.permute.xlu0 %7565  ;;  %677 = vmatpush.msrb.mxu0 %v608_v61  ;;  %v7532_v61 = vunpack.i.l.bf16 %v10700_v19 }
 0x16f   : > { %v7567_v18 = vunpack.i.l.bf16 %v7566_v59  ;;  %v7568_v42 = vunpack.i.h.bf16 %v7566_v59 }
 0x170   : > { %678 = vmatpush.msrb.mxu0 %v604_v8  ;;  %v610_v8 = vsel %vm603_vm8, %v7528_v43, %v7532_v61  ;;  %v7547_v43 = vunpack.i.l.bf16 %v10706_v23 }
 0x171   : > { %7166 = vmatmul.msk.f32.vlgmr.msrb.gmra.mxu0 %vm441_vm7, %v10900_v39  ;;  %v621_v17 = vsel %vm603_vm8, %v7563_v6, %v7567_v18  ;;  %v7638_v6 = vunpack.i.h.bf16 %v10911_v27  ;;  %v622_v56 = vsel %vm603_vm8, %v7567_v18, %v7568_v42 }
 0x172   : > { %694 = vmatpush.msrb.mxu1 %v621_v17 }
 0x173   : > { %v10930_v11 = vsel %vm278_vm3, %v7637_v57, %v7638_v6  ;;  %v615_v57 = vsel %vm603_vm8, %v7543_v36, %v7547_v43  ;;  %v7714_v43 = vpack.i.bf16 %v10933_v1, %v10889_v48 }
 0x174   : > { %695 = vmatpush.msrb.mxu1 %v617_v55  ;;  %v10937_v10 = vpack.i.bf16 %v10930_v11, %v10933_v1  ;;  %v7572_v55 = vunpack.i.l.bf16 %v10772_v45 }
 0x176   : > { %v7581_v3 = vpop.permute.xlu0 %7580  ;;  %696 = vmatpush.msrb.mxu1 %v613_v25  ;;  %v7617_v25 = vunpack.i.l.bf16 %v10865_v5  ;;  %v623_v9 = vsel %vm603_vm8, %v7568_v42, %v7572_v55  ;;  %v7522_v42 = vunpack.i.l.bf16 %v10826_v50 }
 0x177   : > { %v7582_v26 = vunpack.i.l.bf16 %v7581_v3  ;;  %v7583_v59 = vunpack.i.h.bf16 %v7581_v3 }
 0x178   : > { %697 = vmatpush.msrb.mxu1 %v609_v40  ;;  %v10963_v5 = vsel %vm248_vm1, %v7617_v25, %v10869_v32  ;;  %v7533_v40 = vunpack.i.h.bf16 %v10700_v19  ;;  %v7622_v19 = vunpack.i.l.bf16 %v10886_v34 }
 0x179   : > { %v626_v51 = vsel %vm603_vm8, %v7578_v16, %v7582_v26  ;;  %v618_v16 = vsel %vm603_vm8, %v7553_v63, %v7557_v12  ;;  %v7558_v63 = vunpack.i.h.bf16 %v10744_v15  ;;  %v627_v3 = vsel %vm603_vm8, %v7582_v26, %v7583_v59 }
 0x17a   : > { %698 = vmatpush.msrb.mxu1 %v605_v33  ;;  %713 = vmatpush.msrb.mxu2 %v626_v51  ;;  %v611_v50 = vsel %vm603_vm8, %v7532_v61, %v7533_v40 }
 0x17b   : > { %7167 = vmatmul.msk.f32.vlgmr.msrb.gmra.mxu1 %vm441_vm7, %v10900_v39  ;;  %v619_v45 = vsel %vm603_vm8, %v7557_v12, %v7558_v63  ;;  %v7403_v63 = vunpack.i.h.bf16 %v10575_v20 }
 0x17c   : > { %714 = vmatpush.msrb.mxu2 %v622_v56  ;;  %v7623_v56 = vunpack.i.h.bf16 %v10886_v34 }
 0x17e   : > { %v10941_v22 = vpop.permute.xlu0 %7595  ;;  %715 = vmatpush.msrb.mxu2 %v618_v16  ;;  %v607_v16 = vsel %vm603_vm8, %v7438_v24, %v7522_v42  ;;  %v10986_v34 = vsel %vm263_vm2, %v7622_v19, %v7623_v56 }
 0x17f   : > { %v7597_v18 = vunpack.i.l.bf16 %v10941_v22 }
 0x180   : > { %716 = vmatpush.msrb.mxu2 %v614_v2  ;;  %v10983_v2 = vsel %vm263_vm2, %v7373_v7, %v7622_v19 }
 0x181   : > { %v631_v17 = vsel %vm603_vm8, %v7593_v60, %v7597_v18  ;;  %v7358_v60 = vunpack.i.h.bf16 %v10527_v29 }
 0x182   : > { %717 = vmatpush.msrb.mxu2 %v610_v8  ;;  %732 = vmatpush.msrb.mxu3 %v631_v17  ;;  %v7699_v17 = vpack.i.bf16 %v10986_v34, %v10983_v2 }
 0x184   : > { %718 = vmatpush.msrb.mxu2 %v606_v58  ;;  %733 = vmatpush.msrb.mxu3 %v627_v3  ;;  %v7651_v3 = vpop.permute.xlu2 %7650 }
 0x185   : > { %7168 = vmatmul.msk.f32.vlgmr.msrb.gmra.mxu2 %vm441_vm7, %v10900_v39  ;;  %v7652_v40 = vunpack.i.l.bf16 %v7651_v3  ;;  %v7653_v42 = vunpack.i.h.bf16 %v7651_v3 }
 0x186   : > { %v7611_v31 = vpop.permute.xlu0 %7610  ;;  %734 = vmatpush.msrb.mxu3 %v623_v9 }
 0x187   : > { %v7613_v15 = vunpack.i.h.bf16 %v7611_v31  ;;  %v7612_v52 = vunpack.i.l.bf16 %v7611_v31 }
 0x188   : > { %735 = vmatpush.msrb.mxu3 %v619_v45  ;;  %v7648_v45 = vunpack.i.h.bf16 %v10997_v44 }
 0x189   : > { %v784_v29 = vsel %vm248_vm1, %v7613_v15, %v7617_v25  ;;  %v782_v23 = vsel %vm248_vm1, %v7358_v60, %v7612_v52  ;;  %v783_v26 = vsel %vm248_vm1, %v7612_v52, %v7613_v15  ;;  %v7719_v52 = vpack.i.bf16 %v7403_v63, %v10930_v11 }
 0x18a   : > { %736 = vmatpush.msrb.mxu3 %v615_v57  ;;  %v7689_v33 = vpack.i.bf16 %v10963_v5, %v784_v29  ;;  %v7684_v51 = vpack.i.bf16 %v783_v26, %v782_v23  ;;  %v10972_v12 = vpack.i.bf16 %v784_v29, %v783_v26  ;;  %v7418_v57 = vunpack.i.h.bf16 %v10592_v41 }
 0x18b   : > { %v11032_v41 = vsel %vm308_vm5, %v7652_v40, %v7653_v42 }
 0x18c   : > { %7690 = vrot.lane.b32.xlu1 %v7689_v33, %s10397_s5  ;;  %7685 = vrot.lane.b32.xlu0 %v7684_v51, %s10397_s5  ;;  %v11029_v23 = vsel %vm308_vm5, %v7418_v57, %v7652_v40 }
 0x18d   : > { %737 = vmatpush.msrb.mxu3 %v611_v50  ;;  %v7734_v19 = vpack.i.bf16 %v11029_v23, %v7418_v57 }
 0x18e   : > { %v7626_v36 = vpop.permute.xlu0 %7625 }
 0x18f   : > { %v7628_v59 = vunpack.i.h.bf16 %v7626_v36  ;;  %v7627_v18 = vunpack.i.l.bf16 %v7626_v36  ;;  %738 = vmatpush.msrb.mxu3 %v607_v16  ;;  %v10375_v36 = vld [vmem:[%s10444_s22 + $0x8] sm:$0xff]  ;;  %v10376_v16 = vld [vmem:[%s10444_s22 + $0x10] sm:$0xff] }
 0x190   : > { %7169 = vmatmul.msk.f32.vlgmr.msrb.gmra.mxu3 %vm441_vm7, %v10900_v39  ;;  %v7647_v39 = vunpack.i.l.bf16 %v10997_v44 }
 0x191   : > { %v10991_v61 = vsel %vm263_vm2, %v7623_v56, %v7627_v18  ;;  %v1270_v8 = vsel %vm263_vm2, %v7627_v18, %v7628_v59 }
 0x192   : > { %v7704_v24 = vpack.i.bf16 %v7627_v18, %v10991_v61  ;;  %v10999_v7 = vpack.i.bf16 %v7628_v59, %v1270_v8  ;;  %v11024_v11 = vsel %vm293_vm4, %v7647_v39, %v7648_v45  ;;  %v7754_v59 = vpack.i.bf16 %v10376_v16, %v10375_v36  ;;  %v10377_v18 = vld [vmem:[%s10444_s22] sm:$0xff] }
 0x193   : > { %v16144_v8 = vmov 0.0  }
 0x194   : > { %7705 = vrot.lane.b32.xlu1 %v7704_v24, %s10397_s5  ;;  %7700 = vrot.lane.b32.xlu0 %v7699_v17, %s10397_s5  ;;  %v7749_v24 = vpack.i.bf16 %v10377_v18, %v16144_v8 }
 0x196   : > { %v7641_v58 = vpop.permute.xlu0 %7640 }
 0x197   : > { %v7643_v55 = vunpack.i.h.bf16 %v7641_v58  ;;  %v7642_v25 = vunpack.i.l.bf16 %v7641_v58 }
 0x199   : > { %v11006_v9 = vsel %vm293_vm4, %v7403_v63, %v7642_v25  ;;  %v823_v60 = vsel %vm293_vm4, %v7642_v25, %v7643_v55  ;;  %v824_v31 = vsel %vm293_vm4, %v7643_v55, %v7647_v39  ;;  %v10378_v39 = vld [vmem:[%s10444_s22 + $0x18] sm:$0xff]  ;;  %s195_s22 = scalar_lea.vmem %s16007_s4, %s7159_s19 }
 0x19a   : > { %v7724_v15 = vpack.i.bf16 %v823_v60, %v11006_v9  ;;  %v11015_v20 = vpack.i.bf16 %v824_v31, %v823_v60  ;;  %v7729_v33 = vpack.i.bf16 %v11024_v11, %v824_v31  ;;  %v7759_v58 = vpack.i.bf16 %v10615_v54, %v10378_v39 }
 0x19c   : > { %7725 = vrot.lane.b32.xlu2 %v7724_v15, %s10397_s5  ;;  %7720 = vrot.lane.b32.xlu1 %v7719_v52, %s10397_s5 }
 0x19d   : > { %7715 = vrot.lane.b32.xlu0 %v7714_v43, %s10397_s5  ;;  %v11143_v43 = vpack.i.bf16 %v7648_v45, %v11024_v11 }
 0x19e   : > { %v7656_v48 = vpop.permute.xlu0 %7655 }
 0x19f   : > { %v11026_v1 = vunpack.i.h.bf16 %v7656_v48  ;;  %v7657_v29 = vunpack.i.l.bf16 %v7656_v48 }
 0x1a1   : > { %v838_v26 = vsel %vm308_vm5, %v7653_v42, %v7657_v29  ;;  %v839_v51 = vsel %vm308_vm5, %v7657_v29, %v11026_v1 }
 0x1a2   : > { %v7739_v56 = vpack.i.bf16 %v838_v26, %v11032_v41  ;;  %v11040_v50 = vpack.i.bf16 %v839_v51, %v838_v26  ;;  %v7744_v17 = vpack.i.bf16 0.0, %v839_v51 }
 0x1a4   : > { %7740 = vrot.lane.b32.xlu2 %v7739_v56, %s10397_s5  ;;  %7735 = vrot.lane.b32.xlu1 %v7734_v19, %s10397_s5 }
 0x1a5   : > { %7730 = vrot.lane.b32.xlu0 %v7729_v33, %s10397_s5 }
 0x1ac   : > { %7755 = vrot.lane.b32.xlu2 %v7754_v59, %s10398_s10  ;;  %7750 = vrot.lane.b32.xlu1 %v7749_v24, %s10398_s10 }
 0x1ad   : > { %7745 = vrot.lane.b32.xlu0 %v7744_v17, %s10397_s5 }
 0x1b4   : > { %7770 = vrot.lane.b32.xlu2 %v10534_v35, %s10398_s10  ;;  %7765 = vrot.lane.b32.xlu1 %v10520_v21, %s10398_s10  ;;  %v11077_v21 = vpop.permute.xlu2 %7665  ;;  %v16145_v35 = vld [vmem:[#allocation6_spill] sm:$0xff] }
 0x1b5   : > { %7760 = vrot.lane.b32.xlu0 %v7759_v58, %s10398_s10 }
 0x1bc   : > { %7785 = vrot.lane.b32.xlu2 %v10549_v47, %s10398_s10  ;;  %7780 = vrot.lane.b32.xlu1 %v10537_v37, %s10398_s10  ;;  %v16146_v37 = vld [vmem:[#allocation4_spill] sm:$0xff]  ;;  %v16147_v47 = vld [vmem:[#allocation5_spill] sm:$0xff] }
 0x1bd   : > { %7775 = vrot.lane.b32.xlu0 %v10541_v38, %s10398_s10  ;;  %v11085_v38 = vpop.permute.xlu2 %7680 }
 0x1c4   : > { %7800 = vrot.lane.b32.xlu2 %v10566_v0, %s10398_s10  ;;  %7795 = vrot.lane.b32.xlu1 %v10552_v49, %s10398_s10  ;;  %v11093_v49 = vpack.i.bf16 %v10378_v39, %v10376_v16  ;;  %v11095_v0 = vpack.i.bf16 %v10375_v36, %v10377_v18 }
 0x1c5   : > { %7790 = vrot.lane.b32.xlu0 %v10573_v14, %s10398_s10  ;;  %v11101_v14 = vpop.permute.xlu2 %7695 }
 0x1cc   : > { %7815 = vrot.lane.b32.xlu2 %v10583_v30, %s10398_s10  ;;  %7810 = vrot.lane.b32.xlu1 %v10581_v28, %s10398_s10  ;;  %v11109_v28 = vpop.permute.xlu1 %7660 }
 0x1cd   : > { %7805 = vrot.lane.b32.xlu0 %v10569_v13, %s10398_s10  ;;  %v11099_v13 = vpack.i.bf16 %v10840_v46, %v16144_v8  ;;  %v11115_v30 = vpop.permute.xlu2 %7710 }
 0x1ce   : > { %v11125_v63 = vpop.permute.xlu0 %7670  ;;  %v7713_v16 = vunpack.i.h.bf16 %v11115_v30  ;;  %v7712_v59 = vunpack.i.l.bf16 %v11115_v30 }
 0x1d4   : > { %7830 = vrot.lane.b32.xlu2 %v10604_v53, %s10398_s10  ;;  %7825 = vrot.lane.b32.xlu1 %v16145_v35, %s10398_s10  ;;  %v11119_v53 = vpack.i.bf16 %v10991_v61, %v10986_v34  ;;  %v11123_v54 = vpop.permute.xlu1 %7675 }
 0x1d5   : > { %7820 = vrot.lane.b32.xlu0 %v16146_v37, %s10398_s10 }
 0x1dc   : > { %7845 = vrot.lane.b32.xlu2 %v16144_v8, %s10390_s24  ;;  %7840 = vrot.lane.b32.xlu1 %v16144_v8, %s10389_s23 }
 0x1dd   : > { %7835 = vrot.lane.b32.xlu0 %v16147_v47, %s10398_s10 }
 0x1e4   : > { %7860 = vrot.lane.b32.xlu2 %v11099_v13, %s10399_s11  ;;  %7855 = vrot.lane.b32.xlu1 %v11093_v49, %s10399_s11 }
 0x1e5   : > { %7850 = vrot.lane.b32.xlu0 %v11095_v0, %s10399_s11 }
 0x1ec   : > { %7875 = vrot.lane.b32.xlu2 %v10972_v12, %s10399_s11 }
 0x1ed   : > { %7865 = vrot.lane.b32.xlu0 %v10876_v4, %s10399_s11 }
 0x1f4   : > { %7890 = vrot.lane.b32.xlu2 %v11119_v53, %s10399_s11 }
 0x1f6   : > { %v7726_v46 = vpop.permute.xlu2 %7725 }
 0x1f7   : > { %v7728_v48 = vunpack.i.h.bf16 %v7726_v46  ;;  %v7727_v51 = vunpack.i.l.bf16 %v7726_v46 }
 0x1f9   : > { %v934_v30 = vsel %vm912_vm9, %v7727_v51, %v7728_v48 }
 0x1fc   : > { %7905 = vrot.lane.b32.xlu2 %v10937_v10, %s10399_s11 }
 0x1fe   : > { %v11129_v55 = vpop.permute.xlu2 %7740  ;;  %v11131_v25 = vpop.permute.xlu1 %7690 }
 0x1ff   : > { %v7743_v3 = vunpack.i.h.bf16 %v11129_v55  ;;  %v7742_v34 = vunpack.i.l.bf16 %v11129_v55  ;;  %v11135_v61 = vpop.permute.xlu0 %7685  ;;  %v7693_v47 = vunpack.i.h.bf16 %v11131_v25  ;;  %v7692_v46 = vunpack.i.l.bf16 %v11131_v25 }
 0x201   : > { %v939_v60 = vsel %vm912_vm9, %v7742_v34, %v7743_v3 }
 0x202   : > { %1021 = vmatpush.msra.mxu2 %v939_v60  ;;  %v7698_v60 = vunpack.i.h.bf16 %v11101_v14 }
 0x204   : > { %7920 = vrot.lane.b32.xlu2 %v11143_v43, %s10399_s11 }
 0x206   : > { %v11147_v31 = vpop.permute.xlu2 %7755  ;;  %v11149_v15 = vpop.permute.xlu1 %7705 }
 0x207   : > { %v7701_v52 = vpop.permute.xlu0 %7700  ;;  %v7707_v17 = vunpack.i.l.bf16 %v11149_v15  ;;  %v7708_v55 = vunpack.i.h.bf16 %v11149_v15 }
 0x208   : > { %v7703_v39 = vunpack.i.h.bf16 %v7701_v52  ;;  %v7702_v35 = vunpack.i.l.bf16 %v7701_v52  ;;  %v7688_v52 = vunpack.i.h.bf16 %v11135_v61 }
 0x20c   : > { %1341 = vrot.lane.b32.xlu2 %v11026_v1, %s10399_s11 }
 0x20e   : > { %v11153_v40 = vpop.permute.xlu2 %7770  ;;  %v11155_v57 = vpop.permute.xlu1 %7720 }
 0x20f   : > { %v11157_v42 = vpop.permute.xlu0 %7715  ;;  %v7723_v11 = vunpack.i.h.bf16 %v11155_v57 }
 0x210   : > { %v7718_v56 = vunpack.i.h.bf16 %v11157_v42  ;;  %v7717_v19 = vunpack.i.l.bf16 %v11157_v42 }
 0x211   : > { %v933_v37 = vsel %vm912_vm9, %v7723_v11, %v7727_v51  ;;  %v929_v11 = vsel %vm912_vm9, %v7712_v59, %v7713_v16 }
 0x212   : > { %v930_v51 = vsel %vm912_vm9, %v7713_v16, %v7717_v19  ;;  %v923_v16 = vsel %vm912_vm9, %v7692_v46, %v7693_v47 }
 0x214   : > { %7945 = vrot.lane.b32.xlu2 %v11099_v13, %s10400_s12 }
 0x216   : > { %v11161_v44 = vpop.permute.xlu2 %7785  ;;  %v7736_v45 = vpop.permute.xlu1 %7735 }
 0x217   : > { %v7738_v29 = vunpack.i.h.bf16 %v7736_v45  ;;  %v7737_v26 = vunpack.i.l.bf16 %v7736_v45  ;;  %v11164_v33 = vpop.permute.xlu0 %7730  ;;  %v7687_v45 = vunpack.i.l.bf16 %v11135_v61  ;;  %v7677_v61 = vunpack.i.l.bf16 %v11123_v54 }
 0x218   : > { %v7732_v36 = vunpack.i.l.bf16 %v11164_v33 }
 0x219   : > { %v937_v18 = vsel %vm912_vm9, %v7737_v26, %v7738_v29  ;;  %v938_v24 = vsel %vm912_vm9, %v7738_v29, %v7742_v34  ;;  %v931_v34 = vsel %vm912_vm9, %v7717_v19, %v7718_v56  ;;  %v7682_v29 = vunpack.i.l.bf16 %v11085_v38 }
 0x21a   : > { %981 = vmatpush.msra.mxu0 %v937_v18  ;;  %1001 = vmatpush.msra.mxu1 %v938_v24  ;;  %v935_v58 = vsel %vm912_vm9, %v7728_v48, %v7732_v36  ;;  %v7678_v26 = vunpack.i.h.bf16 %v11123_v54  ;;  %v927_v24 = vsel %vm912_vm9, %v7703_v39, %v7707_v17  ;;  %v926_v19 = vsel %vm912_vm9, %v7702_v35, %v7703_v39 }
 0x21b   : > { %1022 = vmatpush.msra.mxu2 %v935_v58  ;;  %v7733_v58 = vunpack.i.h.bf16 %v11164_v33  ;;  %v7667_v54 = vunpack.i.l.bf16 %v11077_v21  ;;  %v7663_v33 = vunpack.i.h.bf16 %v11109_v28 }
 0x21c   : > { %7960 = vrot.lane.b32.xlu2 %v10972_v12, %s10400_s12  ;;  %982 = vmatpush.msra.mxu0 %v933_v37  ;;  %v925_v37 = vsel %vm912_vm9, %v7698_v60, %v7702_v35  ;;  %v7662_v60 = vunpack.i.l.bf16 %v11109_v28  ;;  %v7668_v35 = vunpack.i.h.bf16 %v11077_v21 }
 0x21d   : > { %1002 = vmatpush.msra.mxu1 %v934_v30  ;;  %1023 = vmatpush.msra.mxu2 %v931_v34  ;;  %v7673_v30 = vunpack.i.h.bf16 %v11125_v63 }
 0x21e   : > { %v11190_v18 = vpop.permute.xlu2 %7800  ;;  %v11192_v48 = vpop.permute.xlu1 %7750  ;;  %983 = vmatpush.msra.mxu0 %v929_v11  ;;  %v921_v11 = vsel %vm912_vm9, %v7687_v45, %v7688_v52  ;;  %v915_v21 = vsel %vm912_vm9, %v7667_v54, %v7668_v35 }
 0x21f   : > { %v11200_v59 = vpop.permute.xlu0 %7745  ;;  %1003 = vmatpush.msra.mxu1 %v930_v51  ;;  %1024 = vmatpush.msra.mxu2 %v927_v24  ;;  %v922_v51 = vsel %vm912_vm9, %v7688_v52, %v7692_v46  ;;  %v919_v24 = vsel %vm912_vm9, %v7678_v26, %v7682_v29  ;;  %v917_v28 = vsel %vm912_vm9, %v7673_v30, %v7677_v61 }
 0x220   : > { %16148 = vst [vmem:[#allocation6_spill] sm:$0xff] %v11200_v59  ;;  %v7747_v34 = vunpack.i.l.bf16 %v11200_v59  ;;  %984 = vmatpush.msra.mxu0 %v925_v37  ;;  %v7722_v37 = vunpack.i.l.bf16 %v11155_v57  ;;  %v918_v46 = vsel %vm912_vm9, %v7677_v61, %v7678_v26  ;;  %v914_v52 = vsel %vm912_vm9, %v7663_v33, %v7667_v54 }
 0x221   : > { %1004 = vmatpush.msra.mxu1 %v926_v19  ;;  %1025 = vmatpush.msra.mxu2 %v923_v16  ;;  %v936_v19 = vsel %vm912_vm9, %v7732_v36, %v7733_v58  ;;  %v913_v36 = vsel %vm912_vm9, %v7662_v60, %v7663_v33  ;;  %v7683_v61 = vunpack.i.h.bf16 %v11085_v38  ;;  %v7697_v58 = vunpack.i.l.bf16 %v11101_v14 }
 0x222   : > { %985 = vmatpush.msra.mxu0 %v921_v11  ;;  %v940_v39 = vsel %vm912_vm9, %v7743_v3, %v7747_v34  ;;  %v932_v26 = vsel %vm912_vm9, %v7718_v56, %v7722_v37  ;;  %v928_v30 = vsel %vm912_vm9, %v7707_v17, %v7708_v55  ;;  %v7672_v34 = vunpack.i.l.bf16 %v11125_v63 }
 0x223   : > { %1005 = vmatpush.msra.mxu1 %v922_v51  ;;  %1026 = vmatpush.msra.mxu2 %v919_v24  ;;  %v924_v16 = vsel %vm912_vm9, %v7693_v47, %v7697_v58  ;;  %v920_v42 = vsel %vm912_vm9, %v7682_v29, %v7683_v61  ;;  %v11308_v61 = vpack.i.bf16 %v11006_v9, %v7638_v6  ;;  %v7758_v58 = vunpack.i.h.bf16 %v11147_v31 }
 0x224   : > { %1041 = vmatpush.msra.mxu3 %v940_v39  ;;  %7975 = vrot.lane.b32.xlu2 %v11119_v53, %s10400_s12  ;;  %v916_v25 = vsel %vm912_vm9, %v7668_v35, %v7672_v34 }
 0x225   : > { %986 = vmatpush.msra.mxu0 %v917_v28  ;;  %1006 = vmatpush.msra.mxu1 %v918_v46 }
 0x226   : > { %1027 = vmatpush.msra.mxu2 %v915_v21  ;;  %1042 = vmatpush.msra.mxu3 %v936_v19  ;;  %v11227_v3 = vpop.permute.xlu2 %7815  ;;  %v11229_v57 = vpop.permute.xlu1 %7765 }
 0x227   : > { %v11233_v45 = vpop.permute.xlu0 %7760  ;;  %987 = vmatpush.msra.mxu0 %v913_v36  ;;  %1007 = vmatpush.msra.mxu1 %v914_v52  ;;  %v7818_v37 = vunpack.i.h.bf16 %v11227_v3  ;;  %v7817_v19 = vunpack.i.l.bf16 %v11227_v3  ;;  %v7803_v52 = vunpack.i.h.bf16 %v11190_v18 }
 0x228   : > { %1043 = vmatpush.msra.mxu3 %v932_v26  ;;  %v7802_v26 = vunpack.i.l.bf16 %v11190_v18 }
 0x229   : > { %v1144_v6 = vsel %vm1122_vm10, %v7817_v19, %v7818_v37 }
 0x22a   : > { %1044 = vmatpush.msra.mxu3 %v928_v30 }
 0x22c   : > { %1045 = vmatpush.msra.mxu3 %v924_v16  ;;  %7990 = vrot.lane.b32.xlu2 %v10937_v10, %s10400_s12 }
 0x22e   : > { %1046 = vmatpush.msra.mxu3 %v920_v42  ;;  %v11250_v38 = vpop.permute.xlu2 %7830  ;;  %v11252_v14 = vpop.permute.xlu1 %7780 }
 0x22f   : > { %v7833_v15 = vunpack.i.h.bf16 %v11250_v38  ;;  %v7832_v56 = vunpack.i.l.bf16 %v11250_v38  ;;  %v11256_v63 = vpop.permute.xlu0 %7775  ;;  %v7783_v18 = vunpack.i.h.bf16 %v11252_v14  ;;  %v7782_v9 = vunpack.i.l.bf16 %v11252_v14 }
 0x230   : > { %1047 = vmatpush.msra.mxu3 %v916_v25  ;;  %v7778_v42 = vunpack.i.h.bf16 %v11256_v63 }
 0x231   : > { %v1149_v17 = vsel %vm1122_vm10, %v7832_v56, %v7833_v15 }
 0x232   : > { %1231 = vmatpush.msrb.mxu2 %v1149_v17  ;;  %v7788_v17 = vunpack.i.h.bf16 %v11161_v44 }
 0x234   : > { %8005 = vrot.lane.b32.xlu2 %v11143_v43, %s10400_s12 }
 0x236   : > { %v11264_v47 = vpop.permute.xlu2 %7845  ;;  %v11266_v29 = vpop.permute.xlu1 %7795 }
 0x237   : > { %v7847_v54 = vunpack.i.l.bf16 %v11264_v47  ;;  %v11269_v33 = vpop.permute.xlu0 %7790  ;;  %v7797_v30 = vunpack.i.l.bf16 %v11266_v29 }
 0x238   : > { %v7793_v34 = vunpack.i.h.bf16 %v11269_v33  ;;  %v7792_v16 = vunpack.i.l.bf16 %v11269_v33 }
 0x239   : > { %v1267_v11 = vsel %vm248_vm1, %v10869_v32, %v7847_v54 }
 0x23a   : > { %v11276_v60 = vpack.i.bf16 %v1267_v11, %v10963_v5  ;;  %v1139_v11 = vsel %vm1122_vm10, %v7802_v26, %v7803_v52  ;;  %v1133_v26 = vsel %vm1122_vm10, %v7782_v9, %v7783_v18 }
 0x23c   : > { %1557 = vrot.lane.b32.xlu2 %v11026_v1, %s10400_s12  ;;  %7880 = vrot.lane.b32.xlu0 %v11276_v60, %s10399_s11 }
 0x23e   : > { %v11282_v51 = vpop.permute.xlu1 %7810 }
 0x23f   : > { %v11284_v24 = vpop.permute.xlu0 %7805  ;;  %v7813_v28 = vunpack.i.h.bf16 %v11282_v51  ;;  %v7812_v38 = vunpack.i.l.bf16 %v11282_v51 }
 0x240   : > { %v7808_v55 = vunpack.i.h.bf16 %v11284_v24 }
 0x241   : > { %v1143_v27 = vsel %vm1122_vm10, %v7813_v28, %v7817_v19  ;;  %v1137_v19 = vsel %vm1122_vm10, %v7793_v34, %v7797_v30  ;;  %v7767_v28 = vunpack.i.l.bf16 %v11229_v57 }
 0x244   : > { %8030 = vrot.lane.b32.xlu2 %v11099_v13, %s10401_s13  ;;  %7895 = vrot.lane.b32.xlu0 %v10999_v7, %s10399_s11  ;;  %v7807_v13 = vunpack.i.l.bf16 %v11284_v24 }
 0x246   : > { %v7826_v32 = vpop.permute.xlu1 %7825  ;;  %v1141_v25 = vsel %vm1122_vm10, %v7807_v13, %v7808_v55 }
 0x247   : > { %v7828_v5 = vunpack.i.h.bf16 %v7826_v32  ;;  %v7827_v39 = vunpack.i.l.bf16 %v7826_v32  ;;  %v11290_v35 = vpop.permute.xlu0 %7820  ;;  %v1140_v32 = vsel %vm1122_vm10, %v7803_v52, %v7807_v13  ;;  %v1135_v13 = vsel %vm1122_vm10, %v7788_v17, %v7792_v16 }
 0x248   : > { %v7822_v46 = vunpack.i.l.bf16 %v11290_v35  ;;  %v7763_v52 = vunpack.i.h.bf16 %v11233_v45  ;;  %v7752_v17 = vunpack.i.l.bf16 %v11192_v48 }
 0x249   : > { %v1147_v21 = vsel %vm1122_vm10, %v7827_v39, %v7828_v5  ;;  %v1148_v36 = vsel %vm1122_vm10, %v7828_v5, %v7832_v56  ;;  %v7777_v56 = vunpack.i.l.bf16 %v11256_v63  ;;  %v7772_v5 = vunpack.i.l.bf16 %v11153_v40 }
 0x24a   : > { %1191 = vmatpush.msrb.mxu0 %v1147_v21  ;;  %1211 = vmatpush.msrb.mxu1 %v1148_v36  ;;  %v1145_v3 = vsel %vm1122_vm10, %v7818_v37, %v7822_v46  ;;  %v7768_v63 = vunpack.i.h.bf16 %v11229_v57  ;;  %v1136_v36 = vsel %vm1122_vm10, %v7792_v16, %v7793_v34 }
 0x24b   : > { %1232 = vmatpush.msrb.mxu2 %v1145_v3  ;;  %v1131_v3 = vsel %vm1122_vm10, %v7777_v56, %v7778_v42 }
 0x24c   : > { %8045 = vrot.lane.b32.xlu2 %v10972_v12, %s10401_s13  ;;  %7910 = vrot.lane.b32.xlu0 %v11308_v61, %s10399_s11  ;;  %v7757_v12 = vunpack.i.l.bf16 %v11147_v31  ;;  %v1129_v56 = vsel %vm1122_vm10, %v7768_v63, %v7772_v5 }
 0x24d   : > { %1192 = vmatpush.msrb.mxu0 %v1143_v27  ;;  %1212 = vmatpush.msrb.mxu1 %v1144_v6  ;;  %v16150_v27 = vld [vmem:[#allocation8_spill] sm:$0xff]  ;;  %v1132_v6 = vsel %vm1122_vm10, %v7778_v42, %v7782_v9  ;;  %v11364_v9 = vpack.i.bf16 %v11032_v41, %v11029_v23  ;;  %v7798_v41 = vunpack.i.h.bf16 %v11266_v29 }
 0x24e   : > { %1233 = vmatpush.msrb.mxu2 %v1141_v25  ;;  %v11329_v33 = vpop.permute.xlu1 %7840  ;;  %v7753_v25 = vunpack.i.h.bf16 %v11192_v48  ;;  %v1127_v48 = vsel %vm1122_vm10, %v7763_v52, %v7767_v28  ;;  %v1125_v23 = vsel %vm1122_vm10, %v7757_v12, %v7758_v58 }
 0x24f   : > { %v7842_v39 = vunpack.i.l.bf16 %v11329_v33  ;;  %v11336_v37 = vpop.permute.xlu0 %7835  ;;  %1193 = vmatpush.msrb.mxu0 %v1139_v11  ;;  %1213 = vmatpush.msrb.mxu1 %v1140_v32  ;;  %v7823_v11 = vunpack.i.h.bf16 %v11290_v35  ;;  %v1142_v32 = vsel %vm1122_vm10, %v7808_v55, %v7812_v38  ;;  %v1138_v35 = vsel %vm1122_vm10, %v7797_v30, %v7798_v41 }
 0x250   : > { %16149 = vst [vmem:[#allocation4_spill] sm:$0xff] %v11336_v37  ;;  %v7837_v21 = vunpack.i.l.bf16 %v11336_v37  ;;  %1234 = vmatpush.msrb.mxu2 %v1137_v19  ;;  %v1123_v51 = vsel %vm1122_vm10, %v7752_v17, %v7753_v25  ;;  %v1124_v42 = vsel %vm1122_vm10, %v7753_v25, %v7757_v12  ;;  %v7762_v12 = vunpack.i.l.bf16 %v11233_v45  ;;  %v7194_v45 = vld [vmem:[%s16006_s3 + $0x8] sm:$0xff] }
 0x251   : > { %1194 = vmatpush.msrb.mxu0 %v1135_v13  ;;  %1214 = vmatpush.msrb.mxu1 %v1136_v36  ;;  %v1264_v57 = vsel %vm233_vm0, %v16150_v27, %v7842_v39 }
 0x252   : > { %1235 = vmatpush.msrb.mxu2 %v1133_v26  ;;  %v1150_v34 = vsel %vm1122_vm10, %v7833_v15, %v7837_v21  ;;  %v11356_v16 = vpack.i.bf16 %v7842_v39, %v1264_v57  ;;  %v1128_v15 = vsel %vm1122_vm10, %v7767_v28, %v7768_v63  ;;  %v7773_v63 = vunpack.i.h.bf16 %v11153_v40 }
 0x253   : > { %1195 = vmatpush.msrb.mxu0 %v1131_v3  ;;  %1215 = vmatpush.msrb.mxu1 %v1132_v6  ;;  %v7787_v39 = vunpack.i.l.bf16 %v11161_v44 }
 0x254   : > { %1236 = vmatpush.msrb.mxu2 %v1129_v56  ;;  %1251 = vmatpush.msrb.mxu3 %v1150_v34  ;;  %v1130_v40 = vsel %vm1122_vm10, %v7772_v5, %v7773_v63 }
 0x255   : > { %7870 = vrot.lane.b32.xlu1 %v11356_v16, %s10399_s11  ;;  %8060 = vrot.lane.b32.xlu2 %v11119_v53, %s10401_s13  ;;  %v1146_v53 = vsel %vm1122_vm10, %v7822_v46, %v7823_v11  ;;  %v7884_v46 = vpack.i.bf16 %v10983_v2, %v7847_v54  ;;  %v1134_v24 = vsel %vm1122_vm10, %v7783_v18, %v7787_v39  ;;  %v7164_v54 = vld [vmem:[%s16005_s2 + $0x8] sm:$0xff] }
 0x256   : > { %7925 = vrot.lane.b32.xlu0 %v11364_v9, %s10399_s11  ;;  %1196 = vmatpush.msrb.mxu0 %v1127_v48  ;;  %v1126_v2 = vsel %vm1122_vm10, %v7758_v58, %v7762_v12  ;;  %v11480_v29 = vpop.permute.xlu1 %7855 }
 0x257   : > { %1216 = vmatpush.msrb.mxu1 %v1128_v15  ;;  %1237 = vmatpush.msrb.mxu2 %v1125_v23 }
 0x258   : > { %1252 = vmatpush.msrb.mxu3 %v1146_v53  ;;  %1197 = vmatpush.msrb.mxu0 %v1123_v51 }
 0x259   : > { %1217 = vmatpush.msrb.mxu1 %v1124_v42 }
 0x25a   : > { %1253 = vmatpush.msrb.mxu3 %v1142_v32 }
 0x25c   : > { %1254 = vmatpush.msrb.mxu3 %v1138_v35 }
 0x25d   : > { %7885 = vrot.lane.b32.xlu1 %v7884_v46, %s10399_s11  ;;  %8075 = vrot.lane.b32.xlu2 %v10937_v10, %s10401_s13  ;;  %v11437_v10 = vpop.permute.xlu0 %7850 }
 0x25e   : > { %1255 = vmatpush.msrb.mxu3 %v1134_v24  ;;  %7935 = vrot.lane.b32.xlu0 %v11095_v0, %s10400_s12  ;;  %v7853_v38 = vunpack.i.h.bf16 %v11437_v10  ;;  %v7852_v23 = vunpack.i.l.bf16 %v11437_v10 }
 0x260   : > { %1256 = vmatpush.msrb.mxu3 %v1130_v40 }
 0x262   : > { %1257 = vmatpush.msrb.mxu3 %v1126_v2 }
 0x265   : > { %7900 = vrot.lane.b32.xlu1 %v10893_v62, %s10399_s11  ;;  %8090 = vrot.lane.b32.xlu2 %v11143_v43, %s10401_s13  ;;  %v11445_v43 = vpop.permute.xlu0 %7865 }
 0x266   : > { %7950 = vrot.lane.b32.xlu0 %v10876_v4, %s10400_s12  ;;  %v7867_v11 = vunpack.i.l.bf16 %v11445_v43 }
 0x26d   : > { %7915 = vrot.lane.b32.xlu1 %v11015_v20, %s10399_s11 }
 0x26e   : > { %7965 = vrot.lane.b32.xlu0 %v11276_v60, %s10400_s12 }
 0x275   : > { %7930 = vrot.lane.b32.xlu1 %v11040_v50, %s10399_s11 }
 0x276   : > { %7980 = vrot.lane.b32.xlu0 %v10999_v7, %s10400_s12 }
 0x27d   : > { %7940 = vrot.lane.b32.xlu1 %v11093_v49, %s10400_s12 }
 0x27e   : > { %7995 = vrot.lane.b32.xlu0 %v11308_v61, %s10400_s12 }
 0x285   : > { %7955 = vrot.lane.b32.xlu1 %v11356_v16, %s10400_s12 }
 0x286   : > { %8010 = vrot.lane.b32.xlu0 %v11364_v9, %s10400_s12 }
 0x28d   : > { %7970 = vrot.lane.b32.xlu1 %v7884_v46, %s10400_s12 }
 0x28e   : > { %8020 = vrot.lane.b32.xlu0 %v11095_v0, %s10401_s13  ;;  %v11449_v0 = vpop.permute.xlu2 %7860 }
 0x295   : > { %7985 = vrot.lane.b32.xlu1 %v10893_v62, %s10400_s12 }
 0x296   : > { %8035 = vrot.lane.b32.xlu0 %v10876_v4, %s10401_s13  ;;  %v7170_v4 = vld [vmem:[%s16005_s2 + $0x18] sm:$0xff]  ;;  %v11464_v31 = vpop.permute.xlu2 %7875 }
 0x297   : > { %7171 = vmatmul.msk.f32.vlgmr.msra.gmra.mxu0 %vm441_vm7, %v7170_v4  ;;  %7172 = vmatmul.msk.f32.vlgmr.msra.gmra.mxu1 %vm441_vm7, %v7170_v4  ;;  %v7878_v34 = vunpack.i.h.bf16 %v11464_v31 }
 0x298   : > { %7173 = vmatmul.msk.f32.vlgmr.msra.gmra.mxu2 %vm441_vm7, %v7170_v4  ;;  %7174 = vmatmul.msk.f32.vlgmr.msra.gmra.mxu3 %vm441_vm7, %v7170_v4 }
 0x29d   : > { %8000 = vrot.lane.b32.xlu1 %v11015_v20, %s10400_s12 }
 0x29e   : > { %8050 = vrot.lane.b32.xlu0 %v11276_v60, %s10401_s13 }
 0x29f   : > { %7175 = vmatmul.msk.f32.vlgmr.msrb.gmra.mxu0 %vm441_vm7, %v7164_v54  ;;  %7176 = vmatmul.msk.f32.vlgmr.msrb.gmra.mxu1 %vm441_vm7, %v7164_v54 }
 0x2a0   : > { %7177 = vmatmul.msk.f32.vlgmr.msrb.gmra.mxu2 %vm441_vm7, %v7164_v54  ;;  %7178 = vmatmul.msk.f32.vlgmr.msrb.gmra.mxu3 %vm441_vm7, %v7164_v54 }
 0x2a5   : > { %8015 = vrot.lane.b32.xlu1 %v11040_v50, %s10400_s12 }
 0x2a6   : > { %8065 = vrot.lane.b32.xlu0 %v10999_v7, %s10401_s13 }
 0x2ad   : > { %8025 = vrot.lane.b32.xlu1 %v11093_v49, %s10401_s13  ;;  %v11475_v49 = vpop.permute.xlu2 %7890 }
 0x2ae   : > { %8080 = vrot.lane.b32.xlu0 %v11308_v61, %s10401_s13  ;;  %v11462_v7 = vpop.permute.xlu0 %7880  ;;  %v7893_v4 = vunpack.i.h.bf16 %v11475_v49 }
 0x2b5   : > { %8040 = vrot.lane.b32.xlu1 %v11356_v16, %s10401_s13  ;;  %v11487_v60 = vpop.permute.xlu2 %7905  ;;  %v7892_v16 = vunpack.i.l.bf16 %v11475_v49 }
 0x2b6   : > { %8095 = vrot.lane.b32.xlu0 %v11364_v9, %s10401_s13  ;;  %v11470_v44 = vpop.permute.xlu0 %7895  ;;  %v7863_v9 = vunpack.i.h.bf16 %v11449_v0  ;;  %v7908_v24 = vunpack.i.h.bf16 %v11487_v60  ;;  %v7907_v40 = vunpack.i.l.bf16 %v11487_v60 }
 0x2b7   : > { %v7898_v60 = vunpack.i.h.bf16 %v11470_v44 }
 0x2b8   : > { %v1348_v39 = vsel %vm1343_vm11, %v7863_v9, %v7867_v11 }
 0x2bd   : > { %8055 = vrot.lane.b32.xlu1 %v7884_v46, %s10401_s13  ;;  %v7921_v5 = vpop.permute.xlu2 %7920 }
 0x2be   : > { %1948 = vperm.xlu0 %7328, %v7194_v45   ;;  %v11478_v14 = vpop.permute.xlu0 %7910  ;;  %v7923_v32 = vunpack.i.h.bf16 %v7921_v5  ;;  %v7922_v63 = vunpack.i.l.bf16 %v7921_v5  ;;  %v1344_v45 = vsel %vm1343_vm11, %v7852_v23, %v7853_v38 }
 0x2bf   : > { %v7913_v52 = vunpack.i.h.bf16 %v11478_v14  ;;  %v7912_v2 = vunpack.i.l.bf16 %v11478_v14  ;;  %v7897_v14 = vunpack.i.l.bf16 %v11470_v44 }
 0x2c5   : > { %8070 = vrot.lane.b32.xlu1 %v10893_v62, %s10401_s13  ;;  %v1342_v13 = vpop.permute.xlu2 %1341 }
 0x2c7   : > { %v11491_v55 = vpop.permute.xlu1 %7870 }
 0x2c8   : > { %v7926_v61 = vpop.permute.xlu0 %7925 }
 0x2c9   : > { %v7928_v58 = vunpack.i.h.bf16 %v7926_v61  ;;  %v7927_v30 = vunpack.i.l.bf16 %v7926_v61  ;;  %v7179_v61 = vld [vmem:[%s16005_s2 + $0x20] sm:$0xff] }
 0x2cb   : > { %v1368_v62 = vsel %vm1343_vm11, %v7927_v30, %v7928_v58 }
 0x2cc   : > { %1412 = vmatpush.msra.mxu0 %v1368_v62  ;;  %v7882_v62 = vunpack.i.l.bf16 %v11462_v7 }
 0x2cd   : > { %8085 = vrot.lane.b32.xlu1 %v11015_v20, %s10401_s13  ;;  %v11514_v25 = vpop.permute.xlu2 %7945 }
 0x2cf   : > { %v11498_v18 = vpop.permute.xlu1 %7885 }
 0x2d0   : > { %v11500_v19 = vpop.permute.xlu0 %7935  ;;  %v7888_v20 = vunpack.i.h.bf16 %v11498_v18 }
 0x2d2   : > { %v1356_v56 = vsel %vm1343_vm11, %v7888_v20, %v7892_v16  ;;  %v1358_v20 = vsel %vm1343_vm11, %v7893_v4, %v7897_v14 }
 0x2d5   : > { %8100 = vrot.lane.b32.xlu1 %v11040_v50, %s10401_s13  ;;  %v7877_v50 = vunpack.i.l.bf16 %v11464_v31  ;;  %v11548_v30 = vpop.permute.xlu2 %7960 }
 0x2d7   : > { %v7901_v28 = vpop.permute.xlu1 %7900  ;;  %v1352_v15 = vsel %vm1343_vm11, %v7877_v50, %v7878_v34  ;;  %v7857_v50 = vunpack.i.l.bf16 %v11480_v29 }
 0x2d8   : > { %v11504_v21 = vpop.permute.xlu0 %7950  ;;  %v7903_v26 = vunpack.i.h.bf16 %v7901_v28  ;;  %v7902_v3 = vunpack.i.l.bf16 %v7901_v28  ;;  %v7883_v28 = vunpack.i.h.bf16 %v11462_v7  ;;  %v7873_v7 = vunpack.i.h.bf16 %v11491_v55 }
 0x2da   : > { %v1360_v17 = vsel %vm1343_vm11, %v7902_v3, %v7903_v26  ;;  %v1361_v5 = vsel %vm1343_vm11, %v7903_v26, %v7907_v40  ;;  %v7868_v3 = vunpack.i.h.bf16 %v11445_v43  ;;  %v1357_v26 = vsel %vm1343_vm11, %v7892_v16, %v7893_v4 }
 0x2db   : > { %v1354_v16 = vsel %vm1343_vm11, %v7882_v62, %v7883_v28 }
 0x2dc   : > { %v1349_v9 = vsel %vm1343_vm11, %v7867_v11, %v7868_v3 }
 0x2dd   : > { %v11587_v23 = vpop.permute.xlu2 %7975 }
 0x2df   : > { %v7916_v36 = vpop.permute.xlu1 %7915 }
 0x2e0   : > { %v7917_v27 = vunpack.i.l.bf16 %v7916_v36  ;;  %v11507_v57 = vpop.permute.xlu0 %7965  ;;  %v7918_v41 = vunpack.i.h.bf16 %v7916_v36  ;;  %v1362_v36 = vsel %vm1343_vm11, %v7907_v40, %v7908_v24 }
 0x2e2   : > { %v1364_v6 = vsel %vm1343_vm11, %v7913_v52, %v7917_v27  ;;  %v1365_v54 = vsel %vm1343_vm11, %v7917_v27, %v7918_v41  ;;  %v1366_v49 = vsel %vm1343_vm11, %v7918_v41, %v7922_v63  ;;  %v1363_v52 = vsel %vm1343_vm11, %v7908_v24, %v7912_v2 }
 0x2e3   : > { %1413 = vmatpush.msra.mxu0 %v1364_v6  ;;  %v1359_v6 = vsel %vm1343_vm11, %v7897_v14, %v7898_v60  ;;  %v7962_v60 = vunpack.i.l.bf16 %v11548_v30  ;;  %v7977_v14 = vunpack.i.l.bf16 %v11587_v23 }
 0x2e5   : > { %1414 = vmatpush.msra.mxu0 %v1360_v17  ;;  %v1353_v17 = vsel %vm1343_vm11, %v7878_v34, %v7882_v62  ;;  %v7952_v62 = vunpack.i.l.bf16 %v11504_v21 }
 0x2e7   : > { %v7931_v48 = vpop.permute.xlu1 %7930  ;;  %1415 = vmatpush.msra.mxu0 %v1356_v56  ;;  %v7858_v56 = vunpack.i.h.bf16 %v11480_v29  ;;  %v1345_v29 = vsel %vm1343_vm11, %v7853_v38, %v7857_v50 }
 0x2e8   : > { %v7933_v53 = vunpack.i.h.bf16 %v7931_v48  ;;  %v7932_v51 = vunpack.i.l.bf16 %v7931_v48  ;;  %v11525_v42 = vpop.permute.xlu0 %7980  ;;  %v7862_v48 = vunpack.i.l.bf16 %v11449_v0 }
 0x2e9   : > { %1416 = vmatpush.msra.mxu0 %v1352_v15  ;;  %v1346_v43 = vsel %vm1343_vm11, %v7857_v50, %v7858_v56 }
 0x2ea   : > { %v1369_v35 = vsel %vm1343_vm11, %v7928_v58, %v7932_v51  ;;  %v1370_v46 = vsel %vm1343_vm11, %v7932_v51, %v7933_v53  ;;  %v1371_v12 = vsel %vm1343_vm11, %v7933_v53, %v1342_v13  ;;  %v1367_v58 = vsel %vm1343_vm11, %v7922_v63, %v7923_v32  ;;  %v11597_v32 = vpop.permute.xlu2 %7990 }
 0x2eb   : > { %1417 = vmatpush.msra.mxu0 %v1348_v39  ;;  %1432 = vmatpush.msra.mxu1 %v1369_v35  ;;  %v7887_v13 = vunpack.i.l.bf16 %v11498_v18  ;;  %v7872_v18 = vunpack.i.l.bf16 %v11491_v55  ;;  %v1347_v11 = vsel %vm1343_vm11, %v7858_v56, %v7862_v48  ;;  %v7992_v48 = vunpack.i.l.bf16 %v11597_v32 }
 0x2ec   : > { %1452 = vmatpush.msra.mxu2 %v1370_v46  ;;  %1472 = vmatpush.msra.mxu3 %v1371_v12 }
 0x2ed   : > { %1418 = vmatpush.msra.mxu0 %v1344_v45  ;;  %1433 = vmatpush.msra.mxu1 %v1365_v54  ;;  %v1355_v55 = vsel %vm1343_vm11, %v7883_v28, %v7887_v13  ;;  %v1350_v31 = vsel %vm1343_vm11, %v7868_v3, %v7872_v18  ;;  %v1351_v34 = vsel %vm1343_vm11, %v7872_v18, %v7873_v7  ;;  %v7948_v28 = vunpack.i.h.bf16 %v11514_v25 }
 0x2ee   : > { %1453 = vmatpush.msra.mxu2 %v1366_v49  ;;  %1473 = vmatpush.msra.mxu3 %v1367_v58  ;;  %v7938_v13 = vunpack.i.h.bf16 %v11500_v19  ;;  %v7937_v3 = vunpack.i.l.bf16 %v11500_v19 }
 0x2ef   : > { %7180 = vmatmul.msk.f32.vlgmr.msra.gmra.mxu0 %vm441_vm7, %v7179_v61  ;;  %v11555_v44 = vpop.permute.xlu1 %7940  ;;  %1434 = vmatpush.msra.mxu1 %v1361_v5 }
 0x2f0   : > { %v11560_v27 = vpop.permute.xlu0 %7995  ;;  %1454 = vmatpush.msra.mxu2 %v1362_v36  ;;  %1474 = vmatpush.msra.mxu3 %v1363_v52 }
 0x2f1   : > { %1435 = vmatpush.msra.mxu1 %v1357_v26  ;;  %v7998_v12 = vunpack.i.h.bf16 %v11560_v27 }
 0x2f2   : > { %1455 = vmatpush.msra.mxu2 %v1358_v20  ;;  %1475 = vmatpush.msra.mxu3 %v1359_v6  ;;  %v8006_v35 = vpop.permute.xlu2 %8005 }
 0x2f3   : > { %1436 = vmatpush.msra.mxu1 %v1353_v17  ;;  %v8008_v6 = vunpack.i.h.bf16 %v8006_v35  ;;  %v8007_v50 = vunpack.i.l.bf16 %v8006_v35  ;;  %v1564_v17 = vsel %vm1559_vm12, %v7948_v28, %v7952_v62  ;;  %v7947_v28 = vunpack.i.l.bf16 %v11514_v25 }
 0x2f4   : > { %1456 = vmatpush.msra.mxu2 %v1354_v16  ;;  %1476 = vmatpush.msra.mxu3 %v1355_v55 }
 0x2f5   : > { %1437 = vmatpush.msra.mxu1 %v1349_v9  ;;  %v7993_v9 = vunpack.i.h.bf16 %v11597_v32  ;;  %v7968_v32 = vunpack.i.h.bf16 %v11507_v57 }
 0x2f6   : > { %1457 = vmatpush.msra.mxu2 %v1350_v31  ;;  %1477 = vmatpush.msra.mxu3 %v1351_v34  ;;  %v7997_v31 = vunpack.i.l.bf16 %v11560_v27  ;;  %v7978_v34 = vunpack.i.h.bf16 %v11587_v23  ;;  %v7982_v27 = vunpack.i.l.bf16 %v11525_v42 }
 0x2f7   : > { %v11583_v15 = vpop.permute.xlu1 %7955  ;;  %1438 = vmatpush.msra.mxu1 %v1345_v29  ;;  %v1560_v29 = vsel %vm1559_vm12, %v7937_v3, %v7938_v13 }
 0x2f8   : > { %v8011_v0 = vpop.permute.xlu0 %8010  ;;  %1458 = vmatpush.msra.mxu2 %v1346_v43  ;;  %1478 = vmatpush.msra.mxu3 %v1347_v11  ;;  %v7184_v11 = vld [vmem:[%s16005_s2 + $0x28] sm:$0xff] }
 0x2f9   : > { %v8013_v41 = vunpack.i.h.bf16 %v8011_v0  ;;  %v8012_v53 = vunpack.i.l.bf16 %v8011_v0  ;;  %7181 = vmatmul.msk.f32.vlgmr.msra.gmra.mxu1 %vm441_vm7, %v7179_v61  ;;  %7182 = vmatmul.msk.f32.vlgmr.msra.gmra.mxu2 %vm441_vm7, %v7179_v61  ;;  %v7983_v0 = vunpack.i.h.bf16 %v11525_v42  ;;  %v1578_v42 = vsel %vm1559_vm12, %v7992_v48, %v7993_v9 }
 0x2fa   : > { %7183 = vmatmul.msk.f32.vlgmr.msra.gmra.mxu3 %vm441_vm7, %v7179_v61  ;;  %v7963_v61 = vunpack.i.h.bf16 %v11548_v30  ;;  %v1558_v58 = vpop.permute.xlu2 %1557 }
 0x2fb   : > { %v1584_v10 = vsel %vm1559_vm12, %v8012_v53, %v8013_v41  ;;  %v7967_v53 = vunpack.i.l.bf16 %v11507_v57  ;;  %v1573_v57 = vsel %vm1559_vm12, %v7977_v14, %v7978_v34 }
 0x2fc   : > { %1628 = vmatpush.msrb.mxu0 %v1584_v10  ;;  %v1568_v52 = vsel %vm1559_vm12, %v7962_v60, %v7963_v61  ;;  %v7942_v60 = vunpack.i.l.bf16 %v11555_v44 }
 0x2ff   : > { %v11593_v38 = vpop.permute.xlu1 %7970 }
 0x300   : > { %v11595_v51 = vpop.permute.xlu0 %8020  ;;  %v7973_v45 = vunpack.i.h.bf16 %v11593_v38 }
 0x302   : > { %v1572_v5 = vsel %vm1559_vm12, %v7973_v45, %v7977_v14  ;;  %v1574_v45 = vsel %vm1559_vm12, %v7978_v34, %v7982_v27  ;;  %v1570_v14 = vsel %vm1559_vm12, %v7967_v53, %v7968_v32 }
 0x307   : > { %v7986_v63 = vpop.permute.xlu1 %7985 }
 0x308   : > { %v11599_v39 = vpop.permute.xlu0 %8035  ;;  %v7988_v24 = vunpack.i.h.bf16 %v7986_v63  ;;  %v7987_v40 = vunpack.i.l.bf16 %v7986_v63  ;;  %v7972_v63 = vunpack.i.l.bf16 %v11593_v38  ;;  %v7958_v38 = vunpack.i.h.bf16 %v11583_v15 }
 0x30a   : > { %v1576_v49 = vsel %vm1559_vm12, %v7987_v40, %v7988_v24  ;;  %v1577_v10 = vsel %vm1559_vm12, %v7988_v24, %v7992_v48  ;;  %v7953_v40 = vunpack.i.h.bf16 %v11504_v21  ;;  %v7957_v24 = vunpack.i.l.bf16 %v11583_v15 }
 0x30b   : > { %v1571_v15 = vsel %vm1559_vm12, %v7968_v32, %v7972_v63  ;;  %v8022_v32 = vunpack.i.l.bf16 %v11595_v51 }
 0x30c   : > { %v1566_v30 = vsel %vm1559_vm12, %v7953_v40, %v7957_v24 }
 0x30f   : > { %v8001_v46 = vpop.permute.xlu1 %8000 }
 0x310   : > { %v8002_v2 = vunpack.i.l.bf16 %v8001_v46  ;;  %v11602_v4 = vpop.permute.xlu0 %8050  ;;  %v8003_v26 = vunpack.i.h.bf16 %v8001_v46  ;;  %v1579_v46 = vsel %vm1559_vm12, %v7993_v9, %v7997_v31 }
 0x312   : > { %v1580_v54 = vsel %vm1559_vm12, %v7998_v12, %v8002_v2  ;;  %v1581_v43 = vsel %vm1559_vm12, %v8002_v2, %v8003_v26  ;;  %v1582_v23 = vsel %vm1559_vm12, %v8003_v26, %v8007_v50  ;;  %v11650_v12 = vpop.permute.xlu2 %8030 }
 0x313   : > { %1629 = vmatpush.msrb.mxu0 %v1580_v54  ;;  %v1575_v54 = vsel %vm1559_vm12, %v7982_v27, %v7983_v0  ;;  %v8033_v27 = vunpack.i.h.bf16 %v11650_v12 }
 0x315   : > { %1630 = vmatpush.msrb.mxu0 %v1576_v49  ;;  %v1569_v49 = vsel %vm1559_vm12, %v7963_v61, %v7967_v53  ;;  %v1567_v61 = vsel %vm1559_vm12, %v7957_v24, %v7958_v38 }
 0x317   : > { %v8016_v36 = vpop.permute.xlu1 %8015  ;;  %1631 = vmatpush.msrb.mxu0 %v1572_v5  ;;  %v1565_v5 = vsel %vm1559_vm12, %v7952_v62, %v7953_v40 }
 0x318   : > { %v8018_v7 = vunpack.i.h.bf16 %v8016_v36  ;;  %v8017_v18 = vunpack.i.l.bf16 %v8016_v36  ;;  %v11618_v20 = vpop.permute.xlu0 %8065 }
 0x319   : > { %1632 = vmatpush.msrb.mxu0 %v1568_v52 }
 0x31a   : > { %v1585_v56 = vsel %vm1559_vm12, %v8013_v41, %v8017_v18  ;;  %v1586_v16 = vsel %vm1559_vm12, %v8017_v18, %v8018_v7  ;;  %v1587_v55 = vsel %vm1559_vm12, %v8018_v7, %v1558_v58  ;;  %v1583_v41 = vsel %vm1559_vm12, %v8007_v50, %v8008_v6  ;;  %v11682_v26 = vpop.permute.xlu2 %8045 }
 0x31b   : > { %1633 = vmatpush.msrb.mxu0 %v1564_v17  ;;  %1648 = vmatpush.msrb.mxu1 %v1585_v56  ;;  %v7943_v58 = vunpack.i.h.bf16 %v11555_v44  ;;  %v1561_v44 = vsel %vm1559_vm12, %v7938_v13, %v7942_v60  ;;  %v8048_v31 = vunpack.i.h.bf16 %v11682_v26  ;;  %v8047_v34 = vunpack.i.l.bf16 %v11682_v26 }
 0x31c   : > { %1668 = vmatpush.msrb.mxu2 %v1586_v16  ;;  %1688 = vmatpush.msrb.mxu3 %v1587_v55 }
 0x31d   : > { %1634 = vmatpush.msrb.mxu0 %v1560_v29  ;;  %1649 = vmatpush.msrb.mxu1 %v1581_v43  ;;  %v1562_v21 = vsel %vm1559_vm12, %v7942_v60, %v7943_v58  ;;  %v1563_v62 = vsel %vm1559_vm12, %v7943_v58, %v7947_v28  ;;  %v1784_v53 = vsel %vm1775_vm13, %v8047_v34, %v8048_v31 }
 0x31e   : > { %1669 = vmatpush.msrb.mxu2 %v1582_v23  ;;  %1689 = vmatpush.msrb.mxu3 %v1583_v41  ;;  %v8023_v23 = vunpack.i.h.bf16 %v11595_v51 }
 0x31f   : > { %v11645_v35 = vpop.permute.xlu1 %8025  ;;  %1650 = vmatpush.msrb.mxu1 %v1577_v10  ;;  %7185 = vmatmul.msk.f32.vlgmr.msrb.gmra.mxu0 %vm441_vm7, %v7184_v11 }
 0x320   : > { %v11653_v2 = vpop.permute.xlu0 %8080  ;;  %1670 = vmatpush.msrb.mxu2 %v1578_v42  ;;  %1690 = vmatpush.msrb.mxu3 %v1579_v46  ;;  %v8028_v26 = vunpack.i.h.bf16 %v11645_v35 }
 0x321   : > { %1651 = vmatpush.msrb.mxu1 %v1573_v57  ;;  %v8083_v17 = vunpack.i.h.bf16 %v11653_v2 }
 0x322   : > { %1671 = vmatpush.msrb.mxu2 %v1574_v45  ;;  %1691 = vmatpush.msrb.mxu3 %v1575_v54  ;;  %v8061_v7 = vpop.permute.xlu2 %8060  ;;  %v11719_v54 = vld [vmem:[%s16005_s2 + $0x30] sm:$0xff] }
 0x323   : > { %1652 = vmatpush.msrb.mxu1 %v1569_v49  ;;  %v8062_v29 = vunpack.i.l.bf16 %v8061_v7  ;;  %v8063_v60 = vunpack.i.h.bf16 %v8061_v7  ;;  %v1776_v49 = vsel %vm1775_vm13, %v8022_v32, %v8023_v23  ;;  %v16151_v32 = vld [vmem:[#allocation3_spill] sm:$0xff] }
 0x324   : > { %1672 = vmatpush.msrb.mxu2 %v1570_v14  ;;  %1692 = vmatpush.msrb.mxu3 %v1571_v15  ;;  %v8067_v14 = vunpack.i.l.bf16 %v11618_v20 }
 0x325   : > { %1653 = vmatpush.msrb.mxu1 %v1565_v5  ;;  %v8052_v5 = vunpack.i.l.bf16 %v11602_v4 }
 0x326   : > { %1673 = vmatpush.msrb.mxu2 %v1566_v30  ;;  %1693 = vmatpush.msrb.mxu3 %v1567_v61  ;;  %v8053_v30 = vunpack.i.h.bf16 %v11602_v4 }
 0x327   : > { %v11676_v36 = vpop.permute.xlu1 %8040  ;;  %1654 = vmatpush.msrb.mxu1 %v1561_v44  ;;  %v8038_v44 = vunpack.i.h.bf16 %v11599_v39 }
 0x328   : > { %v8096_v52 = vpop.permute.xlu0 %8095  ;;  %1674 = vmatpush.msrb.mxu2 %v1562_v21  ;;  %1694 = vmatpush.msrb.mxu3 %v1563_v62  ;;  %v1789_v21 = vsel %vm1775_vm13, %v8062_v29, %v8063_v60  ;;  %v8042_v62 = vunpack.i.l.bf16 %v11676_v36 }
 0x329   : > { %v8098_v25 = vunpack.i.h.bf16 %v8096_v52  ;;  %v8097_v3 = vunpack.i.l.bf16 %v8096_v52  ;;  %7186 = vmatmul.msk.f32.vlgmr.msrb.gmra.mxu1 %vm441_vm7, %v7184_v11  ;;  %7187 = vmatmul.msk.f32.vlgmr.msrb.gmra.mxu2 %vm441_vm7, %v7184_v11  ;;  %v1790_v52 = vsel %vm1775_vm13, %v8063_v60, %v8067_v14 }
 0x32a   : > { %7188 = vmatmul.msk.f32.vlgmr.msrb.gmra.mxu3 %vm441_vm7, %v7184_v11  ;;  %v11688_v6 = vpop.permute.xlu2 %8075  ;;  %v8037_v11 = vunpack.i.l.bf16 %v11599_v39  ;;  %v1786_v39 = vsel %vm1775_vm13, %v8052_v5, %v8053_v30  ;;  %v1782_v7 = vsel %vm1775_vm13, %v8038_v44, %v8042_v62 }
 0x32b   : > { %v1800_v19 = vsel %vm1775_vm13, %v8097_v3, %v8098_v25  ;;  %v8078_v24 = vunpack.i.h.bf16 %v11688_v6  ;;  %v8077_v45 = vunpack.i.l.bf16 %v11688_v6  ;;  %v1785_v3 = vsel %vm1775_vm13, %v8048_v31, %v8052_v5 }
 0x32c   : > { %1844 = vmatpush.msra.mxu0 %v1800_v19  ;;  %v1780_v40 = vsel %vm1775_vm13, %v8033_v27, %v8037_v11  ;;  %v1781_v19 = vsel %vm1775_vm13, %v8037_v11, %v8038_v44 }
 0x32d   : > { %v1794_v61 = vsel %vm1775_vm13, %v8077_v45, %v8078_v24 }
 0x32f   : > { %v11686_v13 = vpop.permute.xlu1 %8055 }
 0x330   : > { %v8058_v9 = vunpack.i.h.bf16 %v11686_v13 }
 0x332   : > { %v1788_v0 = vsel %vm1775_vm13, %v8058_v9, %v8062_v29  ;;  %v11703_v10 = vpop.permute.xlu2 %8090 }
 0x333   : > { %v8092_v51 = vunpack.i.l.bf16 %v11703_v10 }
 0x337   : > { %v8071_v18 = vpop.permute.xlu1 %8070 }
 0x338   : > { %v8073_v56 = vunpack.i.h.bf16 %v8071_v18  ;;  %v8072_v16 = vunpack.i.l.bf16 %v8071_v18 }
 0x33a   : > { %v1792_v43 = vsel %vm1775_vm13, %v8072_v16, %v8073_v56  ;;  %v1793_v28 = vsel %vm1775_vm13, %v8073_v56, %v8077_v45  ;;  %v482_v56 = vpop.f32.mrf.mxu1  ;;  %v11763_v45 = vld [vmem:[%s16004_s1] sm:$0xf] }
 0x33f   : > { %v8086_v50 = vpop.permute.xlu1 %8085 }
 0x340   : > { %v8087_v55 = vunpack.i.l.bf16 %v8086_v50  ;;  %v8088_v63 = vunpack.i.h.bf16 %v8086_v50 }
 0x342   : > { %v1796_v48 = vsel %vm1775_vm13, %v8083_v17, %v8087_v55  ;;  %v1797_v58 = vsel %vm1775_vm13, %v8087_v55, %v8088_v63  ;;  %v1798_v15 = vsel %vm1775_vm13, %v8088_v63, %v8092_v51  ;;  %v462_v17 = vpop.f32.mrf.mxu0  ;;  %v502_v55 = vpop.f32.mrf.mxu2 }
 0x343   : > { %1845 = vmatpush.msra.mxu0 %v1796_v48  ;;  %v700_v9 = vpop.f32.mrf.mxu1  ;;  %v525_v63 = vadd.f32 %v462_v17, %v16151_v32  ;;  %v527_v17 = vadd.f32 %v502_v55, %v16151_v32 }
 0x345   : > { %1846 = vmatpush.msra.mxu0 %v1792_v43 }
 0x347   : > { %v11700_v41 = vpop.permute.xlu1 %8100  ;;  %1847 = vmatpush.msra.mxu0 %v1788_v0 }
 0x348   : > { %v8103_v42 = vunpack.i.h.bf16 %v11700_v41  ;;  %v8102_v46 = vunpack.i.l.bf16 %v11700_v41 }
 0x349   : > { %1848 = vmatpush.msra.mxu0 %v1784_v53 }
 0x34a   : > { %v1801_v57 = vsel %vm1775_vm13, %v8098_v25, %v8102_v46  ;;  %v1802_v38 = vsel %vm1775_vm13, %v8102_v46, %v8103_v42  ;;  %v8027_v25 = vunpack.i.l.bf16 %v11645_v35  ;;  %v680_v16 = vpop.f32.mrf.mxu0  ;;  %v720_v31 = vpop.f32.mrf.mxu2 }
 0x34b   : > { %1849 = vmatpush.msra.mxu0 %v1780_v40  ;;  %1864 = vmatpush.msra.mxu1 %v1801_v57  ;;  %v1009_v34 = vpop.f32.mrf.mxu1  ;;  %v743_v46 = vadd.f32 %v680_v16, %v525_v63 }
 0x34c   : > { %1884 = vmatpush.msra.mxu2 %v1802_v38  ;;  %v1777_v18 = vsel %vm1775_vm13, %v8023_v23, %v8027_v25  ;;  %v1778_v50 = vsel %vm1775_vm13, %v8027_v25, %v8028_v26 }
 0x34d   : > { %1850 = vmatpush.msra.mxu0 %v1776_v49  ;;  %1865 = vmatpush.msra.mxu1 %v1797_v58 }
 0x34e   : > { %1885 = vmatpush.msra.mxu2 %v1798_v15  ;;  %7190 = vmatmul.msk.f32.vlgmr.msra.gmra.mxu0 %vm441_vm7, %v11719_v54 }
 0x34f   : > { %1866 = vmatpush.msra.mxu1 %v1793_v28  ;;  %v11766_v28 = vperm.slane %v11763_v45, 0 }
 0x350   : > { %1886 = vmatpush.msra.mxu2 %v1794_v61  ;;  %v526_v61 = vadd.f32 %v482_v56, %v16151_v32 }
 0x351   : > { %1867 = vmatpush.msra.mxu1 %v1789_v21  ;;  %16152 = vst [vmem:[#allocation5_spill] sm:$0xff] %v11766_v28 }
 0x352   : > { %1887 = vmatpush.msra.mxu2 %v1790_v52  ;;  %v989_v48 = vpop.f32.mrf.mxu0  ;;  %v1029_v43 = vpop.f32.mrf.mxu2  ;;  %v744_v52 = vadd.f32 %v700_v9, %v526_v61  ;;  %v745_v9 = vadd.f32 %v720_v31, %v527_v17  ;;  %v11790_v31 = vperm.slane %v11763_v45, 2 }
 0x353   : > { %1868 = vmatpush.msra.mxu1 %v1785_v3  ;;  %v1219_v11 = vpop.f32.mrf.mxu1 }
 0x354   : > { %1888 = vmatpush.msra.mxu2 %v1786_v39  ;;  %v1220_v44 = vadd.f32 %v1219_v11, %v1009_v34  ;;  %16154 = vst [vmem:[#allocation3_spill] sm:$0xff] %v11790_v31 }
 0x355   : > { %1869 = vmatpush.msra.mxu1 %v1781_v19 }
 0x356   : > { %1889 = vmatpush.msra.mxu2 %v1782_v7 }
 0x357   : > { %1870 = vmatpush.msra.mxu1 %v1777_v18 }
 0x358   : > { %1890 = vmatpush.msra.mxu2 %v1778_v50  ;;  %7191 = vmatmul.msk.f32.vlgmr.msra.gmra.mxu1 %vm441_vm7, %v11719_v54 }
 0x359   : > { %7192 = vmatmul.msk.f32.vlgmr.msra.gmra.mxu2 %vm441_vm7, %v11719_v54 }
 0x35a   : > { %v1199_v29 = vpop.f32.mrf.mxu0  ;;  %v1239_v27 = vpop.f32.mrf.mxu2 }
 0x35b   : > { %v1200_v40 = vadd.f32 %v1199_v29, %v989_v48  ;;  %v1240_v16 = vadd.f32 %v1239_v27, %v1029_v43  ;;  %v11777_v48 = vperm.slane %v11763_v45, 1 }
 0x35d   : > { %16153 = vst [vmem:[#allocation8_spill] sm:$0xff] %v11777_v48 }
 0x36c   : > { %v1420_v0 = vpop.f32.mrf.mxu0 }
 0x36d   : > { %v1483_v57 = vadd.f32 %v1420_v0, %v743_v46 }
 0x376   : > { %v1440_v23 = vpop.f32.mrf.mxu1 }
 0x377   : > { %v1484_v39 = vadd.f32 %v1440_v23, %v744_v52 }
 0x37c   : > { %v1460_v38 = vpop.f32.mrf.mxu2 }
 0x37d   : > { %v1485_v29 = vadd.f32 %v1460_v38, %v745_v9  ;;  %v522_v9 = vpop.f32.mrf.mxu3 }
 0x39c   : > { %v1636_v53 = vpop.f32.mrf.mxu0 }
 0x39d   : > { %v1699_v58 = vadd.f32 %v1636_v53, %v1200_v40 }
 0x3a6   : > { %v1656_v49 = vpop.f32.mrf.mxu1 }
 0x3a7   : > { %v1700_v19 = vadd.f32 %v1656_v49, %v1220_v44 }
 0x3ac   : > { %v1676_v3 = vpop.f32.mrf.mxu2 }
 0x3ad   : > { %v1701_v11 = vadd.f32 %v1676_v3, %v1240_v16 }
 0x3cb   : > { %v1852_v60 = vpop.f32.mrf.mxu0 }
 0x3cc   : > { %v1915_v15 = vadd.f32 %v1852_v60, %v1483_v57  ;;  %v8093_v57 = vunpack.i.h.bf16 %v11703_v10  ;;  %v8082_v60 = vunpack.i.l.bf16 %v11653_v2  ;;  %v8043_v2 = vunpack.i.h.bf16 %v11676_v36 }
 0x3ce   : > { %v1919_v5 = vadd.f32 %v1915_v15, %v1699_v58  ;;  %v8068_v58 = vunpack.i.h.bf16 %v11618_v20  ;;  %v1799_v15 = vsel %vm1775_vm13, %v8092_v51, %v8093_v57  ;;  %v1795_v61 = vsel %vm1775_vm13, %v8078_v24, %v8082_v60  ;;  %v11844_v20 = vpop.permute.xlu0 %1948 }
 0x3cf   : > { %16157 = vst [vmem:[#allocation11_spill] sm:$0xff] %v11844_v20 }
 0x3d0   : > { %v1923_v21 = vmax.f32 %v1919_v5, 0.0  ;;  %v8057_v5 = vunpack.i.l.bf16 %v11686_v13  ;;  %v1791_v41 = vsel %vm1775_vm13, %v8067_v14, %v8068_v58  ;;  %v1783_v13 = vsel %vm1775_vm13, %v8042_v62, %v8043_v2 }
 0x3d2   : > { %v11770_v25 = vmul.f32 %v11766_v28, %v1923_v21  ;;  %v1787_v10 = vsel %vm1775_vm13, %v8053_v30, %v8057_v5 }
 0x3d4   : > { %v8104_v7 = vpack.i.bf16 %v11770_v25, %v11026_v1  ;;  %v11782_v1 = vpack.i.bf16 %v11770_v25, %v16144_v8 }
 0x3d5   : > { %v1872_v18 = vpop.f32.mrf.mxu1 }
 0x3d6   : > { %v1916_v50 = vadd.f32 %v1872_v18, %v1484_v39  ;;  %8105 = vrot.lane.b32.xlu2 %v8104_v7, %s10401_s13 }
 0x3d8   : > { %v1920_v56 = vadd.f32 %v1916_v50, %v1700_v19 }
 0x3da   : > { %v1924_v34 = vmax.f32 %v1920_v56, 0.0 }
 0x3dc   : > { %v1937_v0 = vmul.f32 %v11777_v48, %v1924_v34  ;;  %v1892_v23 = vpop.f32.mrf.mxu2  ;;  %v740_v34 = vpop.f32.mrf.mxu3 }
 0x3dd   : > { %v1917_v53 = vadd.f32 %v1892_v23, %v1485_v29 }
 0x3de   : > { %8120 = vrot.lane.b32.xlu2 %v11782_v1, %s10391_s25  ;;  %v11787_v55 = vpack.i.bf16 %v1937_v0, %v11770_v25 }
 0x3df   : > { %v1921_v43 = vadd.f32 %v1917_v53, %v1701_v11  ;;  %v528_v53 = vadd.f32 %v522_v9, %v16151_v32 }
 0x3e0   : > { %8115 = vrot.lane.b32.xlu0 %v11787_v55, %s10390_s24  ;;  %8110 = vrot.lane.b32.xlu1 %v11787_v55, %s10389_s23 }
 0x3e1   : > { %v1925_v27 = vmax.f32 %v1921_v43, 0.0  ;;  %v746_v43 = vadd.f32 %v740_v34, %v528_v53 }
 0x3e3   : > { %v11797_v63 = vmul.f32 %v11790_v31, %v1925_v27 }
 0x3e4   : > { %v1049_v29 = vpop.f32.mrf.mxu3 }
 0x3e5   : > { %v11802_v46 = vpack.i.bf16 %v11797_v63, %v1937_v0 }
 0x3e6   : > { %8125 = vrot.lane.b32.xlu2 %v11782_v1, %s10392_s26 }
 0x3e7   : > { %16155 = vst [vmem:[#allocation9_spill] sm:$0xff] %v11802_v46 }
 0x3e8   : > { %8140 = vrot.lane.b32.xlu0 %v11802_v46, %s10391_s25 }
 0x3ec   : > { %v1259_v11 = vpop.f32.mrf.mxu3 }
 0x3ed   : > { %v1260_v27 = vadd.f32 %v1259_v11, %v1049_v29 }
 0x3f0   : > { %8150 = vrot.lane.b32.xlu0 %v11802_v46, %s10392_s26 }
 0x3f4   : > { %v1480_v0 = vpop.f32.mrf.mxu3 }
 0x3f5   : > { %v1486_v57 = vadd.f32 %v1480_v0, %v746_v43 }
 0x3f8   : > { %8165 = vrot.lane.b32.xlu0 %v11802_v46, %s10393_s27 }
 0x3fc   : > { %v1696_v23 = vpop.f32.mrf.mxu3 }
 0x3fd   : > { %v1702_v60 = vadd.f32 %v1696_v23, %v1260_v27 }
 0x400   : > { %8180 = vrot.lane.b32.xlu0 %v11802_v46, %s10394_s28 }
 0x430   : > { %v11812_v40 = vpop.permute.xlu2 %8105 }
 0x431   : > { %16156 = vst [vmem:[#allocation10_spill] sm:$0xff] %v11812_v40  ;;  %v8107_v38 = vunpack.i.l.bf16 %v11812_v40 }
 0x433   : > { %v1803_v49 = vsel %vm1775_vm13, %v8103_v42, %v8107_v38  ;;  %v8032_v42 = vunpack.i.l.bf16 %v11650_v12  ;;  %v7843_v12 = vunpack.i.h.bf16 %v11329_v33 }
 0x434   : > { %1904 = vmatpush.msra.mxu3 %v1803_v49 }
 0x435   : > { %v1779_v6 = vsel %vm1775_vm13, %v8028_v26, %v8032_v42 }
 0x436   : > { %1905 = vmatpush.msra.mxu3 %v1799_v15  ;;  %v11885_v15 = vperm.slane %v11763_v45, 3 }
 0x438   : > { %1906 = vmatpush.msra.mxu3 %v1795_v61  ;;  %v8121_v30 = vpop.permute.xlu2 %8120  ;;  %16158 = vst [vmem:[#allocation12_spill] sm:$0xff] %v11885_v15 }
 0x439   : > { %v8123_v62 = vunpack.i.h.bf16 %v8121_v30  ;;  %v8122_v26 = vunpack.i.l.bf16 %v8121_v30 }
 0x43a   : > { %1907 = vmatpush.msra.mxu3 %v1791_v41 }
 0x43b   : > { %v1999_v33 = vsel %vm263_vm2, %v8122_v26, %v8123_v62 }
 0x43c   : > { %1908 = vmatpush.msra.mxu3 %v1787_v10 }
 0x43e   : > { %1909 = vmatpush.msra.mxu3 %v1783_v13 }
 0x440   : > { %1910 = vmatpush.msra.mxu3 %v1779_v6  ;;  %v11868_v39 = vpop.permute.xlu2 %8125 }
 0x441   : > { %7193 = vmatmul.msk.f32.vlgmr.msra.gmra.mxu3 %vm441_vm7, %v11719_v54  ;;  %v8128_v7 = vunpack.i.h.bf16 %v11868_v39 }
 0x452   : > { %v11846_v4 = vpop.permute.xlu0 %8115  ;;  %v11848_v24 = vpop.permute.xlu1 %8110 }
 0x453   : > { %v8113_v36 = vunpack.i.h.bf16 %v11848_v24  ;;  %v8112_v51 = vunpack.i.l.bf16 %v11848_v24  ;;  %v8117_v45 = vunpack.i.l.bf16 %v11846_v4  ;;  %v8118_v11 = vunpack.i.h.bf16 %v11846_v4 }
 0x455   : > { %v1971_v35 = vsel %vm233_vm0, %v7843_v12, %v8112_v51  ;;  %v1972_v14 = vsel %vm233_vm0, %v8112_v51, %v8113_v36 }
 0x456   : > { %v11857_v54 = vpack.i.bf16 %v1972_v14, %v1971_v35 }
 0x45a   : > { %v11859_v44 = vpop.permute.xlu0 %8140 }
 0x45b   : > { %v8142_v21 = vunpack.i.l.bf16 %v11859_v44 }
 0x45d   : > { %v2000_v52 = vsel %vm263_vm2, %v8123_v62, %v8142_v21 }
 0x45e   : > { %v11866_v3 = vpack.i.bf16 %v2000_v52, %v1999_v33 }
 0x462   : > { %v11870_v19 = vpop.permute.xlu0 %8150 }
 0x463   : > { %v8153_v18 = vunpack.i.h.bf16 %v11870_v19  ;;  %v8152_v50 = vunpack.i.l.bf16 %v11870_v19 }
 0x465   : > { %v2014_v17 = vsel %vm278_vm3, %v8128_v7, %v8152_v50  ;;  %v2015_v16 = vsel %vm278_vm3, %v8152_v50, %v8153_v18 }
 0x466   : > { %v11881_v56 = vpack.i.bf16 %v2015_v16, %v2014_v17 }
 0x46a   : > { %v8166_v13 = vpop.permute.xlu0 %8165 }
 0x46b   : > { %v8167_v14 = vunpack.i.l.bf16 %v8166_v13 }
 0x472   : > { %v8181_v24 = vpop.permute.xlu0 %8180 }
 0x473   : > { %v8182_v50 = vunpack.i.l.bf16 %v8181_v24 }
 0x4c4   : > { %v1912_v38 = vpop.f32.mrf.mxu3 }
 0x4c5   : > { %v1918_v49 = vadd.f32 %v1912_v38, %v1486_v57  ;;  %v1986_v57 = vsel %vm248_vm1, %v8117_v45, %v8118_v11 }
 0x4c7   : > { %v1922_v58 = vadd.f32 %v1918_v49, %v1702_v60  ;;  %v8127_v60 = vunpack.i.l.bf16 %v11868_v39 }
 0x4c9   : > { %v1926_v5 = vmax.f32 %v1922_v58, 0.0  ;;  %v8143_v58 = vunpack.i.h.bf16 %v11859_v44 }
 0x4cb   : > { %v11888_v61 = vmul.f32 %v11885_v15, %v1926_v5 }
 0x4cd   : > { %v11892_v2 = vpack.i.bf16 %v11888_v61, %v11797_v63  ;;  %v8144_v32 = vpack.i.bf16 %v11770_v25, %v11888_v61  ;;  %v7848_v25 = vunpack.i.h.bf16 %v11264_v47 }
 0x4cf   : > { %8195 = vrot.lane.b32.xlu0 %v11892_v2, %s10395_s29  ;;  %8135 = vrot.lane.b32.xlu1 %v11892_v2, %s10390_s24  ;;  %v1985_v42 = vsel %vm248_vm1, %v7848_v25, %v8117_v45  ;;  %v2001_v45 = vsel %vm263_vm2, %v8142_v21, %v8143_v58  ;;  %v8168_v21 = vunpack.i.h.bf16 %v8166_v13 }
 0x4d0   : > { %8130 = vrot.lane.b32.xlu2 %v11892_v2, %s10389_s23 }
 0x4d7   : > { %8215 = vrot.lane.b32.xlu0 %v11866_v3, %s10395_s29  ;;  %8145 = vrot.lane.b32.xlu1 %v8144_v32, %s10391_s25 }
 0x4d8   : > { %8160 = vrot.lane.b32.xlu2 %v11782_v1, %s10393_s27 }
 0x4df   : > { %8225 = vrot.lane.b32.xlu0 %v11857_v54, %s10396_s30  ;;  %8155 = vrot.lane.b32.xlu1 %v8144_v32, %s10392_s26 }
 0x4e0   : > { %8175 = vrot.lane.b32.xlu2 %v11782_v1, %s10394_s28 }
 0x4e7   : > { %8170 = vrot.lane.b32.xlu1 %v8144_v32, %s10393_s27 }
 0x4e8   : > { %8190 = vrot.lane.b32.xlu2 %v11787_v55, %s10395_s29 }
 0x4ef   : > { %8185 = vrot.lane.b32.xlu1 %v8144_v32, %s10394_s28  ;;  %v2013_v32 = vsel %vm278_vm3, %v8127_v60, %v8128_v7 }
 0x4f0   : > { %8205 = vrot.lane.b32.xlu2 %v11892_v2, %s10396_s30 }
 0x4f7   : > { %8200 = vrot.lane.b32.xlu1 %v11787_v55, %s10396_s30 }
 0x4ff   : > { %8210 = vrot.lane.b32.xlu1 %v11857_v54, %s10395_s29 }
 0x52a   : > { %v8131_v63 = vpop.permute.xlu2 %8130 }
 0x52b   : > { %v8133_v41 = vunpack.i.h.bf16 %v8131_v63  ;;  %v8132_v10 = vunpack.i.l.bf16 %v8131_v63 }
 0x52d   : > { %v1973_v6 = vsel %vm233_vm0, %v8113_v36, %v8132_v10  ;;  %v1974_v12 = vsel %vm233_vm0, %v8132_v10, %v8133_v41  ;;  %v11929_v51 = vpack.i.bf16 %v1985_v42, %v8133_v41  ;;  %v8183_v36 = vunpack.i.h.bf16 %v8181_v24 }
 0x52e   : > { %v11931_v35 = vpack.i.bf16 %v1974_v12, %v1973_v6 }
 0x52f   : > { %8240 = vrot.lane.b32.xlu0 %v11929_v51, %s10395_s29  ;;  %v2043_v9 = vsel %vm308_vm5, %v8182_v50, %v8183_v36 }
 0x532   : > { %v8161_v47 = vpop.permute.xlu2 %8160 }
 0x533   : > { %v8163_v30 = vunpack.i.h.bf16 %v8161_v47  ;;  %v8162_v62 = vunpack.i.l.bf16 %v8161_v47  ;;  %v2029_v47 = vsel %vm293_vm4, %v8167_v14, %v8168_v21 }
 0x535   : > { %v2028_v26 = vsel %vm293_vm4, %v8163_v30, %v8167_v14  ;;  %v2027_v33 = vsel %vm293_vm4, %v8162_v62, %v8163_v30 }
 0x536   : > { %v11937_v52 = vpack.i.bf16 %v2028_v26, %v2027_v33 }
 0x538   : > { %8235 = vrot.lane.b32.xlu1 %v11937_v52, %s10396_s30  ;;  %8220 = vrot.lane.b32.xlu2 %v11937_v52, %s10395_s29 }
 0x53a   : > { %v8176_v17 = vpop.permute.xlu2 %8175 }
 0x53b   : > { %v8178_v16 = vunpack.i.h.bf16 %v8176_v17  ;;  %v8177_v7 = vunpack.i.l.bf16 %v8176_v17 }
 0x53d   : > { %v2042_v34 = vsel %vm308_vm5, %v8178_v16, %v8182_v50  ;;  %v2041_v30 = vsel %vm308_vm5, %v8177_v7, %v8178_v16 }
 0x53e   : > { %v11945_v29 = vpack.i.bf16 %v2043_v9, %v2042_v34 }
 0x540   : > { %16159 = vst [vmem:[#allocation13_spill] sm:$0xff] %v11945_v29  ;;  %8230 = vrot.lane.b32.xlu2 %v11866_v3, %s10396_s30 }
 0x541   : > { %v8136_v0 = vpop.permute.xlu1 %8135 }
 0x542   : > { %v8138_v23 = vunpack.i.h.bf16 %v8136_v0  ;;  %v8137_v53 = vunpack.i.l.bf16 %v8136_v0  ;;  %v12031_v24 = vpop.permute.xlu2 %8190 }
 0x544   : > { %v1987_v43 = vsel %vm248_vm1, %v8118_v11, %v8137_v53  ;;  %v1988_v27 = vsel %vm248_vm1, %v8137_v53, %v8138_v23 }
 0x545   : > { %v11953_v38 = vpack.i.bf16 %v1987_v43, %v1986_v57  ;;  %v11956_v49 = vpack.i.bf16 %v8138_v23, %v1988_v27 }
 0x549   : > { %v11959_v5 = vpop.permute.xlu1 %8145 }
 0x54a   : > { %v8147_v4 = vunpack.i.l.bf16 %v11959_v5  ;;  %v12042_v50 = vpop.permute.xlu2 %8205 }
 0x54c   : > { %v11968_v25 = vpack.i.bf16 %v2013_v32, %v8147_v4  ;;  %v2002_v63 = vsel %vm263_vm2, %v8143_v58, %v8147_v4 }
 0x54d   : > { %v11971_v41 = vpack.i.bf16 %v2002_v63, %v2001_v45 }
 0x54e   : > { %8245 = vrot.lane.b32.xlu2 %v11968_v25, %s10395_s29 }
 0x551   : > { %v11975_v10 = vpop.permute.xlu1 %8155 }
 0x552   : > { %v8157_v42 = vunpack.i.l.bf16 %v11975_v10 }
 0x554   : > { %v2016_v39 = vsel %vm278_vm3, %v8153_v18, %v8157_v42 }
 0x555   : > { %v11981_v44 = vpack.i.bf16 %v8157_v42, %v2016_v39 }
 0x556   : > { %8255 = vrot.lane.b32.xlu2 %v11929_v51, %s10396_s30 }
 0x559   : > { %v11985_v6 = vpop.permute.xlu1 %8170 }
 0x55a   : > { %v8172_v12 = vunpack.i.l.bf16 %v11985_v6 }
 0x55c   : > { %v11990_v62 = vpack.i.bf16 %v2041_v30, %v8172_v12  ;;  %v2030_v19 = vsel %vm293_vm4, %v8168_v21, %v8172_v12 }
 0x55d   : > { %v11993_v18 = vpack.i.bf16 %v2030_v19, %v2029_v47 }
 0x55e   : > { %8250 = vrot.lane.b32.xlu1 %v11990_v62, %s10395_s29  ;;  %8265 = vrot.lane.b32.xlu0 %v11990_v62, %s10396_s30 }
 0x55f   : > { %8270 = vrot.lane.b32.xlu2 %v11931_v35, %s10395_s29 }
 0x561   : > { %v12001_v13 = vpop.permute.xlu1 %8185 }
 0x562   : > { %v8187_v14 = vunpack.i.l.bf16 %v12001_v13 }
 0x564   : > { %v2044_v26 = vsel %vm308_vm5, %v8183_v36, %v8187_v14  ;;  %v12040_v36 = vpack.i.bf16 0.0, %v11888_v61 }
 0x565   : > { %v12005_v33 = vpack.i.bf16 %v8187_v14, %v2044_v26 }
 0x566   : > { %8260 = vrot.lane.b32.xlu1 %v11968_v25, %s10396_s30  ;;  %8290 = vrot.lane.b32.xlu0 %v11881_v56, %s10395_s29  ;;  %16161 = vst [vmem:[#allocation15_spill] sm:$0xff] %v12040_v36 }
 0x567   : > { %16160 = vst [vmem:[#allocation14_spill] sm:$0xff] %v12005_v33  ;;  %8280 = vrot.lane.b32.xlu2 %v11956_v49, %s10395_s29 }
 0x569   : > { %v12086_v11 = vpop.permute.xlu1 %8200 }
 0x56e   : > { %8275 = vrot.lane.b32.xlu1 %v11953_v38, %s10395_s29  ;;  %8300 = vrot.lane.b32.xlu0 %v11993_v18, %s10395_s29 }
 0x56f   : > { %8305 = vrot.lane.b32.xlu2 %v11945_v29, %s10395_s29 }
 0x571   : > { %v12100_v53 = vpop.permute.xlu1 %8210 }
 0x576   : > { %8285 = vrot.lane.b32.xlu1 %v11971_v41, %s10395_s29  ;;  %8310 = vrot.lane.b32.xlu0 %v12005_v33, %s10395_s29 }
 0x577   : > { %8335 = vrot.lane.b32.xlu2 %v11881_v56, %s10396_s30 }
 0x57e   : > { %8295 = vrot.lane.b32.xlu1 %v11981_v44, %s10395_s29  ;;  %8320 = vrot.lane.b32.xlu0 %v11953_v38, %s10396_s30 }
 0x57f   : > { %8350 = vrot.lane.b32.xlu2 %v11993_v18, %s10396_s30 }
 0x586   : > { %8330 = vrot.lane.b32.xlu0 %v11971_v41, %s10396_s30  ;;  %8315 = vrot.lane.b32.xlu1 %v11931_v35, %s10396_s30 }
 0x587   : > { %8365 = vrot.lane.b32.xlu2 %v12005_v33, %s10396_s30 }
 0x58e   : > { %8340 = vrot.lane.b32.xlu0 %v11981_v44, %s10396_s30  ;;  %8325 = vrot.lane.b32.xlu1 %v11956_v49, %s10396_s30 }
 0x58f   : > { %8370 = vrot.lane.b32.xlu2 %v12040_v36, %s10389_s23 }
 0x592   : > { %v12050_v17 = vpop.permute.xlu2 %8220 }
 0x593   : > { %v8223_v42 = vunpack.i.h.bf16 %v12050_v17  ;;  %v8222_v39 = vunpack.i.l.bf16 %v12050_v17 }
 0x595   : > { %v2137_v47 = vsel %vm384_vm6, %v8222_v39, %v8223_v42 }
 0x596   : > { %8345 = vrot.lane.b32.xlu0 %v11782_v1, %s10389_s23  ;;  %8355 = vrot.lane.b32.xlu1 %v11945_v29, %s10396_s30 }
 0x597   : > { %8385 = vrot.lane.b32.xlu2 %v12040_v36, %s10390_s24 }
 0x59a   : > { %v12064_v61 = vpop.permute.xlu2 %8230 }
 0x59e   : > { %8375 = vrot.lane.b32.xlu0 %v11782_v1, %s10390_s24  ;;  %8360 = vrot.lane.b32.xlu1 %v11802_v46, %s10389_s23  ;;  %v12074_v1 = vpop.permute.xlu0 %8195 }
 0x59f   : > { %8400 = vrot.lane.b32.xlu2 %v11802_v46, %s10392_s26 }
 0x5a6   : > { %8390 = vrot.lane.b32.xlu0 %v11802_v46, %s10391_s25  ;;  %8380 = vrot.lane.b32.xlu1 %v11802_v46, %s10390_s24  ;;  %v12084_v34 = vpop.permute.xlu0 %8215 }
 0x5a7   : > { %8415 = vrot.lane.b32.xlu2 %v12040_v36, %s10393_s27  ;;  %v8218_v14 = vunpack.i.h.bf16 %v12084_v34  ;;  %v8217_v26 = vunpack.i.l.bf16 %v12084_v34 }
 0x5a8   : > { %v12072_v16 = vpop.permute.xlu2 %8245 }
 0x5a9   : > { %v8248_v17 = vunpack.i.h.bf16 %v12072_v16  ;;  %v2129_v39 = vsel %vm384_vm6, %v8217_v26, %v8218_v14 }
 0x5aa   : > { %v12106_v57 = vpop.permute.xlu1 %8235 }
 0x5ae   : > { %8405 = vrot.lane.b32.xlu0 %v12040_v36, %s10392_s26  ;;  %8395 = vrot.lane.b32.xlu1 %v12040_v36, %s10391_s25  ;;  %v12098_v23 = vpop.permute.xlu0 %8225 }
 0x5af   : > { %8430 = vrot.lane.b32.xlu2 %v11787_v55, %s10397_s5 }
 0x5b0   : > { %v12082_v9 = vpop.permute.xlu2 %8255 }
 0x5b6   : > { %8420 = vrot.lane.b32.xlu0 %v11802_v46, %s10394_s28  ;;  %8410 = vrot.lane.b32.xlu1 %v11802_v46, %s10393_s27  ;;  %v12104_v27 = vpop.permute.xlu0 %8240 }
 0x5b7   : > { %v8243_v34 = vunpack.i.h.bf16 %v12104_v27 }
 0x5b9   : > { %v12092_v0 = vpop.permute.xlu2 %8270 }
 0x5be   : > { %8435 = vrot.lane.b32.xlu0 %v11892_v2, %s10397_s5  ;;  %8425 = vrot.lane.b32.xlu1 %v12040_v36, %s10394_s28 }
 0x5c1   : > { %v12102_v43 = vpop.permute.xlu2 %8280 }
 0x5c9   : > { %v8306_v60 = vpop.permute.xlu2 %8305 }
 0x5ca   : > { %v8308_v58 = vunpack.i.h.bf16 %v8306_v60  ;;  %v8307_v4 = vunpack.i.l.bf16 %v8306_v60 }
 0x5cc   : > { %v2142_v32 = vsel %vm384_vm6, %v8307_v4, %v8308_v58 }
 0x5cd   : > { %2205 = vmatpush.msrb.mxu1 %v2142_v32 }
 0x5d0   : > { %v12109_v45 = vpop.permute.xlu1 %8250  ;;  %v12111_v63 = vpop.permute.xlu0 %8265 }
 0x5d1   : > { %v8253_v21 = vunpack.i.h.bf16 %v12109_v45  ;;  %v12116_v7 = vpop.permute.xlu2 %8335 }
 0x5d3   : > { %v2141_v12 = vsel %vm384_vm6, %v8253_v21, %v8307_v4  ;;  %v8213_v21 = vunpack.i.h.bf16 %v12100_v53 }
 0x5d4   : > { %2185 = vmatpush.msrb.mxu0 %v2141_v12  ;;  %v8212_v12 = vunpack.i.l.bf16 %v12100_v53  ;;  %v16162_v53 = vld [vmem:[#allocation7_spill] sm:$0xff] }
 0x5d6   : > { %2186 = vmatpush.msrb.mxu0 %v2137_v47  ;;  %v2121_v40 = vsel %vm384_vm6, %v8212_v12, %v8213_v21 }
 0x5d8   : > { %v12120_v30 = vpop.permute.xlu1 %8260  ;;  %v12122_v19 = vpop.permute.xlu0 %8290 }
 0x5d9   : > { %v8292_v60 = vunpack.i.l.bf16 %v12122_v19  ;;  %v12128_v32 = vpop.permute.xlu2 %8350  ;;  %v8293_v31 = vunpack.i.h.bf16 %v12122_v19  ;;  %v12150_v19 = vld [vmem:[%s16005_s2 + $0x38] sm:$0xff]  ;;  %v8263_v33 = vunpack.i.h.bf16 %v12120_v30 }
 0x5db   : > { %v2133_v4 = vsel %vm384_vm6, %v8248_v17, %v8292_v60  ;;  %v8192_v17 = vunpack.i.l.bf16 %v12031_v24  ;;  %v2134_v37 = vsel %vm384_vm6, %v8292_v60, %v8293_v31 }
 0x5dc   : > { %2187 = vmatpush.msrb.mxu0 %v2133_v4 }
 0x5de   : > { %2188 = vmatpush.msrb.mxu0 %v2129_v39  ;;  %v7443_v39 = vunpack.i.h.bf16 %v16162_v53 }
 0x5e0   : > { %v12134_v47 = vpop.permute.xlu1 %8275  ;;  %v8301_v15 = vpop.permute.xlu0 %8300  ;;  %v2117_v36 = vsel %vm384_vm6, %v7443_v39, %v8192_v17  ;;  %v8252_v39 = vunpack.i.l.bf16 %v12109_v45 }
 0x5e1   : > { %v8277_v48 = vunpack.i.l.bf16 %v12134_v47  ;;  %v8302_v28 = vunpack.i.l.bf16 %v8301_v15  ;;  %v12139_v20 = vpop.permute.xlu2 %8365 }
 0x5e3   : > { %v2125_v26 = vsel %vm384_vm6, %v8243_v34, %v8277_v48  ;;  %v2138_v4 = vsel %vm384_vm6, %v8223_v42, %v8302_v28  ;;  %v8278_v34 = vunpack.i.h.bf16 %v12134_v47 }
 0x5e4   : > { %2189 = vmatpush.msrb.mxu0 %v2125_v26  ;;  %2206 = vmatpush.msrb.mxu1 %v2138_v4  ;;  %v8303_v4 = vunpack.i.h.bf16 %v8301_v15  ;;  %v8193_v15 = vunpack.i.h.bf16 %v12031_v24 }
 0x5e6   : > { %2190 = vmatpush.msrb.mxu0 %v2121_v40  ;;  %2207 = vmatpush.msrb.mxu1 %v2134_v37  ;;  %v8272_v37 = vunpack.i.l.bf16 %v12092_v0  ;;  %v2140_v8 = vsel %vm384_vm6, %v8303_v4, %v8252_v39 }
 0x5e8   : > { %v8286_v42 = vpop.permute.xlu1 %8285  ;;  %v8311_v26 = vpop.permute.xlu0 %8310  ;;  %2191 = vmatpush.msrb.mxu0 %v2117_v36  ;;  %v2126_v36 = vsel %vm384_vm6, %v8277_v48, %v8278_v34  ;;  %v8247_v48 = vunpack.i.l.bf16 %v12072_v16 }
 0x5e9   : > { %v8287_v53 = vunpack.i.l.bf16 %v8286_v42  ;;  %v8313_v46 = vunpack.i.h.bf16 %v8311_v26  ;;  %v8312_v12 = vunpack.i.l.bf16 %v8311_v26  ;;  %v12154_v59 = vpop.permute.xlu2 %8370  ;;  %7196 = vmatmul.msk.f32.vlgmr.msrb.gmra.mxu0 %vm441_vm7, %v12150_v19  ;;  %v2139_v26 = vsel %vm384_vm6, %v8302_v28, %v8303_v4 }
 0x5ea   : > { %v8288_v45 = vunpack.i.h.bf16 %v8286_v42 }
 0x5eb   : > { %v2130_v40 = vsel %vm384_vm6, %v8218_v14, %v8287_v53  ;;  %v2143_v60 = vsel %vm384_vm6, %v8308_v58, %v8312_v12  ;;  %v2144_v47 = vsel %vm384_vm6, %v8312_v12, %v8313_v46  ;;  %v2122_v58 = vsel %vm384_vm6, %v8213_v21, %v8272_v37 }
 0x5ec   : > { %2208 = vmatpush.msrb.mxu1 %v2130_v40  ;;  %2225 = vmatpush.msrb.mxu2 %v2143_v60  ;;  %v2118_v60 = vsel %vm384_vm6, %v8192_v17, %v8193_v15  ;;  %v8282_v21 = vunpack.i.l.bf16 %v12102_v43  ;;  %v8273_v17 = vunpack.i.h.bf16 %v12092_v0  ;;  %v2131_v39 = vsel %vm384_vm6, %v8287_v53, %v8288_v45 }
 0x5ed   : > { %2245 = vmatpush.msrb.mxu3 %v2144_v47 }
 0x5ee   : > { %2209 = vmatpush.msrb.mxu1 %v2126_v36  ;;  %2226 = vmatpush.msrb.mxu2 %v2139_v26  ;;  %v8197_v26 = vunpack.i.l.bf16 %v12074_v1 }
 0x5ef   : > { %2246 = vmatpush.msrb.mxu3 %v2140_v8  ;;  %v8283_v8 = vunpack.i.h.bf16 %v12102_v43  ;;  %v2132_v43 = vsel %vm384_vm6, %v8288_v45, %v8247_v48  ;;  %v8368_v45 = vunpack.i.h.bf16 %v12139_v20 }
 0x5f0   : > { %v8296_v14 = vpop.permute.xlu1 %8295  ;;  %v12168_v46 = vpop.permute.xlu0 %8320  ;;  %2210 = vmatpush.msrb.mxu1 %v2122_v58  ;;  %v8242_v58 = vunpack.i.l.bf16 %v12104_v27 }
 0x5f1   : > { %v8298_v12 = vunpack.i.h.bf16 %v8296_v14  ;;  %v8297_v40 = vunpack.i.l.bf16 %v8296_v14  ;;  %v8386_v24 = vpop.permute.xlu2 %8385  ;;  %v2127_v14 = vsel %vm384_vm6, %v8278_v34, %v8282_v21  ;;  %v16034_v34 = vunpack.i.h.bf16 %v11975_v10 }
 0x5f2   : > { %v12172_v28 = vunpack.i.h.bf16 %v8386_v24  ;;  %v12174_v47 = vunpack.i.l.bf16 %v8386_v24  ;;  %2211 = vmatpush.msrb.mxu1 %v2118_v60  ;;  %v2124_v27 = vsel %vm384_vm6, %v8273_v17, %v8242_v58 }
 0x5f3   : > { %7197 = vmatmul.msk.f32.vlgmr.msrb.gmra.mxu1 %vm441_vm7, %v12150_v19  ;;  %v2135_v42 = vsel %vm384_vm6, %v8293_v31, %v8297_v40  ;;  %v2136_v4 = vsel %vm384_vm6, %v8297_v40, %v8298_v12  ;;  %v8198_v31 = vunpack.i.h.bf16 %v12074_v1  ;;  %v2128_v12 = vsel %vm384_vm6, %v8282_v21, %v8283_v8 }
 0x5f4   : > { %16163 = vst [vmem:[#allocation7_spill] sm:$0xff] %v12172_v28  ;;  %v12185_v16 = vsel %vm248_vm1, %v12174_v47, %v12172_v28  ;;  %2227 = vmatpush.msrb.mxu2 %v2135_v42  ;;  %2247 = vmatpush.msrb.mxu3 %v2136_v4  ;;  %v16039_v40 = vunpack.i.l.bf16 %v12139_v20  ;;  %v2123_v1 = vsel %vm384_vm6, %v8272_v37, %v8273_v17  ;;  %v16038_v8 = vunpack.i.h.bf16 %v12128_v32 }
 0x5f5   : > { %v2119_v21 = vsel %vm384_vm6, %v8193_v15, %v8197_v26  ;;  %v2120_v42 = vsel %vm384_vm6, %v8197_v26, %v8198_v31  ;;  %v8267_v17 = vunpack.i.l.bf16 %v12111_v63  ;;  %v8338_v28 = vunpack.i.h.bf16 %v12116_v7 }
 0x5f6   : > { %2228 = vmatpush.msrb.mxu2 %v2131_v39  ;;  %2248 = vmatpush.msrb.mxu3 %v2132_v43  ;;  %v2361_v15 = vsel %vm603_vm8, %v16039_v40, %v8368_v45 }
 0x5f7   : > { %v2357_v43 = vsel %vm603_vm8, %v16038_v8, %v8267_v17  ;;  %v8208_v17 = vunpack.i.h.bf16 %v12042_v50  ;;  %v8268_v8 = vunpack.i.h.bf16 %v12111_v63  ;;  %v8232_v63 = vunpack.i.l.bf16 %v12064_v61 }
 0x5f8   : > { %v12197_v0 = vpop.permute.xlu0 %8330  ;;  %v12199_v53 = vpop.permute.xlu1 %8315  ;;  %2229 = vmatpush.msrb.mxu2 %v2127_v14  ;;  %2249 = vmatpush.msrb.mxu3 %v2128_v12 }
 0x5f9   : > { %v12203_v24 = vpop.permute.xlu2 %8400 }
 0x5fa   : > { %v16035_v60 = vunpack.i.h.bf16 %v12203_v24  ;;  %v8402_v48 = vunpack.i.l.bf16 %v12203_v24  ;;  %2230 = vmatpush.msrb.mxu2 %v2123_v1  ;;  %2250 = vmatpush.msrb.mxu3 %v2124_v27  ;;  %v8262_v27 = vunpack.i.l.bf16 %v12120_v30  ;;  %v8322_v30 = vunpack.i.l.bf16 %v12168_v46 }
 0x5fc   : > { %v12216_v37 = vsel %vm278_vm3, %v16034_v34, %v8402_v48  ;;  %v12221_v4 = vsel %vm278_vm3, %v8402_v48, %v16035_v60  ;;  %2231 = vmatpush.msrb.mxu2 %v2119_v21  ;;  %2251 = vmatpush.msrb.mxu3 %v2120_v42  ;;  %v8257_v60 = vunpack.i.l.bf16 %v12082_v9 }
 0x5fd   : > { %16164 = vst [vmem:[#allocation16_spill] sm:$0xff] %v12216_v37  ;;  %7198 = vmatmul.msk.f32.vlgmr.msrb.gmra.mxu2 %vm441_vm7, %v12150_v19  ;;  %7199 = vmatmul.msk.f32.vlgmr.msrb.gmra.mxu3 %vm441_vm7, %v12150_v19  ;;  %v12233_v39 = vpack.i.bf16 %v12221_v4, %v12216_v37  ;;  %v16040_v19 = vunpack.i.h.bf16 %v12197_v0 }
 0x5fe   : > { %16165 = vst [vmem:[#allocation17_spill] sm:$0xff] %v12221_v4  ;;  %2462 = vmatpush.msra.mxu3 %v2361_v15  ;;  %v16046_v15 = vunpack.i.l.bf16 %v12042_v50 }
 0x5ff   : > { %v2349_v34 = vsel %vm603_vm8, %v16040_v19, %v8262_v27  ;;  %v8352_v19 = vunpack.i.l.bf16 %v12128_v32 }
 0x600   : > { %2463 = vmatpush.msra.mxu3 %v2357_v43  ;;  %v12238_v31 = vpop.permute.xlu0 %8340  ;;  %v12240_v26 = vpop.permute.xlu1 %8325 }
 0x601   : > { %v8343_v58 = vunpack.i.h.bf16 %v12238_v31  ;;  %v16036_v14 = vunpack.i.l.bf16 %v12238_v31  ;;  %v12245_v12 = vpop.permute.xlu2 %8415  ;;  %v8328_v48 = vunpack.i.h.bf16 %v12240_v26  ;;  %v16042_v21 = vunpack.i.l.bf16 %v12240_v26 }
 0x602   : > { %v12248_v45 = vunpack.i.h.bf16 %v12245_v12  ;;  %v16037_v1 = vunpack.i.l.bf16 %v12245_v12 }
 0x603   : > { %v2353_v42 = vsel %vm603_vm8, %v16036_v14, %v8343_v58  ;;  %v2345_v14 = vsel %vm603_vm8, %v16042_v21, %v8328_v48  ;;  %v16169_v48 = vunpack.i.h.bf16 %v12199_v53 }
 0x604   : > { %16166 = vst [vmem:[#allocation18_spill] sm:$0xff] %v12248_v45  ;;  %v12263_v43 = vsel %vm293_vm4, %v16037_v1, %v12248_v45  ;;  %2464 = vmatpush.msra.mxu3 %v2353_v42  ;;  %v8238_v1 = vunpack.i.h.bf16 %v12106_v57  ;;  %v8237_v42 = vunpack.i.l.bf16 %v12106_v57  ;;  %v8233_v57 = vunpack.i.h.bf16 %v12064_v61 }
 0x605   : > { %16167 = vst [vmem:[#allocation19_spill] sm:$0xff] %v12263_v43  ;;  %v12271_v58 = vpack.i.bf16 %v12248_v45, %v12263_v43  ;;  %v2341_v21 = vsel %vm603_vm8, %v16169_v48, %v8257_v60  ;;  %v12302_v60 = vld [vmem:[%s16005_s2 + $0x48] sm:$0xff]  ;;  %v8228_v61 = vunpack.i.h.bf16 %v12098_v23  ;;  %v8332_v48 = vunpack.i.l.bf16 %v12197_v0 }
 0x606   : > { %2465 = vmatpush.msra.mxu3 %v2349_v34  ;;  %v2337_v34 = vsel %vm603_vm8, %v16046_v15, %v8208_v17 }
 0x607   : > { %16168 = vst [vmem:[#allocation20_spill] sm:$0xff] %v12271_v58 }
 0x608   : > { %v12280_v40 = vpop.permute.xlu0 %8345  ;;  %v8356_v27 = vpop.permute.xlu1 %8355  ;;  %2466 = vmatpush.msra.mxu3 %v2345_v14  ;;  %v8337_v14 = vunpack.i.l.bf16 %v12116_v7 }
 0x609   : > { %v8358_v36 = vunpack.i.h.bf16 %v8356_v27  ;;  %v8357_v58 = vunpack.i.l.bf16 %v8356_v27  ;;  %v16170_v27 = vunpack.i.l.bf16 %v12139_v20  ;;  %v8258_v20 = vunpack.i.h.bf16 %v12082_v9 }
 0x60a   : > { %2467 = vmatpush.msra.mxu3 %v2341_v21  ;;  %v8323_v21 = vunpack.i.h.bf16 %v12168_v46  ;;  %v8347_v7 = vunpack.i.l.bf16 %v12280_v40  ;;  %v16171_v46 = vunpack.i.h.bf16 %v12128_v32  ;;  %v16172_v32 = vunpack.i.l.bf16 %v12238_v31 }
 0x60b   : > { %v2358_v17 = vsel %vm603_vm8, %v8268_v8, %v8357_v58  ;;  %v2359_v15 = vsel %vm603_vm8, %v8357_v58, %v8358_v36  ;;  %v2360_v29 = vsel %vm603_vm8, %v8358_v36, %v16170_v27  ;;  %v2354_v36 = vsel %vm603_vm8, %v8237_v42, %v8238_v1 }
 0x60c   : > { %2402 = vmatpush.msra.mxu0 %v2358_v17  ;;  %2422 = vmatpush.msra.mxu1 %v2359_v15  ;;  %v2355_v58 = vsel %vm603_vm8, %v8238_v1, %v8352_v19  ;;  %v8348_v27 = vunpack.i.h.bf16 %v12280_v40  ;;  %v2356_v9 = vsel %vm603_vm8, %v8352_v19, %v16171_v46  ;;  %v2350_v1 = vsel %vm603_vm8, %v8263_v33, %v8337_v14 }
 0x60d   : > { %2442 = vmatpush.msra.mxu2 %v2360_v29  ;;  %2468 = vmatpush.msra.mxu3 %v2337_v34  ;;  %v12321_v29 = vunpack.i.h.bf16 %v12154_v59  ;;  %v2351_v15 = vsel %vm603_vm8, %v8337_v14, %v8338_v28  ;;  %v2346_v42 = vsel %vm603_vm8, %v8232_v63, %v8233_v57  ;;  %v8372_v40 = vunpack.i.l.bf16 %v12154_v59 }
 0x60e   : > { %7205 = vmatmul.msk.f32.vlgmr.msra.gmra.mxu3 %vm441_vm7, %v12302_v60  ;;  %2403 = vmatpush.msra.mxu0 %v2354_v36  ;;  %v2352_v19 = vsel %vm603_vm8, %v8338_v28, %v16172_v32  ;;  %v2342_v36 = vsel %vm603_vm8, %v8258_v20, %v8322_v30  ;;  %v8317_v63 = vunpack.i.l.bf16 %v12199_v53  ;;  %v2498_v59 = vsel %vm233_vm0, %v8347_v7, %v8348_v27 }
 0x60f   : > { %2423 = vmatpush.msra.mxu1 %v2355_v58  ;;  %2443 = vmatpush.msra.mxu2 %v2356_v9  ;;  %v2343_v58 = vsel %vm603_vm8, %v8322_v30, %v8323_v21  ;;  %v2347_v14 = vsel %vm603_vm8, %v8233_v57, %v8332_v48  ;;  %v16173_v31 = vunpack.i.h.bf16 %v12197_v0  ;;  %v8202_v7 = vunpack.i.l.bf16 %v12086_v11 }
 0x610   : > { %v8376_v34 = vpop.permute.xlu0 %8375  ;;  %v8361_v17 = vpop.permute.xlu1 %8360  ;;  %2404 = vmatpush.msra.mxu0 %v2350_v1 }
 0x611   : > { %v8378_v46 = vunpack.i.h.bf16 %v8376_v34  ;;  %v8377_v9 = vunpack.i.l.bf16 %v8376_v34  ;;  %v8363_v33 = vunpack.i.h.bf16 %v8361_v17  ;;  %v8362_v8 = vunpack.i.l.bf16 %v8361_v17  ;;  %2424 = vmatpush.msra.mxu1 %v2351_v15  ;;  %2444 = vmatpush.msra.mxu2 %v2352_v19 }
 0x612   : > { %2405 = vmatpush.msra.mxu0 %v2346_v42  ;;  %v2348_v28 = vsel %vm603_vm8, %v8332_v48, %v16173_v31  ;;  %v7598_v34 = vunpack.i.h.bf16 %v10941_v22  ;;  %v16176_v19 = vunpack.i.h.bf16 %v12199_v53 }
 0x613   : > { %v2512_v20 = vsel %vm248_vm1, %v8377_v9, %v8378_v46  ;;  %v12340_v30 = vsel %vm233_vm0, %v8348_v27, %v8362_v8  ;;  %v12343_v1 = vsel %vm233_vm0, %v8362_v8, %v8363_v33  ;;  %v12346_v15 = vsel %vm233_vm0, %v8363_v33, %v8372_v40  ;;  %2425 = vmatpush.msra.mxu1 %v2347_v14 }
 0x614   : > { %2445 = vmatpush.msra.mxu2 %v2348_v28  ;;  %2406 = vmatpush.msra.mxu0 %v2342_v36  ;;  %v8439_v0 = vpack.i.bf16 %v12340_v30, %v2498_v59  ;;  %v12352_v57 = vpack.i.bf16 %v12346_v15, %v12343_v1  ;;  %v8449_v48 = vpack.i.bf16 %v2512_v20, %v8372_v40  ;;  %v16174_v8 = vunpack.i.l.bf16 %v12240_v26 }
 0x615   : > { %v12356_v27 = vsel %vm233_vm0, %v8372_v40, %v12321_v29  ;;  %2426 = vmatpush.msra.mxu1 %v2343_v58  ;;  %v16175_v26 = vunpack.i.l.bf16 %v12098_v23  ;;  %v8148_v40 = vunpack.i.h.bf16 %v11959_v5  ;;  %v2340_v36 = vsel %vm603_vm8, %v8317_v63, %v16176_v19 }
 0x616   : > { %v2344_v42 = vsel %vm603_vm8, %v8323_v21, %v16174_v8  ;;  %8440 = vrot.lane.b32.xlu1 %v8439_v0, %s10397_s5  ;;  %8445 = vrot.lane.b32.xlu2 %v12352_v57, %s10397_s5  ;;  %v2339_v21 = vsel %vm603_vm8, %v8228_v61, %v8317_v63  ;;  %v2334_v33 = vsel %vm603_vm8, %v7598_v34, %v8202_v7  ;;  %v16177_v59 = vunpack.i.h.bf16 %v12086_v11 }
 0x617   : > { %2446 = vmatpush.msra.mxu2 %v2344_v42  ;;  %8450 = vrot.lane.b32.xlu0 %v8449_v48, %s10397_s5  ;;  %v2338_v22 = vsel %vm603_vm8, %v16175_v26, %v8228_v61  ;;  %v16178_v5 = vunpack.i.l.bf16 %v12042_v50 }
 0x618   : > { %2407 = vmatpush.msra.mxu0 %v2338_v22  ;;  %2427 = vmatpush.msra.mxu1 %v2339_v21  ;;  %v8391_v58 = vpop.permute.xlu0 %8390  ;;  %v8381_v9 = vpop.permute.xlu1 %8380  ;;  %v2335_v14 = vsel %vm603_vm8, %v8202_v7, %v16177_v59  ;;  %v16179_v53 = vmov %v16177_v59 }
 0x619   : > { %2447 = vmatpush.msra.mxu2 %v2340_v36  ;;  %v8393_v23 = vunpack.i.h.bf16 %v8391_v58  ;;  %v8392_v31 = vunpack.i.l.bf16 %v8391_v58  ;;  %v8383_v61 = vunpack.i.h.bf16 %v8381_v9  ;;  %v8382_v28 = vunpack.i.l.bf16 %v8381_v9 }
 0x61a   : > { %2408 = vmatpush.msra.mxu0 %v2334_v33  ;;  %2428 = vmatpush.msra.mxu1 %v2335_v14  ;;  %v2336_v63 = vsel %vm603_vm8, %v16179_v53, %v16178_v5  ;;  %v16182_v58 = vunpack.i.h.bf16 %v12203_v24  ;;  %v16185_v24 = vunpack.i.h.bf16 %v11975_v10 }
 0x61b   : > { %v12392_v20 = vsel %vm263_vm2, %v8148_v40, %v8392_v31  ;;  %v12395_v0 = vsel %vm263_vm2, %v8392_v31, %v8393_v23  ;;  %v12398_v7 = vsel %vm248_vm1, %v8378_v46, %v8382_v28  ;;  %v12401_v48 = vsel %vm248_vm1, %v8382_v28, %v8383_v61  ;;  %2448 = vmatpush.msra.mxu2 %v2336_v63 }
 0x61c   : > { %v12405_v50 = vsel %vm248_vm1, %v8383_v61, %v12174_v47  ;;  %7202 = vmatmul.msk.f32.vlgmr.msra.gmra.mxu0 %vm441_vm7, %v12302_v60  ;;  %7203 = vmatmul.msk.f32.vlgmr.msra.gmra.mxu1 %vm441_vm7, %v12302_v60  ;;  %v12413_v11 = vpack.i.bf16 %v12401_v48, %v12398_v7  ;;  %v8464_v46 = vpack.i.bf16 %v12392_v20, %v8148_v40  ;;  %v8173_v63 = vunpack.i.h.bf16 %v11985_v6 }
 0x61d   : > { %7204 = vmatmul.msk.f32.vlgmr.msra.gmra.mxu2 %vm441_vm7, %v12302_v60  ;;  %v8459_v8 = vpack.i.bf16 %v12174_v47, %v12405_v50  ;;  %v12422_v42 = vpack.i.bf16 %v12185_v16, %v12405_v50  ;;  %v16190_v6 = vunpack.i.l.bf16 %v12245_v12 }
 0x61e   : > { %8455 = vrot.lane.b32.xlu1 %v12413_v11, %s10397_s5 }
 0x61f   : > { %8460 = vrot.lane.b32.xlu2 %v8459_v8, %s10397_s5  ;;  %8465 = vrot.lane.b32.xlu0 %v8464_v46, %s10397_s5  ;;  %v8188_v46 = vunpack.i.h.bf16 %v12001_v13 }
 0x620   : > { %v8406_v26 = vpop.permute.xlu0 %8405  ;;  %v8396_v22 = vpop.permute.xlu1 %8395 }
 0x621   : > { %v12434_v21 = vunpack.i.h.bf16 %v8406_v26  ;;  %v8407_v40 = vunpack.i.l.bf16 %v8406_v26  ;;  %v12436_v19 = vunpack.i.h.bf16 %v8396_v22  ;;  %v8397_v36 = vunpack.i.l.bf16 %v8396_v22 }
 0x623   : > { %16180 = vst [vmem:[#allocation21_spill] sm:$0xff] %v12434_v21  ;;  %v12441_v9 = vsel %vm278_vm3, %v16182_v58, %v8407_v40  ;;  %v12445_v33 = vsel %vm278_vm3, %v8407_v40, %v12434_v21  ;;  %v12448_v59 = vsel %vm263_vm2, %v8393_v23, %v8397_v36  ;;  %v12452_v14 = vsel %vm263_vm2, %v8397_v36, %v12436_v19 }
 0x624   : > { %16181 = vst [vmem:[#allocation22_spill] sm:$0xff] %v12436_v19  ;;  %v12456_v31 = vpack.i.bf16 %v12448_v59, %v12395_v0  ;;  %v8474_v61 = vpack.i.bf16 %v16185_v24, %v8397_v36  ;;  %v12462_v28 = vpack.i.bf16 %v12445_v33, %v12441_v9 }
 0x625   : > { %16183 = vst [vmem:[#allocation23_spill] sm:$0xff] %v12441_v9 }
 0x626   : > { %16184 = vst [vmem:[#allocation24_spill] sm:$0xff] %v12445_v33  ;;  %8470 = vrot.lane.b32.xlu1 %v12456_v31, %s10397_s5 }
 0x627   : > { %8475 = vrot.lane.b32.xlu2 %v8474_v61, %s10397_s5  ;;  %8480 = vrot.lane.b32.xlu0 %v12233_v39, %s10397_s5 }
 0x628   : > { %v8421_v8 = vpop.permute.xlu0 %8420  ;;  %v8411_v26 = vpop.permute.xlu1 %8410 }
 0x629   : > { %v8423_v22 = vunpack.i.h.bf16 %v8421_v8  ;;  %v8422_v40 = vunpack.i.l.bf16 %v8421_v8  ;;  %v8413_v36 = vunpack.i.h.bf16 %v8411_v26  ;;  %v8412_v58 = vunpack.i.l.bf16 %v8411_v26 }
 0x62b   : > { %v12480_v24 = vsel %vm308_vm5, %v8188_v46, %v8422_v40  ;;  %v12483_v61 = vsel %vm308_vm5, %v8422_v40, %v8423_v22  ;;  %v12486_v53 = vsel %vm293_vm4, %v8173_v63, %v8412_v58  ;;  %v12489_v10 = vsel %vm293_vm4, %v8412_v58, %v8413_v36 }
 0x62c   : > { %16186 = vst [vmem:[#allocation25_spill] sm:$0xff] %v12480_v24  ;;  %v12494_v13 = vsel %vm293_vm4, %v8413_v36, %v16190_v6  ;;  %v8489_v8 = vpack.i.bf16 %v12486_v53, %v8173_v63  ;;  %v12499_v26 = vpack.i.bf16 %v12486_v53, %v12434_v21  ;;  %v12507_v5 = vpack.i.bf16 %v12483_v61, %v12480_v24 }
 0x62d   : > { %16187 = vst [vmem:[#allocation26_spill] sm:$0xff] %v12483_v61  ;;  %v12503_v40 = vpack.i.bf16 %v12494_v13, %v12489_v10  ;;  %v8499_v63 = vpack.i.bf16 %v8188_v46, %v12263_v43 }
 0x62e   : > { %16188 = vst [vmem:[#allocation27_spill] sm:$0xff] %v12486_v53  ;;  %8485 = vrot.lane.b32.xlu1 %v12462_v28, %s10397_s5 }
 0x62f   : > { %16189 = vst [vmem:[#allocation28_spill] sm:$0xff] %v12489_v10  ;;  %8490 = vrot.lane.b32.xlu2 %v8489_v8, %s10397_s5  ;;  %8495 = vrot.lane.b32.xlu0 %v12503_v40, %s10397_s5 }
 0x630   : > { %16191 = vst [vmem:[#allocation29_spill] sm:$0xff] %v12494_v13  ;;  %v8426_v58 = vpop.permute.xlu1 %8425 }
 0x631   : > { %v12520_v6 = vunpack.i.h.bf16 %v8426_v58  ;;  %v8427_v23 = vunpack.i.l.bf16 %v8426_v58 }
 0x633   : > { %v12523_v47 = vsel %vm308_vm5, %v8423_v22, %v8427_v23  ;;  %v12527_v12 = vsel %vm308_vm5, %v8427_v23, %v12520_v6 }
 0x634   : > { %16192 = vst [vmem:[#allocation30_spill] sm:$0xff] %v12523_v47  ;;  %v12532_v8 = vpack.i.bf16 %v12527_v12, %v12523_v47 }
 0x635   : > { %16193 = vst [vmem:[#allocation31_spill] sm:$0xff] %v12527_v12 }
 0x636   : > { %8500 = vrot.lane.b32.xlu1 %v8499_v63, %s10397_s5  ;;  %v16198_v63 = vld [vmem:[#allocation20_spill] sm:$0xff] }
 0x637   : > { %8505 = vrot.lane.b32.xlu2 %v12507_v5, %s10397_s5  ;;  %8510 = vrot.lane.b32.xlu0 %v12532_v8, %s10397_s5 }
 0x63e   : > { %8515 = vrot.lane.b32.xlu1 %v11787_v55, %s10398_s10 }
 0x63f   : > { %8520 = vrot.lane.b32.xlu2 %v11892_v2, %s10398_s10  ;;  %8525 = vrot.lane.b32.xlu0 %v11857_v54, %s10398_s10  ;;  %v16194_v54 = vld [vmem:[#allocation13_spill] sm:$0xff] }
 0x646   : > { %8530 = vrot.lane.b32.xlu1 %v11931_v35, %s10398_s10 }
 0x647   : > { %8535 = vrot.lane.b32.xlu2 %v11929_v51, %s10398_s10  ;;  %8540 = vrot.lane.b32.xlu0 %v11953_v38, %s10398_s10  ;;  %v16196_v51 = vmov 0.0   ;;  %v8619_v38 = vpack.i.bf16 %v12321_v29, %v12356_v27 }
 0x648   : > { %v8609_v35 = vpack.i.bf16 %v12340_v30, %v16196_v51 }
 0x64e   : > { %8545 = vrot.lane.b32.xlu1 %v11956_v49, %s10398_s10 }
 0x64f   : > { %8550 = vrot.lane.b32.xlu2 %v11866_v3, %s10398_s10  ;;  %8555 = vrot.lane.b32.xlu0 %v11971_v41, %s10398_s10  ;;  %v16195_v3 = vld [vmem:[#allocation14_spill] sm:$0xff] }
 0x656   : > { %8560 = vrot.lane.b32.xlu1 %v11968_v25, %s10398_s10  ;;  %v16197_v25 = vld [vmem:[#allocation7_spill] sm:$0xff] }
 0x657   : > { %8565 = vrot.lane.b32.xlu2 %v11881_v56, %s10398_s10  ;;  %8570 = vrot.lane.b32.xlu0 %v11981_v44, %s10398_s10  ;;  %v12577_v56 = vpop.permute.xlu2 %8430  ;;  %v12599_v41 = vpack.i.bf16 %v12392_v20, %v16197_v25  ;;  %v12603_v44 = vpack.i.bf16 %v12436_v19, %v12452_v14 }
 0x65e   : > { %8575 = vrot.lane.b32.xlu1 %v11937_v52, %s10398_s10 }
 0x65f   : > { %8580 = vrot.lane.b32.xlu2 %v11993_v18, %s10398_s10  ;;  %8585 = vrot.lane.b32.xlu0 %v11990_v62, %s10398_s10  ;;  %v12611_v62 = vpop.permute.xlu0 %8435 }
 0x666   : > { %8590 = vrot.lane.b32.xlu1 %v16194_v54, %s10398_s10 }
 0x667   : > { %8595 = vrot.lane.b32.xlu2 %v16195_v3, %s10398_s10  ;;  %8600 = vrot.lane.b32.xlu0 %v11787_v55, %s10399_s11 }
 0x66e   : > { %8605 = vrot.lane.b32.xlu1 %v11892_v2, %s10399_s11 }
 0x66f   : > { %8610 = vrot.lane.b32.xlu2 %v8609_v35, %s10399_s11  ;;  %8615 = vrot.lane.b32.xlu0 %v12352_v57, %s10399_s11 }
 0x670   : > { %v12586_v52 = vpop.permute.xlu2 %8445 }
 0x676   : > { %8620 = vrot.lane.b32.xlu1 %v8619_v38, %s10399_s11 }
 0x677   : > { %8625 = vrot.lane.b32.xlu2 %v12413_v11, %s10399_s11  ;;  %8630 = vrot.lane.b32.xlu0 %v12422_v42, %s10399_s11 }
 0x679   : > { %v12595_v49 = vpop.permute.xlu2 %8460 }
 0x67e   : > { %8635 = vrot.lane.b32.xlu1 %v12599_v41, %s10399_s11 }
 0x67f   : > { %8640 = vrot.lane.b32.xlu2 %v12456_v31, %s10399_s11  ;;  %8645 = vrot.lane.b32.xlu0 %v12603_v44, %s10399_s11 }
 0x681   : > { %v12613_v18 = vpop.permute.xlu2 %8475 }
 0x686   : > { %8650 = vrot.lane.b32.xlu1 %v12233_v39, %s10399_s11 }
 0x687   : > { %8655 = vrot.lane.b32.xlu2 %v12462_v28, %s10399_s11  ;;  %8660 = vrot.lane.b32.xlu0 %v12499_v26, %s10399_s11 }
 0x688   : > { %v12621_v23 = vpop.permute.xlu1 %8440 }
 0x689   : > { %v12623_v46 = vpop.permute.xlu2 %8490  ;;  %v12625_v22 = vpop.permute.xlu0 %8450  ;;  %v16202_v9 = vunpack.i.h.bf16 %v12621_v23 }
 0x68e   : > { %8665 = vrot.lane.b32.xlu1 %v12503_v40, %s10399_s11 }
 0x68f   : > { %8670 = vrot.lane.b32.xlu2 %v16198_v63, %s10399_s11  ;;  %8675 = vrot.lane.b32.xlu0 %v12507_v5, %s10399_s11 }
 0x690   : > { %v12633_v58 = vpop.permute.xlu1 %8455 }
 0x691   : > { %v8506_v54 = vpop.permute.xlu2 %8505  ;;  %v12635_v3 = vpop.permute.xlu0 %8465 }
 0x692   : > { %v8508_v36 = vunpack.i.h.bf16 %v8506_v54  ;;  %v8507_v60 = vunpack.i.l.bf16 %v8506_v54  ;;  %v8468_v13 = vunpack.i.h.bf16 %v12635_v3 }
 0x694   : > { %v2667_v34 = vsel %vm912_vm9, %v8507_v60, %v8508_v36 }
 0x695   : > { %2730 = vmatpush.msrb.mxu1 %v2667_v34 }
 0x696   : > { %8680 = vrot.lane.b32.xlu1 %v12532_v8, %s10399_s11 }
 0x697   : > { %3069 = vrot.lane.b32.xlu2 %v12520_v6, %s10399_s11  ;;  %8685 = vrot.lane.b32.xlu0 %v11787_v55, %s10400_s12  ;;  %v8493_v55 = vunpack.i.h.bf16 %v12623_v46 }
 0x698   : > { %v12644_v32 = vpop.permute.xlu1 %8470 }
 0x699   : > { %v12646_v17 = vpop.permute.xlu2 %8520  ;;  %v12648_v51 = vpop.permute.xlu0 %8480 }
 0x69a   : > { %v16058_v61 = vunpack.i.h.bf16 %v12648_v51  ;;  %v8482_v47 = vunpack.i.l.bf16 %v12648_v51 }
 0x69c   : > { %v2659_v24 = vsel %vm912_vm9, %v8482_v47, %v16058_v61 }
 0x69e   : > { %8690 = vrot.lane.b32.xlu1 %v11892_v2, %s10400_s12 }
 0x69f   : > { %8695 = vrot.lane.b32.xlu2 %v8609_v35, %s10400_s12  ;;  %8700 = vrot.lane.b32.xlu0 %v12352_v57, %s10400_s12  ;;  %v16199_v57 = vunpack.i.l.bf16 %v12644_v32 }
 0x6a0   : > { %v12655_v34 = vpop.permute.xlu1 %8485 }
 0x6a1   : > { %v12657_v54 = vpop.permute.xlu2 %8535  ;;  %v8496_v12 = vpop.permute.xlu0 %8495  ;;  %v2655_v35 = vsel %vm912_vm9, %v8468_v13, %v16199_v57  ;;  %v8492_v57 = vunpack.i.l.bf16 %v12623_v46  ;;  %v8488_v46 = vunpack.i.h.bf16 %v12655_v34 }
 0x6a2   : > { %v8497_v45 = vunpack.i.l.bf16 %v8496_v12  ;;  %v8498_v33 = vunpack.i.h.bf16 %v8496_v12  ;;  %v8473_v12 = vunpack.i.h.bf16 %v12644_v32 }
 0x6a4   : > { %v2663_v2 = vsel %vm912_vm9, %v8493_v55, %v8497_v45 }
 0x6a5   : > { %2731 = vmatpush.msrb.mxu1 %v2663_v2  ;;  %v16201_v2 = vunpack.i.l.bf16 %v12633_v58 }
 0x6a6   : > { %8705 = vrot.lane.b32.xlu1 %v8619_v38, %s10400_s12 }
 0x6a7   : > { %8710 = vrot.lane.b32.xlu2 %v12413_v11, %s10400_s12  ;;  %8715 = vrot.lane.b32.xlu0 %v12422_v42, %s10400_s12  ;;  %v8447_v11 = vunpack.i.l.bf16 %v12586_v52 }
 0x6a8   : > { %2732 = vmatpush.msrb.mxu1 %v2659_v24  ;;  %v8501_v38 = vpop.permute.xlu1 %8500  ;;  %v16200_v24 = vunpack.i.h.bf16 %v12633_v58 }
 0x6a9   : > { %v8503_v43 = vunpack.i.h.bf16 %v8501_v38  ;;  %v12681_v10 = vpop.permute.xlu2 %8550  ;;  %v8511_v42 = vpop.permute.xlu0 %8510  ;;  %v8502_v19 = vunpack.i.l.bf16 %v8501_v38  ;;  %v16205_v38 = vunpack.i.h.bf16 %v12648_v51 }
 0x6aa   : > { %2733 = vmatpush.msrb.mxu1 %v2655_v35  ;;  %v8513_v61 = vunpack.i.h.bf16 %v8511_v42  ;;  %v8512_v21 = vunpack.i.l.bf16 %v8511_v42  ;;  %v2651_v4 = vsel %vm912_vm9, %v16201_v2, %v16200_v24  ;;  %v2647_v35 = vsel %vm912_vm9, %v16202_v9, %v8447_v11 }
 0x6ab   : > { %v2666_v53 = vsel %vm912_vm9, %v8503_v43, %v8507_v60  ;;  %v8478_v43 = vunpack.i.h.bf16 %v12613_v18  ;;  %v8467_v60 = vunpack.i.l.bf16 %v12635_v3  ;;  %v16203_v9 = vunpack.i.h.bf16 %v12577_v56 }
 0x6ac   : > { %2734 = vmatpush.msrb.mxu1 %v2651_v4  ;;  %2710 = vmatpush.msrb.mxu0 %v2666_v53  ;;  %v2668_v42 = vsel %vm912_vm9, %v8508_v36, %v8512_v21  ;;  %v2669_v37 = vsel %vm912_vm9, %v8512_v21, %v8513_v61  ;;  %v8487_v4 = vunpack.i.l.bf16 %v12655_v34  ;;  %v2662_v21 = vsel %vm912_vm9, %v8492_v57, %v8493_v55 }
 0x6ad   : > { %2750 = vmatpush.msrb.mxu2 %v2668_v42  ;;  %2770 = vmatpush.msrb.mxu3 %v2669_v37  ;;  %v16204_v53 = vunpack.i.l.bf16 %v12577_v56  ;;  %v2664_v36 = vsel %vm912_vm9, %v8497_v45, %v8498_v33  ;;  %v2658_v34 = vsel %vm912_vm9, %v8478_v43, %v8482_v47  ;;  %v8462_v55 = vunpack.i.l.bf16 %v12595_v49 }
 0x6ae   : > { %2735 = vmatpush.msrb.mxu1 %v2647_v35  ;;  %8720 = vrot.lane.b32.xlu1 %v12599_v41, %s10400_s12  ;;  %v8463_v41 = vunpack.i.h.bf16 %v12595_v49  ;;  %v8477_v2 = vunpack.i.l.bf16 %v12613_v18  ;;  %v2660_v45 = vsel %vm912_vm9, %v16205_v38, %v8487_v4  ;;  %v2654_v24 = vsel %vm912_vm9, %v8467_v60, %v8468_v13  ;;  %v16214_v38 = vld [vmem:[#allocation15_spill] sm:$0xff] }
 0x6af   : > { %8725 = vrot.lane.b32.xlu2 %v12456_v31, %s10400_s12  ;;  %8730 = vrot.lane.b32.xlu0 %v12603_v44, %s10400_s12  ;;  %v2643_v37 = vsel %vm912_vm9, %v16204_v53, %v16203_v9  ;;  %v2665_v31 = vsel %vm912_vm9, %v8498_v33, %v8502_v19  ;;  %v2661_v19 = vsel %vm912_vm9, %v8487_v4, %v8488_v46  ;;  %v8453_v33 = vunpack.i.h.bf16 %v12625_v22 }
 0x6b0   : > { %v12714_v61 = vpop.permute.xlu1 %8515  ;;  %2711 = vmatpush.msrb.mxu0 %v2662_v21  ;;  %2736 = vmatpush.msrb.mxu1 %v2643_v37  ;;  %v8448_v57 = vunpack.i.h.bf16 %v12586_v52  ;;  %v8442_v47 = vunpack.i.l.bf16 %v12621_v23  ;;  %v16206_v49 = vunpack.i.l.bf16 %v12644_v32  ;;  %v2657_v51 = vsel %vm912_vm9, %v8473_v12, %v8477_v2  ;;  %v16209_v21 = vld [vmem:[#allocation6_spill] sm:$0xff] }
 0x6b1   : > { %2751 = vmatpush.msrb.mxu2 %v2664_v36  ;;  %2771 = vmatpush.msrb.mxu3 %v2665_v31  ;;  %v12720_v44 = vpop.permute.xlu2 %8565  ;;  %v12722_v3 = vpop.permute.xlu0 %8525  ;;  %v8452_v35 = vunpack.i.l.bf16 %v12625_v22  ;;  %v16207_v42 = vunpack.i.l.bf16 %v12633_v58  ;;  %v8437_v13 = vunpack.i.l.bf16 %v12611_v62  ;;  %v16208_v4 = vunpack.i.h.bf16 %v12633_v58 }
 0x6b2   : > { %2712 = vmatpush.msrb.mxu0 %v2658_v34  ;;  %v2656_v18 = vsel %vm912_vm9, %v16206_v49, %v8473_v12  ;;  %v2653_v32 = vsel %vm912_vm9, %v8462_v55, %v8463_v41  ;;  %v8438_v22 = vunpack.i.h.bf16 %v12611_v62  ;;  %v7748_v9 = vunpack.i.h.bf16 %v16209_v21 }
 0x6b3   : > { %2752 = vmatpush.msrb.mxu2 %v2660_v45  ;;  %2772 = vmatpush.msrb.mxu3 %v2661_v19  ;;  %v2650_v46 = vsel %vm912_vm9, %v8453_v33, %v16207_v42  ;;  %v2652_v43 = vsel %vm912_vm9, %v16208_v4, %v8462_v55  ;;  %v16210_v58 = vunpack.i.h.bf16 %v12621_v23  ;;  %v2649_v62 = vsel %vm912_vm9, %v8448_v57, %v8452_v35 }
 0x6b4   : > { %2713 = vmatpush.msrb.mxu0 %v2654_v24  ;;  %v16212_v23 = vunpack.i.h.bf16 %v12577_v56  ;;  %v2645_v52 = vsel %vm912_vm9, %v8437_v13, %v8438_v22  ;;  %v16216_v19 = vpack.i.bf16 %v12356_v27, %v12346_v15  ;;  %v16217_v35 = vpack.i.bf16 %v12398_v7, %v12321_v29 }
 0x6b5   : > { %2753 = vmatpush.msrb.mxu2 %v2656_v18  ;;  %2773 = vmatpush.msrb.mxu3 %v2657_v51  ;;  %v2646_v53 = vsel %vm912_vm9, %v8442_v47, %v16210_v58  ;;  %v16218_v4 = vpack.i.bf16 %v12405_v50, %v12401_v48  ;;  %v8537_v48 = vunpack.i.l.bf16 %v12657_v54 }
 0x6b6   : > { %2714 = vmatpush.msrb.mxu0 %v2650_v46  ;;  %8735 = vrot.lane.b32.xlu1 %v12233_v39, %s10400_s12  ;;  %v2648_v39 = vsel %vm912_vm9, %v8447_v11, %v8448_v57  ;;  %v2644_v36 = vsel %vm912_vm9, %v16212_v23, %v8437_v13 }
 0x6b7   : > { %2754 = vmatpush.msrb.mxu2 %v2652_v43  ;;  %2774 = vmatpush.msrb.mxu3 %v2653_v32  ;;  %v16219_v43 = vpack.i.bf16 %v16197_v25, %v12185_v16 }
 0x6b8   : > { %v12751_v60 = vpop.permute.xlu1 %8530  ;;  %8740 = vrot.lane.b32.xlu2 %v12462_v28, %s10400_s12  ;;  %8745 = vrot.lane.b32.xlu0 %v12499_v26, %s10400_s12  ;;  %v16211_v28 = vunpack.i.l.bf16 %v12577_v56 }
 0x6b9   : > { %2715 = vmatpush.msrb.mxu0 %v2646_v53  ;;  %2755 = vmatpush.msrb.mxu2 %v2648_v39  ;;  %v12765_v37 = vpop.permute.xlu2 %8580  ;;  %v12767_v12 = vpop.permute.xlu0 %8540  ;;  %v8533_v13 = vunpack.i.h.bf16 %v12751_v60 }
 0x6ba   : > { %2775 = vmatpush.msrb.mxu3 %v2649_v62  ;;  %v2642_v26 = vsel %vm912_vm9, %v7748_v9, %v16211_v28  ;;  %v8583_v57 = vunpack.i.h.bf16 %v12765_v37  ;;  %v8582_v50 = vunpack.i.l.bf16 %v12765_v37  ;;  %v8523_v28 = vunpack.i.h.bf16 %v12646_v17 }
 0x6bb   : > { %2716 = vmatpush.msrb.mxu0 %v2642_v26  ;;  %2756 = vmatpush.msrb.mxu2 %v2644_v36  ;;  %v8522_v26 = vunpack.i.l.bf16 %v12646_v17  ;;  %v2858_v37 = vsel %vm1122_vm10, %v8533_v13, %v8537_v48  ;;  %v8568_v36 = vunpack.i.h.bf16 %v12720_v44  ;;  %v16233_v48 = vld [vmem:[#allocation27_spill] sm:$0xff] }
 0x6bc   : > { %2776 = vmatpush.msrb.mxu3 %v2645_v52  ;;  %v8567_v52 = vunpack.i.l.bf16 %v12720_v44 }
 0x6be   : > { %8750 = vrot.lane.b32.xlu1 %v12503_v40, %s10400_s12 }
 0x6c0   : > { %v12778_v11 = vpop.permute.xlu1 %8545  ;;  %8755 = vrot.lane.b32.xlu2 %v16198_v63, %s10400_s12  ;;  %8760 = vrot.lane.b32.xlu0 %v12507_v5, %s10400_s12  ;;  %v16213_v63 = vld [vmem:[#allocation9_spill] sm:$0xff] }
 0x6c1   : > { %v8596_v31 = vpop.permute.xlu2 %8595  ;;  %v12784_v56 = vpop.permute.xlu0 %8555  ;;  %v8547_v15 = vunpack.i.l.bf16 %v12778_v11 }
 0x6c2   : > { %v8598_v41 = vunpack.i.h.bf16 %v8596_v31  ;;  %v8597_v34 = vunpack.i.l.bf16 %v8596_v31  ;;  %v8558_v27 = vunpack.i.h.bf16 %v12784_v56  ;;  %v8557_v44 = vunpack.i.l.bf16 %v12784_v56 }
 0x6c3   : > { %v8518_v56 = vunpack.i.h.bf16 %v12714_v61 }
 0x6c4   : > { %v2878_v55 = vsel %vm1122_vm10, %v8597_v34, %v8598_v41  ;;  %v8553_v41 = vunpack.i.h.bf16 %v12681_v10 }
 0x6c5   : > { %2979 = vmatpush.msra.mxu3 %v2878_v55  ;;  %v16220_v55 = vpack.i.bf16 %v12395_v0, %v12392_v20  ;;  %v16222_v20 = vld [vmem:[#allocation16_spill] sm:$0xff]  ;;  %v16223_v0 = vld [vmem:[#allocation22_spill] sm:$0xff] }
 0x6c6   : > { %8765 = vrot.lane.b32.xlu1 %v12532_v8, %s10400_s12  ;;  %v16215_v8 = vpack.i.bf16 %v12343_v1, %v12340_v30  ;;  %v8548_v1 = vunpack.i.h.bf16 %v12778_v11  ;;  %v16229_v11 = vld [vmem:[#allocation21_spill] sm:$0xff] }
 0x6c8   : > { %v12789_v40 = vpop.permute.xlu1 %8560  ;;  %3284 = vrot.lane.b32.xlu2 %v12520_v6, %s10400_s12  ;;  %8770 = vrot.lane.b32.xlu0 %v16213_v63, %s10401_s13  ;;  %v2862_v16 = vsel %vm1122_vm10, %v8547_v15, %v8548_v1  ;;  %v2873_v63 = vsel %vm1122_vm10, %v8582_v50, %v8583_v57  ;;  %v8527_v1 = vunpack.i.l.bf16 %v12722_v3 }
 0x6c9   : > { %v12795_v5 = vpop.permute.xlu2 %8610  ;;  %v12797_v2 = vpop.permute.xlu0 %8570  ;;  %v8562_v51 = vunpack.i.l.bf16 %v12789_v40  ;;  %v8563_v23 = vunpack.i.h.bf16 %v12789_v40 }
 0x6ca   : > { %v8573_v47 = vunpack.i.h.bf16 %v12797_v2  ;;  %v8572_v49 = vunpack.i.l.bf16 %v12797_v2  ;;  %v2865_v2 = vsel %vm1122_vm10, %v8557_v44, %v8558_v27 }
 0x6cb   : > { %v2866_v32 = vsel %vm1122_vm10, %v8558_v27, %v8562_v51  ;;  %v8538_v51 = vunpack.i.h.bf16 %v12657_v54  ;;  %v8532_v54 = vunpack.i.l.bf16 %v12751_v60  ;;  %v7200_v60 = vld [vmem:[%s16005_s2 + $0x40] sm:$0xff] }
 0x6cc   : > { %v2870_v42 = vsel %vm1122_vm10, %v8572_v49, %v8573_v47 }
 0x6ce   : > { %8775 = vrot.lane.b32.xlu1 %v16214_v38, %s10401_s13 }
 0x6d0   : > { %v8576_v45 = vpop.permute.xlu1 %8575  ;;  %8780 = vrot.lane.b32.xlu2 %v16215_v8, %s10401_s13  ;;  %8785 = vrot.lane.b32.xlu0 %v16216_v19, %s10401_s13  ;;  %v16224_v8 = vpack.i.bf16 %v16222_v20, %v16223_v0  ;;  %v2854_v19 = vsel %vm1122_vm10, %v8522_v26, %v8523_v28 }
 0x6d1   : > { %v12809_v33 = vpop.permute.xlu2 %8625  ;;  %v8586_v24 = vpop.permute.xlu0 %8585  ;;  %v8578_v22 = vunpack.i.h.bf16 %v8576_v45  ;;  %v8577_v21 = vunpack.i.l.bf16 %v8576_v45  ;;  %v8542_v45 = vunpack.i.l.bf16 %v12767_v12 }
 0x6d2   : > { %v8587_v18 = vunpack.i.l.bf16 %v8586_v24  ;;  %v8588_v9 = vunpack.i.h.bf16 %v8586_v24  ;;  %v2867_v24 = vsel %vm1122_vm10, %v8563_v23, %v8567_v52 }
 0x6d3   : > { %v2871_v31 = vsel %vm1122_vm10, %v8577_v21, %v8578_v22  ;;  %v2872_v40 = vsel %vm1122_vm10, %v8578_v22, %v8582_v50 }
 0x6d4   : > { %v2874_v30 = vsel %vm1122_vm10, %v8583_v57, %v8587_v18  ;;  %v8543_v57 = vunpack.i.h.bf16 %v12767_v12 }
 0x6d5   : > { %2980 = vmatpush.msra.mxu3 %v2874_v30  ;;  %v8528_v30 = vunpack.i.h.bf16 %v12722_v3  ;;  %v2859_v3 = vsel %vm1122_vm10, %v8538_v51, %v8542_v45 }
 0x6d6   : > { %8790 = vrot.lane.b32.xlu1 %v16217_v35, %s10401_s13  ;;  %v7206_v35 = vld [vmem:[%s16005_s2 + $0x50] sm:$0xff] }
 0x6d7   : > { %2981 = vmatpush.msra.mxu3 %v2870_v42  ;;  %v2864_v42 = vsel %vm1122_vm10, %v8553_v41, %v8557_v44  ;;  %7208 = vmatmul.msk.f32.vlgmr.msrb.gmra.mxu1 %vm441_vm7, %v7206_v35  ;;  %v2855_v27 = vsel %vm1122_vm10, %v8527_v1, %v8528_v30 }
 0x6d8   : > { %v8591_v46 = vpop.permute.xlu1 %8590  ;;  %8795 = vrot.lane.b32.xlu2 %v16218_v4, %s10401_s13  ;;  %8800 = vrot.lane.b32.xlu0 %v16219_v43, %s10401_s13  ;;  %v2861_v4 = vsel %vm1122_vm10, %v8543_v57, %v8547_v15  ;;  %v16225_v43 = vld [vmem:[#allocation4_spill] sm:$0xff] }
 0x6d9   : > { %v8593_v29 = vunpack.i.h.bf16 %v8591_v46  ;;  %v8592_v7 = vunpack.i.l.bf16 %v8591_v46  ;;  %v12838_v58 = vpop.permute.xlu2 %8640  ;;  %v12840_v53 = vpop.permute.xlu0 %8600  ;;  %2982 = vmatpush.msra.mxu3 %v2866_v32  ;;  %v2860_v46 = vsel %vm1122_vm10, %v8542_v45, %v8543_v57  ;;  %7209 = vmatmul.msk.f32.vlgmr.msrb.gmra.mxu2 %vm441_vm7, %v7206_v35  ;;  %v16227_v32 = vld [vmem:[#allocation17_spill] sm:$0xff]  ;;  %v16230_v15 = vld [vmem:[#allocation24_spill] sm:$0xff]  ;;  %v16244_v45 = vld [vmem:[#allocation31_spill] sm:$0xff] }
 0x6da   : > { %7210 = vmatmul.msk.f32.vlgmr.msrb.gmra.mxu3 %vm441_vm7, %v7206_v35  ;;  %7207 = vmatmul.msk.f32.vlgmr.msrb.gmra.mxu0 %vm441_vm7, %v7206_v35 }
 0x6db   : > { %2983 = vmatpush.msra.mxu3 %v2862_v16  ;;  %v2875_v25 = vsel %vm1122_vm10, %v8588_v9, %v8592_v7  ;;  %v2876_v39 = vsel %vm1122_vm10, %v8592_v7, %v8593_v29  ;;  %v2877_v62 = vsel %vm1122_vm10, %v8593_v29, %v8597_v34  ;;  %v8552_v34 = vunpack.i.l.bf16 %v12681_v10  ;;  %v16226_v7 = vld [vmem:[#allocation23_spill] sm:$0xff] }
 0x6dc   : > { %2919 = vmatpush.msra.mxu0 %v2875_v25  ;;  %2939 = vmatpush.msra.mxu1 %v2876_v39  ;;  %v16221_v10 = vpack.i.bf16 %v12452_v14, %v12448_v59  ;;  %v2868_v59 = vsel %vm1122_vm10, %v8567_v52, %v8568_v36  ;;  %v2869_v14 = vsel %vm1122_vm10, %v8568_v36, %v8572_v49  ;;  %v8517_v49 = vunpack.i.l.bf16 %v12714_v61  ;;  %v16232_v61 = vld [vmem:[#allocation28_spill] sm:$0xff]  ;;  %v16236_v36 = vld [vmem:[#allocation29_spill] sm:$0xff] }
 0x6dd   : > { %2959 = vmatpush.msra.mxu2 %v2877_v62  ;;  %2984 = vmatpush.msra.mxu3 %v2858_v37  ;;  %v2863_v12 = vsel %vm1122_vm10, %v8552_v34, %v8553_v41  ;;  %v7838_v29 = vunpack.i.h.bf16 %v16225_v43  ;;  %v16228_v22 = vpack.i.bf16 %v16226_v7, %v16227_v32  ;;  %v16231_v9 = vpack.i.bf16 %v16229_v11, %v16230_v15  ;;  %v16238_v52 = vld [vmem:[#allocation25_spill] sm:$0xff]  ;;  %v16241_v34 = vld [vmem:[#allocation30_spill] sm:$0xff] }
 0x6de   : > { %8805 = vrot.lane.b32.xlu1 %v16220_v55, %s10401_s13  ;;  %2920 = vmatpush.msra.mxu0 %v2871_v31  ;;  %v16234_v50 = vpack.i.bf16 %v16232_v61, %v16233_v48  ;;  %v2856_v16 = vsel %vm1122_vm10, %v8528_v30, %v8532_v54  ;;  %v2857_v25 = vsel %vm1122_vm10, %v8532_v54, %v8533_v13  ;;  %v16235_v13 = vld [vmem:[#allocation19_spill] sm:$0xff]  ;;  %v16239_v31 = vld [vmem:[#allocation18_spill] sm:$0xff]  ;;  %v8627_v54 = vunpack.i.l.bf16 %v12809_v33 }
 0x6df   : > { %2940 = vmatpush.msra.mxu1 %v2872_v40  ;;  %2960 = vmatpush.msra.mxu2 %v2873_v63  ;;  %v2851_v28 = vsel %vm1122_vm10, %v7838_v29, %v8517_v49  ;;  %v2852_v23 = vsel %vm1122_vm10, %v8517_v49, %v8518_v56  ;;  %v2853_v37 = vsel %vm1122_vm10, %v8518_v56, %v8522_v26  ;;  %v16242_v55 = vld [vmem:[#allocation26_spill] sm:$0xff]  ;;  %v8642_v49 = vunpack.i.l.bf16 %v12838_v58 }
 0x6e0   : > { %v12868_v38 = vpop.permute.xlu1 %8605  ;;  %8810 = vrot.lane.b32.xlu2 %v16221_v10, %s10401_s13  ;;  %8815 = vrot.lane.b32.xlu0 %v16224_v8, %s10401_s13  ;;  %v16237_v17 = vpack.i.bf16 %v16235_v13, %v16236_v36  ;;  %v16240_v41 = vpack.i.bf16 %v16238_v52, %v16239_v31  ;;  %v16243_v40 = vpack.i.bf16 %v16241_v34, %v16242_v55  ;;  %v7215_v34 = vld [vmem:[%s16005_s2 + $0x58] sm:$0xff] }
 0x6e1   : > { %2985 = vmatpush.msra.mxu3 %v2854_v19  ;;  %v12884_v47 = vpop.permute.xlu2 %8655  ;;  %v12886_v18 = vpop.permute.xlu0 %8615  ;;  %2921 = vmatpush.msra.mxu0 %v2867_v24  ;;  %v8849_v10 = vpack.i.bf16 %v12520_v6, %v16244_v45 }
 0x6e2   : > { %2941 = vmatpush.msra.mxu1 %v2868_v59  ;;  %2961 = vmatpush.msra.mxu2 %v2869_v14  ;;  %v8658_v43 = vunpack.i.h.bf16 %v12884_v47  ;;  %v8617_v32 = vunpack.i.l.bf16 %v12886_v18  ;;  %v8618_v45 = vunpack.i.h.bf16 %v12886_v18 }
 0x6e3   : > { %2922 = vmatpush.msra.mxu0 %v2863_v12  ;;  %7214 = vmatmul.msk.f32.vlgmr.msra.gmra.mxu3 %vm441_vm7, %v7200_v60 }
 0x6e4   : > { %2942 = vmatpush.msra.mxu1 %v2864_v42  ;;  %2962 = vmatpush.msra.mxu2 %v2865_v2  ;;  %v8628_v2 = vunpack.i.h.bf16 %v12809_v33 }
 0x6e5   : > { %2923 = vmatpush.msra.mxu0 %v2859_v3 }
 0x6e6   : > { %2943 = vmatpush.msra.mxu1 %v2860_v46  ;;  %2963 = vmatpush.msra.mxu2 %v2861_v4 }
 0x6e7   : > { %8820 = vrot.lane.b32.xlu1 %v16228_v22, %s10401_s13  ;;  %2924 = vmatpush.msra.mxu0 %v2855_v27  ;;  %v8613_v27 = vunpack.i.h.bf16 %v12795_v5 }
 0x6e8   : > { %v12919_v21 = vpop.permute.xlu1 %8620  ;;  %8825 = vrot.lane.b32.xlu2 %v16231_v9, %s10401_s13  ;;  %8830 = vrot.lane.b32.xlu0 %v16234_v50, %s10401_s13  ;;  %v8657_v9 = vunpack.i.l.bf16 %v12884_v47  ;;  %v8643_v47 = vunpack.i.h.bf16 %v12838_v58 }
 0x6e9   : > { %2944 = vmatpush.msra.mxu1 %v2856_v16  ;;  %2964 = vmatpush.msra.mxu2 %v2857_v25  ;;  %v12933_v39 = vpop.permute.xlu2 %8670  ;;  %v12935_v62 = vpop.permute.xlu0 %8630  ;;  %v8603_v16 = vunpack.i.h.bf16 %v12840_v53  ;;  %v8602_v25 = vunpack.i.l.bf16 %v12840_v53  ;;  %v3075_v13 = vsel %vm1343_vm11, %v8613_v27, %v8617_v32 }
 0x6ea   : > { %2925 = vmatpush.msra.mxu0 %v2851_v28  ;;  %v8673_v22 = vunpack.i.h.bf16 %v12933_v39  ;;  %v8672_v11 = vunpack.i.l.bf16 %v12933_v39  ;;  %v3079_v39 = vsel %vm1343_vm11, %v8627_v54, %v8628_v2  ;;  %v8633_v55 = vunpack.i.h.bf16 %v12935_v62 }
 0x6eb   : > { %2945 = vmatpush.msra.mxu1 %v2852_v23  ;;  %2965 = vmatpush.msra.mxu2 %v2853_v37 }
 0x6ec   : > { %7212 = vmatmul.msk.f32.vlgmr.msra.gmra.mxu1 %vm441_vm7, %v7200_v60  ;;  %7213 = vmatmul.msk.f32.vlgmr.msra.gmra.mxu2 %vm441_vm7, %v7200_v60  ;;  %v3094_v36 = vsel %vm1343_vm11, %v8672_v11, %v8673_v22 }
 0x6ed   : > { %7211 = vmatmul.msk.f32.vlgmr.msra.gmra.mxu0 %vm441_vm7, %v7200_v60 }
 0x6ef   : > { %8835 = vrot.lane.b32.xlu1 %v16237_v17, %s10401_s13  ;;  %v8632_v17 = vunpack.i.l.bf16 %v12935_v62  ;;  %v8622_v62 = vunpack.i.l.bf16 %v12919_v21 }
 0x6f0   : > { %v12953_v26 = vpop.permute.xlu1 %8635  ;;  %8840 = vrot.lane.b32.xlu2 %v16240_v41, %s10401_s13  ;;  %8845 = vrot.lane.b32.xlu0 %v16243_v40, %s10401_s13  ;;  %v3089_v41 = vsel %vm1343_vm11, %v8657_v9, %v8658_v43 }
 0x6f1   : > { %v3070_v63 = vpop.permute.xlu2 %3069  ;;  %v12963_v44 = vpop.permute.xlu0 %8645  ;;  %v8638_v6 = vunpack.i.h.bf16 %v12953_v26  ;;  %v8637_v40 = vunpack.i.l.bf16 %v12953_v26  ;;  %v3080_v18 = vsel %vm1343_vm11, %v8628_v2, %v8632_v17 }
 0x6f2   : > { %v8648_v60 = vunpack.i.h.bf16 %v12963_v44  ;;  %v8647_v53 = vunpack.i.l.bf16 %v12963_v44 }
 0x6f3   : > { %v3083_v15 = vsel %vm1343_vm11, %v8638_v6, %v8642_v49 }
 0x6f4   : > { %v3085_v26 = vsel %vm1343_vm11, %v8643_v47, %v8647_v53 }
 0x6f7   : > { %8850 = vrot.lane.b32.xlu1 %v8849_v10, %s10401_s13 }
 0x6f8   : > { %v8651_v20 = vpop.permute.xlu1 %8650 }
 0x6f9   : > { %v12970_v0 = vpop.permute.xlu0 %8660  ;;  %v12972_v8 = vpop.permute.xlu2 %8695  ;;  %v8653_v51 = vunpack.i.h.bf16 %v8651_v20  ;;  %v8652_v30 = vunpack.i.l.bf16 %v8651_v20  ;;  %v3084_v20 = vsel %vm1343_vm11, %v8642_v49, %v8643_v47 }
 0x6fa   : > { %v8663_v1 = vunpack.i.h.bf16 %v12970_v0  ;;  %v8662_v28 = vunpack.i.l.bf16 %v12970_v0  ;;  %v8623_v0 = vunpack.i.h.bf16 %v12919_v21  ;;  %v3081_v21 = vsel %vm1343_vm11, %v8632_v17, %v8633_v55 }
 0x6fb   : > { %v3087_v56 = vsel %vm1343_vm11, %v8652_v30, %v8653_v51  ;;  %v3088_v31 = vsel %vm1343_vm11, %v8653_v51, %v8657_v9  ;;  %v8612_v51 = vunpack.i.l.bf16 %v12795_v5  ;;  %v3077_v30 = vsel %vm1343_vm11, %v8618_v45, %v8622_v62 }
 0x6fc   : > { %v3090_v44 = vsel %vm1343_vm11, %v8658_v43, %v8662_v28  ;;  %v3078_v33 = vsel %vm1343_vm11, %v8622_v62, %v8623_v0 }
 0x700   : > { %v8666_v19 = vpop.permute.xlu1 %8665 }
 0x701   : > { %v8676_v24 = vpop.permute.xlu0 %8675  ;;  %v8667_v57 = vunpack.i.l.bf16 %v8666_v19  ;;  %v12976_v35 = vpop.permute.xlu2 %8710  ;;  %v8668_v29 = vunpack.i.h.bf16 %v8666_v19  ;;  %v3086_v19 = vsel %vm1343_vm11, %v8647_v53, %v8648_v60  ;;  %v8698_v60 = vunpack.i.h.bf16 %v12972_v8 }
 0x702   : > { %v8678_v59 = vunpack.i.h.bf16 %v8676_v24  ;;  %v8677_v14 = vunpack.i.l.bf16 %v8676_v24  ;;  %v8607_v24 = vunpack.i.l.bf16 %v12868_v38 }
 0x703   : > { %v3091_v42 = vsel %vm1343_vm11, %v8663_v1, %v8667_v57  ;;  %v3092_v23 = vsel %vm1343_vm11, %v8667_v57, %v8668_v29  ;;  %v3093_v37 = vsel %vm1343_vm11, %v8668_v29, %v8672_v11  ;;  %v8608_v57 = vunpack.i.h.bf16 %v12868_v38 }
 0x704   : > { %v3095_v12 = vsel %vm1343_vm11, %v8677_v14, %v8678_v59  ;;  %v3076_v14 = vsel %vm1343_vm11, %v8617_v32, %v8618_v45  ;;  %v3072_v38 = vsel %vm1343_vm11, %v8603_v16, %v8607_v24 }
 0x705   : > { %3139 = vmatpush.msrb.mxu0 %v3095_v12  ;;  %v3073_v12 = vsel %vm1343_vm11, %v8607_v24, %v8608_v57  ;;  %v3074_v6 = vsel %vm1343_vm11, %v8608_v57, %v8612_v51 }
 0x707   : > { %3140 = vmatpush.msrb.mxu0 %v3091_v42 }
 0x708   : > { %v8681_v3 = vpop.permute.xlu1 %8680 }
 0x709   : > { %v8683_v46 = vunpack.i.h.bf16 %v8681_v3  ;;  %v8682_v4 = vunpack.i.l.bf16 %v8681_v3  ;;  %v12986_v7 = vpop.permute.xlu0 %8685  ;;  %3141 = vmatpush.msrb.mxu0 %v3087_v56  ;;  %v13010_v52 = vpop.permute.xlu2 %8725 }
 0x70a   : > { %v8688_v45 = vunpack.i.h.bf16 %v12986_v7 }
 0x70b   : > { %3142 = vmatpush.msrb.mxu0 %v3083_v15  ;;  %v3096_v61 = vsel %vm1343_vm11, %v8678_v59, %v8682_v4  ;;  %v3097_v48 = vsel %vm1343_vm11, %v8682_v4, %v8683_v46  ;;  %v3098_v50 = vsel %vm1343_vm11, %v8683_v46, %v3070_v63  ;;  %v3071_v63 = vsel %vm1343_vm11, %v8602_v25, %v8603_v16 }
 0x70c   : > { %3159 = vmatpush.msrb.mxu1 %v3096_v61  ;;  %3179 = vmatpush.msrb.mxu2 %v3097_v48  ;;  %v3082_v59 = vsel %vm1343_vm11, %v8633_v55, %v8637_v40  ;;  %v8713_v16 = vunpack.i.h.bf16 %v12976_v35  ;;  %v8712_v25 = vunpack.i.l.bf16 %v12976_v35 }
 0x70d   : > { %3143 = vmatpush.msrb.mxu0 %v3079_v39  ;;  %3199 = vmatpush.msrb.mxu3 %v3098_v50  ;;  %v8727_v39 = vunpack.i.l.bf16 %v13010_v52 }
 0x70e   : > { %3160 = vmatpush.msrb.mxu1 %v3092_v23  ;;  %3180 = vmatpush.msrb.mxu2 %v3093_v37  ;;  %v3294_v62 = vsel %vm1559_vm12, %v8712_v25, %v8713_v16 }
 0x70f   : > { %3144 = vmatpush.msrb.mxu0 %v3075_v13  ;;  %3200 = vmatpush.msrb.mxu3 %v3094_v36 }
 0x710   : > { %v13012_v58 = vpop.permute.xlu1 %8690  ;;  %3161 = vmatpush.msrb.mxu1 %v3088_v31  ;;  %3181 = vmatpush.msrb.mxu2 %v3089_v41 }
 0x711   : > { %v13024_v10 = vpop.permute.xlu0 %8700  ;;  %3145 = vmatpush.msrb.mxu0 %v3071_v63  ;;  %3201 = vmatpush.msrb.mxu3 %v3090_v44 }
 0x712   : > { %7216 = vmatmul.msk.f32.vlgmr.msrb.gmra.mxu0 %vm441_vm7, %v7215_v34  ;;  %3162 = vmatpush.msrb.mxu1 %v3084_v20  ;;  %v13048_v42 = vpop.permute.xlu2 %8740  ;;  %v8702_v53 = vunpack.i.l.bf16 %v13024_v10  ;;  %v8687_v20 = vunpack.i.l.bf16 %v12986_v7 }
 0x713   : > { %3182 = vmatpush.msrb.mxu2 %v3085_v26  ;;  %3202 = vmatpush.msrb.mxu3 %v3086_v19  ;;  %v8743_v17 = vunpack.i.h.bf16 %v13048_v42  ;;  %v8742_v55 = vunpack.i.l.bf16 %v13048_v42  ;;  %v8728_v26 = vunpack.i.h.bf16 %v13010_v52  ;;  %v8703_v42 = vunpack.i.h.bf16 %v13024_v10 }
 0x714   : > { %3163 = vmatpush.msrb.mxu1 %v3080_v18  ;;  %v3290_v57 = vsel %vm1559_vm12, %v8698_v60, %v8702_v53 }
 0x715   : > { %3183 = vmatpush.msrb.mxu2 %v3081_v21  ;;  %3203 = vmatpush.msrb.mxu3 %v3082_v59 }
 0x716   : > { %3164 = vmatpush.msrb.mxu1 %v3076_v14 }
 0x717   : > { %3184 = vmatpush.msrb.mxu2 %v3077_v30  ;;  %3204 = vmatpush.msrb.mxu3 %v3078_v33  ;;  %v3304_v30 = vsel %vm1559_vm12, %v8742_v55, %v8743_v17 }
 0x718   : > { %v13043_v1 = vpop.permute.xlu1 %8705  ;;  %3165 = vmatpush.msrb.mxu1 %v3072_v38 }
 0x719   : > { %v13050_v2 = vpop.permute.xlu0 %8715  ;;  %3185 = vmatpush.msrb.mxu2 %v3073_v12  ;;  %3205 = vmatpush.msrb.mxu3 %v3074_v6  ;;  %v3286_v12 = vsel %vm1559_vm12, %v8687_v20, %v8688_v45 }
 0x71a   : > { %7217 = vmatmul.msk.f32.vlgmr.msrb.gmra.mxu1 %vm441_vm7, %v7215_v34  ;;  %7218 = vmatmul.msk.f32.vlgmr.msrb.gmra.mxu2 %vm441_vm7, %v7215_v34  ;;  %v8756_v3 = vpop.permute.xlu2 %8755  ;;  %v8718_v52 = vunpack.i.h.bf16 %v13050_v2  ;;  %v8717_v59 = vunpack.i.l.bf16 %v13050_v2  ;;  %v8707_v2 = vunpack.i.l.bf16 %v13043_v1 }
 0x71b   : > { %7219 = vmatmul.msk.f32.vlgmr.msrb.gmra.mxu3 %vm441_vm7, %v7215_v34  ;;  %v8758_v31 = vunpack.i.h.bf16 %v8756_v3  ;;  %v8757_v41 = vunpack.i.l.bf16 %v8756_v3  ;;  %v3299_v3 = vsel %vm1559_vm12, %v8727_v39, %v8728_v26 }
 0x71d   : > { %v3309_v21 = vsel %vm1559_vm12, %v8757_v41, %v8758_v31 }
 0x720   : > { %v13055_v5 = vpop.permute.xlu1 %8720 }
 0x721   : > { %v13057_v54 = vpop.permute.xlu0 %8730  ;;  %v8723_v61 = vunpack.i.h.bf16 %v13055_v5  ;;  %v8722_v33 = vunpack.i.l.bf16 %v13055_v5 }
 0x722   : > { %v3285_v4 = vpop.permute.xlu2 %3284  ;;  %v8732_v19 = vunpack.i.l.bf16 %v13057_v54  ;;  %v8733_v7 = vunpack.i.h.bf16 %v13057_v54 }
 0x723   : > { %v3298_v34 = vsel %vm1559_vm12, %v8723_v61, %v8727_v39 }
 0x724   : > { %v3300_v5 = vsel %vm1559_vm12, %v8728_v26, %v8732_v19 }
 0x728   : > { %v8736_v49 = vpop.permute.xlu1 %8735 }
 0x729   : > { %v8738_v22 = vunpack.i.h.bf16 %v8736_v49  ;;  %v8737_v11 = vunpack.i.l.bf16 %v8736_v49  ;;  %v8708_v49 = vunpack.i.h.bf16 %v13043_v1  ;;  %v3297_v1 = vsel %vm1559_vm12, %v8718_v52, %v8722_v33 }
 0x72a   : > { %v13059_v46 = vpop.permute.xlu0 %8745  ;;  %v13064_v48 = vpop.permute.xlu2 %8780 }
 0x72b   : > { %v8748_v15 = vunpack.i.h.bf16 %v13059_v46  ;;  %v3302_v37 = vsel %vm1559_vm12, %v8737_v11, %v8738_v22  ;;  %v8747_v0 = vunpack.i.l.bf16 %v13059_v46  ;;  %v3303_v51 = vsel %vm1559_vm12, %v8738_v22, %v8742_v55 }
 0x72c   : > { %v3301_v46 = vsel %vm1559_vm12, %v8732_v19, %v8733_v7  ;;  %v8697_v22 = vunpack.i.l.bf16 %v12972_v8  ;;  %v3293_v35 = vsel %vm1559_vm12, %v8707_v2, %v8708_v49  ;;  %v8783_v26 = vunpack.i.h.bf16 %v13064_v48 }
 0x72d   : > { %v3305_v6 = vsel %vm1559_vm12, %v8743_v17, %v8747_v0 }
 0x730   : > { %v8751_v56 = vpop.permute.xlu1 %8750 }
 0x731   : > { %v8752_v43 = vunpack.i.l.bf16 %v8751_v56  ;;  %v8753_v13 = vunpack.i.h.bf16 %v8751_v56  ;;  %v8693_v56 = vunpack.i.h.bf16 %v13012_v58 }
 0x732   : > { %v8761_v27 = vpop.permute.xlu0 %8760  ;;  %v13103_v38 = vpop.permute.xlu2 %8795 }
 0x733   : > { %v8763_v29 = vunpack.i.h.bf16 %v8761_v27  ;;  %v8762_v32 = vunpack.i.l.bf16 %v8761_v27  ;;  %v3306_v50 = vsel %vm1559_vm12, %v8748_v15, %v8752_v43  ;;  %v3307_v24 = vsel %vm1559_vm12, %v8752_v43, %v8753_v13 }
 0x734   : > { %v3308_v18 = vsel %vm1559_vm12, %v8753_v13, %v8757_v41  ;;  %v8692_v27 = vunpack.i.l.bf16 %v13012_v58  ;;  %v3295_v43 = vsel %vm1559_vm12, %v8713_v16, %v8717_v59  ;;  %v3292_v58 = vsel %vm1559_vm12, %v8703_v42, %v8707_v2 }
 0x735   : > { %v3310_v9 = vsel %vm1559_vm12, %v8762_v32, %v8763_v29  ;;  %v3291_v32 = vsel %vm1559_vm12, %v8702_v53, %v8703_v42  ;;  %v3289_v10 = vsel %vm1559_vm12, %v8693_v56, %v8697_v22  ;;  %v8798_v19 = vunpack.i.h.bf16 %v13103_v38 }
 0x736   : > { %3354 = vmatpush.msra.mxu0 %v3310_v9  ;;  %v3287_v15 = vsel %vm1559_vm12, %v8688_v45, %v8692_v27  ;;  %v3288_v9 = vsel %vm1559_vm12, %v8692_v27, %v8693_v56 }
 0x738   : > { %3355 = vmatpush.msra.mxu0 %v3306_v50  ;;  %v8766_v28 = vpop.permute.xlu1 %8765 }
 0x739   : > { %v8768_v47 = vunpack.i.h.bf16 %v8766_v28  ;;  %v8767_v23 = vunpack.i.l.bf16 %v8766_v28 }
 0x73a   : > { %v13073_v36 = vpop.permute.xlu0 %8770  ;;  %3356 = vmatpush.msra.mxu0 %v3302_v37  ;;  %v13140_v8 = vpop.permute.xlu2 %8810 }
 0x73b   : > { %v3311_v40 = vsel %vm1559_vm12, %v8763_v29, %v8767_v23  ;;  %v3312_v63 = vsel %vm1559_vm12, %v8767_v23, %v8768_v47  ;;  %v3313_v44 = vsel %vm1559_vm12, %v8768_v47, %v3285_v4  ;;  %v7220_v4 = vld [vmem:[%s16005_s2 + $0x60] sm:$0xff]  ;;  %v3296_v29 = vsel %vm1559_vm12, %v8717_v59, %v8718_v52 }
 0x73c   : > { %3357 = vmatpush.msra.mxu0 %v3298_v34  ;;  %3374 = vmatpush.msra.mxu1 %v3311_v40  ;;  %v8782_v59 = vunpack.i.l.bf16 %v13064_v48 }
 0x73d   : > { %3394 = vmatpush.msra.mxu2 %v3312_v63  ;;  %3414 = vmatpush.msra.mxu3 %v3313_v44 }
 0x73e   : > { %3358 = vmatpush.msra.mxu0 %v3294_v62  ;;  %3375 = vmatpush.msra.mxu1 %v3307_v24  ;;  %v8797_v24 = vunpack.i.l.bf16 %v13103_v38  ;;  %v3505_v22 = vsel %vm1775_vm13, %v8782_v59, %v8783_v26  ;;  %v2213_v38 = vpop.f32.mrf.mxu1  ;;  %v16246_v59 = vld [vmem:[#allocation11_spill] sm:$0xff] }
 0x73f   : > { %3395 = vmatpush.msra.mxu2 %v3308_v18  ;;  %3415 = vmatpush.msra.mxu3 %v3309_v21  ;;  %v8812_v18 = vunpack.i.l.bf16 %v13140_v8 }
 0x740   : > { %3359 = vmatpush.msra.mxu0 %v3290_v57  ;;  %v13098_v14 = vpop.permute.xlu1 %8775  ;;  %3376 = vmatpush.msra.mxu1 %v3303_v51  ;;  %v3510_v27 = vsel %vm1775_vm13, %v8797_v24, %v8798_v19 }
 0x741   : > { %3396 = vmatpush.msra.mxu2 %v3304_v30  ;;  %3416 = vmatpush.msra.mxu3 %v3305_v6 }
 0x742   : > { %v13109_v54 = vpop.permute.xlu0 %8785  ;;  %3360 = vmatpush.msra.mxu0 %v3286_v12  ;;  %3377 = vmatpush.msra.mxu1 %v3299_v3  ;;  %v13146_v25 = vpop.permute.xlu2 %8825 }
 0x743   : > { %3397 = vmatpush.msra.mxu2 %v3300_v5  ;;  %3417 = vmatpush.msra.mxu3 %v3301_v46  ;;  %v8828_v12 = vunpack.i.h.bf16 %v13146_v25  ;;  %v8787_v6 = vunpack.i.l.bf16 %v13109_v54  ;;  %v8827_v3 = vunpack.i.l.bf16 %v13146_v25  ;;  %v8773_v46 = vunpack.i.h.bf16 %v13073_v36 }
 0x744   : > { %7221 = vmatmul.msk.f32.vlgmr.msra.gmra.mxu0 %vm441_vm7, %v7220_v4  ;;  %3378 = vmatpush.msra.mxu1 %v3295_v43  ;;  %v16245_v43 = vld [vmem:[#allocation10_spill] sm:$0xff] }
 0x745   : > { %3398 = vmatpush.msra.mxu2 %v3296_v29  ;;  %3418 = vmatpush.msra.mxu3 %v3297_v1  ;;  %v8108_v29 = vunpack.i.h.bf16 %v16245_v43 }
 0x746   : > { %3379 = vmatpush.msra.mxu1 %v3291_v32 }
 0x747   : > { %3399 = vmatpush.msra.mxu2 %v3292_v58  ;;  %3419 = vmatpush.msra.mxu3 %v3293_v35  ;;  %v8813_v58 = vunpack.i.h.bf16 %v13140_v8  ;;  %v3506_v35 = vsel %vm1775_vm13, %v8783_v26, %v8787_v6 }
 0x748   : > { %v13132_v11 = vpop.permute.xlu1 %8790  ;;  %3380 = vmatpush.msra.mxu1 %v3287_v15 }
 0x749   : > { %3400 = vmatpush.msra.mxu2 %v3288_v9  ;;  %3420 = vmatpush.msra.mxu3 %v3289_v10  ;;  %v8793_v7 = vunpack.i.h.bf16 %v13132_v11  ;;  %v3520_v9 = vsel %vm1775_vm13, %v8827_v3, %v8828_v12  ;;  %v7225_v10 = vld [vmem:[%s16005_s2 + $0x68] sm:$0xff] }
 0x74a   : > { %v13137_v61 = vpop.permute.xlu0 %8800  ;;  %7223 = vmatmul.msk.f32.vlgmr.msra.gmra.mxu2 %vm441_vm7, %v7220_v4  ;;  %7222 = vmatmul.msk.f32.vlgmr.msra.gmra.mxu1 %vm441_vm7, %v7220_v4  ;;  %v8841_v47 = vpop.permute.xlu2 %8840 }
 0x74b   : > { %7224 = vmatmul.msk.f32.vlgmr.msra.gmra.mxu3 %vm441_vm7, %v7220_v4  ;;  %v8843_v37 = vunpack.i.h.bf16 %v8841_v47  ;;  %v8842_v5 = vunpack.i.l.bf16 %v8841_v47  ;;  %v8772_v4 = vunpack.i.l.bf16 %v13073_v36  ;;  %v3509_v56 = vsel %vm1775_vm13, %v8793_v7, %v8797_v24  ;;  %v7230_v7 = vld [vmem:[%s16006_s3 + $0x10] sm:$0xff] }
 0x74c   : > { %v8803_v8 = vunpack.i.h.bf16 %v13137_v61  ;;  %v3515_v47 = vsel %vm1775_vm13, %v8812_v18, %v8813_v58  ;;  %3664 = vperm.xlu2 %8854, %v7230_v7  }
 0x74d   : > { %v3502_v25 = vsel %vm1775_vm13, %v8772_v4, %v8773_v46 }
 0x750   : > { %v8806_v50 = vpop.permute.xlu1 %8805 }
 0x751   : > { %v8808_v44 = vunpack.i.h.bf16 %v8806_v50  ;;  %v8807_v45 = vunpack.i.l.bf16 %v8806_v50  ;;  %v8802_v50 = vunpack.i.l.bf16 %v13137_v61 }
 0x752   : > { %v13144_v16 = vpop.permute.xlu0 %8815 }
 0x753   : > { %v8818_v20 = vunpack.i.h.bf16 %v13144_v16  ;;  %v3513_v42 = vsel %vm1775_vm13, %v8807_v45, %v8808_v44  ;;  %v3514_v2 = vsel %vm1775_vm13, %v8808_v44, %v8812_v18  ;;  %v8817_v36 = vunpack.i.l.bf16 %v13144_v16 }
 0x754   : > { %v3501_v16 = vsel %vm1775_vm13, %v8108_v29, %v8772_v4 }
 0x755   : > { %v3516_v61 = vsel %vm1775_vm13, %v8813_v58, %v8817_v36 }
 0x759   : > { %v13148_v28 = vpop.permute.xlu1 %8820 }
 0x75a   : > { %v8831_v39 = vpop.permute.xlu0 %8830  ;;  %v8823_v34 = vunpack.i.h.bf16 %v13148_v28  ;;  %v8822_v55 = vunpack.i.l.bf16 %v13148_v28  ;;  %v8788_v28 = vunpack.i.h.bf16 %v13109_v54  ;;  %v3511_v54 = vsel %vm1775_vm13, %v8798_v19, %v8802_v50 }
 0x75b   : > { %v8833_v60 = vunpack.i.h.bf16 %v8831_v39  ;;  %v8832_v13 = vunpack.i.l.bf16 %v8831_v39  ;;  %v8792_v39 = vunpack.i.l.bf16 %v13132_v11  ;;  %v3512_v11 = vsel %vm1775_vm13, %v8802_v50, %v8803_v8 }
 0x75c   : > { %v3517_v21 = vsel %vm1775_vm13, %v8818_v20, %v8822_v55  ;;  %v3518_v52 = vsel %vm1775_vm13, %v8822_v55, %v8823_v34  ;;  %v3519_v15 = vsel %vm1775_vm13, %v8823_v34, %v8827_v3  ;;  %v2253_v34 = vpop.f32.mrf.mxu3  ;;  %v2233_v55 = vpop.f32.mrf.mxu2 }
 0x75d   : > { %v3521_v0 = vsel %vm1775_vm13, %v8832_v13, %v8833_v60  ;;  %v2258_v8 = vadd.f32 %v2233_v55, %v16246_v59  ;;  %v2259_v50 = vadd.f32 %v2253_v34, %v16246_v59  ;;  %v16251_v55 = vld [vmem:[#allocation3_spill] sm:$0xff] }
 0x761   : > { %v8836_v23 = vpop.permute.xlu1 %8835 }
 0x762   : > { %v8846_v53 = vpop.permute.xlu0 %8845  ;;  %v8837_v17 = vunpack.i.l.bf16 %v8836_v23  ;;  %v8838_v51 = vunpack.i.h.bf16 %v8836_v23  ;;  %v8778_v23 = vunpack.i.h.bf16 %v13098_v14 }
 0x763   : > { %v8848_v31 = vunpack.i.h.bf16 %v8846_v53  ;;  %v8847_v41 = vunpack.i.l.bf16 %v8846_v53  ;;  %v3508_v53 = vsel %vm1775_vm13, %v8788_v28, %v8792_v39 }
 0x764   : > { %v3522_v62 = vsel %vm1775_vm13, %v8833_v60, %v8837_v17  ;;  %v3523_v1 = vsel %vm1775_vm13, %v8837_v17, %v8838_v51  ;;  %v3524_v32 = vsel %vm1775_vm13, %v8838_v51, %v8842_v5  ;;  %v3507_v60 = vsel %vm1775_vm13, %v8787_v6, %v8788_v28  ;;  %v2470_v44 = vpop.f32.mrf.mxu3  ;;  %v2450_v45 = vpop.f32.mrf.mxu2 }
 0x765   : > { %v3525_v40 = vsel %vm1775_vm13, %v8843_v37, %v8847_v41  ;;  %v3526_v63 = vsel %vm1775_vm13, %v8847_v41, %v8848_v31  ;;  %v8777_v37 = vunpack.i.l.bf16 %v13098_v14  ;;  %v2193_v14 = vpop.f32.mrf.mxu0  ;;  %v2430_v41 = vpop.f32.mrf.mxu1  ;;  %v2476_v39 = vadd.f32 %v2470_v44, %v2259_v50 }
 0x766   : > { %3569 = vmatpush.msrb.mxu0 %v3525_v40  ;;  %3589 = vmatpush.msrb.mxu1 %v3526_v63  ;;  %v2256_v51 = vadd.f32 %v2193_v14, %v16246_v59 }
 0x767   : > { %v3503_v13 = vsel %vm1775_vm13, %v8773_v46, %v8777_v37  ;;  %v3504_v17 = vsel %vm1775_vm13, %v8777_v37, %v8778_v23 }
 0x768   : > { %3570 = vmatpush.msrb.mxu0 %v3521_v0  ;;  %3590 = vmatpush.msrb.mxu1 %v3522_v62 }
 0x769   : > { %v8851_v57 = vpop.permute.xlu1 %8850 }
 0x76a   : > { %v8853_v30 = vunpack.i.h.bf16 %v8851_v57  ;;  %v8852_v33 = vunpack.i.l.bf16 %v8851_v57  ;;  %3571 = vmatpush.msrb.mxu0 %v3517_v21  ;;  %3591 = vmatpush.msrb.mxu1 %v3518_v52 }
 0x76c   : > { %3572 = vmatpush.msrb.mxu0 %v3513_v42  ;;  %3592 = vmatpush.msrb.mxu1 %v3514_v2  ;;  %v3527_v48 = vsel %vm1775_vm13, %v8848_v31, %v8852_v33  ;;  %v3528_v49 = vsel %vm1775_vm13, %v8852_v33, %v8853_v30  ;;  %v2778_v62 = vpop.f32.mrf.mxu3  ;;  %v2758_v26 = vpop.f32.mrf.mxu2  ;;  %v2257_v30 = vadd.f32 %v2213_v38, %v16246_v59 }
 0x76d   : > { %3609 = vmatpush.msrb.mxu2 %v3527_v48  ;;  %3629 = vmatpush.msrb.mxu3 %v3528_v49  ;;  %v2410_v31 = vpop.f32.mrf.mxu0  ;;  %v2738_v63 = vpop.f32.mrf.mxu1 }
 0x76e   : > { %3573 = vmatpush.msrb.mxu0 %v3509_v56  ;;  %3593 = vmatpush.msrb.mxu1 %v3510_v27  ;;  %v2473_v12 = vadd.f32 %v2410_v31, %v2256_v51  ;;  %v2474_v6 = vadd.f32 %v2430_v41, %v2257_v30 }
 0x76f   : > { %3610 = vmatpush.msrb.mxu2 %v3523_v1  ;;  %3630 = vmatpush.msrb.mxu3 %v3524_v32 }
 0x770   : > { %3574 = vmatpush.msrb.mxu0 %v3505_v22  ;;  %3594 = vmatpush.msrb.mxu1 %v3506_v35  ;;  %v16247_v35 = vld [vmem:[#allocation5_spill] sm:$0xff] }
 0x771   : > { %3611 = vmatpush.msrb.mxu2 %v3519_v15  ;;  %3631 = vmatpush.msrb.mxu3 %v3520_v9  ;;  %v16248_v9 = vld [vmem:[#allocation8_spill] sm:$0xff] }
 0x772   : > { %3575 = vmatpush.msrb.mxu0 %v3501_v16  ;;  %3595 = vmatpush.msrb.mxu1 %v3502_v25  ;;  %v16249_v25 = vmov 0.0  }
 0x773   : > { %7226 = vmatmul.msk.f32.vlgmr.msrb.gmra.mxu0 %vm441_vm7, %v7225_v10  ;;  %7227 = vmatmul.msk.f32.vlgmr.msrb.gmra.mxu1 %vm441_vm7, %v7225_v10 }
 0x774   : > { %3612 = vmatpush.msrb.mxu2 %v3515_v47  ;;  %3632 = vmatpush.msrb.mxu3 %v3516_v61  ;;  %v2987_v18 = vpop.f32.mrf.mxu3  ;;  %v2967_v57 = vpop.f32.mrf.mxu2  ;;  %v2475_v47 = vadd.f32 %v2450_v45, %v2258_v8 }
 0x775   : > { %v2718_v40 = vpop.f32.mrf.mxu0  ;;  %v2947_v0 = vpop.f32.mrf.mxu1  ;;  %v2988_v16 = vadd.f32 %v2987_v18, %v2778_v62  ;;  %v2968_v61 = vadd.f32 %v2967_v57, %v2758_v26 }
 0x776   : > { %3613 = vmatpush.msrb.mxu2 %v3511_v54  ;;  %3633 = vmatpush.msrb.mxu3 %v3512_v11  ;;  %v2948_v2 = vadd.f32 %v2947_v0, %v2738_v63  ;;  %v16252_v63 = vld [vmem:[#allocation12_spill] sm:$0xff] }
 0x778   : > { %3614 = vmatpush.msrb.mxu2 %v3507_v60  ;;  %3634 = vmatpush.msrb.mxu3 %v3508_v53 }
 0x77a   : > { %3615 = vmatpush.msrb.mxu2 %v3503_v13  ;;  %3635 = vmatpush.msrb.mxu3 %v3504_v17 }
 0x77b   : > { %7228 = vmatmul.msk.f32.vlgmr.msrb.gmra.mxu2 %vm441_vm7, %v7225_v10  ;;  %7229 = vmatmul.msk.f32.vlgmr.msrb.gmra.mxu3 %vm441_vm7, %v7225_v10 }
 0x77d   : > { %v2927_v20 = vpop.f32.mrf.mxu0 }
 0x77e   : > { %v2928_v42 = vadd.f32 %v2927_v20, %v2718_v40 }
 0x78f   : > { %v3147_v19 = vpop.f32.mrf.mxu0 }
 0x790   : > { %v3210_v5 = vadd.f32 %v3147_v19, %v2473_v12 }
 0x797   : > { %v3167_v24 = vpop.f32.mrf.mxu1 }
 0x798   : > { %v3211_v48 = vadd.f32 %v3167_v24, %v2474_v6 }
 0x79d   : > { %v3187_v3 = vpop.f32.mrf.mxu2 }
 0x79e   : > { %v3207_v33 = vpop.f32.mrf.mxu3  ;;  %v3212_v37 = vadd.f32 %v3187_v3, %v2475_v47 }
 0x79f   : > { %v3213_v54 = vadd.f32 %v3207_v33, %v2476_v39 }
 0x7a6   : > { %v13291_v26 = vpop.permute.xlu2 %3664 }
 0x7a7   : > { %16253 = vst [vmem:[#allocation14_spill] sm:$0xff] %v13291_v26 }
 0x7c1   : > { %v3362_v21 = vpop.f32.mrf.mxu0 }
 0x7c2   : > { %v3425_v4 = vadd.f32 %v3362_v21, %v2928_v42 }
 0x7c7   : > { %v3382_v52 = vpop.f32.mrf.mxu1 }
 0x7c8   : > { %v3426_v56 = vadd.f32 %v3382_v52, %v2948_v2 }
 0x7cd   : > { %v3402_v22 = vpop.f32.mrf.mxu2 }
 0x7ce   : > { %v3422_v32 = vpop.f32.mrf.mxu3  ;;  %v3427_v13 = vadd.f32 %v3402_v22, %v2968_v61 }
 0x7cf   : > { %v3428_v11 = vadd.f32 %v3422_v32, %v2988_v16 }
 0x7f0   : > { %v3577_v49 = vpop.f32.mrf.mxu0  ;;  %v3597_v46 = vpop.f32.mrf.mxu1 }
 0x7f1   : > { %v3640_v27 = vadd.f32 %v3577_v49, %v3210_v5  ;;  %v3641_v43 = vadd.f32 %v3597_v46, %v3211_v48 }
 0x7f3   : > { %v3644_v29 = vadd.f32 %v3640_v27, %v3425_v4  ;;  %v3645_v1 = vadd.f32 %v3641_v43, %v3426_v56 }
 0x7f5   : > { %v3648_v58 = vmax.f32 %v3644_v29, 0.0  ;;  %v3649_v36 = vmax.f32 %v3645_v1, 0.0 }
 0x7f7   : > { %v3652_v15 = vmul.f32 %v3648_v58, %v16247_v35  ;;  %v3653_v10 = vmul.f32 %v3649_v36, %v16248_v9 }
 0x7f9   : > { %v13222_v28 = vpack.i.bf16 %v3652_v15, %v16249_v25  ;;  %v13226_v23 = vpack.i.bf16 %v3653_v10, %v3652_v15 }
 0x7fb   : > { %8856 = vrot.lane.b32.xlu0 %v13222_v28, %s10389_s23  ;;  %16250 = vst [vmem:[#allocation13_spill] sm:$0xff] %v13226_v23 }
 0x7fe   : > { %v3617_v60 = vpop.f32.mrf.mxu2  ;;  %v3637_v53 = vpop.f32.mrf.mxu3 }
 0x7ff   : > { %v3642_v17 = vadd.f32 %v3617_v60, %v3212_v37  ;;  %v3643_v14 = vadd.f32 %v3637_v53, %v3213_v54 }
 0x801   : > { %v3646_v38 = vadd.f32 %v3642_v17, %v3427_v13  ;;  %v3647_v31 = vadd.f32 %v3643_v14, %v3428_v11 }
 0x803   : > { %v3650_v41 = vmax.f32 %v3646_v38, 0.0  ;;  %v3651_v34 = vmax.f32 %v3647_v31, 0.0  ;;  %8861 = vrot.lane.b32.xlu0 %v13222_v28, %s10390_s24 }
 0x805   : > { %v3654_v40 = vmul.f32 %v3650_v41, %v16251_v55  ;;  %v13232_v44 = vmul.f32 %v3651_v34, %v16252_v63 }
 0x807   : > { %v13235_v45 = vpack.i.bf16 0.0, %v13232_v44  ;;  %v13237_v20 = vpack.i.bf16 %v3654_v40, %v3653_v10  ;;  %v8915_v0 = vpack.i.bf16 %v3652_v15, %v13232_v44  ;;  %v13283_v62 = vpack.i.bf16 %v13232_v44, %v3654_v40 }
 0x809   : > { %8896 = vrot.lane.b32.xlu2 %v13235_v45, %s10389_s23  ;;  %8891 = vrot.lane.b32.xlu1 %v13237_v20, %s10389_s23 }
 0x80b   : > { %8866 = vrot.lane.b32.xlu0 %v13222_v28, %s10391_s25 }
 0x811   : > { %8906 = vrot.lane.b32.xlu2 %v13235_v45, %s10390_s24  ;;  %8901 = vrot.lane.b32.xlu1 %v13237_v20, %s10390_s24 }
 0x813   : > { %8871 = vrot.lane.b32.xlu0 %v13222_v28, %s10392_s26 }
 0x819   : > { %8916 = vrot.lane.b32.xlu2 %v8915_v0, %s10391_s25  ;;  %8911 = vrot.lane.b32.xlu1 %v13237_v20, %s10391_s25 }
 0x81b   : > { %8876 = vrot.lane.b32.xlu0 %v13222_v28, %s10393_s27 }
 0x821   : > { %8926 = vrot.lane.b32.xlu2 %v8915_v0, %s10392_s26  ;;  %8921 = vrot.lane.b32.xlu1 %v13237_v20, %s10392_s26 }
 0x823   : > { %8881 = vrot.lane.b32.xlu0 %v13222_v28, %s10394_s28 }
 0x829   : > { %8936 = vrot.lane.b32.xlu2 %v8915_v0, %s10393_s27  ;;  %8931 = vrot.lane.b32.xlu1 %v13237_v20, %s10393_s27 }
 0x82b   : > { %8886 = vrot.lane.b32.xlu0 %v13222_v28, %s10395_s29 }
 0x831   : > { %8946 = vrot.lane.b32.xlu2 %v8915_v0, %s10394_s28  ;;  %8941 = vrot.lane.b32.xlu1 %v13237_v20, %s10394_s28 }
 0x833   : > { %8956 = vrot.lane.b32.xlu0 %v13222_v28, %s10396_s30 }
 0x839   : > { %8976 = vrot.lane.b32.xlu2 %v13226_v23, %s10390_s24  ;;  %8951 = vrot.lane.b32.xlu1 %v13237_v20, %s10395_s29 }
 0x83b   : > { %8966 = vrot.lane.b32.xlu0 %v13226_v23, %s10389_s23 }
 0x841   : > { %8991 = vrot.lane.b32.xlu2 %v13235_v45, %s10391_s25  ;;  %8961 = vrot.lane.b32.xlu1 %v13237_v20, %s10396_s30 }
 0x843   : > { %8981 = vrot.lane.b32.xlu0 %v13283_v62, %s10390_s24 }
 0x849   : > { %8971 = vrot.lane.b32.xlu1 %v13283_v62, %s10389_s23 }
 0x851   : > { %8986 = vrot.lane.b32.xlu1 %v13237_v20, %s10391_s25 }
 0x863   : > { %v13293_v19 = vpop.permute.xlu2 %8896 }
 0x864   : > { %v8898_v12 = vunpack.i.l.bf16 %v13293_v19 }
 0x86b   : > { %v13295_v24 = vpop.permute.xlu2 %8906 }
 0x86c   : > { %v8908_v4 = vunpack.i.l.bf16 %v13295_v24 }
 0x86d   : > { %v8857_v18 = vpop.permute.xlu0 %8856 }
 0x86e   : > { %v8859_v7 = vunpack.i.h.bf16 %v8857_v18  ;;  %v8858_v57 = vunpack.i.l.bf16 %v8857_v18 }
 0x870   : > { %v3687_v21 = vsel %vm233_vm0, %v8858_v57, %v8859_v7 }
 0x871   : > { %v13299_v52 = vpack.i.bf16 %v3687_v21, %v13232_v44 }
 0x873   : > { %v13301_v59 = vpop.permute.xlu2 %8916  ;;  %8996 = vrot.lane.b32.xlu2 %v13299_v52, %s10395_s29 }
 0x874   : > { %v8918_v11 = vunpack.i.l.bf16 %v13301_v59 }
 0x875   : > { %v8862_v51 = vpop.permute.xlu0 %8861 }
 0x876   : > { %v8864_v29 = vunpack.i.h.bf16 %v8862_v51  ;;  %v8863_v1 = vunpack.i.l.bf16 %v8862_v51 }
 0x878   : > { %v3701_v8 = vsel %vm248_vm1, %v8863_v1, %v8864_v29 }
 0x87b   : > { %v13305_v30 = vpop.permute.xlu2 %8926  ;;  %9001 = vrot.lane.b32.xlu2 %v13299_v52, %s10396_s30  ;;  %v8892_v33 = vpop.permute.xlu1 %8891 }
 0x87c   : > { %v8894_v6 = vunpack.i.h.bf16 %v8892_v33  ;;  %v8893_v42 = vunpack.i.l.bf16 %v8892_v33  ;;  %v8928_v34 = vunpack.i.l.bf16 %v13305_v30 }
 0x87d   : > { %v8867_v2 = vpop.permute.xlu0 %8866 }
 0x87e   : > { %v3690_v3 = vsel %vm233_vm0, %v8894_v6, %v8898_v12  ;;  %v3688_v5 = vsel %vm233_vm0, %v8859_v7, %v8893_v42  ;;  %v3689_v48 = vsel %vm233_vm0, %v8893_v42, %v8894_v6  ;;  %v8869_v49 = vunpack.i.h.bf16 %v8867_v2 }
 0x87f   : > { %v8868_v46 = vunpack.i.l.bf16 %v8867_v2  ;;  %v13314_v56 = vpack.i.bf16 %v3689_v48, %v3688_v5  ;;  %v13316_v27 = vpack.i.bf16 %v8898_v12, %v3690_v3 }
 0x881   : > { %v3715_v43 = vsel %vm263_vm2, %v8868_v46, %v8869_v49 }
 0x882   : > { %v13319_v32 = vpack.i.bf16 %v3715_v43, %v8908_v4 }
 0x883   : > { %v13321_v58 = vpop.permute.xlu2 %8936  ;;  %v8902_v36 = vpop.permute.xlu1 %8901 }
 0x884   : > { %v8904_v22 = vunpack.i.h.bf16 %v8902_v36  ;;  %v8903_v15 = vunpack.i.l.bf16 %v8902_v36 }
 0x885   : > { %v8872_v10 = vpop.permute.xlu0 %8871 }
 0x886   : > { %v3704_v50 = vsel %vm248_vm1, %v8904_v22, %v8908_v4  ;;  %v3702_v16 = vsel %vm248_vm1, %v8864_v29, %v8903_v15  ;;  %v3703_v39 = vsel %vm248_vm1, %v8903_v15, %v8904_v22  ;;  %v8874_v7 = vunpack.i.h.bf16 %v8872_v10 }
 0x887   : > { %v13327_v47 = vpack.i.bf16 %v3702_v16, %v3701_v8  ;;  %v13329_v61 = vpack.i.bf16 %v3704_v50, %v3703_v39  ;;  %v8873_v57 = vunpack.i.l.bf16 %v8872_v10  ;;  %v8938_v29 = vunpack.i.l.bf16 %v13321_v58 }
 0x889   : > { %9006 = vrot.lane.b32.xlu2 %v13327_v47, %s10395_s29  ;;  %v3729_v3 = vsel %vm278_vm3, %v8873_v57, %v8874_v7 }
 0x88b   : > { %v13333_v37 = vpop.permute.xlu2 %8946  ;;  %v8912_v54 = vpop.permute.xlu1 %8911 }
 0x88c   : > { %v8914_v60 = vunpack.i.h.bf16 %v8912_v54  ;;  %v8913_v53 = vunpack.i.l.bf16 %v8912_v54  ;;  %v8948_v51 = vunpack.i.l.bf16 %v13333_v37 }
 0x88d   : > { %v8877_v13 = vpop.permute.xlu0 %8876 }
 0x88e   : > { %v3718_v17 = vsel %vm263_vm2, %v8914_v60, %v8918_v11  ;;  %v3716_v14 = vsel %vm263_vm2, %v8869_v49, %v8913_v53  ;;  %v3717_v38 = vsel %vm263_vm2, %v8913_v53, %v8914_v60  ;;  %v8879_v31 = vunpack.i.h.bf16 %v8877_v13 }
 0x88f   : > { %v8878_v41 = vunpack.i.l.bf16 %v8877_v13  ;;  %v13340_v40 = vpack.i.bf16 %v8918_v11, %v3718_v17  ;;  %v13345_v18 = vpack.i.bf16 %v3717_v38, %v3716_v14  ;;  %v13358_v4 = vpack.i.bf16 0.0, %v8948_v51 }
 0x891   : > { %v3743_v0 = vsel %vm293_vm4, %v8878_v41, %v8879_v31  ;;  %9021 = vrot.lane.b32.xlu2 %v13327_v47, %s10396_s30  ;;  %16254 = vst [vmem:[#allocation7_spill] sm:$0xff] %v13358_v4 }
 0x892   : > { %v13347_v21 = vpack.i.bf16 %v3743_v0, %v8928_v34 }
 0x893   : > { %v13350_v33 = vpop.permute.xlu2 %8976  ;;  %v8922_v12 = vpop.permute.xlu1 %8921 }
 0x894   : > { %v8924_v6 = vunpack.i.h.bf16 %v8922_v12  ;;  %v8923_v42 = vunpack.i.l.bf16 %v8922_v12 }
 0x895   : > { %v8882_v2 = vpop.permute.xlu0 %8881 }
 0x896   : > { %v3732_v5 = vsel %vm278_vm3, %v8924_v6, %v8928_v34  ;;  %v3730_v48 = vsel %vm278_vm3, %v8874_v7, %v8923_v42  ;;  %v3731_v49 = vsel %vm278_vm3, %v8923_v42, %v8924_v6  ;;  %v8884_v13 = vunpack.i.h.bf16 %v8882_v2 }
 0x897   : > { %v13356_v46 = vpack.i.bf16 %v3730_v48, %v3729_v3  ;;  %v13364_v43 = vpack.i.bf16 %v3732_v5, %v3731_v49  ;;  %v8883_v17 = vunpack.i.l.bf16 %v8882_v2  ;;  %v8979_v5 = vunpack.i.h.bf16 %v13350_v33 }
 0x898   : > { %v8978_v48 = vunpack.i.l.bf16 %v13350_v33 }
 0x899   : > { %9011 = vrot.lane.b32.xlu1 %v13356_v46, %s10395_s29  ;;  %9046 = vrot.lane.b32.xlu2 %v13358_v4, %s10395_s29  ;;  %v3757_v0 = vsel %vm308_vm5, %v8883_v17, %v8884_v13 }
 0x89b   : > { %v8992_v1 = vpop.permute.xlu2 %8991  ;;  %v8932_v36 = vpop.permute.xlu1 %8931 }
 0x89c   : > { %v8994_v22 = vunpack.i.h.bf16 %v8992_v1  ;;  %v13367_v15 = vunpack.i.l.bf16 %v8992_v1  ;;  %v8934_v10 = vunpack.i.h.bf16 %v8932_v36  ;;  %v8933_v8 = vunpack.i.l.bf16 %v8932_v36 }
 0x89d   : > { %v13369_v50 = vpop.permute.xlu0 %8886  ;;  %v4229_v1 = vsel %vm248_vm1, %v8978_v48, %v8979_v5 }
 0x89e   : > { %v3746_v16 = vsel %vm293_vm4, %v8934_v10, %v8938_v29  ;;  %v3744_v39 = vsel %vm293_vm4, %v8879_v31, %v8933_v8  ;;  %v3745_v54 = vsel %vm293_vm4, %v8933_v8, %v8934_v10  ;;  %v4714_v11 = vsel %vm263_vm2, %v13367_v15, %v8994_v22 }
 0x89f   : > { %v13376_v60 = vpack.i.bf16 %v8938_v29, %v3746_v16  ;;  %v13378_v53 = vpack.i.bf16 %v3745_v54, %v3744_v39  ;;  %v13384_v14 = vpack.i.bf16 %v8994_v22, %v4714_v11 }
 0x8a1   : > { %16255 = vst [vmem:[#allocation20_spill] sm:$0xff] %v13378_v53  ;;  %9026 = vrot.lane.b32.xlu1 %v13356_v46, %s10396_s30  ;;  %9061 = vrot.lane.b32.xlu2 %v13358_v4, %s10396_s30 }
 0x8a2   : > { %16256 = vst [vmem:[#allocation6_spill] sm:$0xff] %v13384_v14 }
 0x8a3   : > { %v8942_v38 = vpop.permute.xlu1 %8941 }
 0x8a4   : > { %v8944_v31 = vunpack.i.h.bf16 %v8942_v38  ;;  %v8943_v41 = vunpack.i.l.bf16 %v8942_v38 }
 0x8a5   : > { %v13386_v34 = vpop.permute.xlu0 %8956 }
 0x8a6   : > { %v3760_v7 = vsel %vm308_vm5, %v8944_v31, %v8948_v51  ;;  %v3758_v57 = vsel %vm308_vm5, %v8884_v13, %v8943_v41  ;;  %v3759_v12 = vsel %vm308_vm5, %v8943_v41, %v8944_v31 }
 0x8a7   : > { %v13392_v6 = vpack.i.bf16 %v3758_v57, %v3757_v0  ;;  %v13394_v42 = vpack.i.bf16 %v3760_v7, %v3759_v12  ;;  %v8899_v12 = vunpack.i.h.bf16 %v13293_v19 }
 0x8a9   : > { %16257 = vst [vmem:[#allocation9_spill] sm:$0xff] %v13394_v42  ;;  %9016 = vrot.lane.b32.xlu0 %v13392_v6, %s10395_s29  ;;  %9036 = vrot.lane.b32.xlu1 %v13319_v32, %s10395_s29 }
 0x8aa   : > { %9081 = vrot.lane.b32.xlu2 %v13345_v18, %s10395_s29 }
 0x8ab   : > { %v13402_v2 = vpop.permute.xlu1 %8951 }
 0x8ad   : > { %v13404_v51 = vpop.permute.xlu0 %8966 }
 0x8ae   : > { %v8969_v10 = vunpack.i.h.bf16 %v13404_v51  ;;  %v8968_v57 = vunpack.i.l.bf16 %v13404_v51  ;;  %v8909_v51 = vunpack.i.h.bf16 %v13295_v24 }
 0x8b1   : > { %9031 = vrot.lane.b32.xlu0 %v13392_v6, %s10396_s30  ;;  %9051 = vrot.lane.b32.xlu1 %v13319_v32, %s10396_s30 }
 0x8b2   : > { %9091 = vrot.lane.b32.xlu2 %v13364_v43, %s10395_s29 }
 0x8b3   : > { %v13412_v3 = vpop.permute.xlu1 %8961 }
 0x8b5   : > { %v13416_v49 = vpop.permute.xlu0 %8981 }
 0x8b6   : > { %v8983_v29 = vunpack.i.l.bf16 %v13416_v49 }
 0x8b8   : > { %v13423_v36 = vsel %vm248_vm1, %v8979_v5, %v8983_v29  ;;  %v4214_v5 = vsel %vm233_vm0, %v8899_v12, %v8968_v57 }
 0x8b9   : > { %9041 = vrot.lane.b32.xlu0 %v13347_v21, %s10395_s29  ;;  %9071 = vrot.lane.b32.xlu1 %v13316_v27, %s10395_s29  ;;  %v13430_v22 = vpack.i.bf16 %v13423_v36, %v4229_v1 }
 0x8ba   : > { %9101 = vrot.lane.b32.xlu2 %v13376_v60, %s10395_s29 }
 0x8bb   : > { %16258 = vst [vmem:[#allocation15_spill] sm:$0xff] %v13430_v22  ;;  %v8972_v33 = vpop.permute.xlu1 %8971 }
 0x8bc   : > { %v13435_v8 = vunpack.i.h.bf16 %v8972_v33  ;;  %v8973_v16 = vunpack.i.l.bf16 %v8972_v33 }
 0x8be   : > { %16259 = vst [vmem:[#allocation16_spill] sm:$0xff] %v13435_v8  ;;  %v4216_v39 = vsel %vm233_vm0, %v8969_v10, %v8973_v16  ;;  %v4217_v54 = vsel %vm233_vm0, %v8973_v16, %v13435_v8  ;;  %v9195_v16 = vpack.i.bf16 %v4214_v5, %v13232_v44  ;;  %v8919_v44 = vunpack.i.h.bf16 %v13301_v59 }
 0x8bf   : > { %v13440_v11 = vpack.i.bf16 %v4217_v54, %v4216_v39  ;;  %v13519_v59 = vunpack.i.h.bf16 %v13416_v49 }
 0x8c1   : > { %16260 = vst [vmem:[#allocation22_spill] sm:$0xff] %v13440_v11  ;;  %9056 = vrot.lane.b32.xlu0 %v13347_v21, %s10396_s30  ;;  %9096 = vrot.lane.b32.xlu1 %v13378_v53, %s10395_s29 }
 0x8c2   : > { %9126 = vrot.lane.b32.xlu2 %v13345_v18, %s10396_s30  ;;  %16263 = vst [vmem:[#allocation17_spill] sm:$0xff] %v13519_v59 }
 0x8c3   : > { %v8987_v13 = vpop.permute.xlu1 %8986 }
 0x8c4   : > { %v8989_v17 = vunpack.i.h.bf16 %v8987_v13  ;;  %v8988_v38 = vunpack.i.l.bf16 %v8987_v13  ;;  %v4228_v13 = vsel %vm248_vm1, %v8909_v51, %v8978_v48 }
 0x8c5   : > { %v9210_v19 = vpack.i.bf16 %v4229_v1, %v4228_v13  ;;  %v9205_v1 = vpack.i.bf16 %v13435_v8, %v4217_v54  ;;  %v13530_v54 = vsel %vm233_vm0, %v8968_v57, %v8969_v10  ;;  %v13542_v13 = vsel %vm248_vm1, %v8983_v29, %v13519_v59 }
 0x8c6   : > { %v13450_v31 = vsel %vm263_vm2, %v8989_v17, %v13367_v15  ;;  %v4241_v41 = vsel %vm263_vm2, %v8988_v38, %v8989_v17  ;;  %v13504_v12 = vsel %vm263_vm2, %v8919_v44, %v8988_v38  ;;  %16265 = vst [vmem:[#allocation24_spill] sm:$0xff] %v13530_v54  ;;  %v8888_v8 = vunpack.i.l.bf16 %v13369_v50 }
 0x8c7   : > { %v13454_v0 = vpack.i.bf16 %v13450_v31, %v4241_v41  ;;  %16262 = vst [vmem:[#allocation23_spill] sm:$0xff] %v13504_v12  ;;  %v9225_v24 = vpack.i.bf16 %v4241_v41, %v13504_v12  ;;  %v9220_v41 = vpack.i.bf16 %v8919_v44, %v13519_v59  ;;  %v9230_v49 = vpack.i.bf16 %v13367_v15, %v13450_v31 }
 0x8c8   : > { %16266 = vst [vmem:[#allocation28_spill] sm:$0xff] %v13542_v13 }
 0x8c9   : > { %16261 = vst [vmem:[#allocation4_spill] sm:$0xff] %v13454_v0  ;;  %9106 = vrot.lane.b32.xlu1 %v13394_v42, %s10395_s29  ;;  %9066 = vrot.lane.b32.xlu0 %v13314_v56, %s10395_s29 }
 0x8ca   : > { %9141 = vrot.lane.b32.xlu2 %v13364_v43, %s10396_s30 }
 0x8cd   : > { %v13474_v7 = vpop.permute.xlu2 %8996 }
 0x8ce   : > { %v8999_v0 = vunpack.i.h.bf16 %v13474_v7 }
 0x8d1   : > { %9116 = vrot.lane.b32.xlu1 %v13316_v27, %s10396_s30  ;;  %9076 = vrot.lane.b32.xlu0 %v13329_v61, %s10395_s29 }
 0x8d2   : > { %9151 = vrot.lane.b32.xlu2 %v13376_v60, %s10396_s30 }
 0x8d5   : > { %v13485_v33 = vpop.permute.xlu2 %9001 }
 0x8d9   : > { %9146 = vrot.lane.b32.xlu1 %v13378_v53, %s10396_s30  ;;  %9086 = vrot.lane.b32.xlu0 %v13340_v40, %s10395_s29 }
 0x8da   : > { %9166 = vrot.lane.b32.xlu2 %v13237_v20, %s10393_s27 }
 0x8e1   : > { %9156 = vrot.lane.b32.xlu1 %v13394_v42, %s10396_s30  ;;  %9111 = vrot.lane.b32.xlu0 %v13314_v56, %s10396_s30 }
 0x8e2   : > { %9181 = vrot.lane.b32.xlu2 %v13235_v45, %s10394_s28 }
 0x8e3   : > { %v13495_v17 = vpop.permute.xlu2 %9006 }
 0x8e4   : > { %v9008_v14 = vunpack.i.l.bf16 %v13495_v17 }
 0x8e9   : > { %9161 = vrot.lane.b32.xlu1 %v13235_v45, %s10392_s26  ;;  %9121 = vrot.lane.b32.xlu0 %v13329_v61, %s10396_s30 }
 0x8ea   : > { %9196 = vrot.lane.b32.xlu2 %v9195_v16, %s10397_s5 }
 0x8eb   : > { %v13511_v48 = vpop.permute.xlu2 %9021 }
 0x8f1   : > { %9176 = vrot.lane.b32.xlu1 %v13237_v20, %s10394_s28  ;;  %9131 = vrot.lane.b32.xlu0 %v13340_v40, %s10396_s30 }
 0x8f2   : > { %9211 = vrot.lane.b32.xlu2 %v9210_v19, %s10397_s5  ;;  %v9215_v19 = vpack.i.bf16 %v13542_v13, %v13423_v36 }
 0x8f3   : > { %v13521_v38 = vpop.permute.xlu2 %9046 }
 0x8f4   : > { %16264 = vst [vmem:[#allocation21_spill] sm:$0xff] %v13521_v38 }
 0x8f9   : > { %9191 = vrot.lane.b32.xlu1 %v13237_v20, %s10397_s5  ;;  %9136 = vrot.lane.b32.xlu0 %v13237_v20, %s10392_s26 }
 0x8fa   : > { %9226 = vrot.lane.b32.xlu2 %v9225_v24, %s10397_s5 }
 0x8fb   : > { %v13532_v16 = vpop.permute.xlu2 %9061 }
 0x901   : > { %9206 = vrot.lane.b32.xlu1 %v9205_v1, %s10397_s5  ;;  %9171 = vrot.lane.b32.xlu0 %v13235_v45, %s10393_s27  ;;  %v9200_v45 = vpack.i.bf16 %v4216_v39, %v13530_v54 }
 0x904   : > { %v13546_v44 = vpop.permute.xlu2 %9081 }
 0x905   : > { %v9083_v13 = vunpack.i.l.bf16 %v13546_v44 }
 0x909   : > { %9221 = vrot.lane.b32.xlu1 %v9220_v41, %s10397_s5  ;;  %9186 = vrot.lane.b32.xlu0 %v13222_v28, %s10397_s5 }
 0x90b   : > { %v13527_v5 = vpop.permute.xlu1 %9011 }
 0x90c   : > { %v13555_v29 = vpop.permute.xlu2 %9091  ;;  %v9013_v15 = vunpack.i.l.bf16 %v13527_v5 }
 0x911   : > { %9201 = vrot.lane.b32.xlu0 %v9200_v45, %s10397_s5 }
 0x913   : > { %v13536_v51 = vpop.permute.xlu1 %9026 }
 0x914   : > { %v9102_v63 = vpop.permute.xlu2 %9101 }
 0x915   : > { %v9103_v42 = vunpack.i.l.bf16 %v9102_v63 }
 0x919   : > { %9216 = vrot.lane.b32.xlu0 %v9215_v19, %s10397_s5 }
 0x91b   : > { %v9017_v10 = vpop.permute.xlu0 %9016  ;;  %v13549_v57 = vpop.permute.xlu1 %9036 }
 0x91c   : > { %v9019_v39 = vunpack.i.h.bf16 %v9017_v10  ;;  %v9018_v24 = vunpack.i.l.bf16 %v9017_v10  ;;  %v9039_v55 = vunpack.i.h.bf16 %v13549_v57  ;;  %v13571_v9 = vpop.permute.xlu2 %9126 }
 0x91e   : > { %v3857_v1 = vsel %vm384_vm6, %v9018_v24, %v9019_v39  ;;  %v3845_v12 = vsel %vm384_vm6, %v9039_v55, %v9083_v13  ;;  %v9093_v55 = vunpack.i.l.bf16 %v13555_v29 }
 0x91f   : > { %3901 = vmatpush.msra.mxu0 %v3857_v1  ;;  %v9014_v1 = vunpack.i.h.bf16 %v13527_v5  ;;  %v8889_v5 = vunpack.i.h.bf16 %v13369_v50  ;;  %v9104_v50 = vunpack.i.h.bf16 %v9102_v63 }
 0x921   : > { %9231 = vrot.lane.b32.xlu0 %v9230_v49, %s10397_s5  ;;  %v3849_v59 = vsel %vm384_vm6, %v9013_v15, %v9014_v1 }
 0x923   : > { %v13557_v36 = vpop.permute.xlu0 %9031  ;;  %v13559_v41 = vpop.permute.xlu1 %9051 }
 0x924   : > { %v13598_v63 = vpop.permute.xlu2 %9141 }
 0x92b   : > { %v13561_v45 = vpop.permute.xlu0 %9041  ;;  %v13563_v19 = vpop.permute.xlu1 %9071 }
 0x92c   : > { %v9044_v31 = vunpack.i.h.bf16 %v13561_v45 }
 0x933   : > { %v13565_v10 = vpop.permute.xlu0 %9056  ;;  %v9097_v24 = vpop.permute.xlu1 %9096 }
 0x934   : > { %v9098_v49 = vunpack.i.l.bf16 %v9097_v24  ;;  %v9099_v15 = vunpack.i.h.bf16 %v9097_v24  ;;  %v9034_v24 = vunpack.i.h.bf16 %v13557_v36 }
 0x936   : > { %v3853_v35 = vsel %vm384_vm6, %v9044_v31, %v9098_v49  ;;  %v9048_v31 = vunpack.i.l.bf16 %v13521_v38 }
 0x937   : > { %3902 = vmatpush.msra.mxu0 %v3853_v35  ;;  %v16267_v35 = vunpack.i.h.bf16 %v13495_v17 }
 0x939   : > { %3903 = vmatpush.msra.mxu0 %v3849_v59  ;;  %v3841_v11 = vsel %vm384_vm6, %v9008_v14, %v16267_v35  ;;  %v9094_v14 = vunpack.i.h.bf16 %v13555_v29  ;;  %v9084_v35 = vunpack.i.h.bf16 %v13546_v44  ;;  %v3856_v44 = vsel %vm384_vm6, %v9103_v42, %v9104_v50 }
 0x93b   : > { %v9107_v22 = vpop.permute.xlu1 %9106  ;;  %3904 = vmatpush.msra.mxu0 %v3845_v12  ;;  %v13583_v26 = vpop.permute.xlu0 %9066  ;;  %v3851_v29 = vsel %vm384_vm6, %v9093_v55, %v9094_v14 }
 0x93c   : > { %v9109_v59 = vunpack.i.h.bf16 %v9107_v22  ;;  %v9108_v54 = vunpack.i.l.bf16 %v9107_v22  ;;  %v9068_v23 = vunpack.i.l.bf16 %v13583_v26  ;;  %v9033_v22 = vunpack.i.l.bf16 %v13557_v36 }
 0x93d   : > { %3905 = vmatpush.msra.mxu0 %v3841_v11  ;;  %v9043_v11 = vunpack.i.l.bf16 %v13561_v45 }
 0x93e   : > { %v3837_v38 = vsel %vm384_vm6, %v8999_v0, %v9068_v23  ;;  %v3858_v12 = vsel %vm384_vm6, %v9019_v39, %v9108_v54  ;;  %v3859_v4 = vsel %vm384_vm6, %v9108_v54, %v9109_v59  ;;  %v3860_v53 = vsel %vm384_vm6, %v9109_v59, %v9048_v31  ;;  %v13606_v39 = vld [vmem:[%s16005_s2 + $0x70] sm:$0xff] }
 0x93f   : > { %3906 = vmatpush.msra.mxu0 %v3837_v38  ;;  %3921 = vmatpush.msra.mxu1 %v3858_v12  ;;  %v3833_v0 = vsel %vm384_vm6, %v8888_v8, %v8889_v5  ;;  %v3854_v54 = vsel %vm384_vm6, %v9098_v49, %v9099_v15  ;;  %v3855_v38 = vsel %vm384_vm6, %v9099_v15, %v9103_v42  ;;  %v9069_v49 = vunpack.i.h.bf16 %v13583_v26  ;;  %v13627_v26 = vpop.permute.xlu2 %9151 }
 0x940   : > { %3941 = vmatpush.msra.mxu2 %v3859_v4  ;;  %3961 = vmatpush.msra.mxu3 %v3860_v53  ;;  %v3850_v4 = vsel %vm384_vm6, %v9014_v1, %v9093_v55  ;;  %v4074_v53 = vsel %vm603_vm8, %v9033_v22, %v9034_v24  ;;  %v3852_v42 = vsel %vm384_vm6, %v9094_v14, %v9043_v11  ;;  %v8953_v15 = vunpack.i.l.bf16 %v13402_v2 }
 0x941   : > { %3907 = vmatpush.msra.mxu0 %v3833_v0  ;;  %3922 = vmatpush.msra.mxu1 %v3854_v54  ;;  %v3846_v31 = vsel %vm384_vm6, %v9083_v13, %v9084_v35  ;;  %v16268_v59 = vunpack.i.h.bf16 %v13495_v17  ;;  %v3838_v55 = vsel %vm384_vm6, %v9068_v23, %v9069_v49  ;;  %v9059_v14 = vunpack.i.h.bf16 %v13565_v10 }
 0x942   : > { %3942 = vmatpush.msra.mxu2 %v3855_v38  ;;  %3962 = vmatpush.msra.mxu3 %v3856_v44  ;;  %v3834_v12 = vsel %vm384_vm6, %v8889_v5, %v8953_v15  ;;  %v9029_v23 = vunpack.i.h.bf16 %v13536_v51  ;;  %v9028_v38 = vunpack.i.l.bf16 %v13536_v51  ;;  %v9038_v5 = vunpack.i.l.bf16 %v13549_v57 }
 0x943   : > { %7232 = vmatmul.msk.f32.vlgmr.msra.gmra.mxu0 %vm441_vm7, %v13606_v39  ;;  %v13616_v8 = vpop.permute.xlu1 %9116  ;;  %3923 = vmatpush.msra.mxu1 %v3850_v4  ;;  %v9077_v45 = vpop.permute.xlu0 %9076  ;;  %v9074_v44 = vunpack.i.h.bf16 %v13563_v19  ;;  %v9073_v4 = vunpack.i.l.bf16 %v13563_v19 }
 0x944   : > { %4118 = vmatpush.msrb.mxu0 %v4074_v53  ;;  %3943 = vmatpush.msra.mxu2 %v3851_v29  ;;  %v9078_v1 = vunpack.i.l.bf16 %v9077_v45  ;;  %v9079_v11 = vunpack.i.h.bf16 %v9077_v45 }
 0x945   : > { %3963 = vmatpush.msra.mxu3 %v3852_v42  ;;  %3924 = vmatpush.msra.mxu1 %v3846_v31  ;;  %v8954_v42 = vunpack.i.h.bf16 %v13402_v2  ;;  %v8998_v31 = vunpack.i.l.bf16 %v13474_v7  ;;  %v4066_v2 = vsel %vm603_vm8, %v9028_v38, %v9029_v23  ;;  %v8959_v7 = vunpack.i.h.bf16 %v13386_v34 }
 0x946   : > { %v3842_v50 = vsel %vm384_vm6, %v16268_v59, %v9078_v1  ;;  %v9054_v59 = vunpack.i.h.bf16 %v13559_v41  ;;  %v3843_v57 = vsel %vm384_vm6, %v9078_v1, %v9079_v11  ;;  %v3844_v19 = vsel %vm384_vm6, %v9079_v11, %v9038_v5 }
 0x947   : > { %3925 = vmatpush.msra.mxu1 %v3842_v50  ;;  %v9023_v50 = vunpack.i.l.bf16 %v13511_v48  ;;  %v3840_v1 = vsel %vm384_vm6, %v9073_v4, %v9074_v44  ;;  %v3836_v38 = vsel %vm384_vm6, %v8954_v42, %v8998_v31  ;;  %v13668_v5 = vpop.permute.xlu2 %9166 }
 0x949   : > { %3926 = vmatpush.msra.mxu1 %v3838_v55  ;;  %v9128_v55 = vunpack.i.l.bf16 %v13571_v9 }
 0x94b   : > { %v13631_v22 = vpop.permute.xlu1 %9146  ;;  %v9087_v13 = vpop.permute.xlu0 %9086  ;;  %3927 = vmatpush.msra.mxu1 %v3834_v12  ;;  %v3839_v12 = vsel %vm384_vm6, %v9069_v49, %v9073_v4 }
 0x94c   : > { %v9148_v0 = vunpack.i.l.bf16 %v13631_v22  ;;  %v9089_v17 = vunpack.i.h.bf16 %v9087_v13  ;;  %v9088_v54 = vunpack.i.l.bf16 %v9087_v13  ;;  %7233 = vmatmul.msk.f32.vlgmr.msra.gmra.mxu1 %vm441_vm7, %v13606_v39  ;;  %v9149_v49 = vunpack.i.h.bf16 %v13631_v22 }
 0x94e   : > { %v3847_v53 = vsel %vm384_vm6, %v9084_v35, %v9088_v54  ;;  %v3848_v29 = vsel %vm384_vm6, %v9088_v54, %v9089_v17  ;;  %v4070_v45 = vsel %vm603_vm8, %v9059_v14, %v9148_v0  ;;  %v9024_v35 = vunpack.i.h.bf16 %v13511_v48 }
 0x94f   : > { %3944 = vmatpush.msra.mxu2 %v3847_v53  ;;  %3964 = vmatpush.msra.mxu3 %v3848_v29  ;;  %v9004_v14 = vunpack.i.h.bf16 %v13485_v33  ;;  %v4062_v17 = vsel %vm603_vm8, %v9054_v59, %v9128_v55  ;;  %v3835_v54 = vsel %vm384_vm6, %v8953_v15, %v8954_v42  ;;  %v8958_v29 = vunpack.i.l.bf16 %v13386_v34 }
 0x950   : > { %4119 = vmatpush.msrb.mxu0 %v4070_v45  ;;  %v9063_v45 = vunpack.i.l.bf16 %v13532_v16  ;;  %v4058_v15 = vsel %vm603_vm8, %v9023_v50, %v9024_v35  ;;  %v9153_v42 = vunpack.i.l.bf16 %v13627_v26  ;;  %v9058_v50 = vunpack.i.l.bf16 %v13565_v10 }
 0x951   : > { %3945 = vmatpush.msra.mxu2 %v3843_v57  ;;  %3965 = vmatpush.msra.mxu3 %v3844_v19  ;;  %v9154_v57 = vunpack.i.h.bf16 %v13627_v26  ;;  %v4071_v36 = vsel %vm603_vm8, %v9148_v0, %v9149_v49  ;;  %v8939_v0 = vunpack.i.h.bf16 %v13321_v58 }
 0x952   : > { %4120 = vmatpush.msrb.mxu0 %v4066_v2  ;;  %v9144_v2 = vunpack.i.h.bf16 %v13598_v63  ;;  %v4072_v10 = vsel %vm603_vm8, %v9149_v49, %v9153_v42 }
 0x953   : > { %v9157_v13 = vpop.permute.xlu1 %9156  ;;  %v13661_v11 = vpop.permute.xlu0 %9111  ;;  %3946 = vmatpush.msra.mxu2 %v3839_v12  ;;  %3966 = vmatpush.msra.mxu3 %v3840_v1  ;;  %v9143_v12 = vunpack.i.l.bf16 %v13598_v63  ;;  %v9129_v63 = vunpack.i.h.bf16 %v13571_v9  ;;  %v9168_v1 = vunpack.i.l.bf16 %v13668_v5  ;;  %v4073_v22 = vsel %vm603_vm8, %v9153_v42, %v9154_v57 }
 0x954   : > { %v9159_v44 = vunpack.i.h.bf16 %v9157_v13  ;;  %v9158_v4 = vunpack.i.l.bf16 %v9157_v13  ;;  %v9113_v53 = vunpack.i.l.bf16 %v13661_v11  ;;  %4121 = vmatpush.msrb.mxu0 %v4062_v17  ;;  %v4069_v58 = vsel %vm603_vm8, %v9144_v2, %v9058_v50 }
 0x955   : > { %3947 = vmatpush.msra.mxu2 %v3835_v54  ;;  %3967 = vmatpush.msra.mxu3 %v3836_v38  ;;  %v4067_v17 = vsel %vm603_vm8, %v9029_v23, %v9143_v12  ;;  %v4068_v54 = vsel %vm603_vm8, %v9143_v12, %v9144_v2  ;;  %v4063_v51 = vsel %vm603_vm8, %v9128_v55, %v9129_v63  ;;  %v8963_v23 = vunpack.i.l.bf16 %v13412_v3 }
 0x956   : > { %4122 = vmatpush.msrb.mxu0 %v4058_v15  ;;  %7234 = vmatmul.msk.f32.vlgmr.msra.gmra.mxu2 %vm441_vm7, %v13606_v39  ;;  %v4054_v31 = vsel %vm603_vm8, %v9004_v14, %v9113_v53  ;;  %v4075_v59 = vsel %vm603_vm8, %v9034_v24, %v9158_v4  ;;  %v4076_v19 = vsel %vm603_vm8, %v9158_v4, %v9159_v44  ;;  %v13698_v24 = vld [vmem:[%s16005_s2 + $0x80] sm:$0xff]  ;;  %v9114_v4 = vunpack.i.h.bf16 %v13661_v11 }
 0x957   : > { %7235 = vmatmul.msk.f32.vlgmr.msra.gmra.mxu3 %vm441_vm7, %v13606_v39  ;;  %4138 = vmatpush.msrb.mxu1 %v4075_v59  ;;  %v4077_v26 = vsel %vm603_vm8, %v9159_v44, %v9063_v45  ;;  %v4050_v39 = vsel %vm603_vm8, %v8958_v29, %v8959_v7  ;;  %v13727_v29 = vsel %vm293_vm4, %v8939_v0, %v9168_v1  ;;  %v9182_v45 = vpop.permute.xlu2 %9181  ;;  %v8949_v59 = vunpack.i.h.bf16 %v13333_v37 }
 0x958   : > { %4123 = vmatpush.msrb.mxu0 %v4054_v31  ;;  %4158 = vmatpush.msrb.mxu2 %v4076_v19  ;;  %v13738_v15 = vunpack.i.h.bf16 %v9182_v45  ;;  %v9183_v42 = vunpack.i.l.bf16 %v9182_v45  ;;  %v4055_v31 = vsel %vm603_vm8, %v9113_v53, %v9114_v4  ;;  %v8964_v19 = vunpack.i.h.bf16 %v13412_v3 }
 0x959   : > { %4178 = vmatpush.msrb.mxu3 %v4077_v26  ;;  %4139 = vmatpush.msrb.mxu1 %v4071_v36  ;;  %v4051_v12 = vsel %vm603_vm8, %v8959_v7, %v8963_v23  ;;  %v9119_v37 = vunpack.i.h.bf16 %v13616_v8  ;;  %v9118_v3 = vunpack.i.l.bf16 %v13616_v8 }
 0x95a   : > { %4124 = vmatpush.msrb.mxu0 %v4050_v39  ;;  %4159 = vmatpush.msrb.mxu2 %v4072_v10  ;;  %v9053_v10 = vunpack.i.l.bf16 %v13559_v41  ;;  %v4285_v53 = vsel %vm308_vm5, %v9183_v42, %v13738_v15 }
 0x95b   : > { %4179 = vmatpush.msrb.mxu3 %v4073_v22  ;;  %7238 = vmatmul.msk.f32.vlgmr.msrb.gmra.mxu0 %vm441_vm7, %v13698_v24  ;;  %v13710_v14 = vpop.permute.xlu1 %9161  ;;  %v9122_v13 = vpop.permute.xlu0 %9121  ;;  %v4057_v45 = vsel %vm603_vm8, %v9118_v3, %v9119_v37  ;;  %v16276_v37 = vld [vmem:[#allocation4_spill] sm:$0xff] }
 0x95c   : > { %v9164_v38 = vunpack.i.h.bf16 %v13710_v14  ;;  %v9163_v49 = vunpack.i.l.bf16 %v13710_v14  ;;  %v9123_v44 = vunpack.i.l.bf16 %v9122_v13  ;;  %4140 = vmatpush.msrb.mxu1 %v4067_v17  ;;  %4160 = vmatpush.msrb.mxu2 %v4068_v54  ;;  %v9124_v48 = vunpack.i.h.bf16 %v9122_v13 }
 0x95d   : > { %4180 = vmatpush.msrb.mxu3 %v4069_v58  ;;  %v9169_v14 = vunpack.i.h.bf16 %v13668_v5  ;;  %v9270_v5 = vpack.i.bf16 0.0, %v4285_v53 }
 0x95e   : > { %v4257_v57 = vsel %vm278_vm3, %v9163_v49, %v9164_v38  ;;  %4141 = vmatpush.msrb.mxu1 %v4063_v51  ;;  %v4059_v11 = vsel %vm603_vm8, %v9024_v35, %v9123_v44  ;;  %v13736_v55 = vpack.i.bf16 %v13727_v29, %v9164_v38  ;;  %v4060_v17 = vsel %vm603_vm8, %v9123_v44, %v9124_v48 }
 0x95f   : > { %v9245_v9 = vpack.i.bf16 %v8939_v0, %v4257_v57  ;;  %v9003_v38 = vunpack.i.l.bf16 %v13485_v33  ;;  %v4061_v58 = vsel %vm603_vm8, %v9124_v48, %v9053_v10  ;;  %v8929_v44 = vunpack.i.h.bf16 %v13305_v30 }
 0x960   : > { %4142 = vmatpush.msrb.mxu1 %v4059_v11 }
 0x961   : > { %9246 = vrot.lane.b32.xlu0 %v9245_v9, %s10397_s5  ;;  %v4053_v33 = vsel %vm603_vm8, %v8964_v19, %v9003_v38 }
 0x962   : > { %4143 = vmatpush.msrb.mxu1 %v4055_v31 }
 0x963   : > { %v9177_v2 = vpop.permute.xlu1 %9176  ;;  %v9132_v35 = vpop.permute.xlu0 %9131 }
 0x964   : > { %v9179_v26 = vunpack.i.h.bf16 %v9177_v2  ;;  %v9178_v50 = vunpack.i.l.bf16 %v9177_v2  ;;  %v9134_v36 = vunpack.i.h.bf16 %v9132_v35  ;;  %v9133_v39 = vunpack.i.l.bf16 %v9132_v35  ;;  %4144 = vmatpush.msrb.mxu1 %v4051_v12 }
 0x965   : > { %7239 = vmatmul.msk.f32.vlgmr.msrb.gmra.mxu1 %vm441_vm7, %v13698_v24 }
 0x966   : > { %v4284_v34 = vsel %vm308_vm5, %v9179_v26, %v9183_v42  ;;  %v4282_v7 = vsel %vm308_vm5, %v8949_v59, %v9178_v50  ;;  %v4283_v22 = vsel %vm308_vm5, %v9178_v50, %v9179_v26  ;;  %v4064_v0 = vsel %vm603_vm8, %v9129_v63, %v9133_v39 }
 0x967   : > { %4161 = vmatpush.msrb.mxu2 %v4064_v0  ;;  %v4065_v41 = vsel %vm603_vm8, %v9133_v39, %v9134_v36  ;;  %v9260_v13 = vpack.i.bf16 %v4282_v7, %v8949_v59  ;;  %v13760_v54 = vpack.i.bf16 %v4285_v53, %v4284_v34  ;;  %v13762_v8 = vpack.i.bf16 %v4283_v22, %v4282_v7 }
 0x968   : > { %4181 = vmatpush.msrb.mxu3 %v4065_v41  ;;  %v4056_v63 = vsel %vm603_vm8, %v9114_v4, %v9118_v3  ;;  %v4052_v42 = vsel %vm603_vm8, %v8963_v23, %v8964_v19 }
 0x969   : > { %9261 = vrot.lane.b32.xlu0 %v9260_v13, %s10397_s5  ;;  %4162 = vmatpush.msrb.mxu2 %v4060_v17 }
 0x96a   : > { %4182 = vmatpush.msrb.mxu3 %v4061_v58 }
 0x96b   : > { %v9137_v51 = vpop.permute.xlu0 %9136  ;;  %4163 = vmatpush.msrb.mxu2 %v4056_v63 }
 0x96c   : > { %v9139_v11 = vunpack.i.h.bf16 %v9137_v51  ;;  %v9138_v9 = vunpack.i.l.bf16 %v9137_v51  ;;  %4183 = vmatpush.msrb.mxu3 %v4057_v45 }
 0x96d   : > { %4164 = vmatpush.msrb.mxu2 %v4052_v42 }
 0x96e   : > { %v4256_v31 = vsel %vm278_vm3, %v9139_v11, %v9163_v49  ;;  %v4254_v4 = vsel %vm278_vm3, %v8929_v44, %v9138_v9  ;;  %v4255_v59 = vsel %vm278_vm3, %v9138_v9, %v9139_v11  ;;  %4184 = vmatpush.msrb.mxu3 %v4053_v33  ;;  %7240 = vmatmul.msk.f32.vlgmr.msrb.gmra.mxu2 %vm441_vm7, %v13698_v24 }
 0x96f   : > { %7241 = vmatmul.msk.f32.vlgmr.msrb.gmra.mxu3 %vm441_vm7, %v13698_v24  ;;  %v9240_v30 = vpack.i.bf16 %v4256_v31, %v4255_v59  ;;  %v9235_v23 = vpack.i.bf16 %v4254_v4, %v8929_v44  ;;  %v13781_v48 = vpack.i.bf16 %v4257_v57, %v4256_v31  ;;  %v13783_v19 = vpack.i.bf16 %v4255_v59, %v4254_v4 }
 0x970   : > { %v4269_v24 = vsel %vm293_vm4, %v9168_v1, %v9169_v14  ;;  %v9265_v1 = vpack.i.bf16 %v4284_v34, %v4283_v22 }
 0x971   : > { %9276 = vrot.lane.b32.xlu0 %v13222_v28, %s10398_s10  ;;  %9241 = vrot.lane.b32.xlu2 %v9240_v30, %s10397_s5  ;;  %v9250_v28 = vpack.i.bf16 %v4269_v24, %v13727_v29  ;;  %v16275_v29 = vld [vmem:[#allocation15_spill] sm:$0xff] }
 0x972   : > { %9236 = vrot.lane.b32.xlu1 %v9235_v23, %s10397_s5 }
 0x973   : > { %v9172_v49 = vpop.permute.xlu0 %9171 }
 0x974   : > { %v9174_v2 = vunpack.i.h.bf16 %v9172_v49  ;;  %v9173_v35 = vunpack.i.l.bf16 %v9172_v49 }
 0x976   : > { %v4270_v57 = vsel %vm293_vm4, %v9169_v14, %v9173_v35  ;;  %v4271_v12 = vsel %vm293_vm4, %v9173_v35, %v9174_v2 }
 0x977   : > { %v9255_v26 = vpack.i.bf16 %v4271_v12, %v4270_v57  ;;  %v13795_v50 = vpack.i.bf16 %v9174_v2, %v4271_v12  ;;  %v13797_v36 = vpack.i.bf16 %v4270_v57, %v4269_v24 }
 0x979   : > { %9291 = vrot.lane.b32.xlu0 %v13314_v56, %s10398_s10  ;;  %9256 = vrot.lane.b32.xlu2 %v9255_v26, %s10397_s5  ;;  %v16270_v56 = vld [vmem:[#allocation7_spill] sm:$0xff] }
 0x97a   : > { %9251 = vrot.lane.b32.xlu1 %v9250_v28, %s10397_s5 }
 0x981   : > { %9306 = vrot.lane.b32.xlu0 %v13329_v61, %s10398_s10  ;;  %9271 = vrot.lane.b32.xlu2 %v9270_v5, %s10397_s5  ;;  %v16272_v61 = vld [vmem:[#allocation13_spill] sm:$0xff] }
 0x982   : > { %9266 = vrot.lane.b32.xlu1 %v9265_v1, %s10397_s5 }
 0x989   : > { %9321 = vrot.lane.b32.xlu0 %v13340_v40, %s10398_s10  ;;  %9286 = vrot.lane.b32.xlu2 %v13299_v52, %s10398_s10  ;;  %v13838_v52 = vpop.permute.xlu0 %9186 }
 0x98a   : > { %9281 = vrot.lane.b32.xlu1 %v13237_v20, %s10398_s10  ;;  %v16269_v20 = vld [vmem:[#allocation20_spill] sm:$0xff]  ;;  %v9189_v24 = vunpack.i.h.bf16 %v13838_v52  ;;  %v9188_v26 = vunpack.i.l.bf16 %v13838_v52 }
 0x991   : > { %9336 = vrot.lane.b32.xlu0 %v13347_v21, %s10398_s10  ;;  %9301 = vrot.lane.b32.xlu2 %v13327_v47, %s10398_s10  ;;  %v13846_v47 = vpop.permute.xlu0 %9201 }
 0x992   : > { %9296 = vrot.lane.b32.xlu1 %v13316_v27, %s10398_s10  ;;  %v16271_v27 = vld [vmem:[#allocation9_spill] sm:$0xff]  ;;  %v9203_v14 = vunpack.i.l.bf16 %v13846_v47 }
 0x999   : > { %9351 = vrot.lane.b32.xlu0 %v13392_v6, %s10398_s10  ;;  %9316 = vrot.lane.b32.xlu2 %v13345_v18, %s10398_s10  ;;  %v16273_v18 = vld [vmem:[#allocation24_spill] sm:$0xff] }
 0x99a   : > { %9311 = vrot.lane.b32.xlu1 %v13319_v32, %s10398_s10  ;;  %v13844_v32 = vpop.permute.xlu2 %9196  ;;  %v13856_v21 = vpack.i.bf16 %v16273_v18, %v16249_v25 }
 0x99b   : > { %v9199_v35 = vunpack.i.h.bf16 %v13844_v32 }
 0x9a1   : > { %9366 = vrot.lane.b32.xlu0 %v16249_v25, %s10389_s23  ;;  %9331 = vrot.lane.b32.xlu2 %v13364_v43, %s10398_s10  ;;  %v16274_v43 = vld [vmem:[#allocation22_spill] sm:$0xff] }
 0x9a2   : > { %9326 = vrot.lane.b32.xlu1 %v13356_v46, %s10398_s10  ;;  %v13852_v40 = vpop.permute.xlu2 %9211  ;;  %v13858_v46 = vpop.permute.xlu0 %9216 }
 0x9a3   : > { %v9214_v31 = vunpack.i.h.bf16 %v13852_v40  ;;  %v9213_v4 = vunpack.i.l.bf16 %v13852_v40  ;;  %v9198_v40 = vunpack.i.l.bf16 %v13844_v32 }
 0x9a5   : > { %v4366_v12 = vsel %vm912_vm9, %v9213_v4, %v9214_v31 }
 0x9a9   : > { %9381 = vrot.lane.b32.xlu0 %v13283_v62, %s10399_s11  ;;  %9346 = vrot.lane.b32.xlu2 %v13376_v60, %s10398_s10  ;;  %v13864_v60 = vpop.permute.xlu1 %9191 }
 0x9aa   : > { %9341 = vrot.lane.b32.xlu1 %v16269_v20, %s10398_s10  ;;  %v13866_v6 = vpop.permute.xlu2 %9226  ;;  %v13870_v39 = vpop.permute.xlu0 %9231 }
 0x9ab   : > { %v9228_v30 = vunpack.i.l.bf16 %v13866_v6 }
 0x9b1   : > { %9361 = vrot.lane.b32.xlu2 %v16270_v56, %s10398_s10  ;;  %v13872_v10 = vpop.permute.xlu1 %9206 }
 0x9b2   : > { %9356 = vrot.lane.b32.xlu1 %v16271_v27, %s10398_s10  ;;  %v4362_v27 = vsel %vm912_vm9, %v9199_v35, %v9203_v14 }
 0x9b9   : > { %9376 = vrot.lane.b32.xlu2 %v16272_v61, %s10399_s11  ;;  %v13882_v7 = vpop.permute.xlu1 %9221 }
 0x9ba   : > { %9371 = vrot.lane.b32.xlu1 %v16249_v25, %s10390_s24  ;;  %v9224_v42 = vunpack.i.h.bf16 %v13882_v7 }
 0x9bc   : > { %v4370_v2 = vsel %vm912_vm9, %v9224_v42, %v9228_v30 }
 0x9c1   : > { %9391 = vrot.lane.b32.xlu2 %v16274_v43, %s10399_s11 }
 0x9c2   : > { %9386 = vrot.lane.b32.xlu1 %v13856_v21, %s10399_s11 }
 0x9ca   : > { %9401 = vrot.lane.b32.xlu1 %v16275_v29, %s10399_s11 }
 0x9cb   : > { %v13874_v53 = vpop.permute.xlu2 %9241 }
 0x9d2   : > { %9416 = vrot.lane.b32.xlu1 %v16276_v37, %s10399_s11 }
 0x9d3   : > { %v13878_v3 = vpop.permute.xlu0 %9246  ;;  %v13884_v22 = vpop.permute.xlu2 %9256 }
 0x9d4   : > { %v9249_v45 = vunpack.i.h.bf16 %v13878_v3  ;;  %v9259_v20 = vunpack.i.h.bf16 %v13884_v22  ;;  %v9258_v18 = vunpack.i.l.bf16 %v13884_v22  ;;  %v4358_v22 = vsel %vm912_vm9, %v9188_v26, %v9189_v24 }
 0x9d6   : > { %v4381_v4 = vsel %vm912_vm9, %v9258_v18, %v9259_v20  ;;  %v9194_v20 = vunpack.i.h.bf16 %v13864_v60 }
 0x9d8   : > { %v4361_v32 = vsel %vm912_vm9, %v9194_v20, %v9198_v40 }
 0x9da   : > { %9431 = vrot.lane.b32.xlu1 %v13781_v48, %s10399_s11 }
 0x9db   : > { %v9262_v34 = vpop.permute.xlu0 %9261  ;;  %v13893_v58 = vpop.permute.xlu2 %9271 }
 0x9dc   : > { %v9264_v0 = vunpack.i.h.bf16 %v9262_v34  ;;  %v9263_v41 = vunpack.i.l.bf16 %v9262_v34  ;;  %16277 = vst [vmem:[#allocation27_spill] sm:$0xff] %v13893_v58  ;;  %v9273_v28 = vunpack.i.l.bf16 %v13893_v58 }
 0x9de   : > { %v4382_v13 = vsel %vm912_vm9, %v9263_v41, %v9264_v0 }
 0x9df   : > { %4426 = vmatpush.msra.mxu0 %v4382_v13 }
 0x9e2   : > { %9446 = vrot.lane.b32.xlu1 %v13795_v50, %s10399_s11 }
 0x9e3   : > { %v13889_v17 = vpop.permute.xlu0 %9276  ;;  %v13906_v59 = vpop.permute.xlu2 %9286 }
 0x9e4   : > { %v13891_v38 = vpop.permute.xlu1 %9236 }
 0x9e5   : > { %v9239_v44 = vunpack.i.h.bf16 %v13891_v38  ;;  %v9238_v11 = vunpack.i.l.bf16 %v13891_v38  ;;  %v9244_v38 = vunpack.i.h.bf16 %v13874_v53 }
 0x9e7   : > { %v4374_v23 = vsel %vm912_vm9, %v9238_v11, %v9239_v44  ;;  %v9233_v11 = vunpack.i.l.bf16 %v13870_v39 }
 0x9ea   : > { %4785 = vrot.lane.b32.xlu1 %v13738_v15, %s10399_s11 }
 0x9eb   : > { %v13897_v63 = vpop.permute.xlu0 %9291  ;;  %v13939_v42 = vpop.permute.xlu2 %9301 }
 0x9ec   : > { %v9252_v51 = vpop.permute.xlu1 %9251 }
 0x9ed   : > { %v9253_v9 = vunpack.i.l.bf16 %v9252_v51  ;;  %v9254_v56 = vunpack.i.h.bf16 %v9252_v51  ;;  %v9248_v51 = vunpack.i.l.bf16 %v13878_v3 }
 0x9ef   : > { %v4378_v33 = vsel %vm912_vm9, %v9249_v45, %v9253_v9  ;;  %v9243_v45 = vunpack.i.l.bf16 %v13874_v53  ;;  %v4379_v53 = vsel %vm912_vm9, %v9253_v9, %v9254_v56  ;;  %v4380_v3 = vsel %vm912_vm9, %v9254_v56, %v9258_v18 }
 0x9f0   : > { %4427 = vmatpush.msra.mxu0 %v4378_v33  ;;  %v9234_v33 = vunpack.i.h.bf16 %v13870_v39  ;;  %v4377_v39 = vsel %vm912_vm9, %v9244_v38, %v9248_v51  ;;  %v9193_v56 = vunpack.i.l.bf16 %v13864_v60 }
 0x9f1   : > { %v4376_v9 = vsel %vm912_vm9, %v9243_v45, %v9244_v38 }
 0x9f2   : > { %9471 = vrot.lane.b32.xlu1 %v13856_v21, %s10400_s12  ;;  %4428 = vmatpush.msra.mxu0 %v4374_v23 }
 0x9f3   : > { %v13913_v49 = vpop.permute.xlu0 %9306 }
 0x9f4   : > { %v9267_v57 = vpop.permute.xlu1 %9266  ;;  %4429 = vmatpush.msra.mxu0 %v4370_v2  ;;  %v9218_v2 = vunpack.i.l.bf16 %v13858_v46 }
 0x9f5   : > { %v9269_v5 = vunpack.i.h.bf16 %v9267_v57  ;;  %v9268_v1 = vunpack.i.l.bf16 %v9267_v57  ;;  %v4375_v57 = vsel %vm912_vm9, %v9239_v44, %v9243_v45  ;;  %v4373_v44 = vsel %vm912_vm9, %v9233_v11, %v9234_v33 }
 0x9f6   : > { %4430 = vmatpush.msra.mxu0 %v4366_v12  ;;  %v9204_v12 = vunpack.i.h.bf16 %v13846_v47  ;;  %v4359_v47 = vsel %vm912_vm9, %v9189_v24, %v9193_v56 }
 0x9f7   : > { %v4383_v34 = vsel %vm912_vm9, %v9264_v0, %v9268_v1  ;;  %v4384_v41 = vsel %vm912_vm9, %v9268_v1, %v9269_v5  ;;  %v4385_v13 = vsel %vm912_vm9, %v9269_v5, %v9273_v28  ;;  %v9229_v0 = vunpack.i.h.bf16 %v13866_v6 }
 0x9f8   : > { %4431 = vmatpush.msra.mxu0 %v4362_v27  ;;  %4446 = vmatpush.msra.mxu1 %v4383_v34  ;;  %v9219_v6 = vunpack.i.h.bf16 %v13858_v46  ;;  %v9209_v46 = vunpack.i.h.bf16 %v13872_v10  ;;  %v9208_v5 = vunpack.i.l.bf16 %v13872_v10  ;;  %v9223_v1 = vunpack.i.l.bf16 %v13882_v7  ;;  %v13980_v34 = vpop.permute.xlu2 %9316 }
 0x9f9   : > { %4466 = vmatpush.msra.mxu2 %v4384_v41  ;;  %4486 = vmatpush.msra.mxu3 %v4385_v13  ;;  %v4371_v26 = vsel %vm912_vm9, %v9228_v30, %v9229_v0  ;;  %v4372_v28 = vsel %vm912_vm9, %v9229_v0, %v9233_v11  ;;  %v4367_v30 = vsel %vm912_vm9, %v9214_v31, %v9218_v2 }
 0x9fa   : > { %9486 = vrot.lane.b32.xlu1 %v16275_v29, %s10400_s12  ;;  %4432 = vmatpush.msra.mxu0 %v4358_v22  ;;  %v4368_v27 = vsel %vm912_vm9, %v9218_v2, %v9219_v6  ;;  %v4369_v10 = vsel %vm912_vm9, %v9219_v6, %v9223_v1  ;;  %v4363_v7 = vsel %vm912_vm9, %v9203_v14, %v9204_v12 }
 0x9fb   : > { %4447 = vmatpush.msra.mxu1 %v4379_v53  ;;  %4467 = vmatpush.msra.mxu2 %v4380_v3  ;;  %v13947_v23 = vpop.permute.xlu0 %9321  ;;  %v4364_v60 = vsel %vm912_vm9, %v9204_v12, %v9208_v5  ;;  %v4365_v31 = vsel %vm912_vm9, %v9208_v5, %v9209_v46  ;;  %v4360_v14 = vsel %vm912_vm9, %v9193_v56, %v9194_v20  ;;  %v16278_v53 = vld [vmem:[#allocation16_spill] sm:$0xff]  ;;  %v9303_v46 = vunpack.i.l.bf16 %v13939_v42 }
 0x9fc   : > { %4487 = vmatpush.msra.mxu3 %v4381_v4  ;;  %v13951_v35 = vpop.permute.xlu1 %9281  ;;  %v9318_v5 = vunpack.i.l.bf16 %v13980_v34 }
 0x9fd   : > { %4448 = vmatpush.msra.mxu1 %v4375_v57  ;;  %4468 = vmatpush.msra.mxu2 %v4376_v9 }
 0x9fe   : > { %4488 = vmatpush.msra.mxu3 %v4377_v39 }
 0x9ff   : > { %4449 = vmatpush.msra.mxu1 %v4371_v26  ;;  %4469 = vmatpush.msra.mxu2 %v4372_v28  ;;  %v9304_v28 = vunpack.i.h.bf16 %v13939_v42 }
 0xa00   : > { %4489 = vmatpush.msra.mxu3 %v4373_v44  ;;  %v13993_v22 = vpop.permute.xlu2 %9331  ;;  %v9293_v44 = vunpack.i.l.bf16 %v13897_v63 }
 0xa01   : > { %4450 = vmatpush.msra.mxu1 %v4367_v30  ;;  %4470 = vmatpush.msra.mxu2 %v4368_v27  ;;  %v9279_v30 = vunpack.i.h.bf16 %v13889_v17  ;;  %v9278_v27 = vunpack.i.l.bf16 %v13889_v17 }
 0xa02   : > { %4490 = vmatpush.msra.mxu3 %v4369_v10  ;;  %9501 = vrot.lane.b32.xlu1 %v16276_v37, %s10400_s12  ;;  %v9289_v10 = vunpack.i.h.bf16 %v13906_v59 }
 0xa03   : > { %4451 = vmatpush.msra.mxu1 %v4363_v7  ;;  %4471 = vmatpush.msra.mxu2 %v4364_v60  ;;  %v13978_v18 = vpop.permute.xlu0 %9336 }
 0xa04   : > { %4491 = vmatpush.msra.mxu3 %v4365_v31  ;;  %v13982_v41 = vpop.permute.xlu1 %9296  ;;  %v9339_v2 = vunpack.i.h.bf16 %v13978_v18 }
 0xa05   : > { %4452 = vmatpush.msra.mxu1 %v4359_v47  ;;  %4472 = vmatpush.msra.mxu2 %v4360_v14  ;;  %v4575_v47 = vsel %vm1122_vm10, %v9303_v46, %v9304_v28 }
 0xa06   : > { %4492 = vmatpush.msra.mxu3 %v4361_v32  ;;  %v4571_v32 = vsel %vm1122_vm10, %v9289_v10, %v9293_v44  ;;  %v9298_v10 = vunpack.i.l.bf16 %v13982_v41 }
 0xa08   : > { %v9347_v4 = vpop.permute.xlu2 %9346 }
 0xa0a   : > { %9516 = vrot.lane.b32.xlu1 %v13781_v48, %s10400_s12 }
 0xa0b   : > { %v9352_v13 = vpop.permute.xlu0 %9351 }
 0xa0c   : > { %v9354_v38 = vunpack.i.h.bf16 %v9352_v13  ;;  %v9353_v45 = vunpack.i.l.bf16 %v9352_v13  ;;  %v13991_v51 = vpop.permute.xlu1 %9311  ;;  %v9348_v13 = vunpack.i.l.bf16 %v9347_v4 }
 0xa0d   : > { %v9314_v12 = vunpack.i.h.bf16 %v13991_v51 }
 0xa0e   : > { %v4591_v52 = vsel %vm1122_vm10, %v9353_v45, %v9354_v38 }
 0xa0f   : > { %4635 = vmatpush.msrb.mxu0 %v4591_v52  ;;  %v4579_v56 = vsel %vm1122_vm10, %v9314_v12, %v9318_v5  ;;  %v9309_v12 = vunpack.i.h.bf16 %v13913_v49 }
 0xa10   : > { %v14021_v20 = vpop.permute.xlu2 %9361 }
 0xa11   : > { %16279 = vst [vmem:[#allocation19_spill] sm:$0xff] %v14021_v20  ;;  %v9363_v60 = vunpack.i.l.bf16 %v14021_v20 }
 0xa12   : > { %9531 = vrot.lane.b32.xlu1 %v13795_v50, %s10400_s12 }
 0xa13   : > { %v13998_v24 = vpop.permute.xlu0 %9366 }
 0xa14   : > { %v9368_v0 = vunpack.i.l.bf16 %v13998_v24  ;;  %v14001_v11 = vpop.permute.xlu1 %9326 }
 0xa15   : > { %v9329_v57 = vunpack.i.h.bf16 %v14001_v11  ;;  %v9328_v9 = vunpack.i.l.bf16 %v14001_v11  ;;  %v9334_v11 = vunpack.i.h.bf16 %v13993_v22 }
 0xa16   : > { %v4708_v3 = vsel %vm233_vm0, %v16278_v53, %v9368_v0  ;;  %v9333_v53 = vunpack.i.l.bf16 %v13993_v22 }
 0xa17   : > { %v14005_v33 = vpack.i.bf16 %v9368_v0, %v4708_v3  ;;  %v4583_v1 = vsel %vm1122_vm10, %v9328_v9, %v9329_v57  ;;  %v9338_v3 = vunpack.i.l.bf16 %v13978_v18  ;;  %v9324_v18 = vunpack.i.h.bf16 %v13947_v23 }
 0xa18   : > { %v4585_v46 = vsel %vm1122_vm10, %v9333_v53, %v9334_v11 }
 0xa19   : > { %9396 = vrot.lane.b32.xlu0 %v14005_v33, %s10399_s11 }
 0xa1a   : > { %5000 = vrot.lane.b32.xlu1 %v13738_v15, %s10400_s12 }
 0xa1c   : > { %v9342_v6 = vpop.permute.xlu1 %9341 }
 0xa1d   : > { %v9343_v39 = vunpack.i.l.bf16 %v9342_v6  ;;  %v9344_v14 = vunpack.i.h.bf16 %v9342_v6  ;;  %v9323_v6 = vunpack.i.l.bf16 %v13947_v23  ;;  %v4586_v23 = vsel %vm1122_vm10, %v9334_v11, %v9338_v3 }
 0xa1f   : > { %v4587_v26 = vsel %vm1122_vm10, %v9339_v2, %v9343_v39  ;;  %v4588_v22 = vsel %vm1122_vm10, %v9343_v39, %v9344_v14  ;;  %v4589_v2 = vsel %vm1122_vm10, %v9344_v14, %v9348_v13  ;;  %v9313_v39 = vunpack.i.l.bf16 %v13991_v51  ;;  %v16280_v51 = vld [vmem:[#allocation23_spill] sm:$0xff] }
 0xa20   : > { %4636 = vmatpush.msrb.mxu0 %v4587_v26 }
 0xa22   : > { %9556 = vrot.lane.b32.xlu1 %v13856_v21, %s10401_s13  ;;  %4637 = vmatpush.msrb.mxu0 %v4583_v1  ;;  %v9349_v21 = vunpack.i.h.bf16 %v9347_v4  ;;  %v4567_v4 = vsel %vm1122_vm10, %v9278_v27, %v9279_v30 }
 0xa24   : > { %v9357_v7 = vpop.permute.xlu1 %9356  ;;  %4638 = vmatpush.msrb.mxu0 %v4579_v56  ;;  %v4590_v9 = vsel %vm1122_vm10, %v9348_v13, %v9349_v21  ;;  %v9294_v56 = vunpack.i.h.bf16 %v13897_v63  ;;  %v16282_v21 = vld [vmem:[#allocation28_spill] sm:$0xff]  ;;  %v9283_v13 = vunpack.i.l.bf16 %v13951_v35 }
 0xa25   : > { %v9359_v40 = vunpack.i.h.bf16 %v9357_v7  ;;  %v9358_v31 = vunpack.i.l.bf16 %v9357_v7 }
 0xa26   : > { %4639 = vmatpush.msrb.mxu0 %v4575_v47  ;;  %v4572_v42 = vsel %vm1122_vm10, %v9293_v44, %v9294_v56  ;;  %v7242_v44 = vld [vmem:[%s16005_s2 + $0x88] sm:$0xff] }
 0xa27   : > { %v4592_v45 = vsel %vm1122_vm10, %v9354_v38, %v9358_v31  ;;  %v4593_v52 = vsel %vm1122_vm10, %v9358_v31, %v9359_v40  ;;  %v4594_v0 = vsel %vm1122_vm10, %v9359_v40, %v9363_v60  ;;  %v9319_v38 = vunpack.i.h.bf16 %v13980_v34  ;;  %v16281_v60 = vld [vmem:[#allocation17_spill] sm:$0xff]  ;;  %7243 = vmatmul.msk.f32.vlgmr.msra.gmra.mxu0 %vm441_vm7, %v7242_v44  ;;  %7244 = vmatmul.msk.f32.vlgmr.msra.gmra.mxu1 %vm441_vm7, %v7242_v44 }
 0xa28   : > { %4640 = vmatpush.msrb.mxu0 %v4571_v32  ;;  %4655 = vmatpush.msrb.mxu1 %v4592_v45  ;;  %v9308_v34 = vunpack.i.l.bf16 %v13913_v49  ;;  %v9299_v31 = vunpack.i.h.bf16 %v13982_v41  ;;  %v9284_v32 = vunpack.i.h.bf16 %v13951_v35  ;;  %v4578_v45 = vsel %vm1122_vm10, %v9309_v12, %v9313_v39 }
 0xa29   : > { %4675 = vmatpush.msrb.mxu2 %v4593_v52  ;;  %4695 = vmatpush.msrb.mxu3 %v4594_v0  ;;  %v4580_v49 = vsel %vm1122_vm10, %v9318_v5, %v9319_v38  ;;  %v4581_v27 = vsel %vm1122_vm10, %v9319_v38, %v9323_v6  ;;  %v4573_v41 = vsel %vm1122_vm10, %v9294_v56, %v9298_v10  ;;  %v9288_v35 = vunpack.i.l.bf16 %v13906_v59  ;;  %v16283_v59 = vld [vmem:[#allocation6_spill] sm:$0xff]  ;;  %v14170_v0 = vpop.permute.xlu0 %9381 }
 0xa2a   : > { %9571 = vrot.lane.b32.xlu1 %v16275_v29, %s10401_s13  ;;  %4641 = vmatpush.msrb.mxu0 %v4567_v4  ;;  %v4584_v29 = vsel %vm1122_vm10, %v9329_v57, %v9333_v53  ;;  %v4582_v57 = vsel %vm1122_vm10, %v9323_v6, %v9324_v18  ;;  %v4576_v5 = vsel %vm1122_vm10, %v9304_v28, %v9308_v34 }
 0xa2b   : > { %4656 = vmatpush.msrb.mxu1 %v4588_v22  ;;  %4676 = vmatpush.msrb.mxu2 %v4589_v2  ;;  %v4577_v47 = vsel %vm1122_vm10, %v9308_v34, %v9309_v12  ;;  %v4574_v28 = vsel %vm1122_vm10, %v9298_v10, %v9299_v31  ;;  %v4568_v52 = vsel %vm1122_vm10, %v9279_v30, %v9283_v13 }
 0xa2c   : > { %4696 = vmatpush.msrb.mxu3 %v4590_v9  ;;  %v14055_v26 = vpop.permute.xlu1 %9371  ;;  %v4570_v63 = vsel %vm1122_vm10, %v9284_v32, %v9288_v35  ;;  %7245 = vmatmul.msk.f32.vlgmr.msra.gmra.mxu2 %vm441_vm7, %v7242_v44 }
 0xa2d   : > { %v9373_v1 = vunpack.i.l.bf16 %v14055_v26  ;;  %4657 = vmatpush.msrb.mxu1 %v4584_v29  ;;  %4677 = vmatpush.msrb.mxu2 %v4585_v46 }
 0xa2e   : > { %4697 = vmatpush.msrb.mxu3 %v4586_v23 }
 0xa2f   : > { %4658 = vmatpush.msrb.mxu1 %v4580_v49  ;;  %4678 = vmatpush.msrb.mxu2 %v4581_v27  ;;  %v14068_v7 = vpack.i.bf16 %v16280_v51, %v9373_v1  ;;  %v4711_v40 = vsel %vm248_vm1, %v16281_v60, %v9373_v1 }
 0xa30   : > { %4698 = vmatpush.msrb.mxu3 %v4582_v57  ;;  %v9405_v14 = vpack.i.bf16 %v4711_v40, %v16282_v21 }
 0xa31   : > { %4659 = vmatpush.msrb.mxu1 %v4576_v5  ;;  %4679 = vmatpush.msrb.mxu2 %v4577_v47 }
 0xa32   : > { %4699 = vmatpush.msrb.mxu3 %v4578_v45  ;;  %9411 = vrot.lane.b32.xlu0 %v14068_v7, %s10399_s11 }
 0xa33   : > { %9586 = vrot.lane.b32.xlu1 %v16276_v37, %s10401_s13  ;;  %9406 = vrot.lane.b32.xlu2 %v9405_v14, %s10399_s11  ;;  %v4569_v37 = vsel %vm1122_vm10, %v9283_v13, %v9284_v32 }
 0xa34   : > { %4660 = vmatpush.msrb.mxu1 %v4572_v42  ;;  %4680 = vmatpush.msrb.mxu2 %v4573_v41 }
 0xa35   : > { %4700 = vmatpush.msrb.mxu3 %v4574_v28 }
 0xa36   : > { %4661 = vmatpush.msrb.mxu1 %v4568_v52  ;;  %4681 = vmatpush.msrb.mxu2 %v4569_v37 }
 0xa37   : > { %4701 = vmatpush.msrb.mxu3 %v4570_v63 }
 0xa38   : > { %7246 = vmatmul.msk.f32.vlgmr.msra.gmra.mxu3 %vm441_vm7, %v7242_v44 }
 0xa3a   : > { %9426 = vrot.lane.b32.xlu0 %v13783_v19, %s10399_s11 }
 0xa3b   : > { %9601 = vrot.lane.b32.xlu1 %v13781_v48, %s10401_s13  ;;  %9421 = vrot.lane.b32.xlu2 %v16283_v59, %s10399_s11  ;;  %v14138_v48 = vpop.permute.xlu2 %9376 }
 0xa3c   : > { %v9378_v60 = vunpack.i.l.bf16 %v14138_v48 }
 0xa42   : > { %9441 = vrot.lane.b32.xlu0 %v13797_v36, %s10399_s11 }
 0xa43   : > { %9616 = vrot.lane.b32.xlu1 %v13795_v50, %s10401_s13  ;;  %9436 = vrot.lane.b32.xlu2 %v13736_v55, %s10399_s11  ;;  %v14148_v17 = vpop.permute.xlu2 %9391 }
 0xa44   : > { %v9393_v40 = vunpack.i.l.bf16 %v14148_v17 }
 0xa4a   : > { %9456 = vrot.lane.b32.xlu0 %v13760_v54, %s10399_s11 }
 0xa4b   : > { %5215 = vrot.lane.b32.xlu1 %v13738_v15, %s10401_s13  ;;  %9451 = vrot.lane.b32.xlu2 %v13762_v8, %s10399_s11  ;;  %v14134_v15 = vpop.permute.xlu1 %9386 }
 0xa4c   : > { %v9389_v57 = vunpack.i.h.bf16 %v14134_v15 }
 0xa4e   : > { %v4791_v42 = vsel %vm1343_vm11, %v9389_v57, %v9393_v40 }
 0xa52   : > { %9466 = vrot.lane.b32.xlu0 %v13283_v62, %s10400_s12 }
 0xa53   : > { %9461 = vrot.lane.b32.xlu2 %v16272_v61, %s10400_s12  ;;  %v14142_v50 = vpop.permute.xlu1 %9401 }
 0xa54   : > { %v9404_v23 = vunpack.i.h.bf16 %v14142_v50  ;;  %v9403_v56 = vunpack.i.l.bf16 %v14142_v50 }
 0xa56   : > { %v4795_v32 = vsel %vm1343_vm11, %v9403_v56, %v9404_v23 }
 0xa5a   : > { %9481 = vrot.lane.b32.xlu0 %v14005_v33, %s10400_s12 }
 0xa5b   : > { %9476 = vrot.lane.b32.xlu2 %v16274_v43, %s10400_s12  ;;  %v14155_v30 = vpop.permute.xlu1 %9416 }
 0xa5c   : > { %v9418_v49 = vunpack.i.l.bf16 %v14155_v30 }
 0xa62   : > { %9496 = vrot.lane.b32.xlu0 %v14068_v7, %s10400_s12 }
 0xa63   : > { %9491 = vrot.lane.b32.xlu2 %v9405_v14, %s10400_s12 }
 0xa6a   : > { %9511 = vrot.lane.b32.xlu0 %v13783_v19, %s10400_s12 }
 0xa6b   : > { %9506 = vrot.lane.b32.xlu2 %v16283_v59, %s10400_s12 }
 0xa72   : > { %9526 = vrot.lane.b32.xlu0 %v13797_v36, %s10400_s12 }
 0xa73   : > { %9521 = vrot.lane.b32.xlu2 %v13736_v55, %s10400_s12 }
 0xa7a   : > { %9541 = vrot.lane.b32.xlu0 %v13760_v54, %s10400_s12 }
 0xa7b   : > { %9536 = vrot.lane.b32.xlu2 %v13762_v8, %s10400_s12 }
 0xa82   : > { %9551 = vrot.lane.b32.xlu0 %v13283_v62, %s10401_s13 }
 0xa83   : > { %9546 = vrot.lane.b32.xlu2 %v16272_v61, %s10401_s13  ;;  %v14165_v61 = vpop.permute.xlu1 %9431 }
 0xa84   : > { %v9434_v52 = vunpack.i.h.bf16 %v14165_v61  ;;  %v9433_v37 = vunpack.i.l.bf16 %v14165_v61 }
 0xa8a   : > { %9566 = vrot.lane.b32.xlu0 %v14005_v33, %s10401_s13 }
 0xa8b   : > { %9561 = vrot.lane.b32.xlu2 %v16274_v43, %s10401_s13  ;;  %v7236_v43 = vld [vmem:[%s16005_s2 + $0x78] sm:$0xff]  ;;  %v14182_v33 = vpop.permute.xlu1 %9446  ;;  %v14184_v53 = vpop.permute.xlu0 %9396 }
 0xa8c   : > { %7247 = vmatmul.msk.f32.vlgmr.msrb.gmra.mxu0 %vm441_vm7, %v7236_v43  ;;  %7248 = vmatmul.msk.f32.vlgmr.msrb.gmra.mxu1 %vm441_vm7, %v7236_v43  ;;  %v9449_v13 = vunpack.i.h.bf16 %v14182_v33  ;;  %v9448_v45 = vunpack.i.l.bf16 %v14182_v33  ;;  %v7251_v33 = vld [vmem:[%s16005_s2 + $0x90] sm:$0xff] }
 0xa8d   : > { %v14163_v62 = vpop.permute.xlu2 %9406  ;;  %7249 = vmatmul.msk.f32.vlgmr.msrb.gmra.mxu2 %vm441_vm7, %v7236_v43  ;;  %7250 = vmatmul.msk.f32.vlgmr.msrb.gmra.mxu3 %vm441_vm7, %v7236_v43 }
 0xa92   : > { %9581 = vrot.lane.b32.xlu0 %v14068_v7, %s10401_s13  ;;  %v9379_v7 = vunpack.i.h.bf16 %v14138_v48 }
 0xa93   : > { %9576 = vrot.lane.b32.xlu2 %v9405_v14, %s10401_s13  ;;  %v4786_v38 = vpop.permute.xlu1 %4785 }
 0xa94   : > { %v4787_v44 = vsel %vm1343_vm11, %v9378_v60, %v9379_v7 }
 0xa95   : > { %v14172_v11 = vpop.permute.xlu2 %9421 }
 0xa96   : > { %v9424_v61 = vunpack.i.h.bf16 %v14172_v11 }
 0xa9a   : > { %9596 = vrot.lane.b32.xlu0 %v13783_v19, %s10401_s13 }
 0xa9b   : > { %9591 = vrot.lane.b32.xlu2 %v16283_v59, %s10401_s13  ;;  %v14204_v9 = vpop.permute.xlu1 %9471  ;;  %v9419_v59 = vunpack.i.h.bf16 %v14155_v30 }
 0xa9d   : > { %v14188_v3 = vpop.permute.xlu2 %9436 }
 0xa9e   : > { %v9439_v34 = vunpack.i.h.bf16 %v14188_v3  ;;  %v9438_v63 = vunpack.i.l.bf16 %v14188_v3  ;;  %v9423_v3 = vunpack.i.l.bf16 %v14172_v11 }
 0xaa2   : > { %9611 = vrot.lane.b32.xlu0 %v13797_v36, %s10401_s13 }
 0xaa3   : > { %9606 = vrot.lane.b32.xlu2 %v13736_v55, %s10401_s13  ;;  %v7266_v55 = vld [vmem:[%s16006_s3 + $0x18] sm:$0xff]  ;;  %v14218_v10 = vpop.permute.xlu1 %9486 }
 0xaa4   : > { %v14195_v19 = vpop.permute.xlu0 %9411 }
 0xaa5   : > { %v9452_v4 = vpop.permute.xlu2 %9451 }
 0xaa6   : > { %v9454_v6 = vunpack.i.h.bf16 %v9452_v4  ;;  %v9453_v22 = vunpack.i.l.bf16 %v9452_v4  ;;  %v4810_v4 = vsel %vm1343_vm11, %v9448_v45, %v9449_v13 }
 0xaa8   : > { %v4811_v2 = vsel %vm1343_vm11, %v9453_v22, %v9454_v6 }
 0xaa9   : > { %4855 = vmatpush.msra.mxu0 %v4811_v2  ;;  %v9409_v2 = vunpack.i.h.bf16 %v14163_v62 }
 0xaaa   : > { %9626 = vrot.lane.b32.xlu0 %v13760_v54, %s10401_s13 }
 0xaab   : > { %9621 = vrot.lane.b32.xlu2 %v13762_v8, %s10401_s13  ;;  %v9414_v8 = vunpack.i.h.bf16 %v14195_v19  ;;  %v14255_v22 = vpop.permute.xlu1 %9501 }
 0xaac   : > { %v9427_v18 = vpop.permute.xlu0 %9426 }
 0xaad   : > { %v14202_v36 = vpop.permute.xlu2 %9461  ;;  %v9429_v29 = vunpack.i.h.bf16 %v9427_v18  ;;  %v9428_v46 = vunpack.i.l.bf16 %v9427_v18  ;;  %v4799_v51 = vsel %vm1343_vm11, %v9414_v8, %v9418_v49  ;;  %v9413_v18 = vunpack.i.l.bf16 %v14195_v19 }
 0xaae   : > { %v9398_v19 = vunpack.i.l.bf16 %v14184_v53  ;;  %v4802_v8 = vsel %vm1343_vm11, %v9423_v3, %v9424_v61  ;;  %v9503_v61 = vunpack.i.l.bf16 %v14255_v22 }
 0xaaf   : > { %v4803_v27 = vsel %vm1343_vm11, %v9428_v46, %v9429_v29  ;;  %v4800_v46 = vsel %vm1343_vm11, %v9418_v49, %v9419_v59  ;;  %v9388_v49 = vunpack.i.l.bf16 %v14134_v15  ;;  %v4798_v57 = vsel %vm1343_vm11, %v9409_v2, %v9413_v18 }
 0xab3   : > { %5380 = vperm.xlu2 %8854, %v7266_v55   ;;  %v4805_v55 = vsel %vm1343_vm11, %v9433_v37, %v9434_v52 }
 0xab4   : > { %v9442_v12 = vpop.permute.xlu0 %9441 }
 0xab5   : > { %v9443_v39 = vunpack.i.l.bf16 %v9442_v12  ;;  %v14210_v54 = vpop.permute.xlu2 %9476  ;;  %v9444_v5 = vunpack.i.h.bf16 %v9442_v12  ;;  %v4806_v12 = vsel %vm1343_vm11, %v9434_v52, %v9438_v63 }
 0xab7   : > { %v4807_v1 = vsel %vm1343_vm11, %v9439_v34, %v9443_v39  ;;  %v4808_v43 = vsel %vm1343_vm11, %v9443_v39, %v9444_v5  ;;  %v4809_v30 = vsel %vm1343_vm11, %v9444_v5, %v9448_v45  ;;  %v9394_v34 = vunpack.i.h.bf16 %v14148_v17 }
 0xab8   : > { %4856 = vmatpush.msra.mxu0 %v4807_v1  ;;  %v4801_v39 = vsel %vm1343_vm11, %v9419_v59, %v9423_v3  ;;  %v9383_v1 = vunpack.i.l.bf16 %v14170_v0 }
 0xab9   : > { %v4793_v50 = vsel %vm1343_vm11, %v9394_v34, %v9398_v19 }
 0xaba   : > { %4857 = vmatpush.msra.mxu0 %v4803_v27  ;;  %v9384_v27 = vunpack.i.h.bf16 %v14170_v0  ;;  %v4788_v15 = vsel %vm1343_vm11, %v9379_v7, %v9383_v1 }
 0xabc   : > { %v9457_v31 = vpop.permute.xlu0 %9456  ;;  %4858 = vmatpush.msra.mxu0 %v4799_v51  ;;  %v4792_v51 = vsel %vm1343_vm11, %v9393_v40, %v9394_v34  ;;  %v4789_v60 = vsel %vm1343_vm11, %v9383_v1, %v9384_v27  ;;  %v4790_v17 = vsel %vm1343_vm11, %v9384_v27, %v9388_v49 }
 0xabd   : > { %v9459_v47 = vunpack.i.h.bf16 %v9457_v31  ;;  %v9458_v21 = vunpack.i.l.bf16 %v9457_v31  ;;  %v14225_v14 = vpop.permute.xlu2 %9491  ;;  %v14294_v31 = vpop.permute.xlu1 %9516 }
 0xabe   : > { %4859 = vmatpush.msra.mxu0 %v4795_v32 }
 0xabf   : > { %v4812_v41 = vsel %vm1343_vm11, %v9454_v6, %v9458_v21  ;;  %v4813_v35 = vsel %vm1343_vm11, %v9458_v21, %v9459_v47  ;;  %v4814_v28 = vsel %vm1343_vm11, %v9459_v47, %v4786_v38  ;;  %v9408_v38 = vunpack.i.l.bf16 %v14163_v62 }
 0xac0   : > { %4860 = vmatpush.msra.mxu0 %v4791_v42  ;;  %4875 = vmatpush.msra.mxu1 %v4812_v41  ;;  %v4804_v6 = vsel %vm1343_vm11, %v9429_v29, %v9433_v37  ;;  %v9399_v62 = vunpack.i.h.bf16 %v14184_v53 }
 0xac1   : > { %4895 = vmatpush.msra.mxu2 %v4813_v35  ;;  %4915 = vmatpush.msra.mxu3 %v4814_v28  ;;  %v4796_v56 = vsel %vm1343_vm11, %v9404_v23, %v9408_v38  ;;  %v4797_v53 = vsel %vm1343_vm11, %v9408_v38, %v9409_v2  ;;  %v9474_v38 = vunpack.i.h.bf16 %v14204_v9  ;;  %v9464_v2 = vunpack.i.h.bf16 %v14202_v36 }
 0xac2   : > { %4861 = vmatpush.msra.mxu0 %v4787_v44  ;;  %4876 = vmatpush.msra.mxu1 %v4808_v43  ;;  %v4794_v23 = vsel %vm1343_vm11, %v9398_v19, %v9399_v62  ;;  %v9489_v43 = vunpack.i.h.bf16 %v14218_v10 }
 0xac3   : > { %4896 = vmatpush.msra.mxu2 %v4809_v30  ;;  %4916 = vmatpush.msra.mxu3 %v4810_v4  ;;  %v9478_v30 = vunpack.i.l.bf16 %v14210_v54 }
 0xac4   : > { %7252 = vmatmul.msk.f32.vlgmr.msra.gmra.mxu0 %vm441_vm7, %v7251_v33  ;;  %v14260_v11 = vpop.permute.xlu0 %9466  ;;  %4877 = vmatpush.msra.mxu1 %v4804_v6 }
 0xac5   : > { %4897 = vmatpush.msra.mxu2 %v4805_v55  ;;  %4917 = vmatpush.msra.mxu3 %v4806_v12  ;;  %v14265_v29 = vpop.permute.xlu2 %9506  ;;  %v9532_v21 = vpop.permute.xlu1 %9531  ;;  %v9463_v12 = vunpack.i.l.bf16 %v14202_v36  ;;  %v5006_v1 = vsel %vm1559_vm12, %v9474_v38, %v9478_v30 }
 0xac6   : > { %4878 = vmatpush.msra.mxu1 %v4800_v46 }
 0xac7   : > { %4898 = vmatpush.msra.mxu2 %v4801_v39  ;;  %4918 = vmatpush.msra.mxu3 %v4802_v8  ;;  %v9534_v39 = vunpack.i.h.bf16 %v9532_v21  ;;  %v9533_v8 = vunpack.i.l.bf16 %v9532_v21 }
 0xac8   : > { %4879 = vmatpush.msra.mxu1 %v4796_v56 }
 0xac9   : > { %4899 = vmatpush.msra.mxu2 %v4797_v53  ;;  %4919 = vmatpush.msra.mxu3 %v4798_v57  ;;  %v9519_v53 = vunpack.i.h.bf16 %v14294_v31  ;;  %v9518_v57 = vunpack.i.l.bf16 %v14294_v31  ;;  %v5025_v31 = vsel %vm1559_vm12, %v9533_v8, %v9534_v39 }
 0xaca   : > { %4880 = vmatpush.msra.mxu1 %v4792_v51 }
 0xacb   : > { %4900 = vmatpush.msra.mxu2 %v4793_v50  ;;  %4920 = vmatpush.msra.mxu3 %v4794_v23  ;;  %v9504_v50 = vunpack.i.h.bf16 %v14255_v22  ;;  %v5002_v23 = vsel %vm1559_vm12, %v9463_v12, %v9464_v2 }
 0xacc   : > { %v14288_v0 = vpop.permute.xlu0 %9481  ;;  %4881 = vmatpush.msra.mxu1 %v4788_v15 }
 0xacd   : > { %4901 = vmatpush.msra.mxu2 %v4789_v60  ;;  %4921 = vmatpush.msra.mxu3 %v4790_v17  ;;  %v14292_v40 = vpop.permute.xlu2 %9521  ;;  %v5001_v42 = vpop.permute.xlu1 %5000  ;;  %v7256_v60 = vld [vmem:[%s16005_s2 + $0x98] sm:$0xff]  ;;  %v9509_v17 = vunpack.i.h.bf16 %v14265_v29 }
 0xace   : > { %7253 = vmatmul.msk.f32.vlgmr.msra.gmra.mxu1 %vm441_vm7, %v7251_v33  ;;  %7254 = vmatmul.msk.f32.vlgmr.msra.gmra.mxu2 %vm441_vm7, %v7251_v33  ;;  %v9524_v35 = vunpack.i.h.bf16 %v14292_v40  ;;  %v9523_v51 = vunpack.i.l.bf16 %v14292_v40  ;;  %v9508_v40 = vunpack.i.l.bf16 %v14265_v29  ;;  %v5020_v29 = vsel %vm1559_vm12, %v9518_v57, %v9519_v53 }
 0xacf   : > { %7255 = vmatmul.msk.f32.vlgmr.msra.gmra.mxu3 %vm441_vm7, %v7251_v33  ;;  %v9488_v33 = vunpack.i.l.bf16 %v14218_v10 }
 0xad1   : > { %v5010_v55 = vsel %vm1559_vm12, %v9488_v33, %v9489_v43  ;;  %v9469_v33 = vunpack.i.h.bf16 %v14260_v11 }
 0xad4   : > { %v14299_v48 = vpop.permute.xlu0 %9496 }
 0xad5   : > { %v9537_v7 = vpop.permute.xlu2 %9536  ;;  %v9499_v59 = vunpack.i.h.bf16 %v14299_v48  ;;  %v14316_v6 = vpop.permute.xlu1 %9556  ;;  %v9498_v21 = vunpack.i.l.bf16 %v14299_v48  ;;  %v9484_v48 = vunpack.i.h.bf16 %v14288_v0 }
 0xad6   : > { %v9539_v5 = vunpack.i.h.bf16 %v9537_v7  ;;  %v9538_v47 = vunpack.i.l.bf16 %v9537_v7  ;;  %v9493_v7 = vunpack.i.l.bf16 %v14225_v14 }
 0xad7   : > { %v5014_v4 = vsel %vm1559_vm12, %v9499_v59, %v9503_v61  ;;  %v9468_v59 = vunpack.i.l.bf16 %v14260_v11 }
 0xad8   : > { %v5026_v32 = vsel %vm1559_vm12, %v9538_v47, %v9539_v5  ;;  %v9494_v47 = vunpack.i.h.bf16 %v14225_v14 }
 0xad9   : > { %5070 = vmatpush.msrb.mxu0 %v5026_v32  ;;  %v5003_v11 = vsel %vm1559_vm12, %v9464_v2, %v9468_v59 }
 0xadc   : > { %v9512_v13 = vpop.permute.xlu0 %9511 }
 0xadd   : > { %v14302_v45 = vpop.permute.xlu2 %9546  ;;  %v9514_v28 = vunpack.i.h.bf16 %v9512_v13  ;;  %v9513_v52 = vunpack.i.l.bf16 %v9512_v13  ;;  %v5021_v13 = vsel %vm1559_vm12, %v9519_v53, %v9523_v51  ;;  %v14359_v14 = vpop.permute.xlu1 %9571 }
 0xade   : > { %v9574_v51 = vunpack.i.h.bf16 %v14359_v14 }
 0xadf   : > { %v5018_v3 = vsel %vm1559_vm12, %v9513_v52, %v9514_v28  ;;  %v5016_v52 = vsel %vm1559_vm12, %v9504_v50, %v9508_v40 }
 0xae4   : > { %v9527_v41 = vpop.permute.xlu0 %9526 }
 0xae5   : > { %v9528_v37 = vunpack.i.l.bf16 %v9527_v41  ;;  %v14305_v63 = vpop.permute.xlu2 %9561  ;;  %v9529_v34 = vunpack.i.h.bf16 %v9527_v41  ;;  %v14390_v36 = vpop.permute.xlu1 %9586 }
 0xae7   : > { %v5022_v44 = vsel %vm1559_vm12, %v9524_v35, %v9528_v37  ;;  %v5023_v15 = vsel %vm1559_vm12, %v9528_v37, %v9529_v34  ;;  %v5024_v22 = vsel %vm1559_vm12, %v9529_v34, %v9533_v8  ;;  %v5015_v35 = vsel %vm1559_vm12, %v9503_v61, %v9504_v50 }
 0xae8   : > { %5071 = vmatpush.msrb.mxu0 %v5022_v44  ;;  %v5017_v37 = vsel %vm1559_vm12, %v9508_v40, %v9509_v17  ;;  %v5011_v44 = vsel %vm1559_vm12, %v9489_v43, %v9493_v7  ;;  %v5012_v61 = vsel %vm1559_vm12, %v9493_v7, %v9494_v47  ;;  %v9573_v50 = vunpack.i.l.bf16 %v14359_v14 }
 0xae9   : > { %v9559_v40 = vunpack.i.h.bf16 %v14316_v6 }
 0xaea   : > { %5072 = vmatpush.msrb.mxu0 %v5018_v3  ;;  %v5225_v7 = vsel %vm1775_vm13, %v9573_v50, %v9574_v51  ;;  %v3929_v50 = vpop.f32.mrf.mxu1 }
 0xaec   : > { %v9542_v18 = vpop.permute.xlu0 %9541  ;;  %5073 = vmatpush.msrb.mxu0 %v5014_v4  ;;  %v9473_v4 = vunpack.i.l.bf16 %v14204_v9 }
 0xaed   : > { %v9544_v46 = vunpack.i.h.bf16 %v9542_v18  ;;  %v9543_v62 = vunpack.i.l.bf16 %v9542_v18  ;;  %v14323_v19 = vpop.permute.xlu2 %9576 }
 0xaee   : > { %5074 = vmatpush.msrb.mxu0 %v5010_v55 }
 0xaef   : > { %v5027_v56 = vsel %vm1559_vm12, %v9539_v5, %v9543_v62  ;;  %v5028_v27 = vsel %vm1559_vm12, %v9543_v62, %v9544_v46  ;;  %v5029_v49 = vsel %vm1559_vm12, %v9544_v46, %v5001_v42  ;;  %v5019_v5 = vsel %vm1559_vm12, %v9514_v28, %v9518_v57  ;;  %v14395_v46 = vpop.permute.xlu1 %9601 }
 0xaf0   : > { %5075 = vmatpush.msrb.mxu0 %v5006_v1  ;;  %5090 = vmatpush.msrb.mxu1 %v5027_v56  ;;  %v9479_v42 = vunpack.i.h.bf16 %v14210_v54  ;;  %v9483_v28 = vunpack.i.l.bf16 %v14288_v0  ;;  %v5013_v0 = vsel %vm1559_vm12, %v9494_v47, %v9498_v21  ;;  %v5004_v54 = vsel %vm1559_vm12, %v9468_v59, %v9469_v33 }
 0xaf1   : > { %5110 = vmatpush.msrb.mxu2 %v5028_v27  ;;  %5130 = vmatpush.msrb.mxu3 %v5029_v49  ;;  %v9604_v59 = vunpack.i.h.bf16 %v14395_v46 }
 0xaf2   : > { %5076 = vmatpush.msrb.mxu0 %v5002_v23  ;;  %5091 = vmatpush.msrb.mxu1 %v5023_v15  ;;  %v5007_v3 = vsel %vm1559_vm12, %v9478_v30, %v9479_v42  ;;  %v5008_v10 = vsel %vm1559_vm12, %v9479_v42, %v9483_v28  ;;  %v5009_v43 = vsel %vm1559_vm12, %v9483_v28, %v9484_v48  ;;  %v9588_v23 = vunpack.i.l.bf16 %v14390_v36 }
 0xaf3   : > { %5111 = vmatpush.msrb.mxu2 %v5024_v22  ;;  %5131 = vmatpush.msrb.mxu3 %v5025_v31  ;;  %v5005_v30 = vsel %vm1559_vm12, %v9469_v33, %v9473_v4  ;;  %v9549_v22 = vunpack.i.h.bf16 %v14302_v45  ;;  %v7261_v4 = vld [vmem:[%s16005_s2 + $0xa0] sm:$0xff] }
 0xaf4   : > { %v14350_v32 = vpop.permute.xlu0 %9551  ;;  %5092 = vmatpush.msrb.mxu1 %v5019_v5  ;;  %7257 = vmatmul.msk.f32.vlgmr.msrb.gmra.mxu0 %vm441_vm7, %v7256_v60  ;;  %v9548_v5 = vunpack.i.l.bf16 %v14302_v45 }
 0xaf5   : > { %5112 = vmatpush.msrb.mxu2 %v5020_v29  ;;  %5132 = vmatpush.msrb.mxu3 %v5021_v13  ;;  %v14356_v41 = vpop.permute.xlu2 %9591 }
 0xaf6   : > { %5093 = vmatpush.msrb.mxu1 %v5015_v35 }
 0xaf7   : > { %5113 = vmatpush.msrb.mxu2 %v5016_v52  ;;  %5133 = vmatpush.msrb.mxu3 %v5017_v37  ;;  %v9617_v39 = vpop.permute.xlu1 %9616 }
 0xaf8   : > { %5094 = vmatpush.msrb.mxu1 %v5011_v44  ;;  %v9619_v13 = vunpack.i.h.bf16 %v9617_v39  ;;  %v9618_v42 = vunpack.i.l.bf16 %v9617_v39  ;;  %v9603_v44 = vunpack.i.l.bf16 %v14395_v46  ;;  %v9553_v39 = vunpack.i.l.bf16 %v14350_v32 }
 0xaf9   : > { %5114 = vmatpush.msrb.mxu2 %v5012_v61  ;;  %5134 = vmatpush.msrb.mxu3 %v5013_v0  ;;  %v9589_v61 = vunpack.i.h.bf16 %v14390_v36  ;;  %v5217_v0 = vsel %vm1775_vm13, %v9548_v5, %v9549_v22  ;;  %v9579_v36 = vunpack.i.h.bf16 %v14323_v19 }
 0xafa   : > { %5095 = vmatpush.msrb.mxu1 %v5007_v3 }
 0xafb   : > { %5115 = vmatpush.msrb.mxu2 %v5008_v10  ;;  %5135 = vmatpush.msrb.mxu3 %v5009_v43  ;;  %v9594_v10 = vunpack.i.h.bf16 %v14356_v41  ;;  %v9593_v43 = vunpack.i.l.bf16 %v14356_v41  ;;  %v5235_v41 = vsel %vm1775_vm13, %v9603_v44, %v9604_v59 }
 0xafc   : > { %v14381_v38 = vpop.permute.xlu0 %9566  ;;  %5096 = vmatpush.msrb.mxu1 %v5003_v11 }
 0xafd   : > { %5116 = vmatpush.msrb.mxu2 %v5004_v54  ;;  %5136 = vmatpush.msrb.mxu3 %v5005_v30  ;;  %v14385_v9 = vpop.permute.xlu2 %9606  ;;  %v5240_v54 = vsel %vm1775_vm13, %v9618_v42, %v9619_v13  ;;  %v9578_v30 = vunpack.i.l.bf16 %v14323_v19  ;;  %v9569_v46 = vunpack.i.h.bf16 %v14381_v38  ;;  %v5231_v19 = vsel %vm1775_vm13, %v9589_v61, %v9593_v43 }
 0xafe   : > { %7258 = vmatmul.msk.f32.vlgmr.msrb.gmra.mxu1 %vm441_vm7, %v7256_v60  ;;  %7259 = vmatmul.msk.f32.vlgmr.msrb.gmra.mxu2 %vm441_vm7, %v7256_v60  ;;  %v9609_v1 = vunpack.i.h.bf16 %v14385_v9  ;;  %v9608_v33 = vunpack.i.l.bf16 %v14385_v9 }
 0xaff   : > { %7260 = vmatmul.msk.f32.vlgmr.msrb.gmra.mxu3 %vm441_vm7, %v7256_v60  ;;  %v9563_v60 = vunpack.i.l.bf16 %v14305_v63  ;;  %v5216_v35 = vpop.permute.xlu1 %5215 }
 0xb01   : > { %v5221_v48 = vsel %vm1775_vm13, %v9559_v40, %v9563_v60 }
 0xb04   : > { %v14392_v2 = vpop.permute.xlu0 %9581 }
 0xb05   : > { %v9622_v18 = vpop.permute.xlu2 %9621  ;;  %v9584_v53 = vunpack.i.h.bf16 %v14392_v2 }
 0xb06   : > { %v9624_v55 = vunpack.i.h.bf16 %v9622_v18  ;;  %v9623_v12 = vunpack.i.l.bf16 %v9622_v18  ;;  %v9583_v18 = vunpack.i.l.bf16 %v14392_v2  ;;  %v5232_v2 = vsel %vm1775_vm13, %v9593_v43, %v9594_v10 }
 0xb07   : > { %v5229_v17 = vsel %vm1775_vm13, %v9584_v53, %v9588_v23 }
 0xb08   : > { %v5241_v34 = vsel %vm1775_vm13, %v9623_v12, %v9624_v55  ;;  %v9564_v12 = vunpack.i.h.bf16 %v14305_v63 }
 0xb09   : > { %5285 = vmatpush.msra.mxu0 %v5241_v34  ;;  %v5230_v34 = vsel %vm1775_vm13, %v9588_v23, %v9589_v61  ;;  %v3949_v23 = vpop.f32.mrf.mxu2 }
 0xb0c   : > { %v9597_v62 = vpop.permute.xlu0 %9596 }
 0xb0d   : > { %v9599_v56 = vunpack.i.h.bf16 %v9597_v62  ;;  %v9598_v27 = vunpack.i.l.bf16 %v9597_v62  ;;  %v9568_v62 = vunpack.i.l.bf16 %v14381_v38  ;;  %v5228_v38 = vsel %vm1775_vm13, %v9579_v36, %v9583_v18 }
 0xb0f   : > { %v5233_v15 = vsel %vm1775_vm13, %v9598_v27, %v9599_v56  ;;  %v5234_v9 = vsel %vm1775_vm13, %v9599_v56, %v9603_v44  ;;  %v5227_v56 = vsel %vm1775_vm13, %v9578_v30, %v9579_v36  ;;  %v5222_v27 = vsel %vm1775_vm13, %v9563_v60, %v9564_v12  ;;  %v4146_v60 = vpop.f32.mrf.mxu1 }
 0xb10   : > { %v5223_v14 = vsel %vm1775_vm13, %v9564_v12, %v9568_v62  ;;  %v5224_v53 = vsel %vm1775_vm13, %v9568_v62, %v9569_v46 }
 0xb14   : > { %v9612_v8 = vpop.permute.xlu0 %9611 }
 0xb15   : > { %v9613_v49 = vunpack.i.l.bf16 %v9612_v8  ;;  %v9614_v47 = vunpack.i.h.bf16 %v9612_v8  ;;  %v5226_v8 = vsel %vm1775_vm13, %v9574_v51, %v9578_v30 }
 0xb17   : > { %v5237_v57 = vsel %vm1775_vm13, %v9609_v1, %v9613_v49  ;;  %v5238_v3 = vsel %vm1775_vm13, %v9613_v49, %v9614_v47  ;;  %v5239_v11 = vsel %vm1775_vm13, %v9614_v47, %v9618_v42  ;;  %v9554_v1 = vunpack.i.h.bf16 %v14350_v32 }
 0xb18   : > { %5286 = vmatpush.msra.mxu0 %v5237_v57  ;;  %v9558_v49 = vunpack.i.l.bf16 %v14316_v6  ;;  %v5218_v32 = vsel %vm1775_vm13, %v9549_v22, %v9553_v39  ;;  %v3909_v6 = vpop.f32.mrf.mxu0 }
 0xb19   : > { %v5219_v57 = vsel %vm1775_vm13, %v9553_v39, %v9554_v1 }
 0xb1a   : > { %5287 = vmatpush.msra.mxu0 %v5233_v15  ;;  %v5220_v63 = vsel %vm1775_vm13, %v9554_v1, %v9558_v49  ;;  %v3969_v15 = vpop.f32.mrf.mxu3 }
 0xb1c   : > { %v9627_v31 = vpop.permute.xlu0 %9626  ;;  %5288 = vmatpush.msra.mxu0 %v5229_v17  ;;  %v4166_v17 = vpop.f32.mrf.mxu2 }
 0xb1d   : > { %v9629_v21 = vunpack.i.h.bf16 %v9627_v31  ;;  %v9628_v29 = vunpack.i.l.bf16 %v9627_v31  ;;  %v4454_v31 = vpop.f32.mrf.mxu1 }
 0xb1e   : > { %5289 = vmatpush.msra.mxu0 %v5225_v7 }
 0xb1f   : > { %v5242_v28 = vsel %vm1775_vm13, %v9624_v55, %v9628_v29  ;;  %v5243_v52 = vsel %vm1775_vm13, %v9628_v29, %v9629_v21  ;;  %v5244_v37 = vsel %vm1775_vm13, %v9629_v21, %v5216_v35  ;;  %v5236_v55 = vsel %vm1775_vm13, %v9604_v59, %v9608_v33 }
 0xb20   : > { %5290 = vmatpush.msra.mxu0 %v5221_v48  ;;  %5305 = vmatpush.msra.mxu1 %v5242_v28  ;;  %v4126_v51 = vpop.f32.mrf.mxu0  ;;  %v16284_v48 = vld [vmem:[#allocation14_spill] sm:$0xff] }
 0xb21   : > { %5325 = vmatpush.msra.mxu2 %v5243_v52  ;;  %5345 = vmatpush.msra.mxu3 %v5244_v37  ;;  %v3972_v28 = vadd.f32 %v3909_v6, %v16284_v48  ;;  %v3973_v43 = vadd.f32 %v3929_v50, %v16284_v48  ;;  %v3974_v46 = vadd.f32 %v3949_v23, %v16284_v48 }
 0xb22   : > { %5291 = vmatpush.msra.mxu0 %v5217_v0  ;;  %5306 = vmatpush.msra.mxu1 %v5238_v3  ;;  %v4186_v40 = vpop.f32.mrf.mxu3 }
 0xb23   : > { %5326 = vmatpush.msra.mxu2 %v5239_v11  ;;  %5346 = vmatpush.msra.mxu3 %v5240_v54  ;;  %v4189_v52 = vadd.f32 %v4126_v51, %v3972_v28  ;;  %v4190_v54 = vadd.f32 %v4146_v60, %v3973_v43  ;;  %v4191_v39 = vadd.f32 %v4166_v17, %v3974_v46  ;;  %v16290_v17 = vld [vmem:[#allocation3_spill] sm:$0xff] }
 0xb24   : > { %7262 = vmatmul.msk.f32.vlgmr.msra.gmra.mxu0 %vm441_vm7, %v7261_v4  ;;  %5307 = vmatpush.msra.mxu1 %v5234_v9  ;;  %v4474_v7 = vpop.f32.mrf.mxu2  ;;  %v16285_v9 = vld [vmem:[#allocation5_spill] sm:$0xff] }
 0xb25   : > { %5327 = vmatpush.msra.mxu2 %v5235_v41  ;;  %5347 = vmatpush.msra.mxu3 %v5236_v55  ;;  %v4663_v21 = vpop.f32.mrf.mxu1 }
 0xb26   : > { %5308 = vmatpush.msra.mxu1 %v5230_v34  ;;  %v4664_v30 = vadd.f32 %v4663_v21, %v4454_v31 }
 0xb27   : > { %5328 = vmatpush.msra.mxu2 %v5231_v19  ;;  %5348 = vmatpush.msra.mxu3 %v5232_v2  ;;  %v3975_v2 = vadd.f32 %v3969_v15, %v16284_v48 }
 0xb28   : > { %5309 = vmatpush.msra.mxu1 %v5226_v8  ;;  %v4434_v45 = vpop.f32.mrf.mxu0 }
 0xb29   : > { %5329 = vmatpush.msra.mxu2 %v5227_v56  ;;  %5349 = vmatpush.msra.mxu3 %v5228_v38  ;;  %v4192_v56 = vadd.f32 %v4186_v40, %v3975_v2 }
 0xb2a   : > { %5310 = vmatpush.msra.mxu1 %v5222_v27  ;;  %v4494_v5 = vpop.f32.mrf.mxu3 }
 0xb2b   : > { %5330 = vmatpush.msra.mxu2 %v5223_v14  ;;  %5350 = vmatpush.msra.mxu3 %v5224_v53 }
 0xb2c   : > { %5311 = vmatpush.msra.mxu1 %v5218_v32  ;;  %v4683_v29 = vpop.f32.mrf.mxu2 }
 0xb2d   : > { %5331 = vmatpush.msra.mxu2 %v5219_v57  ;;  %5351 = vmatpush.msra.mxu3 %v5220_v63  ;;  %v4684_v8 = vadd.f32 %v4683_v29, %v4474_v7  ;;  %v16287_v57 = vld [vmem:[#allocation8_spill] sm:$0xff] }
 0xb2e   : > { %7263 = vmatmul.msk.f32.vlgmr.msra.gmra.mxu1 %vm441_vm7, %v7261_v4  ;;  %7264 = vmatmul.msk.f32.vlgmr.msra.gmra.mxu2 %vm441_vm7, %v7261_v4 }
 0xb2f   : > { %7265 = vmatmul.msk.f32.vlgmr.msra.gmra.mxu3 %vm441_vm7, %v7261_v4 }
 0xb30   : > { %v4643_v22 = vpop.f32.mrf.mxu0 }
 0xb31   : > { %v4644_v37 = vadd.f32 %v4643_v22, %v4434_v45 }
 0xb32   : > { %v4703_v13 = vpop.f32.mrf.mxu3 }
 0xb33   : > { %v4704_v49 = vadd.f32 %v4703_v13, %v4494_v5  ;;  %v16292_v5 = vld [vmem:[#allocation12_spill] sm:$0xff] }
 0xb41   : > { %v4863_v47 = vpop.f32.mrf.mxu0 }
 0xb42   : > { %v4926_v59 = vadd.f32 %v4863_v47, %v4189_v52 }
 0xb4b   : > { %v4883_v35 = vpop.f32.mrf.mxu1 }
 0xb4c   : > { %v4927_v41 = vadd.f32 %v4883_v35, %v4190_v54 }
 0xb51   : > { %v4903_v44 = vpop.f32.mrf.mxu2 }
 0xb52   : > { %v4923_v61 = vpop.f32.mrf.mxu3  ;;  %v4928_v38 = vadd.f32 %v4903_v44, %v4191_v39 }
 0xb53   : > { %v4929_v14 = vadd.f32 %v4923_v61, %v4192_v56 }
 0xb71   : > { %v5078_v42 = vpop.f32.mrf.mxu0 }
 0xb72   : > { %v5141_v0 = vadd.f32 %v5078_v42, %v4644_v37  ;;  %v14540_v42 = vpop.permute.xlu2 %5380 }
 0xb73   : > { %16294 = vst [vmem:[#allocation31_spill] sm:$0xff] %v14540_v42 }
 0xb7b   : > { %v5098_v4 = vpop.f32.mrf.mxu1 }
 0xb7c   : > { %v5142_v62 = vadd.f32 %v5098_v4, %v4664_v30 }
 0xb81   : > { %v5118_v18 = vpop.f32.mrf.mxu2 }
 0xb82   : > { %v5138_v55 = vpop.f32.mrf.mxu3  ;;  %v5143_v32 = vadd.f32 %v5118_v18, %v4684_v8 }
 0xb83   : > { %v5144_v15 = vadd.f32 %v5138_v55, %v4704_v49 }
 0xba1   : > { %v5293_v33 = vpop.f32.mrf.mxu0 }
 0xba2   : > { %v5356_v3 = vadd.f32 %v5293_v33, %v4926_v59 }
 0xba4   : > { %v5360_v10 = vadd.f32 %v5356_v3, %v5141_v0 }
 0xba6   : > { %v5364_v11 = vmax.f32 %v5360_v10, 0.0 }
 0xba8   : > { %v14470_v36 = vmul.f32 %v5364_v11, %v16285_v9 }
 0xbaa   : > { %16286 = vst [vmem:[#allocation29_spill] sm:$0xff] %v14470_v36  ;;  %v9650_v12 = vpack.i.bf16 %v14470_v36, %v16249_v25 }
 0xbab   : > { %v5313_v34 = vpop.f32.mrf.mxu1 }
 0xbac   : > { %v5357_v19 = vadd.f32 %v5313_v34, %v4927_v41  ;;  %9651 = vrot.lane.b32.xlu2 %v9650_v12, %s10389_s23  ;;  %9631 = vrot.lane.b32.xlu1 %v9650_v12, %s10391_s25  ;;  %v9369_v41 = vunpack.i.h.bf16 %v13998_v24 }
 0xbae   : > { %v5361_v1 = vadd.f32 %v5357_v19, %v5142_v62 }
 0xbb0   : > { %v5365_v27 = vmax.f32 %v5361_v1, 0.0 }
 0xbb1   : > { %v5333_v53 = vpop.f32.mrf.mxu2 }
 0xbb2   : > { %v14479_v63 = vmul.f32 %v5365_v27, %v16287_v57  ;;  %v5358_v6 = vadd.f32 %v5333_v53, %v4928_v38  ;;  %v5353_v51 = vpop.f32.mrf.mxu3 }
 0xbb3   : > { %v5359_v23 = vadd.f32 %v5353_v51, %v4929_v14 }
 0xbb4   : > { %16288 = vst [vmem:[#allocation25_spill] sm:$0xff] %v14479_v63  ;;  %v5362_v50 = vadd.f32 %v5358_v6, %v5143_v32  ;;  %9636 = vrot.lane.b32.xlu1 %v9650_v12, %s10392_s26  ;;  %v14484_v45 = vpack.i.bf16 %v14479_v63, %v14470_v36 }
 0xbb5   : > { %v5363_v22 = vadd.f32 %v5359_v23, %v5144_v15 }
 0xbb6   : > { %16289 = vst [vmem:[#allocation18_spill] sm:$0xff] %v14484_v45  ;;  %v5366_v60 = vmax.f32 %v5362_v50, 0.0  ;;  %9656 = vrot.lane.b32.xlu0 %v14484_v45, %s10389_s23  ;;  %9661 = vrot.lane.b32.xlu2 %v14484_v45, %s10390_s24 }
 0xbb7   : > { %v5367_v31 = vmax.f32 %v5363_v22, 0.0 }
 0xbb8   : > { %v14491_v40 = vmul.f32 %v5366_v60, %v16290_v17 }
 0xbb9   : > { %v5371_v47 = vmul.f32 %v5367_v31, %v16292_v5 }
 0xbba   : > { %16291 = vst [vmem:[#allocation30_spill] sm:$0xff] %v14491_v40  ;;  %v9685_v7 = vpack.i.bf16 %v14491_v40, %v14479_v63 }
 0xbbb   : > { %v14502_v21 = vpack.i.bf16 %v5371_v47, %v14491_v40  ;;  %v9690_v29 = vpack.i.bf16 %v14470_v36, %v5371_v47  ;;  %v14521_v13 = vpack.i.bf16 0.0, %v5371_v47 }
 0xbbc   : > { %9641 = vrot.lane.b32.xlu1 %v9650_v12, %s10393_s27 }
 0xbbd   : > { %16293 = vst [vmem:[#allocation26_spill] sm:$0xff] %v14521_v13 }
 0xbbe   : > { %9671 = vrot.lane.b32.xlu0 %v14484_v45, %s10396_s30  ;;  %9686 = vrot.lane.b32.xlu2 %v9685_v7, %s10391_s25 }
 0xbc4   : > { %9646 = vrot.lane.b32.xlu1 %v9650_v12, %s10394_s28 }
 0xbc6   : > { %9681 = vrot.lane.b32.xlu0 %v14502_v21, %s10390_s24  ;;  %9696 = vrot.lane.b32.xlu2 %v9685_v7, %s10392_s26 }
 0xbcc   : > { %9666 = vrot.lane.b32.xlu1 %v14484_v45, %s10395_s29 }
 0xbce   : > { %9691 = vrot.lane.b32.xlu0 %v9690_v29, %s10391_s25  ;;  %9706 = vrot.lane.b32.xlu2 %v9685_v7, %s10393_s27 }
 0xbd4   : > { %9676 = vrot.lane.b32.xlu1 %v14502_v21, %s10389_s23 }
 0xbd6   : > { %9701 = vrot.lane.b32.xlu0 %v9690_v29, %s10392_s26  ;;  %9716 = vrot.lane.b32.xlu2 %v9685_v7, %s10394_s28 }
 0xbdc   : > { %9731 = vrot.lane.b32.xlu1 %v14502_v21, %s10396_s30 }
 0xbde   : > { %9711 = vrot.lane.b32.xlu0 %v9690_v29, %s10393_s27  ;;  %9726 = vrot.lane.b32.xlu2 %v14502_v21, %s10395_s29 }
 0xbe4   : > { %9741 = vrot.lane.b32.xlu1 %v14521_v13, %s10389_s23 }
 0xbe6   : > { %9721 = vrot.lane.b32.xlu0 %v9690_v29, %s10394_s28  ;;  %9746 = vrot.lane.b32.xlu2 %v9650_v12, %s10390_s24 }
 0xbec   : > { %9756 = vrot.lane.b32.xlu1 %v14521_v13, %s10390_s24 }
 0xbee   : > { %9736 = vrot.lane.b32.xlu0 %v9685_v7, %s10389_s23  ;;  %9761 = vrot.lane.b32.xlu2 %v9685_v7, %s10391_s25 }
 0xbf4   : > { %9771 = vrot.lane.b32.xlu1 %v9685_v7, %s10392_s26 }
 0xbf6   : > { %9751 = vrot.lane.b32.xlu0 %v9685_v7, %s10390_s24  ;;  %9776 = vrot.lane.b32.xlu2 %v14521_v13, %s10392_s26 }
 0xbfc   : > { %9786 = vrot.lane.b32.xlu1 %v14521_v13, %s10393_s27 }
 0xbfe   : > { %9766 = vrot.lane.b32.xlu0 %v14521_v13, %s10391_s25  ;;  %9791 = vrot.lane.b32.xlu2 %v9685_v7, %s10394_s28 }
 0xc06   : > { %9781 = vrot.lane.b32.xlu0 %v9685_v7, %s10393_s27  ;;  %v14543_v35 = vpop.permute.xlu2 %9651 }
 0xc10   : > { %v14545_v48 = vpop.permute.xlu2 %9661 }
 0xc11   : > { %v9664_v50 = vunpack.i.h.bf16 %v14545_v48  ;;  %v9663_v23 = vunpack.i.l.bf16 %v14545_v48 }
 0xc18   : > { %v14547_v28 = vpop.permute.xlu2 %9686 }
 0xc19   : > { %v9689_v52 = vunpack.i.h.bf16 %v14547_v28  ;;  %v9688_v37 = vunpack.i.l.bf16 %v14547_v28 }
 0xc1b   : > { %v14554_v59 = vsel %vm263_vm2, %v9688_v37, %v9689_v52 }
 0xc1e   : > { %v9632_v44 = vpop.permute.xlu1 %9631 }
 0xc1f   : > { %v9634_v33 = vunpack.i.h.bf16 %v9632_v44  ;;  %v9633_v61 = vunpack.i.l.bf16 %v9632_v44 }
 0xc20   : > { %v14556_v0 = vpop.permute.xlu2 %9696 }
 0xc21   : > { %v5432_v3 = vsel %vm263_vm2, %v9634_v33, %v9688_v37  ;;  %v5431_v4 = vsel %vm263_vm2, %v9633_v61, %v9634_v33  ;;  %v9699_v43 = vunpack.i.h.bf16 %v14556_v0  ;;  %v9698_v11 = vunpack.i.l.bf16 %v14556_v0 }
 0xc22   : > { %v14560_v10 = vpack.i.bf16 %v5432_v3, %v5431_v4  ;;  %v5418_v37 = vsel %vm248_vm1, %v9663_v23, %v9664_v50 }
 0xc23   : > { %v5447_v46 = vsel %vm278_vm3, %v9698_v11, %v9699_v43 }
 0xc24   : > { %9801 = vrot.lane.b32.xlu2 %v14560_v10, %s10395_s29 }
 0xc26   : > { %v9637_v54 = vpop.permute.xlu1 %9636 }
 0xc27   : > { %v9639_v30 = vunpack.i.h.bf16 %v9637_v54  ;;  %v9638_v33 = vunpack.i.l.bf16 %v9637_v54 }
 0xc28   : > { %v14566_v9 = vpop.permute.xlu0 %9656  ;;  %v14568_v18 = vpop.permute.xlu2 %9706 }
 0xc29   : > { %v5446_v55 = vsel %vm278_vm3, %v9639_v30, %v9698_v11  ;;  %v9659_v12 = vunpack.i.h.bf16 %v14566_v9  ;;  %v9658_v34 = vunpack.i.l.bf16 %v14566_v9  ;;  %v9708_v8 = vunpack.i.l.bf16 %v14568_v18 }
 0xc2a   : > { %v14579_v2 = vpack.i.bf16 %v5447_v46, %v5446_v55  ;;  %v5445_v55 = vsel %vm278_vm3, %v9638_v33, %v9639_v30 }
 0xc2b   : > { %v5403_v62 = vsel %vm233_vm0, %v9369_v41, %v9658_v34  ;;  %v5404_v19 = vsel %vm233_vm0, %v9658_v34, %v9659_v12 }
 0xc2c   : > { %v14581_v39 = vpack.i.bf16 %v5404_v19, %v5403_v62  ;;  %v9374_v19 = vunpack.i.h.bf16 %v14055_v26 }
 0xc2e   : > { %9796 = vrot.lane.b32.xlu0 %v14581_v39, %s10395_s29  ;;  %v9642_v24 = vpop.permute.xlu1 %9641  ;;  %9811 = vrot.lane.b32.xlu2 %v14581_v39, %s10396_s30 }
 0xc2f   : > { %v9644_v1 = vunpack.i.h.bf16 %v9642_v24  ;;  %v9643_v56 = vunpack.i.l.bf16 %v9642_v24 }
 0xc30   : > { %v14588_v38 = vpop.permute.xlu0 %9671  ;;  %v14590_v27 = vpop.permute.xlu2 %9716 }
 0xc31   : > { %v5460_v49 = vsel %vm293_vm4, %v9644_v1, %v9708_v8  ;;  %v5459_v14 = vsel %vm293_vm4, %v9643_v56, %v9644_v1  ;;  %v9719_v32 = vunpack.i.h.bf16 %v14590_v27  ;;  %v9718_v57 = vunpack.i.l.bf16 %v14590_v27 }
 0xc32   : > { %v14596_v53 = vpack.i.bf16 %v5460_v49, %v5459_v14  ;;  %v5417_v14 = vsel %vm248_vm1, %v9374_v19, %v9663_v23 }
 0xc33   : > { %v5475_v7 = vsel %vm308_vm5, %v9718_v57, %v9719_v32 }
 0xc34   : > { %9806 = vrot.lane.b32.xlu1 %v14596_v53, %s10395_s29 }
 0xc36   : > { %v9647_v6 = vpop.permute.xlu1 %9646  ;;  %9821 = vrot.lane.b32.xlu0 %v14596_v53, %s10396_s30 }
 0xc37   : > { %v9649_v51 = vunpack.i.h.bf16 %v9647_v6 }
 0xc38   : > { %v9682_v15 = vpop.permute.xlu0 %9681  ;;  %v14606_v60 = vpop.permute.xlu2 %9726 }
 0xc39   : > { %v5474_v17 = vsel %vm308_vm5, %v9649_v51, %v9718_v57  ;;  %v9684_v22 = vunpack.i.h.bf16 %v9682_v15  ;;  %v9683_v31 = vunpack.i.l.bf16 %v9682_v15  ;;  %v16081_v4 = vunpack.i.l.bf16 %v14606_v60 }
 0xc3a   : > { %v14614_v29 = vpack.i.bf16 %v5475_v7, %v5474_v17  ;;  %v9648_v15 = vunpack.i.l.bf16 %v9647_v6 }
 0xc3b   : > { %v5419_v5 = vsel %vm248_vm1, %v9664_v50, %v9683_v31  ;;  %v5420_v47 = vsel %vm248_vm1, %v9683_v31, %v9684_v22 }
 0xc3c   : > { %9816 = vrot.lane.b32.xlu1 %v14560_v10, %s10396_s30  ;;  %v14619_v48 = vpack.i.bf16 %v9684_v22, %v5420_v47  ;;  %v14621_v44 = vpack.i.bf16 %v5419_v5, %v5418_v37  ;;  %v5473_v47 = vsel %vm308_vm5, %v9648_v15, %v9649_v51 }
 0xc3e   : > { %v14623_v61 = vpop.permute.xlu1 %9666 }
 0xc3f   : > { %v16082_v3 = vunpack.i.h.bf16 %v14623_v61 }
 0xc40   : > { %v14627_v11 = vpop.permute.xlu0 %9691  ;;  %v14629_v9 = vpop.permute.xlu2 %9746 }
 0xc41   : > { %v9693_v41 = vunpack.i.l.bf16 %v14627_v11  ;;  %v14638_v54 = vsel %vm384_vm6, %v16082_v3, %v16081_v4 }
 0xc43   : > { %v14640_v34 = vpack.i.bf16 %v5445_v55, %v9693_v41  ;;  %v5434_v46 = vsel %vm263_vm2, %v9689_v52, %v9693_v41 }
 0xc44   : > { %v14646_v62 = vpack.i.bf16 %v5434_v46, %v14554_v59 }
 0xc45   : > { %9831 = vrot.lane.b32.xlu1 %v14640_v34, %s10395_s29 }
 0xc46   : > { %v9677_v30 = vpop.permute.xlu1 %9676 }
 0xc47   : > { %v9679_v24 = vunpack.i.h.bf16 %v9677_v30  ;;  %v9678_v1 = vunpack.i.l.bf16 %v9677_v30 }
 0xc48   : > { %v14651_v56 = vpop.permute.xlu0 %9701  ;;  %v14653_v49 = vpop.permute.xlu2 %9761 }
 0xc49   : > { %v9703_v28 = vunpack.i.l.bf16 %v14651_v56  ;;  %v5405_v52 = vsel %vm233_vm0, %v9659_v12, %v9678_v1  ;;  %v5406_v59 = vsel %vm233_vm0, %v9678_v1, %v9679_v24  ;;  %v14659_v57 = vpack.i.bf16 %v5417_v14, %v9679_v24 }
 0xc4a   : > { %v14668_v50 = vpack.i.bf16 %v5406_v59, %v5405_v52  ;;  %v9709_v12 = vunpack.i.h.bf16 %v14568_v18  ;;  %v16094_v3 = vunpack.i.h.bf16 %v14651_v56 }
 0xc4b   : > { %v5448_v26 = vsel %vm278_vm3, %v9699_v43, %v9703_v28  ;;  %9826 = vrot.lane.b32.xlu2 %v14659_v57, %s10395_s29 }
 0xc4c   : > { %v14670_v23 = vpack.i.bf16 %v9703_v28, %v5448_v26  ;;  %v5461_v5 = vsel %vm293_vm4, %v9708_v8, %v9709_v12  ;;  %v9763_v26 = vunpack.i.l.bf16 %v14653_v49 }
 0xc4d   : > { %9841 = vrot.lane.b32.xlu1 %v14659_v57, %s10396_s30 }
 0xc4e   : > { %v14673_v17 = vpop.permute.xlu1 %9731 }
 0xc50   : > { %v14675_v22 = vpop.permute.xlu0 %9711  ;;  %v9777_v0 = vpop.permute.xlu2 %9776 }
 0xc51   : > { %v9713_v43 = vunpack.i.l.bf16 %v14675_v22  ;;  %v14678_v31 = vunpack.i.h.bf16 %v9777_v0  ;;  %v9778_v7 = vunpack.i.l.bf16 %v9777_v0  ;;  %v16084_v0 = vunpack.i.h.bf16 %v14627_v11 }
 0xc53   : > { %v14686_v37 = vsel %vm278_vm3, %v9778_v7, %v14678_v31  ;;  %v14688_v6 = vpack.i.bf16 %v5473_v47, %v9713_v43  ;;  %v5462_v33 = vsel %vm293_vm4, %v9709_v12, %v9713_v43 }
 0xc54   : > { %v14691_v41 = vpack.i.bf16 %v5462_v33, %v5461_v5  ;;  %v14756_v33 = vsel %vm263_vm2, %v16084_v0, %v9763_v26 }
 0xc55   : > { %16295 = vst [vmem:[#allocation10_spill] sm:$0xff] %v14688_v6  ;;  %9836 = vrot.lane.b32.xlu0 %v14688_v6, %s10395_s29  ;;  %9856 = vrot.lane.b32.xlu1 %v14668_v50, %s10395_s29 }
 0xc56   : > { %9851 = vrot.lane.b32.xlu2 %v14688_v6, %s10396_s30  ;;  %v9742_v18 = vpop.permute.xlu1 %9741 }
 0xc57   : > { %v14701_v8 = vunpack.i.h.bf16 %v9742_v18  ;;  %v14703_v51 = vunpack.i.l.bf16 %v9742_v18 }
 0xc58   : > { %v14705_v46 = vpop.permute.xlu0 %9721  ;;  %v14707_v30 = vpop.permute.xlu2 %9791 }
 0xc59   : > { %16296 = vst [vmem:[#allocation11_spill] sm:$0xff] %v14701_v8  ;;  %v14712_v19 = vsel %vm233_vm0, %v14703_v51, %v14701_v8  ;;  %v16083_v24 = vunpack.i.h.bf16 %v14705_v46  ;;  %v9723_v1 = vunpack.i.l.bf16 %v14705_v46  ;;  %v16080_v14 = vunpack.i.h.bf16 %v14707_v30 }
 0xc5a   : > { %16297 = vst [vmem:[#allocation20_spill] sm:$0xff] %v14712_v19  ;;  %v9793_v28 = vunpack.i.l.bf16 %v14707_v30  ;;  %v14720_v52 = vpack.i.bf16 %v14701_v8, %v14712_v19  ;;  %v9749_v19 = vunpack.i.h.bf16 %v14629_v9 }
 0xc5b   : > { %v5476_v59 = vsel %vm308_vm5, %v9719_v32, %v9723_v1 }
 0xc5c   : > { %v14729_v12 = vsel %vm308_vm5, %v16083_v24, %v9793_v28  ;;  %v14734_v15 = vsel %vm308_vm5, %v9793_v28, %v16080_v14  ;;  %v14740_v27 = vpack.i.bf16 %v9723_v1, %v5476_v59  ;;  %v9764_v24 = vunpack.i.h.bf16 %v14653_v49 }
 0xc5d   : > { %16298 = vst [vmem:[#allocation7_spill] sm:$0xff] %v14729_v12  ;;  %9846 = vrot.lane.b32.xlu0 %v14640_v34, %s10396_s30  ;;  %9866 = vrot.lane.b32.xlu1 %v14619_v48, %s10395_s29  ;;  %v14744_v32 = vpack.i.bf16 %v14734_v15, %v14729_v12 }
 0xc5e   : > { %16299 = vst [vmem:[#allocation9_spill] sm:$0xff] %v14734_v15  ;;  %9876 = vrot.lane.b32.xlu2 %v14579_v2, %s10395_s29  ;;  %v9757_v43 = vpop.permute.xlu1 %9756  ;;  %v5957_v36 = vsel %vm263_vm2, %v9763_v26, %v9764_v24 }
 0xc5f   : > { %16300 = vst [vmem:[#allocation13_spill] sm:$0xff] %v14744_v32  ;;  %v14749_v5 = vunpack.i.h.bf16 %v9757_v43  ;;  %v14751_v47 = vunpack.i.l.bf16 %v9757_v43 }
 0xc60   : > { %v14758_v18 = vpop.permute.xlu0 %9736 }
 0xc61   : > { %v14763_v1 = vsel %vm248_vm1, %v14751_v47, %v14749_v5  ;;  %v9739_v28 = vunpack.i.h.bf16 %v14758_v18  ;;  %v16085_v59 = vunpack.i.l.bf16 %v14758_v18 }
 0xc62   : > { %16301 = vst [vmem:[#allocation24_spill] sm:$0xff] %v14763_v1 }
 0xc63   : > { %v5932_v14 = vsel %vm233_vm0, %v16085_v59, %v9739_v28  ;;  %v14776_v4 = vsel %vm233_vm0, %v9739_v28, %v14703_v51 }
 0xc64   : > { %16302 = vst [vmem:[#allocation22_spill] sm:$0xff] %v14776_v4  ;;  %v14785_v43 = vpack.i.bf16 %v14776_v4, %v5932_v14 }
 0xc65   : > { %9861 = vrot.lane.b32.xlu0 %v14621_v44, %s10395_s29  ;;  %9891 = vrot.lane.b32.xlu1 %v14614_v29, %s10395_s29 }
 0xc66   : > { %16303 = vst [vmem:[#allocation15_spill] sm:$0xff] %v14785_v43  ;;  %9886 = vrot.lane.b32.xlu2 %v14691_v41, %s10395_s29  ;;  %v9772_v28 = vpop.permute.xlu1 %9771 }
 0xc67   : > { %v9774_v0 = vunpack.i.h.bf16 %v9772_v28  ;;  %v9773_v59 = vunpack.i.l.bf16 %v9772_v28 }
 0xc68   : > { %v9752_v42 = vpop.permute.xlu0 %9751 }
 0xc69   : > { %v14794_v20 = vsel %vm278_vm3, %v9774_v0, %v9778_v7  ;;  %v5970_v63 = vsel %vm278_vm3, %v16094_v3, %v9773_v59  ;;  %v14800_v55 = vsel %vm278_vm3, %v9773_v59, %v9774_v0  ;;  %v9754_v49 = vunpack.i.h.bf16 %v9752_v42 }
 0xc6a   : > { %16304 = vst [vmem:[#allocation4_spill] sm:$0xff] %v14800_v55  ;;  %v9753_v4 = vunpack.i.l.bf16 %v9752_v42  ;;  %v14806_v28 = vpack.i.bf16 %v14686_v37, %v14794_v20  ;;  %v14813_v58 = vpack.i.bf16 %v14800_v55, %v5970_v63  ;;  %v14815_v3 = vpack.i.bf16 %v5970_v63, %v5957_v36 }
 0xc6b   : > { %v14810_v7 = vsel %vm248_vm1, %v9754_v49, %v14751_v47 }
 0xc6c   : > { %16305 = vst [vmem:[#allocation16_spill] sm:$0xff] %v14810_v7  ;;  %v5945_v59 = vsel %vm248_vm1, %v9749_v19, %v9753_v4  ;;  %v5946_v42 = vsel %vm248_vm1, %v9753_v4, %v9754_v49  ;;  %v14823_v26 = vpack.i.bf16 %v14763_v1, %v14810_v7 }
 0xc6d   : > { %16306 = vst [vmem:[#allocation23_spill] sm:$0xff] %v14815_v3  ;;  %9871 = vrot.lane.b32.xlu0 %v14646_v62, %s10395_s29  ;;  %9921 = vrot.lane.b32.xlu1 %v14579_v2, %s10396_s30  ;;  %v14829_v6 = vpack.i.bf16 %v5946_v42, %v5945_v59  ;;  %v14832_v63 = vpack.i.bf16 %v14756_v33, %v5946_v42 }
 0xc6e   : > { %16307 = vst [vmem:[#allocation17_spill] sm:$0xff] %v14823_v26  ;;  %9896 = vrot.lane.b32.xlu2 %v14740_v27, %s10395_s29  ;;  %v14836_v0 = vpop.permute.xlu1 %9786  ;;  %v14838_v4 = vpack.i.bf16 %v5945_v59, %v5932_v14 }
 0xc6f   : > { %16308 = vst [vmem:[#allocation28_spill] sm:$0xff] %v14832_v63  ;;  %v14843_v1 = vunpack.i.h.bf16 %v14836_v0  ;;  %v9788_v8 = vunpack.i.l.bf16 %v14836_v0 }
 0xc70   : > { %16309 = vst [vmem:[#allocation6_spill] sm:$0xff] %v14838_v4  ;;  %v9767_v3 = vpop.permute.xlu0 %9766  ;;  %v9714_v4 = vunpack.i.h.bf16 %v14675_v22 }
 0xc71   : > { %16310 = vst [vmem:[#allocation14_spill] sm:$0xff] %v14843_v1  ;;  %v14848_v42 = vsel %vm293_vm4, %v9788_v8, %v14843_v1  ;;  %v14850_v63 = vunpack.i.h.bf16 %v9767_v3  ;;  %v9768_v26 = vunpack.i.l.bf16 %v9767_v3 }
 0xc72   : > { %16311 = vst [vmem:[#allocation5_spill] sm:$0xff] %v14848_v42  ;;  %v14856_v59 = vpack.i.bf16 %v14843_v1, %v14848_v42  ;;  %v9654_v1 = vunpack.i.h.bf16 %v14543_v35 }
 0xc73   : > { %16312 = vst [vmem:[#allocation8_spill] sm:$0xff] %v14850_v63  ;;  %v14860_v49 = vsel %vm263_vm2, %v9768_v26, %v14850_v63  ;;  %v14863_v0 = vsel %vm263_vm2, %v9764_v24, %v9768_v26 }
 0xc74   : > { %16313 = vst [vmem:[#allocation3_spill] sm:$0xff] %v14860_v49  ;;  %v14868_v40 = vpack.i.bf16 %v14863_v0, %v5957_v36  ;;  %v14874_v14 = vpack.i.bf16 %v14850_v63, %v14860_v49  ;;  %v9653_v49 = vunpack.i.l.bf16 %v14543_v35 }
 0xc75   : > { %16314 = vst [vmem:[#allocation12_spill] sm:$0xff] %v14863_v0  ;;  %9881 = vrot.lane.b32.xlu0 %v14670_v23, %s10395_s29  ;;  %9931 = vrot.lane.b32.xlu1 %v14691_v41, %s10396_s30 }
 0xc76   : > { %16315 = vst [vmem:[#allocation32_spill] sm:$0xff] %v14874_v14  ;;  %9906 = vrot.lane.b32.xlu2 %v14621_v44, %s10396_s30 }
 0xc78   : > { %v9782_v36 = vpop.permute.xlu0 %9781 }
 0xc79   : > { %v9784_v3 = vunpack.i.h.bf16 %v9782_v36  ;;  %v9783_v15 = vunpack.i.l.bf16 %v9782_v36  ;;  %v9980_v36 = vpack.i.bf16 %v14751_v47, %v14810_v7  ;;  %v16318_v47 = vunpack.i.h.bf16 %v14651_v56 }
 0xc7a   : > { %v16319_v7 = vunpack.i.h.bf16 %v14627_v11 }
 0xc7b   : > { %v14886_v63 = vsel %vm293_vm4, %v9714_v4, %v9783_v15  ;;  %v14889_v14 = vsel %vm293_vm4, %v9783_v15, %v9784_v3  ;;  %v9748_v15 = vunpack.i.l.bf16 %v14629_v9  ;;  %v16317_v9 = vunpack.i.l.bf16 %v14758_v18 }
 0xc7c   : > { %16316 = vst [vmem:[#allocation33_spill] sm:$0xff] %v14889_v14  ;;  %v9985_v35 = vpack.i.bf16 %v14756_v33, %v16319_v7 }
 0xc7d   : > { %9901 = vrot.lane.b32.xlu0 %v14668_v50, %s10396_s30  ;;  %9946 = vrot.lane.b32.xlu1 %v14740_v27, %s10396_s30  ;;  %v5944_v24 = vsel %vm248_vm1, %v9748_v15, %v9749_v19  ;;  %v14931_v19 = vsel %vm233_vm0, %v9654_v1, %v16317_v9  ;;  %v16321_v9 = vunpack.i.h.bf16 %v14705_v46 }
 0xc7e   : > { %9916 = vrot.lane.b32.xlu2 %v14646_v62, %s10396_s30  ;;  %v9970_v22 = vpack.i.bf16 %v5944_v24, %v14703_v51  ;;  %v14933_v15 = vpop.permute.xlu2 %9801  ;;  %v5930_v51 = vsel %vm233_vm0, %v9653_v49, %v9654_v1  ;;  %v9995_v24 = vpack.i.bf16 %v16318_v47, %v9768_v26  ;;  %v14958_v1 = vsel %vm293_vm4, %v9784_v3, %v9788_v8 }
 0xc7f   : > { %16320 = vst [vmem:[#allocation34_spill] sm:$0xff] %v14958_v1  ;;  %v14962_v7 = vpack.i.bf16 %v14958_v1, %v14889_v14  ;;  %vm7091_vm0 = vcmask 1041408  }
 0xc85   : > { %9911 = vrot.lane.b32.xlu0 %v14619_v48, %s10396_s30  ;;  %9951 = vrot.lane.b32.xlu1 %v14484_v45, %s10397_s5 }
 0xc86   : > { %9926 = vrot.lane.b32.xlu2 %v14670_v23, %s10396_s30 }
 0xc88   : > { %v14945_v18 = vpop.permute.xlu2 %9811 }
 0xc8d   : > { %9936 = vrot.lane.b32.xlu0 %v14614_v29, %s10396_s30  ;;  %9966 = vrot.lane.b32.xlu1 %v14785_v43, %s10397_s5 }
 0xc8e   : > { %9956 = vrot.lane.b32.xlu2 %v14502_v21, %s10397_s5 }
 0xc95   : > { %9941 = vrot.lane.b32.xlu0 %v14521_v13, %s10394_s28  ;;  %9981 = vrot.lane.b32.xlu1 %v9980_v36, %s10397_s5  ;;  %v9960_v36 = vpack.i.bf16 %v14931_v19, %v5930_v51  ;;  %v10020_v51 = vpack.i.bf16 %v16321_v9, %v14848_v42 }
 0xc96   : > { %9971 = vrot.lane.b32.xlu2 %v9970_v22, %s10397_s5  ;;  %v10010_v22 = vpack.i.bf16 %v14886_v63, %v9714_v4 }
 0xc9d   : > { %9961 = vrot.lane.b32.xlu0 %v9960_v36, %s10397_s5  ;;  %9996 = vrot.lane.b32.xlu1 %v9995_v24, %s10397_s5 }
 0xc9e   : > { %9986 = vrot.lane.b32.xlu2 %v9985_v35, %s10397_s5 }
 0xca0   : > { %v14974_v49 = vpop.permute.xlu0 %9796 }
 0xca5   : > { %9976 = vrot.lane.b32.xlu0 %v14829_v6, %s10397_s5  ;;  %10011 = vrot.lane.b32.xlu1 %v10010_v22, %s10397_s5  ;;  %v14955_v56 = vpop.permute.xlu2 %9826 }
 0xca6   : > { %10001 = vrot.lane.b32.xlu2 %v14813_v58, %s10397_s5  ;;  %v14953_v11 = vpop.permute.xlu1 %9806 }
 0xca8   : > { %v14990_v47 = vpop.permute.xlu0 %9821 }
 0xcad   : > { %9991 = vrot.lane.b32.xlu0 %v14868_v40, %s10397_s5  ;;  %10026 = vrot.lane.b32.xlu1 %v14744_v32, %s10397_s5 }
 0xcae   : > { %10016 = vrot.lane.b32.xlu2 %v14962_v7, %s10397_s5  ;;  %v14970_v26 = vpop.permute.xlu1 %9816 }
 0xcb0   : > { %v14972_v4 = vpop.permute.xlu2 %9851 }
 0xcb5   : > { %10006 = vrot.lane.b32.xlu0 %v14806_v28, %s10397_s5  ;;  %10041 = vrot.lane.b32.xlu1 %v14502_v21, %s10398_s10 }
 0xcb7   : > { %v14980_v8 = vpop.permute.xlu1 %9831 }
 0xcb8   : > { %v14982_v3 = vpop.permute.xlu2 %9876 }
 0xcb9   : > { %v9878_v55 = vunpack.i.l.bf16 %v14982_v3 }
 0xcbd   : > { %10021 = vrot.lane.b32.xlu0 %v10020_v51, %s10397_s5  ;;  %10056 = vrot.lane.b32.xlu1 %v14659_v57, %s10398_s10 }
 0xcbf   : > { %v14992_v24 = vpop.permute.xlu1 %9841 }
 0xcc0   : > { %v9887_v36 = vpop.permute.xlu2 %9886 }
 0xcc1   : > { %v9889_v1 = vunpack.i.h.bf16 %v9887_v36  ;;  %v9888_v13 = vunpack.i.l.bf16 %v9887_v36 }
 0xcc5   : > { %10036 = vrot.lane.b32.xlu0 %v14484_v45, %s10398_s10  ;;  %10071 = vrot.lane.b32.xlu1 %v14560_v10, %s10398_s10  ;;  %v9879_v45 = vunpack.i.h.bf16 %v14982_v3 }
 0xcc7   : > { %v9837_v35 = vpop.permute.xlu0 %9836  ;;  %v14998_v22 = vpop.permute.xlu1 %9856 }
 0xcc8   : > { %v9897_v46 = vpop.permute.xlu2 %9896  ;;  %v9838_v9 = vunpack.i.l.bf16 %v9837_v35 }
 0xcc9   : > { %v9899_v51 = vunpack.i.h.bf16 %v9897_v46  ;;  %v9898_v42 = vunpack.i.l.bf16 %v9897_v46 }
 0xcca   : > { %v5572_v14 = vsel %vm384_vm6, %v9889_v1, %v9838_v9  ;;  %v9808_v9 = vunpack.i.l.bf16 %v14953_v11 }
 0xccb   : > { %v5576_v57 = vsel %vm384_vm6, %v9898_v42, %v9899_v51 }
 0xccc   : > { %5677 = vmatpush.msrb.mxu3 %v5576_v57  ;;  %v9839_v57 = vunpack.i.h.bf16 %v9837_v35  ;;  %v9804_v35 = vunpack.i.h.bf16 %v14933_v15 }
 0xccd   : > { %10051 = vrot.lane.b32.xlu0 %v14668_v50, %s10398_s10  ;;  %10086 = vrot.lane.b32.xlu1 %v14579_v2, %s10398_s10 }
 0xcce   : > { %5678 = vmatpush.msrb.mxu3 %v5572_v14  ;;  %v9809_v14 = vunpack.i.h.bf16 %v14953_v11 }
 0xccf   : > { %v15006_v10 = vpop.permute.xlu0 %9846  ;;  %v15008_v32 = vpop.permute.xlu1 %9866 }
 0xcd0   : > { %v15014_v46 = vpop.permute.xlu2 %9906 }
 0xcd5   : > { %10066 = vrot.lane.b32.xlu0 %v14619_v48, %s10398_s10  ;;  %10101 = vrot.lane.b32.xlu1 %v14691_v41, %s10398_s10  ;;  %v9834_v41 = vunpack.i.h.bf16 %v14980_v8 }
 0xcd7   : > { %v15016_v51 = vpop.permute.xlu0 %9861  ;;  %v9892_v50 = vpop.permute.xlu1 %9891 }
 0xcd8   : > { %v9894_v2 = vunpack.i.h.bf16 %v9892_v50  ;;  %v9893_v0 = vunpack.i.l.bf16 %v9892_v50  ;;  %v9803_v50 = vunpack.i.l.bf16 %v14933_v15  ;;  %v9863_v11 = vunpack.i.l.bf16 %v15016_v51  ;;  %v15040_v36 = vpop.permute.xlu2 %9916 }
 0xcda   : > { %v5573_v43 = vsel %vm384_vm6, %v9839_v57, %v9893_v0  ;;  %v5574_v48 = vsel %vm384_vm6, %v9893_v0, %v9894_v2  ;;  %v5575_v12 = vsel %vm384_vm6, %v9894_v2, %v9898_v42  ;;  %v5569_v42 = vsel %vm384_vm6, %v9808_v9, %v9809_v14 }
 0xcdb   : > { %5617 = vmatpush.msrb.mxu0 %v5573_v43  ;;  %5637 = vmatpush.msrb.mxu1 %v5574_v48  ;;  %v5570_v0 = vsel %vm384_vm6, %v9809_v14, %v9888_v13  ;;  %v5571_v43 = vsel %vm384_vm6, %v9888_v13, %v9889_v1  ;;  %v5561_v57 = vsel %vm384_vm6, %v9803_v50, %v9804_v35  ;;  %v9799_v2 = vunpack.i.h.bf16 %v14974_v49 }
 0xcdc   : > { %5657 = vmatpush.msrb.mxu2 %v5575_v12  ;;  %v5565_v12 = vsel %vm384_vm6, %v9834_v41, %v9878_v55  ;;  %v9798_v13 = vunpack.i.l.bf16 %v14974_v49  ;;  %v9829_v1 = vunpack.i.h.bf16 %v14955_v56  ;;  %v9864_v14 = vunpack.i.h.bf16 %v15016_v51 }
 0xcdd   : > { %10081 = vrot.lane.b32.xlu0 %v14640_v34, %s10398_s10  ;;  %10116 = vrot.lane.b32.xlu1 %v14740_v27, %s10398_s10  ;;  %v5566_v34 = vsel %vm384_vm6, %v9878_v55, %v9879_v45  ;;  %v9668_v55 = vunpack.i.l.bf16 %v14623_v61  ;;  %v9858_v48 = vunpack.i.l.bf16 %v14998_v22  ;;  %v10130_v50 = vpack.i.bf16 %v14931_v19, %v16249_v25 }
 0xcde   : > { %5618 = vmatpush.msrb.mxu0 %v5569_v42  ;;  %5638 = vmatpush.msrb.mxu1 %v5570_v0  ;;  %v5557_v41 = vsel %vm384_vm6, %v9829_v1, %v9863_v11  ;;  %v16322_v42 = vld [vmem:[#allocation21_spill] sm:$0xff]  ;;  %v5553_v51 = vsel %vm384_vm6, %v9798_v13, %v9799_v2  ;;  %v7267_v0 = vld [vmem:[%s16005_s2 + $0xa8] sm:$0xff] }
 0xcdf   : > { %5658 = vmatpush.msrb.mxu2 %v5571_v43  ;;  %v9872_v3 = vpop.permute.xlu0 %9871  ;;  %v15036_v15 = vpop.permute.xlu1 %9921  ;;  %v9049_v49 = vunpack.i.h.bf16 %v16322_v42  ;;  %v9869_v42 = vunpack.i.h.bf16 %v15008_v32 }
 0xce0   : > { %v9873_v27 = vunpack.i.l.bf16 %v9872_v3  ;;  %5619 = vmatpush.msrb.mxu0 %v5565_v12  ;;  %5639 = vmatpush.msrb.mxu1 %v5566_v34  ;;  %v5554_v34 = vsel %vm384_vm6, %v9799_v2, %v9858_v48  ;;  %v9874_v13 = vunpack.i.h.bf16 %v9872_v3  ;;  %v9833_v2 = vunpack.i.l.bf16 %v14980_v8 }
 0xce1   : > { %v5549_v12 = vsel %vm384_vm6, %v9049_v49, %v9668_v55  ;;  %v9868_v49 = vunpack.i.l.bf16 %v15008_v32  ;;  %v9729_v32 = vunpack.i.h.bf16 %v14606_v60  ;;  %v9828_v3 = vunpack.i.l.bf16 %v14955_v56 }
 0xce2   : > { %5620 = vmatpush.msrb.mxu0 %v5561_v57  ;;  %v5562_v9 = vsel %vm384_vm6, %v9804_v35, %v9873_v27  ;;  %v5558_v35 = vsel %vm384_vm6, %v9863_v11, %v9864_v14  ;;  %v16323_v11 = vunpack.i.h.bf16 %v14623_v61  ;;  %v9859_v61 = vunpack.i.h.bf16 %v14998_v22 }
 0xce3   : > { %5640 = vmatpush.msrb.mxu1 %v5562_v9  ;;  %v15070_v9 = vpop.permute.xlu2 %9926  ;;  %v5564_v8 = vsel %vm384_vm6, %v9874_v13, %v9833_v2  ;;  %v5559_v22 = vsel %vm384_vm6, %v9864_v14, %v9868_v49 }
 0xce4   : > { %5621 = vmatpush.msrb.mxu0 %v5557_v41  ;;  %v5550_v1 = vsel %vm384_vm6, %v9668_v55, %v16323_v11 }
 0xce5   : > { %10096 = vrot.lane.b32.xlu0 %v14596_v53, %s10398_s10  ;;  %10131 = vrot.lane.b32.xlu1 %v10130_v50, %s10399_s11 }
 0xce6   : > { %5622 = vmatpush.msrb.mxu0 %v5553_v51  ;;  %5641 = vmatpush.msrb.mxu1 %v5558_v35  ;;  %v5555_v35 = vsel %vm384_vm6, %v9858_v48, %v9859_v61  ;;  %v9853_v48 = vunpack.i.l.bf16 %v14972_v4 }
 0xce7   : > { %v9882_v43 = vpop.permute.xlu0 %9881  ;;  %v15062_v25 = vpop.permute.xlu1 %9931 }
 0xce8   : > { %v9884_v53 = vunpack.i.h.bf16 %v9882_v43  ;;  %v9883_v57 = vunpack.i.l.bf16 %v9882_v43  ;;  %5623 = vmatpush.msrb.mxu0 %v5549_v12  ;;  %5642 = vmatpush.msrb.mxu1 %v5554_v34  ;;  %v5556_v43 = vsel %vm384_vm6, %v9859_v61, %v9828_v3  ;;  %v9934_v56 = vunpack.i.h.bf16 %v15062_v25 }
 0xce9   : > { %7268 = vmatmul.msk.f32.vlgmr.msrb.gmra.mxu0 %vm441_vm7, %v7267_v0  ;;  %v16324_v12 = vunpack.i.l.bf16 %v14606_v60  ;;  %v9919_v60 = vunpack.i.h.bf16 %v15040_v36  ;;  %v9843_v3 = vunpack.i.l.bf16 %v14992_v24 }
 0xcea   : > { %5643 = vmatpush.msrb.mxu1 %v5550_v1  ;;  %v5567_v41 = vsel %vm384_vm6, %v9879_v45, %v9883_v57  ;;  %v5568_v50 = vsel %vm384_vm6, %v9883_v57, %v9884_v53  ;;  %v5563_v45 = vsel %vm384_vm6, %v9873_v27, %v9874_v13  ;;  %v9929_v57 = vunpack.i.h.bf16 %v15070_v9 }
 0xceb   : > { %7269 = vmatmul.msk.f32.vlgmr.msrb.gmra.mxu1 %vm441_vm7, %v7267_v0  ;;  %5659 = vmatpush.msrb.mxu2 %v5567_v41  ;;  %v5552_v14 = vsel %vm384_vm6, %v16324_v12, %v9729_v32  ;;  %v15104_v53 = vpop.permute.xlu2 %9956  ;;  %v9928_v13 = vunpack.i.l.bf16 %v15070_v9  ;;  %v9733_v32 = vunpack.i.l.bf16 %v14673_v17 }
 0xcec   : > { %5679 = vmatpush.msrb.mxu3 %v5568_v50  ;;  %v9848_v50 = vunpack.i.l.bf16 %v15006_v10  ;;  %v9958_v2 = vunpack.i.l.bf16 %v15104_v53 }
 0xced   : > { %10111 = vrot.lane.b32.xlu0 %v14614_v29, %s10398_s10  ;;  %10146 = vrot.lane.b32.xlu1 %v14829_v6, %s10399_s11  ;;  %v5560_v29 = vsel %vm384_vm6, %v9868_v49, %v9869_v42 }
 0xcee   : > { %5660 = vmatpush.msrb.mxu2 %v5563_v45  ;;  %5680 = vmatpush.msrb.mxu3 %v5564_v8  ;;  %v5781_v49 = vsel %vm603_vm8, %v9919_v60, %v9848_v50  ;;  %v9734_v8 = vunpack.i.h.bf16 %v14673_v17 }
 0xcef   : > { %v15087_v55 = vpop.permute.xlu0 %9901  ;;  %v15089_v51 = vpop.permute.xlu1 %9946 }
 0xcf0   : > { %v9949_v6 = vunpack.i.h.bf16 %v15089_v51  ;;  %v9948_v27 = vunpack.i.l.bf16 %v15089_v51  ;;  %5661 = vmatpush.msrb.mxu2 %v5559_v22  ;;  %5681 = vmatpush.msrb.mxu3 %v5560_v29  ;;  %v9904_v42 = vunpack.i.h.bf16 %v15087_v55  ;;  %v9824_v29 = vunpack.i.h.bf16 %v14990_v47 }
 0xcf1   : > { %v5769_v50 = vsel %vm603_vm8, %v9733_v32, %v9734_v8  ;;  %v9819_v51 = vunpack.i.h.bf16 %v14970_v26 }
 0xcf2   : > { %5662 = vmatpush.msrb.mxu2 %v5555_v35  ;;  %5682 = vmatpush.msrb.mxu3 %v5556_v43  ;;  %v5793_v34 = vsel %vm603_vm8, %v9948_v27, %v9949_v6  ;;  %v9823_v6 = vunpack.i.l.bf16 %v14990_v47  ;;  %v9854_v35 = vunpack.i.h.bf16 %v14972_v4  ;;  %v5773_v43 = vsel %vm603_vm8, %v9904_v42, %v9843_v3  ;;  %v15168_v4 = vld [vmem:[%s16005_s2 + $0xb8] sm:$0xff] }
 0xcf3   : > { %v15149_v22 = vpop.permute.xlu2 %9971  ;;  %v9933_v47 = vunpack.i.l.bf16 %v15062_v25 }
 0xcf4   : > { %5663 = vmatpush.msrb.mxu2 %v14638_v54  ;;  %5683 = vmatpush.msrb.mxu3 %v5552_v14  ;;  %v5789_v54 = vsel %vm603_vm8, %v9934_v56, %v9853_v48 }
 0xcf5   : > { %7270 = vmatmul.msk.f32.vlgmr.msrb.gmra.mxu2 %vm441_vm7, %v7267_v0  ;;  %7271 = vmatmul.msk.f32.vlgmr.msrb.gmra.mxu3 %vm441_vm7, %v7267_v0 }
 0xcf6   : > { %5894 = vmatpush.msra.mxu3 %v5793_v34  ;;  %10126 = vrot.lane.b32.xlu0 %v14502_v21, %s10399_s11 }
 0xcf7   : > { %10161 = vrot.lane.b32.xlu1 %v14868_v40, %s10399_s11  ;;  %v15120_v11 = vpop.permute.xlu0 %9911  ;;  %v15122_v1 = vpop.permute.xlu1 %9951  ;;  %v5785_v40 = vsel %vm603_vm8, %v9928_v13, %v9929_v57 }
 0xcf8   : > { %5895 = vmatpush.msra.mxu3 %v5789_v54  ;;  %v9914_v0 = vunpack.i.h.bf16 %v15120_v11  ;;  %v9913_v41 = vunpack.i.l.bf16 %v15120_v11  ;;  %v9954_v21 = vunpack.i.h.bf16 %v15122_v1 }
 0xcfa   : > { %5896 = vmatpush.msra.mxu3 %v5785_v40  ;;  %v5777_v61 = vsel %vm603_vm8, %v9913_v41, %v9914_v0  ;;  %v15144_v45 = vsel %vm912_vm9, %v9954_v21, %v9958_v2  ;;  %v9973_v0 = vunpack.i.l.bf16 %v15149_v22 }
 0xcfc   : > { %5897 = vmatpush.msra.mxu3 %v5781_v49 }
 0xcfe   : > { %5898 = vmatpush.msra.mxu3 %v5777_v61  ;;  %10141 = vrot.lane.b32.xlu0 %v14720_v52, %s10399_s11 }
 0xcff   : > { %10176 = vrot.lane.b32.xlu1 %v14806_v28, %s10399_s11  ;;  %v9937_v12 = vpop.permute.xlu0 %9936  ;;  %v15161_v14 = vpop.permute.xlu1 %9966 }
 0xd00   : > { %5899 = vmatpush.msra.mxu3 %v5773_v43  ;;  %v9939_v34 = vunpack.i.h.bf16 %v9937_v12  ;;  %v9938_v48 = vunpack.i.l.bf16 %v9937_v12  ;;  %v9969_v57 = vunpack.i.h.bf16 %v15161_v14  ;;  %v9968_v54 = vunpack.i.l.bf16 %v15161_v14 }
 0xd01   : > { %v9924_v43 = vunpack.i.h.bf16 %v15036_v15  ;;  %v9923_v12 = vunpack.i.l.bf16 %v15036_v15  ;;  %v5787_v15 = vsel %vm603_vm8, %v9824_v29, %v9933_v47 }
 0xd02   : > { %5900 = vmatpush.msra.mxu3 %v5769_v50  ;;  %v5790_v40 = vsel %vm603_vm8, %v9854_v35, %v9938_v48  ;;  %v5791_v49 = vsel %vm603_vm8, %v9938_v48, %v9939_v34  ;;  %v5792_v61 = vsel %vm603_vm8, %v9939_v34, %v9948_v27  ;;  %v15183_v3 = vsel %vm912_vm9, %v9968_v54, %v9969_v57 }
 0xd03   : > { %7277 = vmatmul.msk.f32.vlgmr.msra.gmra.mxu3 %vm441_vm7, %v15168_v4  ;;  %5834 = vmatpush.msra.mxu0 %v5790_v40  ;;  %v15190_v8 = vsel %vm912_vm9, %v9969_v57, %v9973_v0  ;;  %v5786_v27 = vsel %vm603_vm8, %v9823_v6, %v9824_v29  ;;  %v9818_v35 = vunpack.i.l.bf16 %v14970_v26  ;;  %v9849_v34 = vunpack.i.h.bf16 %v15006_v10 }
 0xd04   : > { %5854 = vmatpush.msra.mxu1 %v5791_v49  ;;  %5874 = vmatpush.msra.mxu2 %v5792_v61  ;;  %v9918_v48 = vunpack.i.l.bf16 %v15040_v36  ;;  %v16325_v57 = vpack.i.bf16 %v14756_v33, %v14749_v5  ;;  %v5788_v0 = vsel %vm603_vm8, %v9933_v47, %v9934_v56  ;;  %v9909_v6 = vunpack.i.h.bf16 %v15014_v46 }
 0xd05   : > { %5835 = vmatpush.msra.mxu0 %v5786_v27  ;;  %v9908_v26 = vunpack.i.l.bf16 %v15014_v46  ;;  %v5782_v50 = vsel %vm603_vm8, %v9849_v34, %v9923_v12  ;;  %v5783_v33 = vsel %vm603_vm8, %v9923_v12, %v9924_v43  ;;  %v9814_v40 = vunpack.i.h.bf16 %v14945_v18  ;;  %v15224_v34 = vpop.permute.xlu2 %9986 }
 0xd06   : > { %10156 = vrot.lane.b32.xlu0 %v16325_v57, %s10399_s11  ;;  %5855 = vmatpush.msra.mxu1 %v5787_v15  ;;  %v5784_v46 = vsel %vm603_vm8, %v9924_v43, %v9928_v13  ;;  %v9813_v47 = vunpack.i.l.bf16 %v14945_v18  ;;  %v9844_v49 = vunpack.i.h.bf16 %v14992_v24  ;;  %v5778_v61 = vsel %vm603_vm8, %v9818_v35, %v9819_v51 }
 0xd07   : > { %10191 = vrot.lane.b32.xlu1 %v14856_v59, %s10399_s11  ;;  %5875 = vmatpush.msra.mxu2 %v5788_v0  ;;  %v9942_v10 = vpop.permute.xlu0 %9941  ;;  %v15209_v29 = vpop.permute.xlu1 %9981  ;;  %v5779_v12 = vsel %vm603_vm8, %v9819_v51, %v9918_v48  ;;  %v9903_v27 = vunpack.i.l.bf16 %v15087_v55  ;;  %v16326_v15 = vunpack.i.h.bf16 %v14707_v30  ;;  %v5780_v18 = vsel %vm603_vm8, %v9918_v48, %v9919_v60 }
 0xd08   : > { %v15214_v25 = vunpack.i.h.bf16 %v9942_v10  ;;  %v9943_v56 = vunpack.i.l.bf16 %v9942_v10  ;;  %5836 = vmatpush.msra.mxu0 %v5782_v50  ;;  %5856 = vmatpush.msra.mxu1 %v5783_v33  ;;  %v9673_v24 = vunpack.i.l.bf16 %v14588_v38  ;;  %v5774_v13 = vsel %vm603_vm8, %v9844_v49, %v9908_v26 }
 0xd09   : > { %5876 = vmatpush.msra.mxu2 %v5784_v46  ;;  %v5775_v43 = vsel %vm603_vm8, %v9908_v26, %v9909_v6  ;;  %v9674_v51 = vunpack.i.h.bf16 %v14588_v38  ;;  %v5776_v36 = vsel %vm603_vm8, %v9909_v6, %v9913_v41  ;;  %v9064_v60 = vunpack.i.h.bf16 %v13532_v16 }
 0xd0a   : > { %v15229_v57 = vsel %vm308_vm5, %v16326_v15, %v9943_v56  ;;  %v6001_v9 = vsel %vm308_vm5, %v9943_v56, %v15214_v25  ;;  %5837 = vmatpush.msra.mxu0 %v5778_v61  ;;  %5857 = vmatpush.msra.mxu1 %v5779_v12  ;;  %v5770_v35 = vsel %vm603_vm8, %v9813_v47, %v9814_v40  ;;  %v9983_v26 = vunpack.i.l.bf16 %v15209_v29 }
 0xd0b   : > { %5877 = vmatpush.msra.mxu2 %v5780_v18  ;;  %v15240_v30 = vpack.i.bf16 %v6001_v9, %v15229_v57  ;;  %v5771_v38 = vsel %vm603_vm8, %v9814_v40, %v9903_v27  ;;  %v5772_v16 = vsel %vm603_vm8, %v9903_v27, %v9904_v42  ;;  %v5766_v48 = vsel %vm603_vm8, %v9064_v60, %v9673_v24 }
 0xd0c   : > { %5838 = vmatpush.msra.mxu0 %v5774_v13  ;;  %5858 = vmatpush.msra.mxu1 %v5775_v43  ;;  %v5768_v0 = vsel %vm603_vm8, %v9674_v51, %v9733_v32  ;;  %v10215_v42 = vpack.i.bf16 %v15214_v25, %v6001_v9  ;;  %v16327_v50 = vpack.i.bf16 %v14678_v31, %v14686_v37  ;;  %v16328_v9 = vld [vmem:[#allocation30_spill] sm:$0xff]  ;;  %v9989_v13 = vunpack.i.h.bf16 %v15224_v34 }
 0xd0d   : > { %5878 = vmatpush.msra.mxu2 %v5776_v36  ;;  %10031 = vrot.lane.b32.xlu2 %v15240_v30, %s10397_s5  ;;  %v15273_v55 = vpop.permute.xlu2 %10001  ;;  %v10210_v18 = vpack.i.bf16 %v15229_v57, %v16328_v9  ;;  %v16329_v36 = vld [vmem:[#allocation17_spill] sm:$0xff] }
 0xd0e   : > { %10171 = vrot.lane.b32.xlu0 %v14813_v58, %s10399_s11  ;;  %5839 = vmatpush.msra.mxu0 %v5770_v35  ;;  %v5767_v58 = vsel %vm603_vm8, %v9673_v24, %v9674_v51  ;;  %v10004_v49 = vunpack.i.h.bf16 %v15273_v55  ;;  %v10003_v61 = vunpack.i.l.bf16 %v15273_v55  ;;  %v16330_v55 = vld [vmem:[#allocation14_spill] sm:$0xff] }
 0xd0f   : > { %6501 = vrot.lane.b32.xlu1 %v15214_v25, %s10399_s11  ;;  %5859 = vmatpush.msra.mxu1 %v5771_v38  ;;  %v15258_v11 = vpop.permute.xlu0 %9961  ;;  %v15260_v41 = vpop.permute.xlu1 %9996 }
 0xd10   : > { %5879 = vmatpush.msra.mxu2 %v5772_v16  ;;  %5840 = vmatpush.msra.mxu0 %v5766_v48  ;;  %v6091_v51 = vsel %vm912_vm9, %v10003_v61, %v10004_v49  ;;  %v9964_v35 = vunpack.i.h.bf16 %v15258_v11  ;;  %v9953_v16 = vunpack.i.l.bf16 %v15122_v1  ;;  %v9988_v1 = vunpack.i.l.bf16 %v15224_v34 }
 0xd11   : > { %5860 = vmatpush.msra.mxu1 %v5767_v58  ;;  %7274 = vmatmul.msk.f32.vlgmr.msra.gmra.mxu0 %vm441_vm7, %v15168_v4 }
 0xd12   : > { %5880 = vmatpush.msra.mxu2 %v5768_v0  ;;  %7275 = vmatmul.msk.f32.vlgmr.msra.gmra.mxu1 %vm441_vm7, %v15168_v4  ;;  %v6079_v0 = vsel %vm912_vm9, %v9964_v35, %v9968_v54 }
 0xd13   : > { %7276 = vmatmul.msk.f32.vlgmr.msra.gmra.mxu2 %vm441_vm7, %v15168_v4 }
 0xd15   : > { %10046 = vrot.lane.b32.xlu2 %v14581_v39, %s10398_s10  ;;  %v15292_v39 = vpop.permute.xlu2 %10016 }
 0xd16   : > { %10186 = vrot.lane.b32.xlu0 %v14962_v7, %s10399_s11  ;;  %v9998_v7 = vunpack.i.l.bf16 %v15260_v41  ;;  %v10018_v12 = vunpack.i.l.bf16 %v15292_v39 }
 0xd17   : > { %10216 = vrot.lane.b32.xlu1 %v10215_v42, %s10400_s12  ;;  %v15281_v17 = vpop.permute.xlu0 %9976  ;;  %v10012_v32 = vpop.permute.xlu1 %10011  ;;  %v16331_v42 = vpack.i.bf16 %v14794_v20, %v16330_v55 }
 0xd18   : > { %v9979_v6 = vunpack.i.h.bf16 %v15281_v17  ;;  %v10014_v10 = vunpack.i.h.bf16 %v10012_v32  ;;  %v9978_v43 = vunpack.i.l.bf16 %v15281_v17  ;;  %v6075_v17 = vsel %vm912_vm9, %v9953_v16, %v9954_v21 }
 0xd19   : > { %v10013_v54 = vunpack.i.l.bf16 %v10012_v32 }
 0xd1a   : > { %v15288_v4 = vsel %vm912_vm9, %v9979_v6, %v9983_v26  ;;  %v6095_v24 = vsel %vm912_vm9, %v10014_v10, %v10018_v12  ;;  %v6083_v48 = vsel %vm912_vm9, %v9978_v43, %v9979_v6 }
 0xd1b   : > { %v6094_v21 = vsel %vm912_vm9, %v10013_v54, %v10014_v10 }
 0xd1d   : > { %10061 = vrot.lane.b32.xlu2 %v14621_v44, %s10398_s10 }
 0xd1e   : > { %10201 = vrot.lane.b32.xlu0 %v15240_v30, %s10399_s11 }
 0xd1f   : > { %10231 = vrot.lane.b32.xlu1 %v16327_v50, %s10400_s12  ;;  %v9992_v33 = vpop.permute.xlu0 %9991  ;;  %v15301_v40 = vpop.permute.xlu1 %10026  ;;  %v16332_v50 = vld [vmem:[#allocation10_spill] sm:$0xff] }
 0xd20   : > { %v9994_v56 = vunpack.i.h.bf16 %v9992_v33  ;;  %v9993_v46 = vunpack.i.l.bf16 %v9992_v33  ;;  %v10029_v44 = vunpack.i.h.bf16 %v15301_v40  ;;  %v10028_v47 = vunpack.i.l.bf16 %v15301_v40  ;;  %v16334_v33 = vld [vmem:[#allocation8_spill] sm:$0xff] }
 0xd22   : > { %v6099_v37 = vsel %vm912_vm9, %v10028_v47, %v10029_v44  ;;  %v15312_v27 = vsel %vm912_vm9, %v9993_v46, %v9994_v56  ;;  %v15315_v15 = vsel %vm912_vm9, %v9994_v56, %v9998_v7  ;;  %v6087_v38 = vsel %vm912_vm9, %v9989_v13, %v9993_v46  ;;  %v16336_v46 = vld [vmem:[#allocation4_spill] sm:$0xff] }
 0xd23   : > { %6162 = vmatpush.msrb.mxu1 %v6099_v37  ;;  %v9999_v7 = vunpack.i.h.bf16 %v15260_v41  ;;  %v9974_v41 = vunpack.i.h.bf16 %v15149_v22 }
 0xd25   : > { %10076 = vrot.lane.b32.xlu2 %v14646_v62, %s10398_s10  ;;  %6163 = vmatpush.msrb.mxu1 %v6095_v24  ;;  %v6090_v32 = vsel %vm912_vm9, %v9999_v7, %v10003_v61  ;;  %v6086_v61 = vsel %vm912_vm9, %v9988_v1, %v9989_v13  ;;  %v6082_v22 = vsel %vm912_vm9, %v9974_v41, %v9978_v43  ;;  %v16340_v13 = vld [vmem:[#allocation22_spill] sm:$0xff]  ;;  %v16349_v41 = vld [vmem:[#allocation12_spill] sm:$0xff] }
 0xd26   : > { %10211 = vrot.lane.b32.xlu0 %v10210_v18, %s10400_s12 }
 0xd27   : > { %10246 = vrot.lane.b32.xlu1 %v16329_v36, %s10400_s12  ;;  %v15330_v57 = vpop.permute.xlu0 %10006  ;;  %v15332_v60 = vpop.permute.xlu1 %10041  ;;  %6164 = vmatpush.msrb.mxu1 %v6091_v51  ;;  %v16338_v51 = vld [vmem:[#allocation27_spill] sm:$0xff] }
 0xd28   : > { %v10008_v62 = vunpack.i.l.bf16 %v15330_v57  ;;  %v16128_v37 = vunpack.i.l.bf16 %v15332_v60 }
 0xd29   : > { %6165 = vmatpush.msrb.mxu1 %v6087_v38  ;;  %v9274_v38 = vunpack.i.h.bf16 %v16338_v51  ;;  %v16352_v51 = vld [vmem:[#allocation16_spill] sm:$0xff] }
 0xd2a   : > { %v15342_v58 = vsel %vm912_vm9, %v10004_v49, %v10008_v62  ;;  %v9963_v49 = vunpack.i.l.bf16 %v15258_v11 }
 0xd2b   : > { %6166 = vmatpush.msrb.mxu1 %v6083_v48  ;;  %v16339_v48 = vld [vmem:[#allocation18_spill] sm:$0xff]  ;;  %v6074_v55 = vsel %vm912_vm9, %v9274_v38, %v9953_v16  ;;  %v16345_v16 = vld [vmem:[#allocation28_spill] sm:$0xff] }
 0xd2c   : > { %v6078_v11 = vsel %vm912_vm9, %v9963_v49, %v9964_v35 }
 0xd2d   : > { %10091 = vrot.lane.b32.xlu2 %v14670_v23, %s10398_s10  ;;  %6167 = vmatpush.msrb.mxu1 %v6079_v0  ;;  %v16341_v0 = vld [vmem:[#allocation7_spill] sm:$0xff] }
 0xd2e   : > { %10226 = vrot.lane.b32.xlu0 %v16331_v42, %s10400_s12  ;;  %v16342_v43 = vpack.i.bf16 %v16340_v13, %v16341_v0  ;;  %v16343_v42 = vld [vmem:[#allocation23_spill] sm:$0xff] }
 0xd2f   : > { %10261 = vrot.lane.b32.xlu1 %v15240_v30, %s10401_s13  ;;  %v15358_v6 = vpop.permute.xlu0 %10021  ;;  %v15360_v14 = vpop.permute.xlu1 %10056  ;;  %6168 = vmatpush.msrb.mxu1 %v6075_v17  ;;  %v16333_v30 = vld [vmem:[#allocation9_spill] sm:$0xff] }
 0xd30   : > { %v10024_v23 = vunpack.i.h.bf16 %v15358_v6  ;;  %v16335_v56 = vpack.i.bf16 %v16333_v30, %v16334_v33  ;;  %v10058_v35 = vunpack.i.l.bf16 %v15360_v14  ;;  %v16347_v33 = vld [vmem:[#allocation6_spill] sm:$0xff]  ;;  %v16353_v38 = vpack.i.bf16 %v16352_v51, %v16333_v30 }
 0xd32   : > { %v6098_v20 = vsel %vm912_vm9, %v10024_v23, %v10028_v47  ;;  %v16337_v47 = vpack.i.bf16 %v14886_v63, %v16336_v46 }
 0xd33   : > { %6142 = vmatpush.msrb.mxu0 %v6098_v20  ;;  %v16344_v20 = vld [vmem:[#allocation15_spill] sm:$0xff] }
 0xd35   : > { %10106 = vrot.lane.b32.xlu2 %v16332_v50, %s10398_s10  ;;  %6143 = vmatpush.msrb.mxu0 %v6094_v21  ;;  %v16346_v50 = vld [vmem:[#allocation26_spill] sm:$0xff] }
 0xd36   : > { %10241 = vrot.lane.b32.xlu0 %v16335_v56, %s10400_s12 }
 0xd37   : > { %10276 = vrot.lane.b32.xlu1 %v16337_v47, %s10400_s12  ;;  %v15379_v34 = vpop.permute.xlu0 %10036  ;;  %v15381_v10 = vpop.permute.xlu1 %10071  ;;  %6144 = vmatpush.msrb.mxu0 %v6090_v32  ;;  %v16350_v47 = vpack.i.bf16 %v16349_v41, %v14678_v31 }
 0xd38   : > { %v10039_v18 = vunpack.i.h.bf16 %v15379_v34 }
 0xd39   : > { %6145 = vmatpush.msrb.mxu0 %v6086_v61  ;;  %v10345_v61 = vpack.i.bf16 %v16328_v9, %v14886_v63 }
 0xd3a   : > { %v15393_v24 = vsel %vm1122_vm10, %v10039_v18, %v16128_v37  ;;  %v10019_v37 = vunpack.i.h.bf16 %v15292_v39 }
 0xd3b   : > { %6146 = vmatpush.msrb.mxu0 %v6082_v22  ;;  %v16351_v22 = vpack.i.bf16 %v14886_v63, %v14678_v31 }
 0xd3d   : > { %10121 = vrot.lane.b32.xlu2 %v16339_v48, %s10399_s11  ;;  %6147 = vmatpush.msrb.mxu0 %v6078_v11 }
 0xd3e   : > { %10256 = vrot.lane.b32.xlu0 %v16342_v43, %s10400_s12 }
 0xd3f   : > { %10291 = vrot.lane.b32.xlu1 %v16343_v42, %s10400_s12  ;;  %v15406_v17 = vpop.permute.xlu0 %10051  ;;  %v15408_v54 = vpop.permute.xlu1 %10086  ;;  %6148 = vmatpush.msrb.mxu0 %v6074_v55 }
 0xd40   : > { %v16131_v23 = vunpack.i.h.bf16 %v15406_v17  ;;  %v10089_v31 = vunpack.i.h.bf16 %v15408_v54  ;;  %v16132_v63 = vunpack.i.l.bf16 %v15408_v54 }
 0xd42   : > { %v15415_v7 = vsel %vm1122_vm10, %v16131_v23, %v10058_v35 }
 0xd45   : > { %10136 = vrot.lane.b32.xlu2 %v16344_v20, %s10399_s11 }
 0xd46   : > { %10271 = vrot.lane.b32.xlu0 %v14720_v52, %s10400_s12  ;;  %v16348_v52 = vld [vmem:[#allocation32_spill] sm:$0xff] }
 0xd47   : > { %10306 = vrot.lane.b32.xlu1 %v16345_v16, %s10400_s12  ;;  %v15423_v1 = vpop.permute.xlu0 %10066  ;;  %v15425_v21 = vpop.permute.xlu1 %10101 }
 0xd48   : > { %v10103_v20 = vunpack.i.l.bf16 %v15425_v21 }
 0xd4d   : > { %10151 = vrot.lane.b32.xlu2 %v16329_v36, %s10399_s11 }
 0xd4e   : > { %10286 = vrot.lane.b32.xlu0 %v16346_v50, %s10400_s12 }
 0xd4f   : > { %10321 = vrot.lane.b32.xlu1 %v16347_v33, %s10400_s12  ;;  %v15433_v56 = vpop.permute.xlu0 %10081  ;;  %v15435_v32 = vpop.permute.xlu1 %10116 }
 0xd55   : > { %10166 = vrot.lane.b32.xlu2 %v16348_v52, %s10399_s11 }
 0xd56   : > { %10301 = vrot.lane.b32.xlu0 %v16350_v47, %s10401_s13 }
 0xd57   : > { %6658 = vrot.lane.b32.xlu1 %v14931_v19, %s10400_s12  ;;  %v15445_v36 = vpop.permute.xlu0 %10096  ;;  %v15447_v49 = vpop.permute.xlu1 %10131 }
 0xd58   : > { %v16129_v55 = vunpack.i.h.bf16 %v15445_v36 }
 0xd5a   : > { %v6304_v47 = vsel %vm1122_vm10, %v16129_v55, %v10103_v20 }
 0xd5d   : > { %10181 = vrot.lane.b32.xlu2 %v16351_v22, %s10399_s11  ;;  %v16355_v22 = vld [vmem:[#allocation33_spill] sm:$0xff] }
 0xd5e   : > { %10316 = vrot.lane.b32.xlu0 %v16353_v38, %s10401_s13  ;;  %v16356_v51 = vpack.i.bf16 %v16341_v0, %v16355_v22  ;;  %v6300_v38 = vsel %vm1122_vm10, %v16132_v63, %v10089_v31  ;;  %v10023_v0 = vunpack.i.l.bf16 %v15358_v6  ;;  %v10009_v63 = vunpack.i.h.bf16 %v15330_v57  ;;  %v16360_v57 = vld [vmem:[#allocation34_spill] sm:$0xff] }
 0xd5f   : > { %10346 = vrot.lane.b32.xlu1 %v10345_v61, %s10401_s13  ;;  %v15460_v11 = vpop.permute.xlu0 %10111  ;;  %v15462_v43 = vpop.permute.xlu1 %10146  ;;  %v16354_v61 = vld [vmem:[#allocation13_spill] sm:$0xff] }
 0xd60   : > { %v10114_v9 = vunpack.i.h.bf16 %v15460_v11  ;;  %v16130_v35 = vunpack.i.l.bf16 %v15460_v11  ;;  %v6097_v40 = vsel %vm912_vm9, %v10019_v37, %v10023_v0  ;;  %v16361_v0 = vld [vmem:[#allocation5_spill] sm:$0xff] }
 0xd62   : > { %v6308_v30 = vsel %vm1122_vm10, %v16130_v35, %v10114_v9 }
 0xd63   : > { %6371 = vmatpush.msra.mxu1 %v6308_v30 }
 0xd65   : > { %10196 = vrot.lane.b32.xlu2 %v16354_v61, %s10399_s11  ;;  %6372 = vmatpush.msra.mxu1 %v6304_v47 }
 0xd66   : > { %10331 = vrot.lane.b32.xlu0 %v16356_v51, %s10401_s13  ;;  %v10133_v51 = vunpack.i.l.bf16 %v15447_v49 }
 0xd67   : > { %10361 = vrot.lane.b32.xlu1 %v16345_v16, %s10401_s13  ;;  %v10032_v30 = vpop.permute.xlu2 %10031  ;;  %6373 = vmatpush.msra.mxu1 %v6300_v38 }
 0xd68   : > { %v15492_v61 = vpop.permute.xlu0 %10126  ;;  %v10034_v47 = vunpack.i.h.bf16 %v10032_v30  ;;  %v10033_v55 = vunpack.i.l.bf16 %v10032_v30  ;;  %v6096_v30 = vsel %vm912_vm9, %v10018_v12, %v10019_v37  ;;  %v6093_v12 = vsel %vm912_vm9, %v10008_v62, %v10009_v63 }
 0xd69   : > { %v10129_v35 = vunpack.i.h.bf16 %v15492_v61  ;;  %v15497_v23 = vpop.permute.xlu1 %10161  ;;  %v10220_v62 = vpack.i.bf16 %v16361_v0, %v16360_v57  ;;  %v10119_v63 = vunpack.i.h.bf16 %v15435_v32  ;;  %v10053_v0 = vunpack.i.l.bf16 %v15406_v17 }
 0xd6a   : > { %v6100_v16 = vsel %vm912_vm9, %v10029_v44, %v10033_v55  ;;  %v6101_v38 = vsel %vm912_vm9, %v10033_v55, %v10034_v47  ;;  %v16357_v44 = vld [vmem:[#allocation11_spill] sm:$0xff]  ;;  %v9984_v47 = vunpack.i.h.bf16 %v15209_v29 }
 0xd6b   : > { %6182 = vmatpush.msrb.mxu2 %v6100_v16  ;;  %6202 = vmatpush.msrb.mxu3 %v6101_v38  ;;  %v15507_v6 = vsel %vm1343_vm11, %v10129_v35, %v10133_v51  ;;  %v16358_v55 = vpack.i.bf16 %v16336_v46, %v16357_v44  ;;  %v16359_v51 = vld [vmem:[#allocation29_spill] sm:$0xff]  ;;  %v9959_v46 = vunpack.i.h.bf16 %v15104_v53  ;;  %v10118_v16 = vunpack.i.l.bf16 %v15435_v32 }
 0xd6c   : > { %v10074_v44 = vunpack.i.h.bf16 %v15381_v10 }
 0xd6d   : > { %10206 = vrot.lane.b32.xlu2 %v16339_v48, %s10400_s12  ;;  %6183 = vmatpush.msrb.mxu2 %v6096_v30  ;;  %v16363_v30 = vld [vmem:[#allocation3_spill] sm:$0xff] }
 0xd6e   : > { %10341 = vrot.lane.b32.xlu0 %v16358_v55, %s10401_s13  ;;  %6203 = vmatpush.msrb.mxu3 %v6097_v40 }
 0xd6f   : > { %6863 = vrot.lane.b32.xlu1 %v16359_v51, %s10401_s13  ;;  %v15522_v39 = vpop.permute.xlu2 %10046  ;;  %6184 = vmatpush.msrb.mxu2 %v15342_v58  ;;  %v6085_v58 = vsel %vm912_vm9, %v9983_v26, %v9984_v47  ;;  %v6077_v26 = vsel %vm912_vm9, %v9958_v2, %v9959_v46 }
 0xd70   : > { %v15528_v37 = vpop.permute.xlu0 %10141  ;;  %6204 = vmatpush.msrb.mxu3 %v6093_v12  ;;  %v10049_v46 = vunpack.i.h.bf16 %v15522_v39 }
 0xd71   : > { %v15530_v48 = vpop.permute.xlu1 %10176  ;;  %6185 = vmatpush.msrb.mxu2 %v15312_v27  ;;  %v10104_v27 = vunpack.i.h.bf16 %v15425_v21  ;;  %v16368_v21 = vunpack.i.h.bf16 %v15445_v36 }
 0xd72   : > { %6205 = vmatpush.msrb.mxu3 %v15315_v15  ;;  %v7278_v15 = vld [vmem:[%s16005_s2 + $0xc0] sm:$0xff] }
 0xd73   : > { %6186 = vmatpush.msrb.mxu2 %v15288_v4  ;;  %v6309_v4 = vsel %vm1122_vm10, %v10114_v9, %v10118_v16  ;;  %v6305_v53 = vsel %vm1122_vm10, %v10103_v20, %v10104_v27  ;;  %7279 = vmatmul.msk.f32.vlgmr.msrb.gmra.mxu0 %vm441_vm7, %v7278_v15  ;;  %v16362_v9 = vld [vmem:[#allocation25_spill] sm:$0xff]  ;;  %v16364_v20 = vpack.i.bf16 %v16363_v30, %v16349_v41 }
 0xd74   : > { %6206 = vmatpush.msrb.mxu3 %v6085_v58  ;;  %7280 = vmatmul.msk.f32.vlgmr.msrb.gmra.mxu1 %vm441_vm7, %v7278_v15  ;;  %v10370_v38 = vpack.i.bf16 %v14931_v19, %v16362_v9  ;;  %v10038_v58 = vunpack.i.l.bf16 %v15379_v34  ;;  %v10265_v9 = vpack.i.bf16 %v16360_v57, %v15214_v25 }
 0xd75   : > { %10221 = vrot.lane.b32.xlu2 %v10220_v62, %s10400_s12  ;;  %6187 = vmatpush.msrb.mxu2 %v15183_v3 }
 0xd76   : > { %10356 = vrot.lane.b32.xlu0 %v16343_v42, %s10401_s13  ;;  %6207 = vmatpush.msrb.mxu3 %v15190_v8  ;;  %v6310_v8 = vsel %vm1122_vm10, %v10118_v16, %v10119_v63  ;;  %v10163_v42 = vunpack.i.l.bf16 %v15497_v23  ;;  %v16365_v63 = vpack.i.bf16 %v16355_v22, %v14749_v5  ;;  %v6288_v16 = vsel %vm1122_vm10, %v10049_v46, %v10053_v0 }
 0xd77   : > { %v15549_v29 = vpop.permute.xlu2 %10061  ;;  %6188 = vmatpush.msrb.mxu2 %v15144_v45 }
 0xd78   : > { %v15559_v3 = vpop.permute.xlu0 %10156  ;;  %6208 = vmatpush.msrb.mxu3 %v6077_v26  ;;  %7281 = vmatmul.msk.f32.vlgmr.msrb.gmra.mxu2 %vm441_vm7, %v7278_v15  ;;  %v10064_v55 = vunpack.i.h.bf16 %v15549_v29  ;;  %v10063_v47 = vunpack.i.l.bf16 %v15549_v29 }
 0xd79   : > { %6391 = vmatpush.msra.mxu2 %v6309_v4  ;;  %v10159_v45 = vunpack.i.h.bf16 %v15559_v3  ;;  %v15564_v32 = vpop.permute.xlu1 %10191  ;;  %7282 = vmatmul.msk.f32.vlgmr.msrb.gmra.mxu3 %vm441_vm7, %v7278_v15 }
 0xd7a   : > { %6411 = vmatpush.msra.mxu3 %v6310_v8  ;;  %v6292_v62 = vsel %vm1122_vm10, %v10063_v47, %v10064_v55 }
 0xd7b   : > { %6392 = vmatpush.msra.mxu2 %v6305_v53  ;;  %v15578_v2 = vsel %vm1343_vm11, %v10159_v45, %v10163_v42  ;;  %v6284_v45 = vsel %vm1122_vm10, %v10038_v58, %v10039_v18 }
 0xd7d   : > { %10236 = vrot.lane.b32.xlu2 %v16364_v20, %s10400_s12 }
 0xd7e   : > { %10371 = vrot.lane.b32.xlu0 %v10370_v38, %s10401_s13  ;;  %v10068_v38 = vunpack.i.l.bf16 %v15423_v1 }
 0xd7f   : > { %v15587_v40 = vpop.permute.xlu2 %10076 }
 0xd80   : > { %v15592_v51 = vpop.permute.xlu0 %10171  ;;  %v10078_v12 = vunpack.i.l.bf16 %v15587_v40  ;;  %v10079_v4 = vunpack.i.h.bf16 %v15587_v40  ;;  %v6293_v18 = vsel %vm1122_vm10, %v10064_v55, %v10068_v38  ;;  %v10098_v40 = vunpack.i.l.bf16 %v15445_v36 }
 0xd81   : > { %v15595_v19 = vpop.permute.xlu1 %6501  ;;  %v10084_v55 = vunpack.i.h.bf16 %v15433_v56 }
 0xd82   : > { %v6296_v41 = vsel %vm1122_vm10, %v10074_v44, %v10078_v12  ;;  %v6297_v30 = vsel %vm1122_vm10, %v10078_v12, %v10079_v4 }
 0xd83   : > { %6374 = vmatpush.msra.mxu1 %v6296_v41 }
 0xd85   : > { %10251 = vrot.lane.b32.xlu2 %v16365_v63, %s10400_s12  ;;  %6375 = vmatpush.msra.mxu1 %v6292_v62  ;;  %v16366_v63 = vunpack.i.h.bf16 %v15406_v17 }
 0xd87   : > { %v10092_v26 = vpop.permute.xlu2 %10091  ;;  %6376 = vmatpush.msra.mxu1 %v6288_v16  ;;  %v6289_v25 = vsel %vm1122_vm10, %v10053_v0, %v16366_v63  ;;  %v10179_v0 = vunpack.i.h.bf16 %v15530_v48 }
 0xd88   : > { %v15614_v15 = vpop.permute.xlu0 %10186  ;;  %v10093_v8 = vunpack.i.l.bf16 %v10092_v26  ;;  %v10094_v12 = vunpack.i.h.bf16 %v10092_v26  ;;  %v10193_v26 = vunpack.i.l.bf16 %v15564_v32 }
 0xd89   : > { %6377 = vmatpush.msra.mxu1 %v6284_v45  ;;  %v15621_v22 = vpop.permute.xlu1 %10216  ;;  %v10189_v57 = vunpack.i.h.bf16 %v15614_v15 }
 0xd8a   : > { %v6301_v53 = vsel %vm1122_vm10, %v10089_v31, %v10093_v8  ;;  %v6302_v63 = vsel %vm1122_vm10, %v10093_v8, %v10094_v12  ;;  %v10048_v8 = vunpack.i.l.bf16 %v15522_v39  ;;  %v10044_v12 = vunpack.i.h.bf16 %v15332_v60 }
 0xd8b   : > { %6393 = vmatpush.msra.mxu2 %v6301_v53  ;;  %v16367_v53 = vunpack.i.l.bf16 %v15460_v11  ;;  %v10073_v11 = vunpack.i.l.bf16 %v15381_v10  ;;  %v6525_v36 = vsel %vm1343_vm11, %v10189_v57, %v10193_v26 }
 0xd8c   : > { %v6287_v10 = vsel %vm1122_vm10, %v10048_v8, %v10049_v46  ;;  %v15761_v8 = vld [vmem:[%s16005_s2 + $0xc8] sm:$0xff] }
 0xd8d   : > { %10266 = vrot.lane.b32.xlu2 %v10265_v9, %s10401_s13  ;;  %6394 = vmatpush.msra.mxu2 %v6297_v30  ;;  %v10178_v30 = vunpack.i.l.bf16 %v15530_v48 }
 0xd8f   : > { %v10107_v20 = vpop.permute.xlu2 %10106  ;;  %6395 = vmatpush.msra.mxu2 %v6293_v18 }
 0xd90   : > { %v15633_v41 = vpop.permute.xlu0 %10201  ;;  %v10109_v31 = vunpack.i.h.bf16 %v10107_v20  ;;  %v10108_v62 = vunpack.i.l.bf16 %v10107_v20 }
 0xd91   : > { %v10204_v16 = vunpack.i.h.bf16 %v15633_v41  ;;  %v10203_v45 = vunpack.i.l.bf16 %v15633_v41  ;;  %6396 = vmatpush.msra.mxu2 %v6289_v25  ;;  %v15656_v20 = vpop.permute.xlu1 %10231 }
 0xd92   : > { %v6307_v9 = vsel %vm1122_vm10, %v10109_v31, %v16367_v53  ;;  %v6306_v17 = vsel %vm1122_vm10, %v10104_v27, %v10108_v62  ;;  %v6303_v27 = vsel %vm1122_vm10, %v10098_v40, %v16368_v21  ;;  %v7272_v31 = vld [vmem:[%s16005_s2 + $0xb0] sm:$0xff]  ;;  %v10083_v62 = vunpack.i.l.bf16 %v15433_v56 }
 0xd93   : > { %6351 = vmatpush.msra.mxu0 %v6307_v9  ;;  %6397 = vmatpush.msra.mxu2 %v15393_v24  ;;  %v6529_v18 = vsel %vm1343_vm11, %v10203_v45, %v10204_v16  ;;  %v10069_v24 = vunpack.i.h.bf16 %v15423_v1  ;;  %v16369_v40 = vunpack.i.l.bf16 %v15408_v54  ;;  %v10059_v56 = vunpack.i.h.bf16 %v15360_v14  ;;  %v16370_v9 = vld [vmem:[#allocation19_spill] sm:$0xff] }
 0xd94   : > { %6412 = vmatpush.msra.mxu3 %v6306_v17  ;;  %v6298_v1 = vsel %vm1122_vm10, %v10079_v4, %v10083_v62  ;;  %7285 = vmatmul.msk.f32.vlgmr.msra.gmra.mxu2 %vm441_vm7, %v7272_v31  ;;  %v6295_v4 = vsel %vm1122_vm10, %v10073_v11, %v10074_v44  ;;  %v9364_v17 = vunpack.i.h.bf16 %v16370_v9  ;;  %v16371_v44 = vunpack.i.l.bf16 %v15332_v60 }
 0xd95   : > { %6611 = vmatpush.msrb.mxu2 %v6529_v18  ;;  %10281 = vrot.lane.b32.xlu2 %v14856_v59, %s10401_s13  ;;  %v6299_v25 = vsel %vm1122_vm10, %v10084_v55, %v16369_v40  ;;  %v6521_v59 = vsel %vm1343_vm11, %v10178_v30, %v10179_v0  ;;  %v6294_v55 = vsel %vm1122_vm10, %v10068_v38, %v10069_v24  ;;  %v10194_v18 = vunpack.i.h.bf16 %v15564_v32  ;;  %v16374_v40 = vld [vmem:[#allocation20_spill] sm:$0xff] }
 0xd96   : > { %6352 = vmatpush.msra.mxu0 %v6303_v27  ;;  %6413 = vmatpush.msra.mxu3 %v6302_v63  ;;  %v6291_v14 = vsel %vm1122_vm10, %v10059_v56, %v10063_v47  ;;  %v6286_v29 = vsel %vm1122_vm10, %v16371_v44, %v10044_v12  ;;  %v6530_v32 = vsel %vm1343_vm11, %v10204_v16, %v15595_v19  ;;  %v10143_v63 = vunpack.i.l.bf16 %v15528_v37 }
 0xd97   : > { %6612 = vmatpush.msrb.mxu2 %v6525_v36  ;;  %v15675_v53 = vpop.permute.xlu2 %10121  ;;  %7284 = vmatmul.msk.f32.vlgmr.msra.gmra.mxu1 %vm441_vm7, %v7272_v31  ;;  %v6526_v60 = vsel %vm1343_vm11, %v10193_v26, %v10194_v18  ;;  %v10164_v26 = vunpack.i.h.bf16 %v15497_v23  ;;  %v10144_v18 = vunpack.i.h.bf16 %v15528_v37 }
 0xd98   : > { %6353 = vmatpush.msra.mxu0 %v6299_v25  ;;  %v15686_v54 = vpop.permute.xlu0 %10211  ;;  %6414 = vmatpush.msra.mxu3 %v6298_v1  ;;  %v16375_v25 = vpack.i.bf16 %v16374_v40, %v16340_v13 }
 0xd99   : > { %6613 = vmatpush.msrb.mxu2 %v6521_v59  ;;  %v15708_v47 = vpop.permute.xlu1 %10246  ;;  %v10214_v1 = vunpack.i.h.bf16 %v15686_v54  ;;  %v6510_v37 = vsel %vm1343_vm11, %v10143_v63, %v10144_v18 }
 0xd9a   : > { %6354 = vmatpush.msra.mxu0 %v6295_v4  ;;  %6415 = vmatpush.msra.mxu3 %v6294_v55  ;;  %v10218_v4 = vunpack.i.l.bf16 %v15621_v22 }
 0xd9c   : > { %6355 = vmatpush.msra.mxu0 %v6291_v14  ;;  %6416 = vmatpush.msra.mxu3 %v15415_v7  ;;  %v6283_v7 = vsel %vm1122_vm10, %v9364_v17, %v10038_v58  ;;  %v16372_v58 = vld [vmem:[#allocation24_spill] sm:$0xff]  ;;  %v6744_v9 = vsel %vm1559_vm12, %v10214_v1, %v10218_v4 }
 0xd9d   : > { %10296 = vrot.lane.b32.xlu2 %v14806_v28, %s10401_s13  ;;  %v16373_v38 = vpack.i.bf16 %v14749_v5, %v16372_v58  ;;  %v10128_v5 = vunpack.i.l.bf16 %v15492_v61 }
 0xd9e   : > { %6356 = vmatpush.msra.mxu0 %v6287_v10  ;;  %6417 = vmatpush.msra.mxu3 %v6286_v29  ;;  %v10158_v10 = vunpack.i.l.bf16 %v15559_v3  ;;  %v10219_v3 = vunpack.i.h.bf16 %v15621_v22 }
 0xd9f   : > { %v15715_v39 = vpop.permute.xlu2 %10136  ;;  %7286 = vmatmul.msk.f32.vlgmr.msra.gmra.mxu3 %vm441_vm7, %v7272_v31  ;;  %v6505_v14 = vsel %vm1343_vm11, %v10128_v5, %v10129_v35 }
 0xda0   : > { %6631 = vmatpush.msrb.mxu3 %v6530_v32  ;;  %6357 = vmatpush.msra.mxu0 %v6283_v7  ;;  %v15717_v28 = vpop.permute.xlu0 %10226  ;;  %v6745_v22 = vsel %vm1559_vm12, %v10218_v4, %v10219_v3 }
 0xda1   : > { %7283 = vmatmul.msk.f32.vlgmr.msra.gmra.mxu0 %vm441_vm7, %v7272_v31  ;;  %v15726_v34 = vpop.permute.xlu1 %10261  ;;  %v10139_v31 = vunpack.i.h.bf16 %v15715_v39 }
 0xda2   : > { %6632 = vmatpush.msrb.mxu3 %v6526_v60 }
 0xda3   : > { %v6509_v59 = vsel %vm1343_vm11, %v10139_v31, %v10143_v63 }
 0xda5   : > { %10311 = vrot.lane.b32.xlu2 %v16348_v52, %s10401_s13 }
 0xda7   : > { %v15724_v19 = vpop.permute.xlu2 %10151 }
 0xda8   : > { %v15728_v46 = vpop.permute.xlu0 %10241  ;;  %v10154_v11 = vunpack.i.h.bf16 %v15724_v19  ;;  %v10153_v21 = vunpack.i.l.bf16 %v15724_v19 }
 0xda9   : > { %v15740_v24 = vpop.permute.xlu1 %10276 }
 0xdaa   : > { %v6513_v36 = vsel %vm1343_vm11, %v10153_v21, %v10154_v11  ;;  %v6514_v29 = vsel %vm1343_vm11, %v10154_v11, %v10158_v10  ;;  %v10174_v11 = vunpack.i.h.bf16 %v15592_v51 }
 0xdac   : > { %v6520_v40 = vsel %vm1343_vm11, %v10174_v11, %v10178_v30 }
 0xdad   : > { %10326 = vrot.lane.b32.xlu2 %v16373_v38, %s10401_s13  ;;  %v10188_v38 = vunpack.i.l.bf16 %v15614_v15  ;;  %v10138_v15 = vunpack.i.l.bf16 %v15715_v39 }
 0xdaf   : > { %v10167_v16 = vpop.permute.xlu2 %10166 }
 0xdb0   : > { %v15737_v27 = vpop.permute.xlu0 %10256  ;;  %v10168_v52 = vunpack.i.l.bf16 %v10167_v16  ;;  %v10169_v12 = vunpack.i.h.bf16 %v10167_v16 }
 0xdb1   : > { %v15781_v44 = vpop.permute.xlu1 %10291  ;;  %v10258_v30 = vunpack.i.l.bf16 %v15737_v27 }
 0xdb2   : > { %v6517_v62 = vsel %vm1343_vm11, %v10164_v26, %v10168_v52  ;;  %v6518_v35 = vsel %vm1343_vm11, %v10168_v52, %v10169_v12  ;;  %v10173_v52 = vunpack.i.l.bf16 %v15592_v51  ;;  %v6524_v51 = vsel %vm1343_vm11, %v10188_v38, %v10189_v57 }
 0xdb3   : > { %6614 = vmatpush.msrb.mxu2 %v6517_v62  ;;  %v10134_v57 = vunpack.i.h.bf16 %v15447_v49  ;;  %v6508_v49 = vsel %vm1343_vm11, %v10138_v15, %v10139_v31 }
 0xdb5   : > { %10336 = vrot.lane.b32.xlu2 %v16375_v25, %s10401_s13  ;;  %6615 = vmatpush.msrb.mxu2 %v6513_v36  ;;  %v6519_v36 = vsel %vm1343_vm11, %v10173_v52, %v10174_v11  ;;  %v10124_v25 = vunpack.i.h.bf16 %v15675_v53  ;;  %v6507_v23 = vsel %vm1343_vm11, %v10134_v57, %v10138_v15  ;;  %v10213_v11 = vunpack.i.l.bf16 %v15686_v54 }
 0xdb7   : > { %v10182_v56 = vpop.permute.xlu2 %10181  ;;  %6616 = vmatpush.msrb.mxu2 %v6509_v59  ;;  %v10123_v59 = vunpack.i.l.bf16 %v15675_v53  ;;  %v6504_v19 = vsel %vm1343_vm11, %v10124_v25, %v10128_v5 }
 0xdb8   : > { %v15764_v55 = vpop.permute.xlu0 %10271  ;;  %v10183_v13 = vunpack.i.l.bf16 %v10182_v56  ;;  %v10184_v58 = vunpack.i.h.bf16 %v10182_v56  ;;  %v10228_v56 = vunpack.i.l.bf16 %v15717_v28 }
 0xdb9   : > { %6617 = vmatpush.msrb.mxu2 %v6505_v14  ;;  %v15805_v62 = vpop.permute.xlu1 %10306  ;;  %v10233_v14 = vunpack.i.l.bf16 %v15656_v20  ;;  %v10274_v15 = vunpack.i.h.bf16 %v15764_v55 }
 0xdba   : > { %7290 = vmatmul.msk.f32.vlgmr.msrb.gmra.mxu2 %vm441_vm7, %v15761_v8  ;;  %v6522_v17 = vsel %vm1343_vm11, %v10179_v0, %v10183_v13  ;;  %v6523_v41 = vsel %vm1343_vm11, %v10184_v58, %v10188_v38  ;;  %v10234_v13 = vunpack.i.h.bf16 %v15656_v20  ;;  %v10259_v38 = vunpack.i.h.bf16 %v15737_v27 }
 0xdbb   : > { %6826 = vmatpush.msra.mxu2 %v6744_v9  ;;  %6633 = vmatpush.msrb.mxu3 %v6522_v17  ;;  %v10294_v27 = vunpack.i.h.bf16 %v15781_v44  ;;  %v10309_v57 = vunpack.i.h.bf16 %v15805_v62 }
 0xdbc   : > { %v6737_v18 = vsel %vm1559_vm12, %v10233_v14, %v10234_v13 }
 0xdbd   : > { %10351 = vrot.lane.b32.xlu2 %v16346_v50, %s10401_s13  ;;  %6634 = vmatpush.msrb.mxu3 %v6518_v35  ;;  %v10243_v35 = vunpack.i.l.bf16 %v15728_v46 }
 0xdbf   : > { %v10197_v32 = vpop.permute.xlu2 %10196  ;;  %6635 = vmatpush.msrb.mxu3 %v6514_v29 }
 0xdc0   : > { %v15787_v7 = vpop.permute.xlu0 %10286  ;;  %v10199_v0 = vunpack.i.h.bf16 %v10197_v32  ;;  %v10198_v60 = vunpack.i.l.bf16 %v10197_v32 }
 0xdc1   : > { %6636 = vmatpush.msrb.mxu3 %v6510_v37  ;;  %v15848_v4 = vpop.permute.xlu1 %10321 }
 0xdc2   : > { %v6527_v16 = vsel %vm1343_vm11, %v10198_v60, %v10199_v0  ;;  %v6528_v50 = vsel %vm1343_vm11, %v10199_v0, %v10203_v45  ;;  %v10148_v45 = vunpack.i.l.bf16 %v15462_v43  ;;  %v10273_v60 = vunpack.i.l.bf16 %v15764_v55 }
 0xdc3   : > { %6571 = vmatpush.msrb.mxu0 %v6527_v16  ;;  %6591 = vmatpush.msrb.mxu1 %v6528_v50  ;;  %v10264_v16 = vunpack.i.h.bf16 %v15726_v34  ;;  %v10263_v50 = vunpack.i.l.bf16 %v15726_v34  ;;  %v10308_v55 = vunpack.i.l.bf16 %v15805_v62 }
 0xdc4   : > { %6637 = vmatpush.msrb.mxu3 %v15507_v6  ;;  %v10149_v6 = vunpack.i.h.bf16 %v15462_v43  ;;  %v6516_v43 = vsel %vm1343_vm11, %v10163_v42, %v10164_v26  ;;  %v10244_v42 = vunpack.i.h.bf16 %v15728_v46  ;;  %v6503_v26 = vsel %vm1343_vm11, %v10123_v59, %v10124_v25 }
 0xdc5   : > { %7291 = vmatmul.msk.f32.vlgmr.msrb.gmra.mxu3 %vm441_vm7, %v15761_v8  ;;  %10366 = vrot.lane.b32.xlu2 %v16347_v33, %s10401_s13  ;;  %v6724_v52 = vsel %vm1559_vm12, %v10259_v38, %v10273_v60 }
 0xdc6   : > { %6846 = vmatpush.msra.mxu3 %v6745_v22  ;;  %6572 = vmatpush.msrb.mxu0 %v6523_v41  ;;  %v6511_v48 = vsel %vm1343_vm11, %v10148_v45, %v10149_v6  ;;  %v6742_v61 = vsel %vm1559_vm12, %v10258_v30, %v10244_v42  ;;  %v6743_v5 = vsel %vm1559_vm12, %v10244_v42, %v10214_v1  ;;  %v10248_v1 = vunpack.i.l.bf16 %v15708_v47 }
 0xdc7   : > { %6592 = vmatpush.msrb.mxu1 %v6524_v51  ;;  %v15812_v63 = vpop.permute.xlu2 %10206  ;;  %v10279_v22 = vunpack.i.h.bf16 %v15740_v24  ;;  %v10278_v41 = vunpack.i.l.bf16 %v15740_v24  ;;  %v15902_v24 = vld [vmem:[%s16005_s2 + $0xd0] sm:$0xff]  ;;  %v10293_v30 = vunpack.i.l.bf16 %v15781_v44  ;;  %v10323_v44 = vunpack.i.l.bf16 %v15848_v4 }
 0xdc8   : > { %v15815_v33 = vpop.permute.xlu0 %10301  ;;  %6573 = vmatpush.msrb.mxu0 %v6519_v36 }
 0xdc9   : > { %6593 = vmatpush.msrb.mxu1 %v6520_v40  ;;  %v15876_v37 = vpop.permute.xlu1 %6658  ;;  %v6730_v62 = vsel %vm1559_vm12, %v10309_v57, %v10293_v30 }
 0xdca   : > { %6574 = vmatpush.msrb.mxu0 %v15578_v2  ;;  %v6512_v2 = vsel %vm1343_vm11, %v10149_v6, %v10153_v21  ;;  %v10229_v21 = vunpack.i.h.bf16 %v15717_v28 }
 0xdcb   : > { %6594 = vmatpush.msrb.mxu1 %v6516_v43  ;;  %v6959_v43 = vsel %vm1775_vm13, %v10263_v50, %v10264_v16 }
 0xdcc   : > { %6575 = vmatpush.msrb.mxu0 %v6511_v48  ;;  %v6736_v20 = vsel %vm1559_vm12, %v10229_v21, %v10233_v14 }
 0xdcd   : > { %6595 = vmatpush.msrb.mxu1 %v6512_v2  ;;  %v10289_v2 = vunpack.i.h.bf16 %v15787_v7 }
 0xdce   : > { %6576 = vmatpush.msrb.mxu0 %v6507_v23  ;;  %v10324_v23 = vunpack.i.h.bf16 %v15848_v4 }
 0xdcf   : > { %6596 = vmatpush.msrb.mxu1 %v6508_v49  ;;  %v15840_v53 = vpop.permute.xlu2 %10221  ;;  %v6734_v49 = vsel %vm1559_vm12, %v10294_v27, %v10278_v41 }
 0xdd0   : > { %v15850_v12 = vpop.permute.xlu0 %10316  ;;  %v10224_v39 = vunpack.i.h.bf16 %v15840_v53  ;;  %v10223_v31 = vunpack.i.l.bf16 %v15840_v53  ;;  %6577 = vmatpush.msrb.mxu0 %v6503_v26  ;;  %v6735_v53 = vsel %vm1559_vm12, %v10278_v41, %v10229_v21  ;;  %v6727_v21 = vsel %vm1559_vm12, %v10308_v55, %v10248_v1 }
 0xdd1   : > { %6597 = vmatpush.msrb.mxu1 %v6504_v19  ;;  %7288 = vmatmul.msk.f32.vlgmr.msrb.gmra.mxu0 %vm441_vm7, %v15761_v8  ;;  %v15912_v42 = vpop.permute.xlu1 %10346  ;;  %v6726_v4 = vsel %vm1559_vm12, %v10324_v23, %v10308_v55  ;;  %v10318_v13 = vunpack.i.l.bf16 %v15850_v12 }
 0xdd2   : > { %7289 = vmatmul.msk.f32.vlgmr.msrb.gmra.mxu1 %vm441_vm7, %v15761_v8  ;;  %6786 = vmatpush.msra.mxu0 %v6742_v61  ;;  %v6740_v9 = vsel %vm1559_vm12, %v10223_v31, %v10224_v39  ;;  %v6741_v17 = vsel %vm1559_vm12, %v10224_v39, %v10228_v56  ;;  %v10249_v8 = vunpack.i.h.bf16 %v15708_v47  ;;  %v10288_v47 = vunpack.i.l.bf16 %v15787_v7 }
 0xdd3   : > { %6806 = vmatpush.msra.mxu1 %v6743_v5  ;;  %6827 = vmatpush.msra.mxu2 %v6740_v9  ;;  %v6725_v7 = vsel %vm1559_vm12, %v10273_v60, %v10274_v15  ;;  %v10209_v56 = vunpack.i.h.bf16 %v15812_v63  ;;  %v10208_v39 = vunpack.i.l.bf16 %v15812_v63  ;;  %v6722_v5 = vsel %vm1559_vm12, %v15876_v37, %v10323_v44 }
 0xdd4   : > { %6847 = vmatpush.msra.mxu3 %v6741_v17  ;;  %v6728_v46 = vsel %vm1559_vm12, %v10248_v1, %v10249_v8  ;;  %v6720_v40 = vsel %vm1559_vm12, %v10213_v11, %v10288_v47  ;;  %v6721_v28 = vsel %vm1559_vm12, %v10288_v47, %v10289_v2  ;;  %v6723_v9 = vsel %vm1559_vm12, %v10323_v44, %v10259_v38 }
 0xdd5   : > { %6828 = vmatpush.msra.mxu2 %v6736_v20  ;;  %v10319_v15 = vunpack.i.h.bf16 %v15850_v12 }
 0xdd6   : > { %6848 = vmatpush.msra.mxu3 %v6737_v18  ;;  %v6718_v18 = vsel %vm1559_vm12, %v10208_v39, %v10209_v56  ;;  %v7297_v39 = vld [vmem:[%s16005_s2 + $0xd8] sm:$0xff] }
 0xdd7   : > { %v10237_v10 = vpop.permute.xlu2 %10236 }
 0xdd8   : > { %v15873_v29 = vpop.permute.xlu0 %10331  ;;  %v10239_v32 = vunpack.i.h.bf16 %v10237_v10  ;;  %v10238_v0 = vunpack.i.l.bf16 %v10237_v10  ;;  %v10348_v10 = vunpack.i.l.bf16 %v15912_v42 }
 0xdd9   : > { %v10334_v14 = vunpack.i.h.bf16 %v15873_v29  ;;  %v10333_v63 = vunpack.i.l.bf16 %v15873_v29  ;;  %v6958_v29 = vsel %vm1775_vm13, %v10318_v13, %v10263_v50 }
 0xdda   : > { %v6732_v3 = vsel %vm1559_vm12, %v10238_v0, %v10239_v32  ;;  %v6733_v58 = vsel %vm1559_vm12, %v10239_v32, %v10243_v35  ;;  %v6731_v26 = vsel %vm1559_vm12, %v10293_v30, %v10238_v0  ;;  %v15947_v32 = vpop.permute.xlu1 %10361 }
 0xddb   : > { %6829 = vmatpush.msra.mxu2 %v6732_v3  ;;  %6849 = vmatpush.msra.mxu3 %v6733_v58  ;;  %v6957_v35 = vsel %vm1775_vm13, %v10334_v14, %v10318_v13  ;;  %v6953_v37 = vsel %vm1775_vm13, %v10348_v10, %v10333_v63  ;;  %v10364_v38 = vunpack.i.h.bf16 %v15947_v32  ;;  %v10363_v27 = vunpack.i.l.bf16 %v15947_v32  ;;  %v5665_v10 = vpop.f32.mrf.mxu2 }
 0xddd   : > { %6830 = vmatpush.msra.mxu2 %v6728_v46 }
 0xddf   : > { %v10252_v51 = vpop.permute.xlu2 %10251  ;;  %6831 = vmatpush.msra.mxu2 %v6724_v52  ;;  %v10303_v52 = vunpack.i.l.bf16 %v15815_v33 }
 0xde0   : > { %v15890_v6 = vpop.permute.xlu0 %10341  ;;  %v10254_v45 = vunpack.i.h.bf16 %v10252_v51  ;;  %v10253_v36 = vunpack.i.l.bf16 %v10252_v51  ;;  %v10304_v51 = vunpack.i.h.bf16 %v15815_v33 }
 0xde1   : > { %6832 = vmatpush.msra.mxu2 %v6720_v40  ;;  %v10344_v0 = vunpack.i.h.bf16 %v15890_v6 }
 0xde2   : > { %v6738_v25 = vsel %vm1559_vm12, %v10279_v22, %v10254_v45  ;;  %v6739_v59 = vsel %vm1559_vm12, %v10254_v45, %v10223_v31  ;;  %v6729_v48 = vsel %vm1559_vm12, %v10249_v8, %v10253_v36  ;;  %7295 = vmatmul.msk.f32.vlgmr.msra.gmra.mxu2 %vm441_vm7, %v15902_v24  ;;  %v6719_v8 = vsel %vm1559_vm12, %v10209_v56, %v10213_v11 }
 0xde3   : > { %7041 = vmatpush.msrb.mxu2 %v6959_v43  ;;  %6787 = vmatpush.msra.mxu0 %v6738_v25 }
 0xde4   : > { %6807 = vmatpush.msra.mxu1 %v6739_v59  ;;  %6850 = vmatpush.msra.mxu3 %v6729_v48 }
 0xde5   : > { %6788 = vmatpush.msra.mxu0 %v6734_v49 }
 0xde6   : > { %6808 = vmatpush.msra.mxu1 %v6735_v53  ;;  %6851 = vmatpush.msra.mxu3 %v6725_v7  ;;  %v10343_v53 = vunpack.i.l.bf16 %v15890_v6 }
 0xde7   : > { %v10267_v19 = vpop.permute.xlu2 %10266  ;;  %6789 = vmatpush.msra.mxu0 %v6730_v62 }
 0xde8   : > { %6809 = vmatpush.msra.mxu1 %v6731_v26  ;;  %v10268_v31 = vunpack.i.l.bf16 %v10267_v19  ;;  %6852 = vmatpush.msra.mxu3 %v6721_v28  ;;  %v10357_v61 = vpop.permute.xlu0 %10356  ;;  %v10269_v20 = vunpack.i.h.bf16 %v10267_v19  ;;  %v10349_v28 = vunpack.i.h.bf16 %v15912_v42 }
 0xde9   : > { %6790 = vmatpush.msra.mxu0 %v6726_v4  ;;  %7296 = vmatmul.msk.f32.vlgmr.msra.gmra.mxu3 %vm441_vm7, %v15902_v24  ;;  %v10359_v1 = vunpack.i.h.bf16 %v10357_v61  ;;  %v10358_v54 = vunpack.i.l.bf16 %v10357_v61 }
 0xdea   : > { %6810 = vmatpush.msra.mxu1 %v6727_v21  ;;  %v6960_v17 = vsel %vm1775_vm13, %v10264_v16, %v10268_v31  ;;  %v6954_v3 = vsel %vm1775_vm13, %v10333_v63, %v10269_v20 }
 0xdeb   : > { %6791 = vmatpush.msra.mxu0 %v6722_v5  ;;  %7061 = vmatpush.msrb.mxu3 %v6960_v17  ;;  %v6949_v47 = vsel %vm1775_vm13, %v10359_v1, %v10344_v0  ;;  %v6945_v50 = vsel %vm1775_vm13, %v10364_v38, %v10358_v54  ;;  %v6946_v43 = vsel %vm1775_vm13, %v10358_v54, %v10304_v51  ;;  %v5685_v1 = vpop.f32.mrf.mxu3 }
 0xdec   : > { %6811 = vmatpush.msra.mxu1 %v6723_v9 }
 0xded   : > { %6792 = vmatpush.msra.mxu0 %v6718_v18  ;;  %v6864_v18 = vpop.permute.xlu1 %6863 }
 0xdee   : > { %6812 = vmatpush.msra.mxu1 %v6719_v8  ;;  %7293 = vmatmul.msk.f32.vlgmr.msra.gmra.mxu0 %vm441_vm7, %v15902_v24 }
 0xdef   : > { %7001 = vmatpush.msrb.mxu0 %v6957_v35  ;;  %v10282_v60 = vpop.permute.xlu2 %10281  ;;  %7294 = vmatmul.msk.f32.vlgmr.msra.gmra.mxu1 %vm441_vm7, %v15902_v24  ;;  %v6942_v24 = vsel %vm1775_vm13, %v10363_v27, %v10319_v15  ;;  %v5645_v35 = vpop.f32.mrf.mxu1 }
 0xdf0   : > { %7021 = vmatpush.msrb.mxu1 %v6958_v29  ;;  %v10284_v34 = vunpack.i.h.bf16 %v10282_v60  ;;  %v10283_v58 = vunpack.i.l.bf16 %v10282_v60  ;;  %v10372_v4 = vpop.permute.xlu0 %10371  ;;  %v5625_v29 = vpop.f32.mrf.mxu0 }
 0xdf1   : > { %7002 = vmatpush.msrb.mxu0 %v6953_v37  ;;  %v10373_v14 = vunpack.i.l.bf16 %v10372_v4  ;;  %v10374_v5 = vunpack.i.h.bf16 %v10372_v4 }
 0xdf2   : > { %7022 = vmatpush.msrb.mxu1 %v6954_v3  ;;  %v6955_v46 = vsel %vm1775_vm13, %v10269_v20, %v10283_v58  ;;  %v6956_v16 = vsel %vm1775_vm13, %v10283_v58, %v10284_v34 }
 0xdf3   : > { %7003 = vmatpush.msrb.mxu0 %v6949_v47  ;;  %7042 = vmatpush.msrb.mxu2 %v6955_v46  ;;  %v6934_v20 = vsel %vm1775_vm13, %v10373_v14, %v10349_v28  ;;  %v6933_v8 = vsel %vm1775_vm13, %v6864_v18, %v10373_v14  ;;  %v5902_v32 = vpop.f32.mrf.mxu3  ;;  %v7094_v14 = vlaneseq }
 0xdf4   : > { %7062 = vmatpush.msrb.mxu3 %v6956_v16 }
 0xdf5   : > { %7004 = vmatpush.msrb.mxu0 %v6945_v50  ;;  %vm7096_vm1 = vcmp.lt.s32.totalorder %v7094_v14, 512 }
 0xdf7   : > { %v10297_v11 = vpop.permute.xlu2 %10296  ;;  %v5862_v54 = vpop.f32.mrf.mxu1 }
 0xdf8   : > { %v10299_v22 = vunpack.i.h.bf16 %v10297_v11  ;;  %v10298_v41 = vunpack.i.l.bf16 %v10297_v11  ;;  %v5842_v60 = vpop.f32.mrf.mxu0 }
 0xdfa   : > { %v6950_v45 = vsel %vm1775_vm13, %v10344_v0, %v10298_v41  ;;  %v6951_v36 = vsel %vm1775_vm13, %v10298_v41, %v10299_v22  ;;  %v6952_v40 = vsel %vm1775_vm13, %v10299_v22, %v10303_v52  ;;  %v5882_v0 = vpop.f32.mrf.mxu2 }
 0xdfb   : > { %7023 = vmatpush.msrb.mxu1 %v6950_v45  ;;  %7043 = vmatpush.msrb.mxu2 %v6951_v36 }
 0xdfc   : > { %7063 = vmatpush.msrb.mxu3 %v6952_v40  ;;  %v6210_v3 = vpop.f32.mrf.mxu3 }
 0xdfd   : > { %7024 = vmatpush.msrb.mxu1 %v6946_v43 }
 0xdff   : > { %v10312_v57 = vpop.permute.xlu2 %10311  ;;  %7025 = vmatpush.msrb.mxu1 %v6942_v24  ;;  %v6170_v34 = vpop.f32.mrf.mxu1 }
 0xe00   : > { %v10314_v33 = vunpack.i.h.bf16 %v10312_v57  ;;  %v10313_v25 = vunpack.i.l.bf16 %v10312_v57  ;;  %v6150_v58 = vpop.f32.mrf.mxu0 }
 0xe02   : > { %v6947_v59 = vsel %vm1775_vm13, %v10304_v51, %v10313_v25  ;;  %v6948_v48 = vsel %vm1775_vm13, %v10313_v25, %v10314_v33  ;;  %v6190_v37 = vpop.f32.mrf.mxu2 }
 0xe03   : > { %7044 = vmatpush.msrb.mxu2 %v6947_v59  ;;  %7064 = vmatpush.msrb.mxu3 %v6948_v48 }
 0xe07   : > { %v10327_v55 = vpop.permute.xlu2 %10326 }
 0xe08   : > { %v10329_v2 = vunpack.i.h.bf16 %v10327_v55  ;;  %v10328_v30 = vunpack.i.l.bf16 %v10327_v55 }
 0xe0a   : > { %v6943_v12 = vsel %vm1775_vm13, %v10319_v15, %v10328_v30  ;;  %v6944_v23 = vsel %vm1775_vm13, %v10328_v30, %v10329_v2 }
 0xe0b   : > { %7045 = vmatpush.msrb.mxu2 %v6943_v12  ;;  %7065 = vmatpush.msrb.mxu3 %v6944_v23 }
 0xe0f   : > { %v10337_v49 = vpop.permute.xlu2 %10336 }
 0xe10   : > { %v10339_v7 = vunpack.i.h.bf16 %v10337_v49  ;;  %v10338_v44 = vunpack.i.l.bf16 %v10337_v49 }
 0xe12   : > { %v6939_v62 = vsel %vm1775_vm13, %v10338_v44, %v10339_v7  ;;  %v6940_v26 = vsel %vm1775_vm13, %v10339_v7, %v10343_v53 }
 0xe13   : > { %7046 = vmatpush.msrb.mxu2 %v6939_v62  ;;  %7066 = vmatpush.msrb.mxu3 %v6940_v26 }
 0xe14   : > { %v6379_v46 = vpop.f32.mrf.mxu1 }
 0xe15   : > { %v6380_v30 = vadd.f32 %v6379_v46, %v6170_v34 }
 0xe17   : > { %v10352_v19 = vpop.permute.xlu2 %10351  ;;  %v6399_v38 = vpop.f32.mrf.mxu2 }
 0xe18   : > { %v10354_v21 = vunpack.i.h.bf16 %v10352_v19  ;;  %v10353_v56 = vunpack.i.l.bf16 %v10352_v19  ;;  %v6400_v24 = vadd.f32 %v6399_v38, %v6190_v37 }
 0xe1a   : > { %v6935_v31 = vsel %vm1775_vm13, %v10349_v28, %v10353_v56  ;;  %v6936_v6 = vsel %vm1775_vm13, %v10353_v56, %v10354_v21 }
 0xe1b   : > { %7047 = vmatpush.msrb.mxu2 %v6935_v31  ;;  %7067 = vmatpush.msrb.mxu3 %v6936_v6 }
 0xe1c   : > { %7300 = vmatmul.msk.f32.vlgmr.msrb.gmra.mxu2 %vm441_vm7, %v7297_v39  ;;  %7301 = vmatmul.msk.f32.vlgmr.msrb.gmra.mxu3 %vm441_vm7, %v7297_v39 }
 0xe1e   : > { %v6359_v16 = vpop.f32.mrf.mxu0 }
 0xe1f   : > { %v10367_v13 = vpop.permute.xlu2 %10366  ;;  %v6360_v62 = vadd.f32 %v6359_v16, %v6150_v58 }
 0xe20   : > { %v10369_v42 = vunpack.i.h.bf16 %v10367_v13  ;;  %v10368_v61 = vunpack.i.l.bf16 %v10367_v13 }
 0xe22   : > { %v6941_v9 = vsel %vm1775_vm13, %v10369_v42, %v10363_v27  ;;  %v6938_v17 = vsel %vm1775_vm13, %v10368_v61, %v10338_v44  ;;  %v6937_v63 = vsel %vm1775_vm13, %v10374_v5, %v10368_v61  ;;  %v6419_v47 = vpop.f32.mrf.mxu3  ;;  %v16376_v27 = vld [vmem:[#allocation31_spill] sm:$0xff] }
 0xe23   : > { %7005 = vmatpush.msrb.mxu0 %v6941_v9  ;;  %7026 = vmatpush.msrb.mxu1 %v6938_v17  ;;  %v5690_v45 = vadd.f32 %v5665_v10, %v16376_v27  ;;  %v5691_v36 = vadd.f32 %v5685_v1, %v16376_v27  ;;  %v6420_v57 = vadd.f32 %v6419_v47, %v6210_v3 }
 0xe24   : > { %v5689_v33 = vadd.f32 %v5645_v35, %v16376_v27  ;;  %v5688_v55 = vadd.f32 %v5625_v29, %v16376_v27 }
 0xe25   : > { %7006 = vmatpush.msrb.mxu0 %v6937_v63  ;;  %7027 = vmatpush.msrb.mxu1 %v6934_v20  ;;  %v5908_v15 = vadd.f32 %v5902_v32, %v5691_v36  ;;  %v5907_v43 = vadd.f32 %v5882_v0, %v5690_v45 }
 0xe26   : > { %7299 = vmatmul.msk.f32.vlgmr.msrb.gmra.mxu1 %vm441_vm7, %v7297_v39  ;;  %v5906_v2 = vadd.f32 %v5862_v54, %v5689_v33  ;;  %v5905_v26 = vadd.f32 %v5842_v60, %v5688_v55 }
 0xe27   : > { %7007 = vmatpush.msrb.mxu0 %v6933_v8 }
 0xe28   : > { %7298 = vmatmul.msk.f32.vlgmr.msrb.gmra.mxu0 %vm441_vm7, %v7297_v39 }
 0xe3d   : > { %v6619_v50 = vpop.f32.mrf.mxu2 }
 0xe3e   : > { %v6644_v59 = vadd.f32 %v6619_v50, %v5907_v43 }
 0xe48   : > { %v6639_v11 = vpop.f32.mrf.mxu3 }
 0xe49   : > { %v6645_v48 = vadd.f32 %v6639_v11, %v5908_v15 }
 0xe4e   : > { %v6579_v22 = vpop.f32.mrf.mxu0 }
 0xe4f   : > { %v6599_v52 = vpop.f32.mrf.mxu1  ;;  %v6642_v39 = vadd.f32 %v6579_v22, %v5905_v26 }
 0xe50   : > { %v6643_v19 = vadd.f32 %v6599_v52, %v5906_v2 }
 0xe65   : > { %v6834_v41 = vpop.f32.mrf.mxu2 }
 0xe66   : > { %v6859_v49 = vadd.f32 %v6834_v41, %v6400_v24 }
 0xe6b   : > { %v6794_v25 = vpop.f32.mrf.mxu0 }
 0xe6c   : > { %v6854_v51 = vpop.f32.mrf.mxu3  ;;  %v6814_v40 = vpop.f32.mrf.mxu1  ;;  %v6857_v4 = vadd.f32 %v6794_v25, %v6360_v62 }
 0xe6d   : > { %v6860_v53 = vadd.f32 %v6854_v51, %v6420_v57  ;;  %v6858_v31 = vadd.f32 %v6814_v40, %v6380_v30 }
 0xe9f   : > { %v7049_v12 = vpop.f32.mrf.mxu2  ;;  %v7069_v23 = vpop.f32.mrf.mxu3 }
 0xea0   : > { %v7074_v7 = vadd.f32 %v7049_v12, %v6644_v59  ;;  %v7075_v44 = vadd.f32 %v7069_v23, %v6645_v48 }
 0xea2   : > { %v7078_v28 = vadd.f32 %v7074_v7, %v6859_v49  ;;  %v7079_v21 = vadd.f32 %v7075_v44, %v6860_v53 }
 0xea3   : > { %v7029_v56 = vpop.f32.mrf.mxu1 }
 0xea4   : > { %v7073_v6 = vadd.f32 %v7029_v56, %v6643_v19  ;;  %v7085_v42 = vrot.slane %v7078_v28, 6  ;;  %v7086_v61 = vrot.slane %v7079_v21, 5 }
 0xea5   : > { %v7009_v13 = vpop.f32.mrf.mxu0 }
 0xea6   : > { %v7077_v5 = vadd.f32 %v7073_v6, %v6858_v31  ;;  %v7072_v9 = vadd.f32 %v7009_v13, %v6642_v39  ;;  %v7090_v20 = vsel %vm7089_vm14, %v7085_v42, %v7086_v61 }
 0xea8   : > { %v7084_v17 = vrot.slane %v7077_v5, 7  ;;  %v7076_v63 = vadd.f32 %v7072_v9, %v6857_v4 }
 0xeaa   : > { %v7088_v18 = vsel %vm7087_vm15, %v7076_v63, %v7084_v17 }
 0xeab   : > { %v7092_v8 = vsel %vm7091_vm0, %v7088_v18, %v7090_v20 }
 0xeac   : > { %7098 = vst.msk [vmem:[%s195_s22] sm:$0xf] %vm7096_vm1, %v7092_v8 }
 0xead PF: > { %s14_s15 = sadd.s32 1, %s10385_s15  }
 0xeae   : > { %p11_p4 = scmp.ge.s32.totalorder %s14_s15, 4  }
 0xeb0   :  { %13 = sbr.rel (!%p11_p4) target bundleno = 1 (0x1), region = 96 }

</bundles_post_ra>
